<compile_context>
chip_gen: v6e
topology: v6e:2x2x1
jax: 0.10.0
libtpu: 0.0.40
codegen_flags: <defaults>
</compile_context>

<pallas_src>
import jax
import jax.numpy as jnp
import numpy as np
from jax.experimental import pallas as pl
from jax.experimental.pallas import tpu as pltpu

LANE = 128  # lane width for the padded head / score slabs (must equal D here)


def _ln(x, g, b, eps=1e-5):
    """LayerNorm over the last axis (biased variance, like torch), f32."""
    m = jnp.mean(x, axis=-1, keepdims=True)
    c = x - m
    v = jnp.mean(c * c, axis=-1, keepdims=True)
    return c * jax.lax.rsqrt(v + eps) * g + b


# ----------------------------------------------------------------------------
# Fused kernel: indicator add + 6 TransformerEncoderLayers + LN + proj + LSM
# ----------------------------------------------------------------------------

def fused_alignment_kernel(x_ref, mask_ref, consts_ref, gvecs_ref,
                           wqkv_ref, wo_ref, w1_ref, w2_ref,
                           vecs_ref, b1_ref, o_ref):
    S, Tb, D = x_ref.shape          # S = torch "seq" axis (= batch B), Tb = token block
    n_layers = wqkv_ref.shape[0]
    rows = S * Tb

    hsum = consts_ref[0]            # (D, LANE) bf16, 1/sqrt(hd) folded in
    hbc = consts_ref[1]             # (LANE, D) bf16 head-broadcast
    wproj = consts_ref[2]           # (D, LANE) bf16 padded Linear(D->2)

    # ---- indicator add (word rows only, via mask) ; flatten to (rows, D)
    ind = gvecs_ref[0:1, :]                                   # (1, D)
    x = (x_ref[...] + mask_ref[...] * ind).reshape(rows, D)   # f32

    for l in range(n_layers):
        vec = vecs_ref[l]           # (9, D): bq bk bv bo ln1g ln1b b2 ln2g ln2b

        # ---- fused QKV projection (bf16 MXU, f32 accumulation)
        qkv = jnp.dot(x.astype(jnp.bfloat16), wqkv_ref[l],
                      preferred_element_type=jnp.float32)     # (rows, 3D)
        q = qkv[:, 0 * D:1 * D] + vec[0:1, :]
        k = qkv[:, 1 * D:2 * D] + vec[1:2, :]
        v = qkv[:, 2 * D:3 * D] + vec[2:3, :]

        # ---- multi-head self-attention over the length-S axis, lane-dense.
        # scores[sq,sk,t,h] = sum_{head-h lanes} q[sq,t]*k[sk,t] / sqrt(hd):
        # one broadcast VPU multiply + ONE block-diagonal matmul for ALL pairs.
        e = (q.reshape(S, 1, Tb, D) * k.reshape(1, S, Tb, D)).astype(jnp.bfloat16)
        sc = jnp.dot(e.reshape(S * S * Tb, D), hsum,
                     preferred_element_type=jnp.float32).reshape(S, S, Tb, LANE)

        # softmax over the sk axis (axis 1); unrolled -- S is tiny.
        # TODO(synk): for large S convert to a streaming online softmax
        # (lax.fori_loop) so live vregs stay bounded.
        m = sc[:, 0]
        for sk in range(1, S):
            m = jnp.maximum(m, sc[:, sk])
        p = jnp.exp(sc - m[:, None])
        den = p[:, 0]
        for sk in range(1, S):
            den = den + p[:, sk]
        pn = p * pl.reciprocal(den, approx=True)[:, None]      # EUP slot

        # ONE matmul broadcasts per-head probabilities back to their D lanes;
        # zero rows of hbc annihilate the padded (>= H) score lanes.
        pb = jnp.dot(pn.reshape(S * S * Tb, LANE).astype(jnp.bfloat16), hbc,
                     preferred_element_type=jnp.float32).reshape(S, S, Tb, D)
        v3 = v.reshape(S, Tb, D)
        ctx = pb[:, 0] * v3[0]
        for sk in range(1, S):
            ctx = ctx + pb[:, sk] * v3[sk]
        attn = ctx.reshape(rows, D)                            # no concatenate

        # ---- out-proj + residual + LN1 + FFN(ReLU) + residual + LN2 (post-norm)
        h = x + jnp.dot(attn.astype(jnp.bfloat16), wo_ref[l],
                        preferred_element_type=jnp.float32) + vec[3:4, :]
        h = _ln(h, vec[4:5, :], vec[5:6, :])
        f = jnp.maximum(
            jnp.dot(h.astype(jnp.bfloat16), w1_ref[l],
                    preferred_element_type=jnp.float32) + b1_ref[l], 0.0)
        f = jnp.dot(f.astype(jnp.bfloat16), w2_ref[l],
                    preferred_element_type=jnp.float32) + vec[6:7, :]
        x = _ln(h + f, vec[7:8, :], vec[8:9, :])

    # ---- final LayerNorm + padded Linear(D->2) + LogSoftmax (lane-dense).
    # Columns >= 2 carry bias -1e30 (zero weights): they vanish from the
    # softmax and are sliced off in JAX.
    hN = _ln(x, gvecs_ref[1:2, :], gvecs_ref[2:3, :])
    logits = jnp.dot(hN.astype(jnp.bfloat16), wproj,
                     preferred_element_type=jnp.float32) + gvecs_ref[3:4, :]
    z = logits - jnp.max(logits, axis=-1, keepdims=True)
    out = z - jnp.log(jnp.sum(jnp.exp(z), axis=-1, keepdims=True))
    o_ref[...] = out.reshape(S, Tb, LANE)


# ----------------------------------------------------------------------------
# Parameter setup (deterministic, synthetic, packed per-layer weights)
# ----------------------------------------------------------------------------

def init_params(key, D, H, FFN, n_layers):
    assert D == LANE, "this toy packing assumes bert_feature_dim == 128"
    scale = 0.02
    ks = jax.random.split(key, 6)
    wdt = jnp.bfloat16                 # matmul weights bf16, f32 accumulation

    indicator = jax.random.uniform(ks[0], (D,), jnp.float32)  # torch.rand
    w_qkv = (scale * jax.random.normal(ks[1], (n_layers, D, 3 * D),
                                       jnp.float32)).astype(wdt)
    w_o = (scale * jax.random.normal(ks[2], (n_layers, D, D),
                                     jnp.float32)).astype(wdt)
    w1 = (scale * jax.random.normal(ks[3], (n_layers, D, FFN),
                                    jnp.float32)).astype(wdt)
    w2 = (scale * jax.random.normal(ks[4], (n_layers, FFN, D),
                                    jnp.float32)).astype(wdt)
    b1 = jnp.zeros((n_layers, 1, FFN), jnp.float32)

    # Packed per-layer vectors: [bq, bk, bv, b_o, ln1_g, ln1_b, b2, ln2_g, ln2_b]
    vecs = jnp.zeros((n_layers, 9, D), jnp.float32)
    vecs = vecs.at[:, 4, :].set(1.0).at[:, 7, :].set(1.0)     # LN gains = 1

    # Packed global vectors: [indicator, norm_g, norm_b, b_proj_pad]
    b_proj_pad = jnp.full((D,), -1e30, jnp.float32).at[:2].set(0.0)
    gvecs = jnp.stack([indicator,
                       jnp.ones((D,), jnp.float32),
                       jnp.zeros((D,), jnp.float32),
                       b_proj_pad], axis=0)

    # bf16 constants: scaled block-diag head-sum, head-broadcast, padded proj.
    hd = D // H
    hsum = np.zeros((D, LANE), np.float32)
    hbc = np.zeros((LANE, D), np.float32)
    for h in range(H):
        hsum[h * hd:(h + 1) * hd, h] = 1.0 / np.sqrt(hd)      # scale folded in
        hbc[h, h * hd:(h + 1) * hd] = 1.0
    w_proj = scale * jax.random.normal(ks[5], (D, 2), jnp.float32)
    w_proj_pad = jnp.zeros((D, LANE), jnp.float32).at[:, :2].set(w_proj)
    consts = jnp.stack([jnp.asarray(hsum), jnp.asarray(hbc), w_proj_pad],
                       axis=0).astype(jnp.bfloat16)           # (3, 128, 128)

    return dict(w_qkv=w_qkv, w_o=w_o, w1=w1, w2=w2, b1=b1,
                vecs=vecs, gvecs=gvecs, consts=consts)


# ----------------------------------------------------------------------------
# Forward pass: one pallas_call for the whole post-BERT model
# ----------------------------------------------------------------------------

def alignment_forward(bert_word_features, bert_sql_features, nl_mask, params,
                      block_t=None):
    B, Lw, D = bert_word_features.shape
    Ls = bert_sql_features.shape[1]
    Ntok = Lw + Ls
    S = B                              # torch batch_first=False: seq axis = B
    n_layers = params["w_qkv"].shape[0]
    FFN = params["w1"].shape[-1]
    assert D == LANE

    if block_t is None:
        block_t = Ntok                 # toy size: single grid step is optimal
    assert Ntok % block_t == 0 and block_t % 8 == 0

    # Wrapper-side layout plumbing: torch.cat((word, sql), dim=1) and the
    # indicator mask column (word rows get nl_mask, SQL rows get 0).
    x_in = jnp.concatenate([bert_word_features.astype(jnp.float32),
                            bert_sql_features.astype(jnp.float32)],
                           axis=1)                                  # (S, Ntok, D)
    ind_mask = jnp.concatenate([nl_mask.astype(jnp.float32)[..., None],
                                jnp.zeros((B, Ls, 1), jnp.float32)],
                               axis=1)                              # (S, Ntok, 1)

    inputs = (x_in, ind_mask, params["consts"], params["gvecs"],
              params["w_qkv"], params["w_o"], params["w1"], params["w2"],
              params["vecs"], params["b1"])

    def _resident(a):                  # weights: same block every grid step
        zeros = (0,) * a.ndim
        return pl.BlockSpec(a.shape, lambda t: zeros)

    in_specs = [
        pl.BlockSpec((S, block_t, D), lambda t: (0, t, 0)),
        pl.BlockSpec((S, block_t, 1), lambda t: (0, t, 0)),
    ] + [_resident(a) for a in inputs[2:]]
    out_specs = pl.BlockSpec((S, block_t, LANE), lambda t: (0, t, 0))

    # Advisory cost estimate for XLA scheduling around the custom call.
    rows = S * Ntok
    flops = n_layers * (2 * rows * D * 3 * D                 # QKV
                        + 2 * (S * S * Ntok) * D * LANE * 2  # score + broadcast
                        + 2 * rows * D * D                   # out-proj
                        + 4 * rows * D * FFN)                # FFN
    flops += 2 * rows * D * LANE                             # padded head proj
    transcend = n_layers * (S * S * Ntok * LANE + rows * LANE) + 2 * rows * LANE
    bytes_acc = sum(int(a.size) * a.dtype.itemsize for a in inputs) \
        + rows * LANE * 4

    out_pad = pl.pallas_call(
        fused_alignment_kernel,
        out_shape=jax.ShapeDtypeStruct((S, Ntok, LANE), jnp.float32),
        grid=(Ntok // block_t,),
        in_specs=in_specs,
        out_specs=out_specs,
        compiler_params=pltpu.CompilerParams(
            dimension_semantics=("parallel",),       # token blocks independent
            vmem_limit_bytes=32 * 1024 * 1024),
        cost_estimate=pl.CostEstimate(flops=flops, transcendentals=transcend,
                                      bytes_accessed=bytes_acc),
    )(*inputs)

    logits = out_pad[:, :, :2]                       # (B, Ntok, 2) log-probs
    all_sql_lengths = [Ls] * B                       # TODO(synk): from _bert_embed
    return logits, Lw, Ls, all_sql_lengths


# ----------------------------------------------------------------------------
# Pure-JAX f32 reference (same synthetic params) for a parity check
# ----------------------------------------------------------------------------

def alignment_reference(word, sql, nl_mask, params, H):
    B, Lw, D = word.shape
    Ls = sql.shape[1]
    S, Ntok = B, Lw + Ls
    hd = D // H
    n_layers = params["w_qkv"].shape[0]

    ind = params["gvecs"][0]
    x = jnp.concatenate([word + nl_mask[..., None] * ind, sql],
                        axis=1).astype(jnp.float32)           # (S, Ntok, D)
    for l in range(n_layers):
        wqkv = params["w_qkv"][l].astype(jnp.float32)
        vec = params["vecs"][l]
        q = (x @ wqkv[:, 0 * D:1 * D] + vec[0]).reshape(S, Ntok, H, hd)
        k = (x @ wqkv[:, 1 * D:2 * D] + vec[1]).reshape(S, Ntok, H, hd)
        v = (x @ wqkv[:, 2 * D:3 * D] + vec[2]).reshape(S, Ntok, H, hd)
        sc = jnp.einsum('qthd,kthd->thqk', q, k) / np.sqrt(hd)
        p = jax.nn.softmax(sc, axis=-1)
        ctx = jnp.einsum('thqk,kthd->qthd', p, v).reshape(S, Ntok, D)
        h = _ln(x + ctx @ params["w_o"][l].astype(jnp.float32) + vec[3],
                vec[4], vec[5])
        f = jax.nn.relu(h @ params["w1"][l].astype(jnp.float32)
                        + params["b1"][l, 0])
        f = f @ params["w2"][l].astype(jnp.float32) + vec[6]
        x = _ln(h + f, vec[7], vec[8])
    hN = _ln(x, params["gvecs"][1], params["gvecs"][2])
    logits = hN @ params["consts"][2].astype(jnp.float32)[:, :2] \
        + params["gvecs"][3][:2]
    return jax.nn.log_softmax(logits, axis=-1)


if __name__ == "__main__":
    B, Lw, Ls = 2, 8, 8
    D, H, FFN, N_LAYERS = 128, 8, 256, 6

    key = jax.random.PRNGKey(0)
    k_w, k_s, k_m, k_p = jax.random.split(key, 4)
    bert_word_features = jax.random.normal(k_w, (B, Lw, D), jnp.float32)
    bert_sql_features = jax.random.normal(k_s, (B, Ls, D), jnp.float32)
    # nl_indices -> binary mask over word positions
    nl_mask = (jax.random.uniform(k_m, (B, Lw)) > 0.5).astype(jnp.float32)

    params = init_params(k_p, D, H, FFN, N_LAYERS)

    logits, word_seq_len, sql_seq_len, all_sql_lengths = alignment_forward(
        bert_word_features, bert_sql_features, nl_mask, params)
    logits = jax.block_until_ready(logits)

    assert logits.shape == (B, Lw + Ls, 2)
    assert word_seq_len == Lw and sql_seq_len == Ls
    assert len(all_sql_lengths) == B
    # log-softmax rows must (exp-)sum to ~1 and be finite
    assert jnp.allclose(jnp.sum(jnp.exp(logits), axis=-1), 1.0, atol=1e-4)
    assert bool(jnp.all(jnp.isfinite(logits)))
    # parity vs. pure-JAX f32 reference (bf16 matmuls + approx reciprocal
    # introduce small deviations -> loose tolerance)
    ref = jax.block_until_ready(
        alignment_reference(bert_word_features, bert_sql_features, nl_mask,
                            params, H))
    assert float(jnp.max(jnp.abs(logits - ref))) < 5e-2
    print("KERNEL_OK")
</pallas_src>

<mosaic_0001>
module attributes {stable_mosaic.version = 11 : i64} {
  func.func @fused_alignment_kernel(%arg0: i32, %arg1: memref<2x16x128xf32, #tpu.memory_space<vmem>>, %arg2: memref<2x16x1xf32, #tpu.memory_space<vmem>>, %arg3: memref<3x128x128xbf16, #tpu.memory_space<vmem>>, %arg4: memref<4x128xf32, #tpu.memory_space<vmem>>, %arg5: memref<6x128x384xbf16, #tpu.memory_space<vmem>>, %arg6: memref<6x128x128xbf16, #tpu.memory_space<vmem>>, %arg7: memref<6x128x256xbf16, #tpu.memory_space<vmem>>, %arg8: memref<6x256x128xbf16, #tpu.memory_space<vmem>>, %arg9: memref<6x9x128xf32, #tpu.memory_space<vmem>>, %arg10: memref<6x1x256xf32, #tpu.memory_space<vmem>>, %arg11: memref<2x16x128xf32, #tpu.memory_space<vmem>>) attributes {dimension_semantics = [#tpu.dimension_semantics<parallel>], iteration_bounds = array<i64: 1>, scalar_prefetch = 0 : i64, scratch_operands = 0 : i64, tpu.core_type = #tpu.core_type<tc>, window_params = [{transform_indices = @transform_0, window_bounds = array<i64: 2, 16, 128>}, {transform_indices = @transform_1, window_bounds = array<i64: 2, 16, 1>}, {pipeline_mode = #tpu.pipeline_mode<synchronous>, transform_indices = @transform_2, window_bounds = array<i64: 3, 128, 128>}, {pipeline_mode = #tpu.pipeline_mode<synchronous>, transform_indices = @transform_3, window_bounds = array<i64: 4, 128>}, {pipeline_mode = #tpu.pipeline_mode<synchronous>, transform_indices = @transform_4, window_bounds = array<i64: 6, 128, 384>}, {pipeline_mode = #tpu.pipeline_mode<synchronous>, transform_indices = @transform_5, window_bounds = array<i64: 6, 128, 128>}, {pipeline_mode = #tpu.pipeline_mode<synchronous>, transform_indices = @transform_6, window_bounds = array<i64: 6, 128, 256>}, {pipeline_mode = #tpu.pipeline_mode<synchronous>, transform_indices = @transform_7, window_bounds = array<i64: 6, 256, 128>}, {pipeline_mode = #tpu.pipeline_mode<synchronous>, transform_indices = @transform_8, window_bounds = array<i64: 6, 9, 128>}, {pipeline_mode = #tpu.pipeline_mode<synchronous>, transform_indices = @transform_9, window_bounds = array<i64: 6, 1, 256>}, {transform_indices = @transform_10, window_bounds = array<i64: 2, 16, 128>}]} {
    %c0 = arith.constant 0 : index
    %c0_0 = arith.constant 0 : index
    %c0_1 = arith.constant 0 : index
    %0 = vector.load %arg3[%c0, %c0_0, %c0_1] : memref<3x128x128xbf16, #tpu.memory_space<vmem>>, vector<1x128x128xbf16>
    %1 = vector.shape_cast %0 : vector<1x128x128xbf16> to vector<128x128xbf16>
    %c1 = arith.constant 1 : index
    %c0_2 = arith.constant 0 : index
    %c0_3 = arith.constant 0 : index
    %2 = vector.load %arg3[%c1, %c0_2, %c0_3] : memref<3x128x128xbf16, #tpu.memory_space<vmem>>, vector<1x128x128xbf16>
    %3 = vector.shape_cast %2 : vector<1x128x128xbf16> to vector<128x128xbf16>
    %c2 = arith.constant 2 : index
    %c0_4 = arith.constant 0 : index
    %c0_5 = arith.constant 0 : index
    %4 = vector.load %arg3[%c2, %c0_4, %c0_5] : memref<3x128x128xbf16, #tpu.memory_space<vmem>>, vector<1x128x128xbf16>
    %5 = vector.shape_cast %4 : vector<1x128x128xbf16> to vector<128x128xbf16>
    %c0_6 = arith.constant 0 : index
    %c0_7 = arith.constant 0 : index
    %6 = vector.load %arg4[%c0_6, %c0_7] : memref<4x128xf32, #tpu.memory_space<vmem>>, vector<1x128xf32>
    %c0_8 = arith.constant 0 : index
    %c0_9 = arith.constant 0 : index
    %c0_10 = arith.constant 0 : index
    %7 = vector.load %arg1[%c0_8, %c0_9, %c0_10] : memref<2x16x128xf32, #tpu.memory_space<vmem>>, vector<2x16x128xf32>
    %c0_11 = arith.constant 0 : index
    %c0_12 = arith.constant 0 : index
    %c0_13 = arith.constant 0 : index
    %8 = vector.load %arg2[%c0_11, %c0_12, %c0_13] : memref<2x16x1xf32, #tpu.memory_space<vmem>>, vector<2x16x1xf32>
    %9 = vector.shape_cast %6 : vector<1x128xf32> to vector<1x1x128xf32>
    %10 = vector.broadcast %8 : vector<2x16x1xf32> to vector<2x16x128xf32>
    %11 = vector.broadcast %9 : vector<1x1x128xf32> to vector<2x16x128xf32>
    %12 = arith.mulf %10, %11 : vector<2x16x128xf32>
    %13 = arith.addf %7, %12 : vector<2x16x128xf32>
    %14 = vector.shape_cast %13 : vector<2x16x128xf32> to vector<32x128xf32>
    %c0_14 = arith.constant 0 : index
    %c0_15 = arith.constant 0 : index
    %c0_16 = arith.constant 0 : index
    %15 = vector.load %arg9[%c0_14, %c0_15, %c0_16] : memref<6x9x128xf32, #tpu.memory_space<vmem>>, vector<1x9x128xf32>
    %16 = vector.shape_cast %15 : vector<1x9x128xf32> to vector<9x128xf32>
    %17 = arith.truncf %14 : vector<32x128xf32> to vector<32x128xbf16>
    %c0_17 = arith.constant 0 : index
    %c0_18 = arith.constant 0 : index
    %c0_19 = arith.constant 0 : index
    %18 = vector.load %arg5[%c0_17, %c0_18, %c0_19] : memref<6x128x384xbf16, #tpu.memory_space<vmem>>, vector<1x128x384xbf16>
    %19 = vector.shape_cast %18 : vector<1x128x384xbf16> to vector<128x384xbf16>
    %cst = arith.constant dense<0.000000e+00> : vector<32x384xf32>
    %20 = tpu.matmul %17, %19, %cst {dimension_numbers = #tpu.dot_dimension_numbers<[1], [0], [0], [1], [0, 0, 1, 1], [], []>} : vector<32x128xbf16>, vector<128x384xbf16>, vector<32x384xf32> -> vector<32x384xf32>
    %21 = vector.extract_strided_slice %20 {offsets = [0, 0], sizes = [32, 128], strides = [1, 1]} : vector<32x384xf32> to vector<32x128xf32>
    %22 = vector.extract_strided_slice %16 {offsets = [0, 0], sizes = [1, 128], strides = [1, 1]} : vector<9x128xf32> to vector<1x128xf32>
    %23 = vector.broadcast %22 : vector<1x128xf32> to vector<32x128xf32>
    %24 = arith.addf %21, %23 : vector<32x128xf32>
    %25 = vector.extract_strided_slice %20 {offsets = [0, 128], sizes = [32, 128], strides = [1, 1]} : vector<32x384xf32> to vector<32x128xf32>
    %26 = vector.extract_strided_slice %16 {offsets = [1, 0], sizes = [1, 128], strides = [1, 1]} : vector<9x128xf32> to vector<1x128xf32>
    %27 = vector.broadcast %26 : vector<1x128xf32> to vector<32x128xf32>
    %28 = arith.addf %25, %27 : vector<32x128xf32>
    %29 = vector.extract_strided_slice %20 {offsets = [0, 256], sizes = [32, 128], strides = [1, 1]} : vector<32x384xf32> to vector<32x128xf32>
    %30 = vector.extract_strided_slice %16 {offsets = [2, 0], sizes = [1, 128], strides = [1, 1]} : vector<9x128xf32> to vector<1x128xf32>
    %31 = vector.broadcast %30 : vector<1x128xf32> to vector<32x128xf32>
    %32 = arith.addf %29, %31 : vector<32x128xf32>
    %33 = vector.shape_cast %24 : vector<32x128xf32> to vector<2x1x16x128xf32>
    %34 = vector.shape_cast %28 : vector<32x128xf32> to vector<1x2x16x128xf32>
    %35 = vector.broadcast %33 : vector<2x1x16x128xf32> to vector<2x2x16x128xf32>
    %36 = vector.broadcast %34 : vector<1x2x16x128xf32> to vector<2x2x16x128xf32>
    %37 = arith.mulf %35, %36 : vector<2x2x16x128xf32>
    %38 = arith.truncf %37 : vector<2x2x16x128xf32> to vector<2x2x16x128xbf16>
    %39 = vector.shape_cast %38 : vector<2x2x16x128xbf16> to vector<64x128xbf16>
    %cst_20 = arith.constant dense<0.000000e+00> : vector<64x128xf32>
    %40 = tpu.matmul %39, %1, %cst_20 {dimension_numbers = #tpu.dot_dimension_numbers<[1], [0], [0], [1], [0, 0, 1, 1], [], []>} : vector<64x128xbf16>, vector<128x128xbf16>, vector<64x128xf32> -> vector<64x128xf32>
    %41 = vector.shape_cast %40 : vector<64x128xf32> to vector<2x2x16x128xf32>
    %42 = vector.extract_strided_slice %41 {offsets = [0, 0, 0, 0], sizes = [2, 1, 16, 128], strides = [1, 1, 1, 1]} : vector<2x2x16x128xf32> to vector<2x1x16x128xf32>
    %43 = vector.shape_cast %42 : vector<2x1x16x128xf32> to vector<2x16x128xf32>
    %44 = vector.extract_strided_slice %41 {offsets = [0, 1, 0, 0], sizes = [2, 1, 16, 128], strides = [1, 1, 1, 1]} : vector<2x2x16x128xf32> to vector<2x1x16x128xf32>
    %45 = vector.shape_cast %44 : vector<2x1x16x128xf32> to vector<2x16x128xf32>
    %46 = arith.maximumf %43, %45 : vector<2x16x128xf32>
    %47 = vector.shape_cast %46 : vector<2x16x128xf32> to vector<2x1x16x128xf32>
    %48 = vector.broadcast %47 : vector<2x1x16x128xf32> to vector<2x2x16x128xf32>
    %49 = arith.subf %41, %48 : vector<2x2x16x128xf32>
    %50 = math.exp %49 : vector<2x2x16x128xf32>
    %51 = vector.extract_strided_slice %50 {offsets = [0, 0, 0, 0], sizes = [2, 1, 16, 128], strides = [1, 1, 1, 1]} : vector<2x2x16x128xf32> to vector<2x1x16x128xf32>
    %52 = vector.shape_cast %51 : vector<2x1x16x128xf32> to vector<2x16x128xf32>
    %53 = vector.extract_strided_slice %50 {offsets = [0, 1, 0, 0], sizes = [2, 1, 16, 128], strides = [1, 1, 1, 1]} : vector<2x2x16x128xf32> to vector<2x1x16x128xf32>
    %54 = vector.shape_cast %53 : vector<2x1x16x128xf32> to vector<2x16x128xf32>
    %55 = arith.addf %52, %54 : vector<2x16x128xf32>
    %56 = tpu.reciprocal %55 {approx = true} : vector<2x16x128xf32> -> vector<2x16x128xf32>
    %57 = vector.shape_cast %56 : vector<2x16x128xf32> to vector<2x1x16x128xf32>
    %58 = vector.broadcast %57 : vector<2x1x16x128xf32> to vector<2x2x16x128xf32>
    %59 = arith.mulf %50, %58 : vector<2x2x16x128xf32>
    %60 = vector.shape_cast %59 : vector<2x2x16x128xf32> to vector<64x128xf32>
    %61 = arith.truncf %60 : vector<64x128xf32> to vector<64x128xbf16>
    %cst_21 = arith.constant dense<0.000000e+00> : vector<64x128xf32>
    %62 = tpu.matmul %61, %3, %cst_21 {dimension_numbers = #tpu.dot_dimension_numbers<[1], [0], [0], [1], [0, 0, 1, 1], [], []>} : vector<64x128xbf16>, vector<128x128xbf16>, vector<64x128xf32> -> vector<64x128xf32>
    %63 = vector.shape_cast %62 : vector<64x128xf32> to vector<2x2x16x128xf32>
    %64 = vector.shape_cast %32 : vector<32x128xf32> to vector<2x16x128xf32>
    %65 = vector.extract_strided_slice %63 {offsets = [0, 0, 0, 0], sizes = [2, 1, 16, 128], strides = [1, 1, 1, 1]} : vector<2x2x16x128xf32> to vector<2x1x16x128xf32>
    %66 = vector.shape_cast %65 : vector<2x1x16x128xf32> to vector<2x16x128xf32>
    %67 = vector.extract_strided_slice %64 {offsets = [0, 0, 0], sizes = [1, 16, 128], strides = [1, 1, 1]} : vector<2x16x128xf32> to vector<1x16x128xf32>
    %68 = vector.shape_cast %67 : vector<1x16x128xf32> to vector<16x128xf32>
    %69 = vector.shape_cast %68 : vector<16x128xf32> to vector<1x16x128xf32>
    %70 = vector.broadcast %69 : vector<1x16x128xf32> to vector<2x16x128xf32>
    %71 = arith.mulf %66, %70 : vector<2x16x128xf32>
    %72 = vector.extract_strided_slice %63 {offsets = [0, 1, 0, 0], sizes = [2, 1, 16, 128], strides = [1, 1, 1, 1]} : vector<2x2x16x128xf32> to vector<2x1x16x128xf32>
    %73 = vector.shape_cast %72 : vector<2x1x16x128xf32> to vector<2x16x128xf32>
    %74 = vector.extract_strided_slice %64 {offsets = [1, 0, 0], sizes = [1, 16, 128], strides = [1, 1, 1]} : vector<2x16x128xf32> to vector<1x16x128xf32>
    %75 = vector.shape_cast %74 : vector<1x16x128xf32> to vector<16x128xf32>
    %76 = vector.shape_cast %75 : vector<16x128xf32> to vector<1x16x128xf32>
    %77 = vector.broadcast %76 : vector<1x16x128xf32> to vector<2x16x128xf32>
    %78 = arith.mulf %73, %77 : vector<2x16x128xf32>
    %79 = arith.addf %71, %78 : vector<2x16x128xf32>
    %80 = vector.shape_cast %79 : vector<2x16x128xf32> to vector<32x128xf32>
    %81 = arith.truncf %80 : vector<32x128xf32> to vector<32x128xbf16>
    %c0_22 = arith.constant 0 : index
    %c0_23 = arith.constant 0 : index
    %c0_24 = arith.constant 0 : index
    %82 = vector.load %arg6[%c0_22, %c0_23, %c0_24] : memref<6x128x128xbf16, #tpu.memory_space<vmem>>, vector<1x128x128xbf16>
    %83 = vector.shape_cast %82 : vector<1x128x128xbf16> to vector<128x128xbf16>
    %cst_25 = arith.constant dense<0.000000e+00> : vector<32x128xf32>
    %84 = tpu.matmul %81, %83, %cst_25 {dimension_numbers = #tpu.dot_dimension_numbers<[1], [0], [0], [1], [0, 0, 1, 1], [], []>} : vector<32x128xbf16>, vector<128x128xbf16>, vector<32x128xf32> -> vector<32x128xf32>
    %85 = arith.addf %14, %84 : vector<32x128xf32>
    %86 = vector.extract_strided_slice %16 {offsets = [3, 0], sizes = [1, 128], strides = [1, 1]} : vector<9x128xf32> to vector<1x128xf32>
    %87 = vector.broadcast %86 : vector<1x128xf32> to vector<32x128xf32>
    %88 = arith.addf %85, %87 : vector<32x128xf32>
    %89 = vector.extract_strided_slice %16 {offsets = [4, 0], sizes = [1, 128], strides = [1, 1]} : vector<9x128xf32> to vector<1x128xf32>
    %90 = vector.extract_strided_slice %16 {offsets = [5, 0], sizes = [1, 128], strides = [1, 1]} : vector<9x128xf32> to vector<1x128xf32>
    %cst_26 = arith.constant dense<0.000000e+00> : vector<32xf32>
    %91 = vector.multi_reduction <add>, %88, %cst_26 [1] : vector<32x128xf32> to vector<32xf32>
    %92 = vector.shape_cast %91 : vector<32xf32> to vector<32x1xf32>
    %cst_27 = arith.constant 1.280000e+02 : f32
    %93 = vector.broadcast %cst_27 : f32 to vector<32x1xf32>
    %94 = arith.divf %92, %93 : vector<32x1xf32>
    %95 = vector.broadcast %94 : vector<32x1xf32> to vector<32x128xf32>
    %96 = arith.subf %88, %95 : vector<32x128xf32>
    %97 = arith.mulf %96, %96 : vector<32x128xf32>
    %cst_28 = arith.constant dense<0.000000e+00> : vector<32xf32>
    %98 = vector.multi_reduction <add>, %97, %cst_28 [1] : vector<32x128xf32> to vector<32xf32>
    %99 = vector.shape_cast %98 : vector<32xf32> to vector<32x1xf32>
    %cst_29 = arith.constant 1.280000e+02 : f32
    %100 = vector.broadcast %cst_29 : f32 to vector<32x1xf32>
    %101 = arith.divf %99, %100 : vector<32x1xf32>
    %cst_30 = arith.constant 9.99999974E-6 : f32
    %102 = vector.broadcast %cst_30 : f32 to vector<32x1xf32>
    %103 = arith.addf %101, %102 : vector<32x1xf32>
    %104 = math.rsqrt %103 : vector<32x1xf32>
    %105 = vector.broadcast %104 : vector<32x1xf32> to vector<32x128xf32>
    %106 = arith.mulf %96, %105 : vector<32x128xf32>
    %107 = vector.broadcast %89 : vector<1x128xf32> to vector<32x128xf32>
    %108 = arith.mulf %106, %107 : vector<32x128xf32>
    %109 = vector.broadcast %90 : vector<1x128xf32> to vector<32x128xf32>
    %110 = arith.addf %108, %109 : vector<32x128xf32>
    %111 = arith.truncf %110 : vector<32x128xf32> to vector<32x128xbf16>
    %c0_31 = arith.constant 0 : index
    %c0_32 = arith.constant 0 : index
    %c0_33 = arith.constant 0 : index
    %112 = vector.load %arg7[%c0_31, %c0_32, %c0_33] : memref<6x128x256xbf16, #tpu.memory_space<vmem>>, vector<1x128x256xbf16>
    %113 = vector.shape_cast %112 : vector<1x128x256xbf16> to vector<128x256xbf16>
    %cst_34 = arith.constant dense<0.000000e+00> : vector<32x256xf32>
    %114 = tpu.matmul %111, %113, %cst_34 {dimension_numbers = #tpu.dot_dimension_numbers<[1], [0], [0], [1], [0, 0, 1, 1], [], []>} : vector<32x128xbf16>, vector<128x256xbf16>, vector<32x256xf32> -> vector<32x256xf32>
    %c0_35 = arith.constant 0 : index
    %c0_36 = arith.constant 0 : index
    %c0_37 = arith.constant 0 : index
    %115 = vector.load %arg10[%c0_35, %c0_36, %c0_37] : memref<6x1x256xf32, #tpu.memory_space<vmem>>, vector<1x1x256xf32>
    %116 = vector.shape_cast %115 : vector<1x1x256xf32> to vector<1x256xf32>
    %117 = vector.broadcast %116 : vector<1x256xf32> to vector<32x256xf32>
    %118 = arith.addf %114, %117 : vector<32x256xf32>
    %cst_38 = arith.constant 0.000000e+00 : f32
    %119 = vector.broadcast %cst_38 : f32 to vector<32x256xf32>
    %120 = arith.maximumf %118, %119 : vector<32x256xf32>
    %121 = arith.truncf %120 : vector<32x256xf32> to vector<32x256xbf16>
    %c0_39 = arith.constant 0 : index
    %c0_40 = arith.constant 0 : index
    %c0_41 = arith.constant 0 : index
    %122 = vector.load %arg8[%c0_39, %c0_40, %c0_41] : memref<6x256x128xbf16, #tpu.memory_space<vmem>>, vector<1x256x128xbf16>
    %123 = vector.shape_cast %122 : vector<1x256x128xbf16> to vector<256x128xbf16>
    %cst_42 = arith.constant dense<0.000000e+00> : vector<32x128xf32>
    %124 = tpu.matmul %121, %123, %cst_42 {dimension_numbers = #tpu.dot_dimension_numbers<[1], [0], [0], [1], [0, 0, 1, 1], [], []>} : vector<32x256xbf16>, vector<256x128xbf16>, vector<32x128xf32> -> vector<32x128xf32>
    %125 = vector.extract_strided_slice %16 {offsets = [6, 0], sizes = [1, 128], strides = [1, 1]} : vector<9x128xf32> to vector<1x128xf32>
    %126 = vector.broadcast %125 : vector<1x128xf32> to vector<32x128xf32>
    %127 = arith.addf %124, %126 : vector<32x128xf32>
    %128 = arith.addf %110, %127 : vector<32x128xf32>
    %129 = vector.extract_strided_slice %16 {offsets = [7, 0], sizes = [1, 128], strides = [1, 1]} : vector<9x128xf32> to vector<1x128xf32>
    %130 = vector.extract_strided_slice %16 {offsets = [8, 0], sizes = [1, 128], strides = [1, 1]} : vector<9x128xf32> to vector<1x128xf32>
    %cst_43 = arith.constant dense<0.000000e+00> : vector<32xf32>
    %131 = vector.multi_reduction <add>, %128, %cst_43 [1] : vector<32x128xf32> to vector<32xf32>
    %132 = vector.shape_cast %131 : vector<32xf32> to vector<32x1xf32>
    %cst_44 = arith.constant 1.280000e+02 : f32
    %133 = vector.broadcast %cst_44 : f32 to vector<32x1xf32>
    %134 = arith.divf %132, %133 : vector<32x1xf32>
    %135 = vector.broadcast %134 : vector<32x1xf32> to vector<32x128xf32>
    %136 = arith.subf %128, %135 : vector<32x128xf32>
    %137 = arith.mulf %136, %136 : vector<32x128xf32>
    %cst_45 = arith.constant dense<0.000000e+00> : vector<32xf32>
    %138 = vector.multi_reduction <add>, %137, %cst_45 [1] : vector<32x128xf32> to vector<32xf32>
    %139 = vector.shape_cast %138 : vector<32xf32> to vector<32x1xf32>
    %cst_46 = arith.constant 1.280000e+02 : f32
    %140 = vector.broadcast %cst_46 : f32 to vector<32x1xf32>
    %141 = arith.divf %139, %140 : vector<32x1xf32>
    %cst_47 = arith.constant 9.99999974E-6 : f32
    %142 = vector.broadcast %cst_47 : f32 to vector<32x1xf32>
    %143 = arith.addf %141, %142 : vector<32x1xf32>
    %144 = math.rsqrt %143 : vector<32x1xf32>
    %145 = vector.broadcast %144 : vector<32x1xf32> to vector<32x128xf32>
    %146 = arith.mulf %136, %145 : vector<32x128xf32>
    %147 = vector.broadcast %129 : vector<1x128xf32> to vector<32x128xf32>
    %148 = arith.mulf %146, %147 : vector<32x128xf32>
    %149 = vector.broadcast %130 : vector<1x128xf32> to vector<32x128xf32>
    %150 = arith.addf %148, %149 : vector<32x128xf32>
    %c1_48 = arith.constant 1 : index
    %c0_49 = arith.constant 0 : index
    %c0_50 = arith.constant 0 : index
    %151 = vector.load %arg9[%c1_48, %c0_49, %c0_50] : memref<6x9x128xf32, #tpu.memory_space<vmem>>, vector<1x9x128xf32>
    %152 = vector.shape_cast %151 : vector<1x9x128xf32> to vector<9x128xf32>
    %153 = arith.truncf %150 : vector<32x128xf32> to vector<32x128xbf16>
    %c1_51 = arith.constant 1 : index
    %c0_52 = arith.constant 0 : index
    %c0_53 = arith.constant 0 : index
    %154 = vector.load %arg5[%c1_51, %c0_52, %c0_53] : memref<6x128x384xbf16, #tpu.memory_space<vmem>>, vector<1x128x384xbf16>
    %155 = vector.shape_cast %154 : vector<1x128x384xbf16> to vector<128x384xbf16>
    %cst_54 = arith.constant dense<0.000000e+00> : vector<32x384xf32>
    %156 = tpu.matmul %153, %155, %cst_54 {dimension_numbers = #tpu.dot_dimension_numbers<[1], [0], [0], [1], [0, 0, 1, 1], [], []>} : vector<32x128xbf16>, vector<128x384xbf16>, vector<32x384xf32> -> vector<32x384xf32>
    %157 = vector.extract_strided_slice %156 {offsets = [0, 0], sizes = [32, 128], strides = [1, 1]} : vector<32x384xf32> to vector<32x128xf32>
    %158 = vector.extract_strided_slice %152 {offsets = [0, 0], sizes = [1, 128], strides = [1, 1]} : vector<9x128xf32> to vector<1x128xf32>
    %159 = vector.broadcast %158 : vector<1x128xf32> to vector<32x128xf32>
    %160 = arith.addf %157, %159 : vector<32x128xf32>
    %161 = vector.extract_strided_slice %156 {offsets = [0, 128], sizes = [32, 128], strides = [1, 1]} : vector<32x384xf32> to vector<32x128xf32>
    %162 = vector.extract_strided_slice %152 {offsets = [1, 0], sizes = [1, 128], strides = [1, 1]} : vector<9x128xf32> to vector<1x128xf32>
    %163 = vector.broadcast %162 : vector<1x128xf32> to vector<32x128xf32>
    %164 = arith.addf %161, %163 : vector<32x128xf32>
    %165 = vector.extract_strided_slice %156 {offsets = [0, 256], sizes = [32, 128], strides = [1, 1]} : vector<32x384xf32> to vector<32x128xf32>
    %166 = vector.extract_strided_slice %152 {offsets = [2, 0], sizes = [1, 128], strides = [1, 1]} : vector<9x128xf32> to vector<1x128xf32>
    %167 = vector.broadcast %166 : vector<1x128xf32> to vector<32x128xf32>
    %168 = arith.addf %165, %167 : vector<32x128xf32>
    %169 = vector.shape_cast %160 : vector<32x128xf32> to vector<2x1x16x128xf32>
    %170 = vector.shape_cast %164 : vector<32x128xf32> to vector<1x2x16x128xf32>
    %171 = vector.broadcast %169 : vector<2x1x16x128xf32> to vector<2x2x16x128xf32>
    %172 = vector.broadcast %170 : vector<1x2x16x128xf32> to vector<2x2x16x128xf32>
    %173 = arith.mulf %171, %172 : vector<2x2x16x128xf32>
    %174 = arith.truncf %173 : vector<2x2x16x128xf32> to vector<2x2x16x128xbf16>
    %175 = vector.shape_cast %174 : vector<2x2x16x128xbf16> to vector<64x128xbf16>
    %cst_55 = arith.constant dense<0.000000e+00> : vector<64x128xf32>
    %176 = tpu.matmul %175, %1, %cst_55 {dimension_numbers = #tpu.dot_dimension_numbers<[1], [0], [0], [1], [0, 0, 1, 1], [], []>} : vector<64x128xbf16>, vector<128x128xbf16>, vector<64x128xf32> -> vector<64x128xf32>
    %177 = vector.shape_cast %176 : vector<64x128xf32> to vector<2x2x16x128xf32>
    %178 = vector.extract_strided_slice %177 {offsets = [0, 0, 0, 0], sizes = [2, 1, 16, 128], strides = [1, 1, 1, 1]} : vector<2x2x16x128xf32> to vector<2x1x16x128xf32>
    %179 = vector.shape_cast %178 : vector<2x1x16x128xf32> to vector<2x16x128xf32>
    %180 = vector.extract_strided_slice %177 {offsets = [0, 1, 0, 0], sizes = [2, 1, 16, 128], strides = [1, 1, 1, 1]} : vector<2x2x16x128xf32> to vector<2x1x16x128xf32>
    %181 = vector.shape_cast %180 : vector<2x1x16x128xf32> to vector<2x16x128xf32>
    %182 = arith.maximumf %179, %181 : vector<2x16x128xf32>
    %183 = vector.shape_cast %182 : vector<2x16x128xf32> to vector<2x1x16x128xf32>
    %184 = vector.broadcast %183 : vector<2x1x16x128xf32> to vector<2x2x16x128xf32>
    %185 = arith.subf %177, %184 : vector<2x2x16x128xf32>
    %186 = math.exp %185 : vector<2x2x16x128xf32>
    %187 = vector.extract_strided_slice %186 {offsets = [0, 0, 0, 0], sizes = [2, 1, 16, 128], strides = [1, 1, 1, 1]} : vector<2x2x16x128xf32> to vector<2x1x16x128xf32>
    %188 = vector.shape_cast %187 : vector<2x1x16x128xf32> to vector<2x16x128xf32>
    %189 = vector.extract_strided_slice %186 {offsets = [0, 1, 0, 0], sizes = [2, 1, 16, 128], strides = [1, 1, 1, 1]} : vector<2x2x16x128xf32> to vector<2x1x16x128xf32>
    %190 = vector.shape_cast %189 : vector<2x1x16x128xf32> to vector<2x16x128xf32>
    %191 = arith.addf %188, %190 : vector<2x16x128xf32>
    %192 = tpu.reciprocal %191 {approx = true} : vector<2x16x128xf32> -> vector<2x16x128xf32>
    %193 = vector.shape_cast %192 : vector<2x16x128xf32> to vector<2x1x16x128xf32>
    %194 = vector.broadcast %193 : vector<2x1x16x128xf32> to vector<2x2x16x128xf32>
    %195 = arith.mulf %186, %194 : vector<2x2x16x128xf32>
    %196 = vector.shape_cast %195 : vector<2x2x16x128xf32> to vector<64x128xf32>
    %197 = arith.truncf %196 : vector<64x128xf32> to vector<64x128xbf16>
    %cst_56 = arith.constant dense<0.000000e+00> : vector<64x128xf32>
    %198 = tpu.matmul %197, %3, %cst_56 {dimension_numbers = #tpu.dot_dimension_numbers<[1], [0], [0], [1], [0, 0, 1, 1], [], []>} : vector<64x128xbf16>, vector<128x128xbf16>, vector<64x128xf32> -> vector<64x128xf32>
    %199 = vector.shape_cast %198 : vector<64x128xf32> to vector<2x2x16x128xf32>
    %200 = vector.shape_cast %168 : vector<32x128xf32> to vector<2x16x128xf32>
    %201 = vector.extract_strided_slice %199 {offsets = [0, 0, 0, 0], sizes = [2, 1, 16, 128], strides = [1, 1, 1, 1]} : vector<2x2x16x128xf32> to vector<2x1x16x128xf32>
    %202 = vector.shape_cast %201 : vector<2x1x16x128xf32> to vector<2x16x128xf32>
    %203 = vector.extract_strided_slice %200 {offsets = [0, 0, 0], sizes = [1, 16, 128], strides = [1, 1, 1]} : vector<2x16x128xf32> to vector<1x16x128xf32>
    %204 = vector.shape_cast %203 : vector<1x16x128xf32> to vector<16x128xf32>
    %205 = vector.shape_cast %204 : vector<16x128xf32> to vector<1x16x128xf32>
    %206 = vector.broadcast %205 : vector<1x16x128xf32> to vector<2x16x128xf32>
    %207 = arith.mulf %202, %206 : vector<2x16x128xf32>
    %208 = vector.extract_strided_slice %199 {offsets = [0, 1, 0, 0], sizes = [2, 1, 16, 128], strides = [1, 1, 1, 1]} : vector<2x2x16x128xf32> to vector<2x1x16x128xf32>
    %209 = vector.shape_cast %208 : vector<2x1x16x128xf32> to vector<2x16x128xf32>
    %210 = vector.extract_strided_slice %200 {offsets = [1, 0, 0], sizes = [1, 16, 128], strides = [1, 1, 1]} : vector<2x16x128xf32> to vector<1x16x128xf32>
    %211 = vector.shape_cast %210 : vector<1x16x128xf32> to vector<16x128xf32>
    %212 = vector.shape_cast %211 : vector<16x128xf32> to vector<1x16x128xf32>
    %213 = vector.broadcast %212 : vector<1x16x128xf32> to vector<2x16x128xf32>
    %214 = arith.mulf %209, %213 : vector<2x16x128xf32>
    %215 = arith.addf %207, %214 : vector<2x16x128xf32>
    %216 = vector.shape_cast %215 : vector<2x16x128xf32> to vector<32x128xf32>
    %217 = arith.truncf %216 : vector<32x128xf32> to vector<32x128xbf16>
    %c1_57 = arith.constant 1 : index
    %c0_58 = arith.constant 0 : index
    %c0_59 = arith.constant 0 : index
    %218 = vector.load %arg6[%c1_57, %c0_58, %c0_59] : memref<6x128x128xbf16, #tpu.memory_space<vmem>>, vector<1x128x128xbf16>
    %219 = vector.shape_cast %218 : vector<1x128x128xbf16> to vector<128x128xbf16>
    %cst_60 = arith.constant dense<0.000000e+00> : vector<32x128xf32>
    %220 = tpu.matmul %217, %219, %cst_60 {dimension_numbers = #tpu.dot_dimension_numbers<[1], [0], [0], [1], [0, 0, 1, 1], [], []>} : vector<32x128xbf16>, vector<128x128xbf16>, vector<32x128xf32> -> vector<32x128xf32>
    %221 = arith.addf %150, %220 : vector<32x128xf32>
    %222 = vector.extract_strided_slice %152 {offsets = [3, 0], sizes = [1, 128], strides = [1, 1]} : vector<9x128xf32> to vector<1x128xf32>
    %223 = vector.broadcast %222 : vector<1x128xf32> to vector<32x128xf32>
    %224 = arith.addf %221, %223 : vector<32x128xf32>
    %225 = vector.extract_strided_slice %152 {offsets = [4, 0], sizes = [1, 128], strides = [1, 1]} : vector<9x128xf32> to vector<1x128xf32>
    %226 = vector.extract_strided_slice %152 {offsets = [5, 0], sizes = [1, 128], strides = [1, 1]} : vector<9x128xf32> to vector<1x128xf32>
    %cst_61 = arith.constant dense<0.000000e+00> : vector<32xf32>
    %227 = vector.multi_reduction <add>, %224, %cst_61 [1] : vector<32x128xf32> to vector<32xf32>
    %228 = vector.shape_cast %227 : vector<32xf32> to vector<32x1xf32>
    %cst_62 = arith.constant 1.280000e+02 : f32
    %229 = vector.broadcast %cst_62 : f32 to vector<32x1xf32>
    %230 = arith.divf %228, %229 : vector<32x1xf32>
    %231 = vector.broadcast %230 : vector<32x1xf32> to vector<32x128xf32>
    %232 = arith.subf %224, %231 : vector<32x128xf32>
    %233 = arith.mulf %232, %232 : vector<32x128xf32>
    %cst_63 = arith.constant dense<0.000000e+00> : vector<32xf32>
    %234 = vector.multi_reduction <add>, %233, %cst_63 [1] : vector<32x128xf32> to vector<32xf32>
    %235 = vector.shape_cast %234 : vector<32xf32> to vector<32x1xf32>
    %cst_64 = arith.constant 1.280000e+02 : f32
    %236 = vector.broadcast %cst_64 : f32 to vector<32x1xf32>
    %237 = arith.divf %235, %236 : vector<32x1xf32>
    %cst_65 = arith.constant 9.99999974E-6 : f32
    %238 = vector.broadcast %cst_65 : f32 to vector<32x1xf32>
    %239 = arith.addf %237, %238 : vector<32x1xf32>
    %240 = math.rsqrt %239 : vector<32x1xf32>
    %241 = vector.broadcast %240 : vector<32x1xf32> to vector<32x128xf32>
    %242 = arith.mulf %232, %241 : vector<32x128xf32>
    %243 = vector.broadcast %225 : vector<1x128xf32> to vector<32x128xf32>
    %244 = arith.mulf %242, %243 : vector<32x128xf32>
    %245 = vector.broadcast %226 : vector<1x128xf32> to vector<32x128xf32>
    %246 = arith.addf %244, %245 : vector<32x128xf32>
    %247 = arith.truncf %246 : vector<32x128xf32> to vector<32x128xbf16>
    %c1_66 = arith.constant 1 : index
    %c0_67 = arith.constant 0 : index
    %c0_68 = arith.constant 0 : index
    %248 = vector.load %arg7[%c1_66, %c0_67, %c0_68] : memref<6x128x256xbf16, #tpu.memory_space<vmem>>, vector<1x128x256xbf16>
    %249 = vector.shape_cast %248 : vector<1x128x256xbf16> to vector<128x256xbf16>
    %cst_69 = arith.constant dense<0.000000e+00> : vector<32x256xf32>
    %250 = tpu.matmul %247, %249, %cst_69 {dimension_numbers = #tpu.dot_dimension_numbers<[1], [0], [0], [1], [0, 0, 1, 1], [], []>} : vector<32x128xbf16>, vector<128x256xbf16>, vector<32x256xf32> -> vector<32x256xf32>
    %c1_70 = arith.constant 1 : index
    %c0_71 = arith.constant 0 : index
    %c0_72 = arith.constant 0 : index
    %251 = vector.load %arg10[%c1_70, %c0_71, %c0_72] : memref<6x1x256xf32, #tpu.memory_space<vmem>>, vector<1x1x256xf32>
    %252 = vector.shape_cast %251 : vector<1x1x256xf32> to vector<1x256xf32>
    %253 = vector.broadcast %252 : vector<1x256xf32> to vector<32x256xf32>
    %254 = arith.addf %250, %253 : vector<32x256xf32>
    %cst_73 = arith.constant 0.000000e+00 : f32
    %255 = vector.broadcast %cst_73 : f32 to vector<32x256xf32>
    %256 = arith.maximumf %254, %255 : vector<32x256xf32>
    %257 = arith.truncf %256 : vector<32x256xf32> to vector<32x256xbf16>
    %c1_74 = arith.constant 1 : index
    %c0_75 = arith.constant 0 : index
    %c0_76 = arith.constant 0 : index
    %258 = vector.load %arg8[%c1_74, %c0_75, %c0_76] : memref<6x256x128xbf16, #tpu.memory_space<vmem>>, vector<1x256x128xbf16>
    %259 = vector.shape_cast %258 : vector<1x256x128xbf16> to vector<256x128xbf16>
    %cst_77 = arith.constant dense<0.000000e+00> : vector<32x128xf32>
    %260 = tpu.matmul %257, %259, %cst_77 {dimension_numbers = #tpu.dot_dimension_numbers<[1], [0], [0], [1], [0, 0, 1, 1], [], []>} : vector<32x256xbf16>, vector<256x128xbf16>, vector<32x128xf32> -> vector<32x128xf32>
    %261 = vector.extract_strided_slice %152 {offsets = [6, 0], sizes = [1, 128], strides = [1, 1]} : vector<9x128xf32> to vector<1x128xf32>
    %262 = vector.broadcast %261 : vector<1x128xf32> to vector<32x128xf32>
    %263 = arith.addf %260, %262 : vector<32x128xf32>
    %264 = arith.addf %246, %263 : vector<32x128xf32>
    %265 = vector.extract_strided_slice %152 {offsets = [7, 0], sizes = [1, 128], strides = [1, 1]} : vector<9x128xf32> to vector<1x128xf32>
    %266 = vector.extract_strided_slice %152 {offsets = [8, 0], sizes = [1, 128], strides = [1, 1]} : vector<9x128xf32> to vector<1x128xf32>
    %cst_78 = arith.constant dense<0.000000e+00> : vector<32xf32>
    %267 = vector.multi_reduction <add>, %264, %cst_78 [1] : vector<32x128xf32> to vector<32xf32>
    %268 = vector.shape_cast %267 : vector<32xf32> to vector<32x1xf32>
    %cst_79 = arith.constant 1.280000e+02 : f32
    %269 = vector.broadcast %cst_79 : f32 to vector<32x1xf32>
    %270 = arith.divf %268, %269 : vector<32x1xf32>
    %271 = vector.broadcast %270 : vector<32x1xf32> to vector<32x128xf32>
    %272 = arith.subf %264, %271 : vector<32x128xf32>
    %273 = arith.mulf %272, %272 : vector<32x128xf32>
    %cst_80 = arith.constant dense<0.000000e+00> : vector<32xf32>
    %274 = vector.multi_reduction <add>, %273, %cst_80 [1] : vector<32x128xf32> to vector<32xf32>
    %275 = vector.shape_cast %274 : vector<32xf32> to vector<32x1xf32>
    %cst_81 = arith.constant 1.280000e+02 : f32
    %276 = vector.broadcast %cst_81 : f32 to vector<32x1xf32>
    %277 = arith.divf %275, %276 : vector<32x1xf32>
    %cst_82 = arith.constant 9.99999974E-6 : f32
    %278 = vector.broadcast %cst_82 : f32 to vector<32x1xf32>
    %279 = arith.addf %277, %278 : vector<32x1xf32>
    %280 = math.rsqrt %279 : vector<32x1xf32>
    %281 = vector.broadcast %280 : vector<32x1xf32> to vector<32x128xf32>
    %282 = arith.mulf %272, %281 : vector<32x128xf32>
    %283 = vector.broadcast %265 : vector<1x128xf32> to vector<32x128xf32>
    %284 = arith.mulf %282, %283 : vector<32x128xf32>
    %285 = vector.broadcast %266 : vector<1x128xf32> to vector<32x128xf32>
    %286 = arith.addf %284, %285 : vector<32x128xf32>
    %c2_83 = arith.constant 2 : index
    %c0_84 = arith.constant 0 : index
    %c0_85 = arith.constant 0 : index
    %287 = vector.load %arg9[%c2_83, %c0_84, %c0_85] : memref<6x9x128xf32, #tpu.memory_space<vmem>>, vector<1x9x128xf32>
    %288 = vector.shape_cast %287 : vector<1x9x128xf32> to vector<9x128xf32>
    %289 = arith.truncf %286 : vector<32x128xf32> to vector<32x128xbf16>
    %c2_86 = arith.constant 2 : index
    %c0_87 = arith.constant 0 : index
    %c0_88 = arith.constant 0 : index
    %290 = vector.load %arg5[%c2_86, %c0_87, %c0_88] : memref<6x128x384xbf16, #tpu.memory_space<vmem>>, vector<1x128x384xbf16>
    %291 = vector.shape_cast %290 : vector<1x128x384xbf16> to vector<128x384xbf16>
    %cst_89 = arith.constant dense<0.000000e+00> : vector<32x384xf32>
    %292 = tpu.matmul %289, %291, %cst_89 {dimension_numbers = #tpu.dot_dimension_numbers<[1], [0], [0], [1], [0, 0, 1, 1], [], []>} : vector<32x128xbf16>, vector<128x384xbf16>, vector<32x384xf32> -> vector<32x384xf32>
    %293 = vector.extract_strided_slice %292 {offsets = [0, 0], sizes = [32, 128], strides = [1, 1]} : vector<32x384xf32> to vector<32x128xf32>
    %294 = vector.extract_strided_slice %288 {offsets = [0, 0], sizes = [1, 128], strides = [1, 1]} : vector<9x128xf32> to vector<1x128xf32>
    %295 = vector.broadcast %294 : vector<1x128xf32> to vector<32x128xf32>
    %296 = arith.addf %293, %295 : vector<32x128xf32>
    %297 = vector.extract_strided_slice %292 {offsets = [0, 128], sizes = [32, 128], strides = [1, 1]} : vector<32x384xf32> to vector<32x128xf32>
    %298 = vector.extract_strided_slice %288 {offsets = [1, 0], sizes = [1, 128], strides = [1, 1]} : vector<9x128xf32> to vector<1x128xf32>
    %299 = vector.broadcast %298 : vector<1x128xf32> to vector<32x128xf32>
    %300 = arith.addf %297, %299 : vector<32x128xf32>
    %301 = vector.extract_strided_slice %292 {offsets = [0, 256], sizes = [32, 128], strides = [1, 1]} : vector<32x384xf32> to vector<32x128xf32>
    %302 = vector.extract_strided_slice %288 {offsets = [2, 0], sizes = [1, 128], strides = [1, 1]} : vector<9x128xf32> to vector<1x128xf32>
    %303 = vector.broadcast %302 : vector<1x128xf32> to vector<32x128xf32>
    %304 = arith.addf %301, %303 : vector<32x128xf32>
    %305 = vector.shape_cast %296 : vector<32x128xf32> to vector<2x1x16x128xf32>
    %306 = vector.shape_cast %300 : vector<32x128xf32> to vector<1x2x16x128xf32>
    %307 = vector.broadcast %305 : vector<2x1x16x128xf32> to vector<2x2x16x128xf32>
    %308 = vector.broadcast %306 : vector<1x2x16x128xf32> to vector<2x2x16x128xf32>
    %309 = arith.mulf %307, %308 : vector<2x2x16x128xf32>
    %310 = arith.truncf %309 : vector<2x2x16x128xf32> to vector<2x2x16x128xbf16>
    %311 = vector.shape_cast %310 : vector<2x2x16x128xbf16> to vector<64x128xbf16>
    %cst_90 = arith.constant dense<0.000000e+00> : vector<64x128xf32>
    %312 = tpu.matmul %311, %1, %cst_90 {dimension_numbers = #tpu.dot_dimension_numbers<[1], [0], [0], [1], [0, 0, 1, 1], [], []>} : vector<64x128xbf16>, vector<128x128xbf16>, vector<64x128xf32> -> vector<64x128xf32>
    %313 = vector.shape_cast %312 : vector<64x128xf32> to vector<2x2x16x128xf32>
    %314 = vector.extract_strided_slice %313 {offsets = [0, 0, 0, 0], sizes = [2, 1, 16, 128], strides = [1, 1, 1, 1]} : vector<2x2x16x128xf32> to vector<2x1x16x128xf32>
    %315 = vector.shape_cast %314 : vector<2x1x16x128xf32> to vector<2x16x128xf32>
    %316 = vector.extract_strided_slice %313 {offsets = [0, 1, 0, 0], sizes = [2, 1, 16, 128], strides = [1, 1, 1, 1]} : vector<2x2x16x128xf32> to vector<2x1x16x128xf32>
    %317 = vector.shape_cast %316 : vector<2x1x16x128xf32> to vector<2x16x128xf32>
    %318 = arith.maximumf %315, %317 : vector<2x16x128xf32>
    %319 = vector.shape_cast %318 : vector<2x16x128xf32> to vector<2x1x16x128xf32>
    %320 = vector.broadcast %319 : vector<2x1x16x128xf32> to vector<2x2x16x128xf32>
    %321 = arith.subf %313, %320 : vector<2x2x16x128xf32>
    %322 = math.exp %321 : vector<2x2x16x128xf32>
    %323 = vector.extract_strided_slice %322 {offsets = [0, 0, 0, 0], sizes = [2, 1, 16, 128], strides = [1, 1, 1, 1]} : vector<2x2x16x128xf32> to vector<2x1x16x128xf32>
    %324 = vector.shape_cast %323 : vector<2x1x16x128xf32> to vector<2x16x128xf32>
    %325 = vector.extract_strided_slice %322 {offsets = [0, 1, 0, 0], sizes = [2, 1, 16, 128], strides = [1, 1, 1, 1]} : vector<2x2x16x128xf32> to vector<2x1x16x128xf32>
    %326 = vector.shape_cast %325 : vector<2x1x16x128xf32> to vector<2x16x128xf32>
    %327 = arith.addf %324, %326 : vector<2x16x128xf32>
    %328 = tpu.reciprocal %327 {approx = true} : vector<2x16x128xf32> -> vector<2x16x128xf32>
    %329 = vector.shape_cast %328 : vector<2x16x128xf32> to vector<2x1x16x128xf32>
    %330 = vector.broadcast %329 : vector<2x1x16x128xf32> to vector<2x2x16x128xf32>
    %331 = arith.mulf %322, %330 : vector<2x2x16x128xf32>
    %332 = vector.shape_cast %331 : vector<2x2x16x128xf32> to vector<64x128xf32>
    %333 = arith.truncf %332 : vector<64x128xf32> to vector<64x128xbf16>
    %cst_91 = arith.constant dense<0.000000e+00> : vector<64x128xf32>
    %334 = tpu.matmul %333, %3, %cst_91 {dimension_numbers = #tpu.dot_dimension_numbers<[1], [0], [0], [1], [0, 0, 1, 1], [], []>} : vector<64x128xbf16>, vector<128x128xbf16>, vector<64x128xf32> -> vector<64x128xf32>
    %335 = vector.shape_cast %334 : vector<64x128xf32> to vector<2x2x16x128xf32>
    %336 = vector.shape_cast %304 : vector<32x128xf32> to vector<2x16x128xf32>
    %337 = vector.extract_strided_slice %335 {offsets = [0, 0, 0, 0], sizes = [2, 1, 16, 128], strides = [1, 1, 1, 1]} : vector<2x2x16x128xf32> to vector<2x1x16x128xf32>
    %338 = vector.shape_cast %337 : vector<2x1x16x128xf32> to vector<2x16x128xf32>
    %339 = vector.extract_strided_slice %336 {offsets = [0, 0, 0], sizes = [1, 16, 128], strides = [1, 1, 1]} : vector<2x16x128xf32> to vector<1x16x128xf32>
    %340 = vector.shape_cast %339 : vector<1x16x128xf32> to vector<16x128xf32>
    %341 = vector.shape_cast %340 : vector<16x128xf32> to vector<1x16x128xf32>
    %342 = vector.broadcast %341 : vector<1x16x128xf32> to vector<2x16x128xf32>
    %343 = arith.mulf %338, %342 : vector<2x16x128xf32>
    %344 = vector.extract_strided_slice %335 {offsets = [0, 1, 0, 0], sizes = [2, 1, 16, 128], strides = [1, 1, 1, 1]} : vector<2x2x16x128xf32> to vector<2x1x16x128xf32>
    %345 = vector.shape_cast %344 : vector<2x1x16x128xf32> to vector<2x16x128xf32>
    %346 = vector.extract_strided_slice %336 {offsets = [1, 0, 0], sizes = [1, 16, 128], strides = [1, 1, 1]} : vector<2x16x128xf32> to vector<1x16x128xf32>
    %347 = vector.shape_cast %346 : vector<1x16x128xf32> to vector<16x128xf32>
    %348 = vector.shape_cast %347 : vector<16x128xf32> to vector<1x16x128xf32>
    %349 = vector.broadcast %348 : vector<1x16x128xf32> to vector<2x16x128xf32>
    %350 = arith.mulf %345, %349 : vector<2x16x128xf32>
    %351 = arith.addf %343, %350 : vector<2x16x128xf32>
    %352 = vector.shape_cast %351 : vector<2x16x128xf32> to vector<32x128xf32>
    %353 = arith.truncf %352 : vector<32x128xf32> to vector<32x128xbf16>
    %c2_92 = arith.constant 2 : index
    %c0_93 = arith.constant 0 : index
    %c0_94 = arith.constant 0 : index
    %354 = vector.load %arg6[%c2_92, %c0_93, %c0_94] : memref<6x128x128xbf16, #tpu.memory_space<vmem>>, vector<1x128x128xbf16>
    %355 = vector.shape_cast %354 : vector<1x128x128xbf16> to vector<128x128xbf16>
    %cst_95 = arith.constant dense<0.000000e+00> : vector<32x128xf32>
    %356 = tpu.matmul %353, %355, %cst_95 {dimension_numbers = #tpu.dot_dimension_numbers<[1], [0], [0], [1], [0, 0, 1, 1], [], []>} : vector<32x128xbf16>, vector<128x128xbf16>, vector<32x128xf32> -> vector<32x128xf32>
    %357 = arith.addf %286, %356 : vector<32x128xf32>
    %358 = vector.extract_strided_slice %288 {offsets = [3, 0], sizes = [1, 128], strides = [1, 1]} : vector<9x128xf32> to vector<1x128xf32>
    %359 = vector.broadcast %358 : vector<1x128xf32> to vector<32x128xf32>
    %360 = arith.addf %357, %359 : vector<32x128xf32>
    %361 = vector.extract_strided_slice %288 {offsets = [4, 0], sizes = [1, 128], strides = [1, 1]} : vector<9x128xf32> to vector<1x128xf32>
    %362 = vector.extract_strided_slice %288 {offsets = [5, 0], sizes = [1, 128], strides = [1, 1]} : vector<9x128xf32> to vector<1x128xf32>
    %cst_96 = arith.constant dense<0.000000e+00> : vector<32xf32>
    %363 = vector.multi_reduction <add>, %360, %cst_96 [1] : vector<32x128xf32> to vector<32xf32>
    %364 = vector.shape_cast %363 : vector<32xf32> to vector<32x1xf32>
    %cst_97 = arith.constant 1.280000e+02 : f32
    %365 = vector.broadcast %cst_97 : f32 to vector<32x1xf32>
    %366 = arith.divf %364, %365 : vector<32x1xf32>
    %367 = vector.broadcast %366 : vector<32x1xf32> to vector<32x128xf32>
    %368 = arith.subf %360, %367 : vector<32x128xf32>
    %369 = arith.mulf %368, %368 : vector<32x128xf32>
    %cst_98 = arith.constant dense<0.000000e+00> : vector<32xf32>
    %370 = vector.multi_reduction <add>, %369, %cst_98 [1] : vector<32x128xf32> to vector<32xf32>
    %371 = vector.shape_cast %370 : vector<32xf32> to vector<32x1xf32>
    %cst_99 = arith.constant 1.280000e+02 : f32
    %372 = vector.broadcast %cst_99 : f32 to vector<32x1xf32>
    %373 = arith.divf %371, %372 : vector<32x1xf32>
    %cst_100 = arith.constant 9.99999974E-6 : f32
    %374 = vector.broadcast %cst_100 : f32 to vector<32x1xf32>
    %375 = arith.addf %373, %374 : vector<32x1xf32>
    %376 = math.rsqrt %375 : vector<32x1xf32>
    %377 = vector.broadcast %376 : vector<32x1xf32> to vector<32x128xf32>
    %378 = arith.mulf %368, %377 : vector<32x128xf32>
    %379 = vector.broadcast %361 : vector<1x128xf32> to vector<32x128xf32>
    %380 = arith.mulf %378, %379 : vector<32x128xf32>
    %381 = vector.broadcast %362 : vector<1x128xf32> to vector<32x128xf32>
    %382 = arith.addf %380, %381 : vector<32x128xf32>
    %383 = arith.truncf %382 : vector<32x128xf32> to vector<32x128xbf16>
    %c2_101 = arith.constant 2 : index
    %c0_102 = arith.constant 0 : index
    %c0_103 = arith.constant 0 : index
    %384 = vector.load %arg7[%c2_101, %c0_102, %c0_103] : memref<6x128x256xbf16, #tpu.memory_space<vmem>>, vector<1x128x256xbf16>
    %385 = vector.shape_cast %384 : vector<1x128x256xbf16> to vector<128x256xbf16>
    %cst_104 = arith.constant dense<0.000000e+00> : vector<32x256xf32>
    %386 = tpu.matmul %383, %385, %cst_104 {dimension_numbers = #tpu.dot_dimension_numbers<[1], [0], [0], [1], [0, 0, 1, 1], [], []>} : vector<32x128xbf16>, vector<128x256xbf16>, vector<32x256xf32> -> vector<32x256xf32>
    %c2_105 = arith.constant 2 : index
    %c0_106 = arith.constant 0 : index
    %c0_107 = arith.constant 0 : index
    %387 = vector.load %arg10[%c2_105, %c0_106, %c0_107] : memref<6x1x256xf32, #tpu.memory_space<vmem>>, vector<1x1x256xf32>
    %388 = vector.shape_cast %387 : vector<1x1x256xf32> to vector<1x256xf32>
    %389 = vector.broadcast %388 : vector<1x256xf32> to vector<32x256xf32>
    %390 = arith.addf %386, %389 : vector<32x256xf32>
    %cst_108 = arith.constant 0.000000e+00 : f32
    %391 = vector.broadcast %cst_108 : f32 to vector<32x256xf32>
    %392 = arith.maximumf %390, %391 : vector<32x256xf32>
    %393 = arith.truncf %392 : vector<32x256xf32> to vector<32x256xbf16>
    %c2_109 = arith.constant 2 : index
    %c0_110 = arith.constant 0 : index
    %c0_111 = arith.constant 0 : index
    %394 = vector.load %arg8[%c2_109, %c0_110, %c0_111] : memref<6x256x128xbf16, #tpu.memory_space<vmem>>, vector<1x256x128xbf16>
    %395 = vector.shape_cast %394 : vector<1x256x128xbf16> to vector<256x128xbf16>
    %cst_112 = arith.constant dense<0.000000e+00> : vector<32x128xf32>
    %396 = tpu.matmul %393, %395, %cst_112 {dimension_numbers = #tpu.dot_dimension_numbers<[1], [0], [0], [1], [0, 0, 1, 1], [], []>} : vector<32x256xbf16>, vector<256x128xbf16>, vector<32x128xf32> -> vector<32x128xf32>
    %397 = vector.extract_strided_slice %288 {offsets = [6, 0], sizes = [1, 128], strides = [1, 1]} : vector<9x128xf32> to vector<1x128xf32>
    %398 = vector.broadcast %397 : vector<1x128xf32> to vector<32x128xf32>
    %399 = arith.addf %396, %398 : vector<32x128xf32>
    %400 = arith.addf %382, %399 : vector<32x128xf32>
    %401 = vector.extract_strided_slice %288 {offsets = [7, 0], sizes = [1, 128], strides = [1, 1]} : vector<9x128xf32> to vector<1x128xf32>
    %402 = vector.extract_strided_slice %288 {offsets = [8, 0], sizes = [1, 128], strides = [1, 1]} : vector<9x128xf32> to vector<1x128xf32>
    %cst_113 = arith.constant dense<0.000000e+00> : vector<32xf32>
    %403 = vector.multi_reduction <add>, %400, %cst_113 [1] : vector<32x128xf32> to vector<32xf32>
    %404 = vector.shape_cast %403 : vector<32xf32> to vector<32x1xf32>
    %cst_114 = arith.constant 1.280000e+02 : f32
    %405 = vector.broadcast %cst_114 : f32 to vector<32x1xf32>
    %406 = arith.divf %404, %405 : vector<32x1xf32>
    %407 = vector.broadcast %406 : vector<32x1xf32> to vector<32x128xf32>
    %408 = arith.subf %400, %407 : vector<32x128xf32>
    %409 = arith.mulf %408, %408 : vector<32x128xf32>
    %cst_115 = arith.constant dense<0.000000e+00> : vector<32xf32>
    %410 = vector.multi_reduction <add>, %409, %cst_115 [1] : vector<32x128xf32> to vector<32xf32>
    %411 = vector.shape_cast %410 : vector<32xf32> to vector<32x1xf32>
    %cst_116 = arith.constant 1.280000e+02 : f32
    %412 = vector.broadcast %cst_116 : f32 to vector<32x1xf32>
    %413 = arith.divf %411, %412 : vector<32x1xf32>
    %cst_117 = arith.constant 9.99999974E-6 : f32
    %414 = vector.broadcast %cst_117 : f32 to vector<32x1xf32>
    %415 = arith.addf %413, %414 : vector<32x1xf32>
    %416 = math.rsqrt %415 : vector<32x1xf32>
    %417 = vector.broadcast %416 : vector<32x1xf32> to vector<32x128xf32>
    %418 = arith.mulf %408, %417 : vector<32x128xf32>
    %419 = vector.broadcast %401 : vector<1x128xf32> to vector<32x128xf32>
    %420 = arith.mulf %418, %419 : vector<32x128xf32>
    %421 = vector.broadcast %402 : vector<1x128xf32> to vector<32x128xf32>
    %422 = arith.addf %420, %421 : vector<32x128xf32>
    %c3 = arith.constant 3 : index
    %c0_118 = arith.constant 0 : index
    %c0_119 = arith.constant 0 : index
    %423 = vector.load %arg9[%c3, %c0_118, %c0_119] : memref<6x9x128xf32, #tpu.memory_space<vmem>>, vector<1x9x128xf32>
    %424 = vector.shape_cast %423 : vector<1x9x128xf32> to vector<9x128xf32>
    %425 = arith.truncf %422 : vector<32x128xf32> to vector<32x128xbf16>
    %c3_120 = arith.constant 3 : index
    %c0_121 = arith.constant 0 : index
    %c0_122 = arith.constant 0 : index
    %426 = vector.load %arg5[%c3_120, %c0_121, %c0_122] : memref<6x128x384xbf16, #tpu.memory_space<vmem>>, vector<1x128x384xbf16>
    %427 = vector.shape_cast %426 : vector<1x128x384xbf16> to vector<128x384xbf16>
    %cst_123 = arith.constant dense<0.000000e+00> : vector<32x384xf32>
    %428 = tpu.matmul %425, %427, %cst_123 {dimension_numbers = #tpu.dot_dimension_numbers<[1], [0], [0], [1], [0, 0, 1, 1], [], []>} : vector<32x128xbf16>, vector<128x384xbf16>, vector<32x384xf32> -> vector<32x384xf32>
    %429 = vector.extract_strided_slice %428 {offsets = [0, 0], sizes = [32, 128], strides = [1, 1]} : vector<32x384xf32> to vector<32x128xf32>
    %430 = vector.extract_strided_slice %424 {offsets = [0, 0], sizes = [1, 128], strides = [1, 1]} : vector<9x128xf32> to vector<1x128xf32>
    %431 = vector.broadcast %430 : vector<1x128xf32> to vector<32x128xf32>
    %432 = arith.addf %429, %431 : vector<32x128xf32>
    %433 = vector.extract_strided_slice %428 {offsets = [0, 128], sizes = [32, 128], strides = [1, 1]} : vector<32x384xf32> to vector<32x128xf32>
    %434 = vector.extract_strided_slice %424 {offsets = [1, 0], sizes = [1, 128], strides = [1, 1]} : vector<9x128xf32> to vector<1x128xf32>
    %435 = vector.broadcast %434 : vector<1x128xf32> to vector<32x128xf32>
    %436 = arith.addf %433, %435 : vector<32x128xf32>
    %437 = vector.extract_strided_slice %428 {offsets = [0, 256], sizes = [32, 128], strides = [1, 1]} : vector<32x384xf32> to vector<32x128xf32>
    %438 = vector.extract_strided_slice %424 {offsets = [2, 0], sizes = [1, 128], strides = [1, 1]} : vector<9x128xf32> to vector<1x128xf32>
    %439 = vector.broadcast %438 : vector<1x128xf32> to vector<32x128xf32>
    %440 = arith.addf %437, %439 : vector<32x128xf32>
    %441 = vector.shape_cast %432 : vector<32x128xf32> to vector<2x1x16x128xf32>
    %442 = vector.shape_cast %436 : vector<32x128xf32> to vector<1x2x16x128xf32>
    %443 = vector.broadcast %441 : vector<2x1x16x128xf32> to vector<2x2x16x128xf32>
    %444 = vector.broadcast %442 : vector<1x2x16x128xf32> to vector<2x2x16x128xf32>
    %445 = arith.mulf %443, %444 : vector<2x2x16x128xf32>
    %446 = arith.truncf %445 : vector<2x2x16x128xf32> to vector<2x2x16x128xbf16>
    %447 = vector.shape_cast %446 : vector<2x2x16x128xbf16> to vector<64x128xbf16>
    %cst_124 = arith.constant dense<0.000000e+00> : vector<64x128xf32>
    %448 = tpu.matmul %447, %1, %cst_124 {dimension_numbers = #tpu.dot_dimension_numbers<[1], [0], [0], [1], [0, 0, 1, 1], [], []>} : vector<64x128xbf16>, vector<128x128xbf16>, vector<64x128xf32> -> vector<64x128xf32>
    %449 = vector.shape_cast %448 : vector<64x128xf32> to vector<2x2x16x128xf32>
    %450 = vector.extract_strided_slice %449 {offsets = [0, 0, 0, 0], sizes = [2, 1, 16, 128], strides = [1, 1, 1, 1]} : vector<2x2x16x128xf32> to vector<2x1x16x128xf32>
    %451 = vector.shape_cast %450 : vector<2x1x16x128xf32> to vector<2x16x128xf32>
    %452 = vector.extract_strided_slice %449 {offsets = [0, 1, 0, 0], sizes = [2, 1, 16, 128], strides = [1, 1, 1, 1]} : vector<2x2x16x128xf32> to vector<2x1x16x128xf32>
    %453 = vector.shape_cast %452 : vector<2x1x16x128xf32> to vector<2x16x128xf32>
    %454 = arith.maximumf %451, %453 : vector<2x16x128xf32>
    %455 = vector.shape_cast %454 : vector<2x16x128xf32> to vector<2x1x16x128xf32>
    %456 = vector.broadcast %455 : vector<2x1x16x128xf32> to vector<2x2x16x128xf32>
    %457 = arith.subf %449, %456 : vector<2x2x16x128xf32>
    %458 = math.exp %457 : vector<2x2x16x128xf32>
    %459 = vector.extract_strided_slice %458 {offsets = [0, 0, 0, 0], sizes = [2, 1, 16, 128], strides = [1, 1, 1, 1]} : vector<2x2x16x128xf32> to vector<2x1x16x128xf32>
    %460 = vector.shape_cast %459 : vector<2x1x16x128xf32> to vector<2x16x128xf32>
    %461 = vector.extract_strided_slice %458 {offsets = [0, 1, 0, 0], sizes = [2, 1, 16, 128], strides = [1, 1, 1, 1]} : vector<2x2x16x128xf32> to vector<2x1x16x128xf32>
    %462 = vector.shape_cast %461 : vector<2x1x16x128xf32> to vector<2x16x128xf32>
    %463 = arith.addf %460, %462 : vector<2x16x128xf32>
    %464 = tpu.reciprocal %463 {approx = true} : vector<2x16x128xf32> -> vector<2x16x128xf32>
    %465 = vector.shape_cast %464 : vector<2x16x128xf32> to vector<2x1x16x128xf32>
    %466 = vector.broadcast %465 : vector<2x1x16x128xf32> to vector<2x2x16x128xf32>
    %467 = arith.mulf %458, %466 : vector<2x2x16x128xf32>
    %468 = vector.shape_cast %467 : vector<2x2x16x128xf32> to vector<64x128xf32>
    %469 = arith.truncf %468 : vector<64x128xf32> to vector<64x128xbf16>
    %cst_125 = arith.constant dense<0.000000e+00> : vector<64x128xf32>
    %470 = tpu.matmul %469, %3, %cst_125 {dimension_numbers = #tpu.dot_dimension_numbers<[1], [0], [0], [1], [0, 0, 1, 1], [], []>} : vector<64x128xbf16>, vector<128x128xbf16>, vector<64x128xf32> -> vector<64x128xf32>
    %471 = vector.shape_cast %470 : vector<64x128xf32> to vector<2x2x16x128xf32>
    %472 = vector.shape_cast %440 : vector<32x128xf32> to vector<2x16x128xf32>
    %473 = vector.extract_strided_slice %471 {offsets = [0, 0, 0, 0], sizes = [2, 1, 16, 128], strides = [1, 1, 1, 1]} : vector<2x2x16x128xf32> to vector<2x1x16x128xf32>
    %474 = vector.shape_cast %473 : vector<2x1x16x128xf32> to vector<2x16x128xf32>
    %475 = vector.extract_strided_slice %472 {offsets = [0, 0, 0], sizes = [1, 16, 128], strides = [1, 1, 1]} : vector<2x16x128xf32> to vector<1x16x128xf32>
    %476 = vector.shape_cast %475 : vector<1x16x128xf32> to vector<16x128xf32>
    %477 = vector.shape_cast %476 : vector<16x128xf32> to vector<1x16x128xf32>
    %478 = vector.broadcast %477 : vector<1x16x128xf32> to vector<2x16x128xf32>
    %479 = arith.mulf %474, %478 : vector<2x16x128xf32>
    %480 = vector.extract_strided_slice %471 {offsets = [0, 1, 0, 0], sizes = [2, 1, 16, 128], strides = [1, 1, 1, 1]} : vector<2x2x16x128xf32> to vector<2x1x16x128xf32>
    %481 = vector.shape_cast %480 : vector<2x1x16x128xf32> to vector<2x16x128xf32>
    %482 = vector.extract_strided_slice %472 {offsets = [1, 0, 0], sizes = [1, 16, 128], strides = [1, 1, 1]} : vector<2x16x128xf32> to vector<1x16x128xf32>
    %483 = vector.shape_cast %482 : vector<1x16x128xf32> to vector<16x128xf32>
    %484 = vector.shape_cast %483 : vector<16x128xf32> to vector<1x16x128xf32>
    %485 = vector.broadcast %484 : vector<1x16x128xf32> to vector<2x16x128xf32>
    %486 = arith.mulf %481, %485 : vector<2x16x128xf32>
    %487 = arith.addf %479, %486 : vector<2x16x128xf32>
    %488 = vector.shape_cast %487 : vector<2x16x128xf32> to vector<32x128xf32>
    %489 = arith.truncf %488 : vector<32x128xf32> to vector<32x128xbf16>
    %c3_126 = arith.constant 3 : index
    %c0_127 = arith.constant 0 : index
    %c0_128 = arith.constant 0 : index
    %490 = vector.load %arg6[%c3_126, %c0_127, %c0_128] : memref<6x128x128xbf16, #tpu.memory_space<vmem>>, vector<1x128x128xbf16>
    %491 = vector.shape_cast %490 : vector<1x128x128xbf16> to vector<128x128xbf16>
    %cst_129 = arith.constant dense<0.000000e+00> : vector<32x128xf32>
    %492 = tpu.matmul %489, %491, %cst_129 {dimension_numbers = #tpu.dot_dimension_numbers<[1], [0], [0], [1], [0, 0, 1, 1], [], []>} : vector<32x128xbf16>, vector<128x128xbf16>, vector<32x128xf32> -> vector<32x128xf32>
    %493 = arith.addf %422, %492 : vector<32x128xf32>
    %494 = vector.extract_strided_slice %424 {offsets = [3, 0], sizes = [1, 128], strides = [1, 1]} : vector<9x128xf32> to vector<1x128xf32>
    %495 = vector.broadcast %494 : vector<1x128xf32> to vector<32x128xf32>
    %496 = arith.addf %493, %495 : vector<32x128xf32>
    %497 = vector.extract_strided_slice %424 {offsets = [4, 0], sizes = [1, 128], strides = [1, 1]} : vector<9x128xf32> to vector<1x128xf32>
    %498 = vector.extract_strided_slice %424 {offsets = [5, 0], sizes = [1, 128], strides = [1, 1]} : vector<9x128xf32> to vector<1x128xf32>
    %cst_130 = arith.constant dense<0.000000e+00> : vector<32xf32>
    %499 = vector.multi_reduction <add>, %496, %cst_130 [1] : vector<32x128xf32> to vector<32xf32>
    %500 = vector.shape_cast %499 : vector<32xf32> to vector<32x1xf32>
    %cst_131 = arith.constant 1.280000e+02 : f32
    %501 = vector.broadcast %cst_131 : f32 to vector<32x1xf32>
    %502 = arith.divf %500, %501 : vector<32x1xf32>
    %503 = vector.broadcast %502 : vector<32x1xf32> to vector<32x128xf32>
    %504 = arith.subf %496, %503 : vector<32x128xf32>
    %505 = arith.mulf %504, %504 : vector<32x128xf32>
    %cst_132 = arith.constant dense<0.000000e+00> : vector<32xf32>
    %506 = vector.multi_reduction <add>, %505, %cst_132 [1] : vector<32x128xf32> to vector<32xf32>
    %507 = vector.shape_cast %506 : vector<32xf32> to vector<32x1xf32>
    %cst_133 = arith.constant 1.280000e+02 : f32
    %508 = vector.broadcast %cst_133 : f32 to vector<32x1xf32>
    %509 = arith.divf %507, %508 : vector<32x1xf32>
    %cst_134 = arith.constant 9.99999974E-6 : f32
    %510 = vector.broadcast %cst_134 : f32 to vector<32x1xf32>
    %511 = arith.addf %509, %510 : vector<32x1xf32>
    %512 = math.rsqrt %511 : vector<32x1xf32>
    %513 = vector.broadcast %512 : vector<32x1xf32> to vector<32x128xf32>
    %514 = arith.mulf %504, %513 : vector<32x128xf32>
    %515 = vector.broadcast %497 : vector<1x128xf32> to vector<32x128xf32>
    %516 = arith.mulf %514, %515 : vector<32x128xf32>
    %517 = vector.broadcast %498 : vector<1x128xf32> to vector<32x128xf32>
    %518 = arith.addf %516, %517 : vector<32x128xf32>
    %519 = arith.truncf %518 : vector<32x128xf32> to vector<32x128xbf16>
    %c3_135 = arith.constant 3 : index
    %c0_136 = arith.constant 0 : index
    %c0_137 = arith.constant 0 : index
    %520 = vector.load %arg7[%c3_135, %c0_136, %c0_137] : memref<6x128x256xbf16, #tpu.memory_space<vmem>>, vector<1x128x256xbf16>
    %521 = vector.shape_cast %520 : vector<1x128x256xbf16> to vector<128x256xbf16>
    %cst_138 = arith.constant dense<0.000000e+00> : vector<32x256xf32>
    %522 = tpu.matmul %519, %521, %cst_138 {dimension_numbers = #tpu.dot_dimension_numbers<[1], [0], [0], [1], [0, 0, 1, 1], [], []>} : vector<32x128xbf16>, vector<128x256xbf16>, vector<32x256xf32> -> vector<32x256xf32>
    %c3_139 = arith.constant 3 : index
    %c0_140 = arith.constant 0 : index
    %c0_141 = arith.constant 0 : index
    %523 = vector.load %arg10[%c3_139, %c0_140, %c0_141] : memref<6x1x256xf32, #tpu.memory_space<vmem>>, vector<1x1x256xf32>
    %524 = vector.shape_cast %523 : vector<1x1x256xf32> to vector<1x256xf32>
    %525 = vector.broadcast %524 : vector<1x256xf32> to vector<32x256xf32>
    %526 = arith.addf %522, %525 : vector<32x256xf32>
    %cst_142 = arith.constant 0.000000e+00 : f32
    %527 = vector.broadcast %cst_142 : f32 to vector<32x256xf32>
    %528 = arith.maximumf %526, %527 : vector<32x256xf32>
    %529 = arith.truncf %528 : vector<32x256xf32> to vector<32x256xbf16>
    %c3_143 = arith.constant 3 : index
    %c0_144 = arith.constant 0 : index
    %c0_145 = arith.constant 0 : index
    %530 = vector.load %arg8[%c3_143, %c0_144, %c0_145] : memref<6x256x128xbf16, #tpu.memory_space<vmem>>, vector<1x256x128xbf16>
    %531 = vector.shape_cast %530 : vector<1x256x128xbf16> to vector<256x128xbf16>
    %cst_146 = arith.constant dense<0.000000e+00> : vector<32x128xf32>
    %532 = tpu.matmul %529, %531, %cst_146 {dimension_numbers = #tpu.dot_dimension_numbers<[1], [0], [0], [1], [0, 0, 1, 1], [], []>} : vector<32x256xbf16>, vector<256x128xbf16>, vector<32x128xf32> -> vector<32x128xf32>
    %533 = vector.extract_strided_slice %424 {offsets = [6, 0], sizes = [1, 128], strides = [1, 1]} : vector<9x128xf32> to vector<1x128xf32>
    %534 = vector.broadcast %533 : vector<1x128xf32> to vector<32x128xf32>
    %535 = arith.addf %532, %534 : vector<32x128xf32>
    %536 = arith.addf %518, %535 : vector<32x128xf32>
    %537 = vector.extract_strided_slice %424 {offsets = [7, 0], sizes = [1, 128], strides = [1, 1]} : vector<9x128xf32> to vector<1x128xf32>
    %538 = vector.extract_strided_slice %424 {offsets = [8, 0], sizes = [1, 128], strides = [1, 1]} : vector<9x128xf32> to vector<1x128xf32>
    %cst_147 = arith.constant dense<0.000000e+00> : vector<32xf32>
    %539 = vector.multi_reduction <add>, %536, %cst_147 [1] : vector<32x128xf32> to vector<32xf32>
    %540 = vector.shape_cast %539 : vector<32xf32> to vector<32x1xf32>
    %cst_148 = arith.constant 1.280000e+02 : f32
    %541 = vector.broadcast %cst_148 : f32 to vector<32x1xf32>
    %542 = arith.divf %540, %541 : vector<32x1xf32>
    %543 = vector.broadcast %542 : vector<32x1xf32> to vector<32x128xf32>
    %544 = arith.subf %536, %543 : vector<32x128xf32>
    %545 = arith.mulf %544, %544 : vector<32x128xf32>
    %cst_149 = arith.constant dense<0.000000e+00> : vector<32xf32>
    %546 = vector.multi_reduction <add>, %545, %cst_149 [1] : vector<32x128xf32> to vector<32xf32>
    %547 = vector.shape_cast %546 : vector<32xf32> to vector<32x1xf32>
    %cst_150 = arith.constant 1.280000e+02 : f32
    %548 = vector.broadcast %cst_150 : f32 to vector<32x1xf32>
    %549 = arith.divf %547, %548 : vector<32x1xf32>
    %cst_151 = arith.constant 9.99999974E-6 : f32
    %550 = vector.broadcast %cst_151 : f32 to vector<32x1xf32>
    %551 = arith.addf %549, %550 : vector<32x1xf32>
    %552 = math.rsqrt %551 : vector<32x1xf32>
    %553 = vector.broadcast %552 : vector<32x1xf32> to vector<32x128xf32>
    %554 = arith.mulf %544, %553 : vector<32x128xf32>
    %555 = vector.broadcast %537 : vector<1x128xf32> to vector<32x128xf32>
    %556 = arith.mulf %554, %555 : vector<32x128xf32>
    %557 = vector.broadcast %538 : vector<1x128xf32> to vector<32x128xf32>
    %558 = arith.addf %556, %557 : vector<32x128xf32>
    %c4 = arith.constant 4 : index
    %c0_152 = arith.constant 0 : index
    %c0_153 = arith.constant 0 : index
    %559 = vector.load %arg9[%c4, %c0_152, %c0_153] : memref<6x9x128xf32, #tpu.memory_space<vmem>>, vector<1x9x128xf32>
    %560 = vector.shape_cast %559 : vector<1x9x128xf32> to vector<9x128xf32>
    %561 = arith.truncf %558 : vector<32x128xf32> to vector<32x128xbf16>
    %c4_154 = arith.constant 4 : index
    %c0_155 = arith.constant 0 : index
    %c0_156 = arith.constant 0 : index
    %562 = vector.load %arg5[%c4_154, %c0_155, %c0_156] : memref<6x128x384xbf16, #tpu.memory_space<vmem>>, vector<1x128x384xbf16>
    %563 = vector.shape_cast %562 : vector<1x128x384xbf16> to vector<128x384xbf16>
    %cst_157 = arith.constant dense<0.000000e+00> : vector<32x384xf32>
    %564 = tpu.matmul %561, %563, %cst_157 {dimension_numbers = #tpu.dot_dimension_numbers<[1], [0], [0], [1], [0, 0, 1, 1], [], []>} : vector<32x128xbf16>, vector<128x384xbf16>, vector<32x384xf32> -> vector<32x384xf32>
    %565 = vector.extract_strided_slice %564 {offsets = [0, 0], sizes = [32, 128], strides = [1, 1]} : vector<32x384xf32> to vector<32x128xf32>
    %566 = vector.extract_strided_slice %560 {offsets = [0, 0], sizes = [1, 128], strides = [1, 1]} : vector<9x128xf32> to vector<1x128xf32>
    %567 = vector.broadcast %566 : vector<1x128xf32> to vector<32x128xf32>
    %568 = arith.addf %565, %567 : vector<32x128xf32>
    %569 = vector.extract_strided_slice %564 {offsets = [0, 128], sizes = [32, 128], strides = [1, 1]} : vector<32x384xf32> to vector<32x128xf32>
    %570 = vector.extract_strided_slice %560 {offsets = [1, 0], sizes = [1, 128], strides = [1, 1]} : vector<9x128xf32> to vector<1x128xf32>
    %571 = vector.broadcast %570 : vector<1x128xf32> to vector<32x128xf32>
    %572 = arith.addf %569, %571 : vector<32x128xf32>
    %573 = vector.extract_strided_slice %564 {offsets = [0, 256], sizes = [32, 128], strides = [1, 1]} : vector<32x384xf32> to vector<32x128xf32>
    %574 = vector.extract_strided_slice %560 {offsets = [2, 0], sizes = [1, 128], strides = [1, 1]} : vector<9x128xf32> to vector<1x128xf32>
    %575 = vector.broadcast %574 : vector<1x128xf32> to vector<32x128xf32>
    %576 = arith.addf %573, %575 : vector<32x128xf32>
    %577 = vector.shape_cast %568 : vector<32x128xf32> to vector<2x1x16x128xf32>
    %578 = vector.shape_cast %572 : vector<32x128xf32> to vector<1x2x16x128xf32>
    %579 = vector.broadcast %577 : vector<2x1x16x128xf32> to vector<2x2x16x128xf32>
    %580 = vector.broadcast %578 : vector<1x2x16x128xf32> to vector<2x2x16x128xf32>
    %581 = arith.mulf %579, %580 : vector<2x2x16x128xf32>
    %582 = arith.truncf %581 : vector<2x2x16x128xf32> to vector<2x2x16x128xbf16>
    %583 = vector.shape_cast %582 : vector<2x2x16x128xbf16> to vector<64x128xbf16>
    %cst_158 = arith.constant dense<0.000000e+00> : vector<64x128xf32>
    %584 = tpu.matmul %583, %1, %cst_158 {dimension_numbers = #tpu.dot_dimension_numbers<[1], [0], [0], [1], [0, 0, 1, 1], [], []>} : vector<64x128xbf16>, vector<128x128xbf16>, vector<64x128xf32> -> vector<64x128xf32>
    %585 = vector.shape_cast %584 : vector<64x128xf32> to vector<2x2x16x128xf32>
    %586 = vector.extract_strided_slice %585 {offsets = [0, 0, 0, 0], sizes = [2, 1, 16, 128], strides = [1, 1, 1, 1]} : vector<2x2x16x128xf32> to vector<2x1x16x128xf32>
    %587 = vector.shape_cast %586 : vector<2x1x16x128xf32> to vector<2x16x128xf32>
    %588 = vector.extract_strided_slice %585 {offsets = [0, 1, 0, 0], sizes = [2, 1, 16, 128], strides = [1, 1, 1, 1]} : vector<2x2x16x128xf32> to vector<2x1x16x128xf32>
    %589 = vector.shape_cast %588 : vector<2x1x16x128xf32> to vector<2x16x128xf32>
    %590 = arith.maximumf %587, %589 : vector<2x16x128xf32>
    %591 = vector.shape_cast %590 : vector<2x16x128xf32> to vector<2x1x16x128xf32>
    %592 = vector.broadcast %591 : vector<2x1x16x128xf32> to vector<2x2x16x128xf32>
    %593 = arith.subf %585, %592 : vector<2x2x16x128xf32>
    %594 = math.exp %593 : vector<2x2x16x128xf32>
    %595 = vector.extract_strided_slice %594 {offsets = [0, 0, 0, 0], sizes = [2, 1, 16, 128], strides = [1, 1, 1, 1]} : vector<2x2x16x128xf32> to vector<2x1x16x128xf32>
    %596 = vector.shape_cast %595 : vector<2x1x16x128xf32> to vector<2x16x128xf32>
    %597 = vector.extract_strided_slice %594 {offsets = [0, 1, 0, 0], sizes = [2, 1, 16, 128], strides = [1, 1, 1, 1]} : vector<2x2x16x128xf32> to vector<2x1x16x128xf32>
    %598 = vector.shape_cast %597 : vector<2x1x16x128xf32> to vector<2x16x128xf32>
    %599 = arith.addf %596, %598 : vector<2x16x128xf32>
    %600 = tpu.reciprocal %599 {approx = true} : vector<2x16x128xf32> -> vector<2x16x128xf32>
    %601 = vector.shape_cast %600 : vector<2x16x128xf32> to vector<2x1x16x128xf32>
    %602 = vector.broadcast %601 : vector<2x1x16x128xf32> to vector<2x2x16x128xf32>
    %603 = arith.mulf %594, %602 : vector<2x2x16x128xf32>
    %604 = vector.shape_cast %603 : vector<2x2x16x128xf32> to vector<64x128xf32>
    %605 = arith.truncf %604 : vector<64x128xf32> to vector<64x128xbf16>
    %cst_159 = arith.constant dense<0.000000e+00> : vector<64x128xf32>
    %606 = tpu.matmul %605, %3, %cst_159 {dimension_numbers = #tpu.dot_dimension_numbers<[1], [0], [0], [1], [0, 0, 1, 1], [], []>} : vector<64x128xbf16>, vector<128x128xbf16>, vector<64x128xf32> -> vector<64x128xf32>
    %607 = vector.shape_cast %606 : vector<64x128xf32> to vector<2x2x16x128xf32>
    %608 = vector.shape_cast %576 : vector<32x128xf32> to vector<2x16x128xf32>
    %609 = vector.extract_strided_slice %607 {offsets = [0, 0, 0, 0], sizes = [2, 1, 16, 128], strides = [1, 1, 1, 1]} : vector<2x2x16x128xf32> to vector<2x1x16x128xf32>
    %610 = vector.shape_cast %609 : vector<2x1x16x128xf32> to vector<2x16x128xf32>
    %611 = vector.extract_strided_slice %608 {offsets = [0, 0, 0], sizes = [1, 16, 128], strides = [1, 1, 1]} : vector<2x16x128xf32> to vector<1x16x128xf32>
    %612 = vector.shape_cast %611 : vector<1x16x128xf32> to vector<16x128xf32>
    %613 = vector.shape_cast %612 : vector<16x128xf32> to vector<1x16x128xf32>
    %614 = vector.broadcast %613 : vector<1x16x128xf32> to vector<2x16x128xf32>
    %615 = arith.mulf %610, %614 : vector<2x16x128xf32>
    %616 = vector.extract_strided_slice %607 {offsets = [0, 1, 0, 0], sizes = [2, 1, 16, 128], strides = [1, 1, 1, 1]} : vector<2x2x16x128xf32> to vector<2x1x16x128xf32>
    %617 = vector.shape_cast %616 : vector<2x1x16x128xf32> to vector<2x16x128xf32>
    %618 = vector.extract_strided_slice %608 {offsets = [1, 0, 0], sizes = [1, 16, 128], strides = [1, 1, 1]} : vector<2x16x128xf32> to vector<1x16x128xf32>
    %619 = vector.shape_cast %618 : vector<1x16x128xf32> to vector<16x128xf32>
    %620 = vector.shape_cast %619 : vector<16x128xf32> to vector<1x16x128xf32>
    %621 = vector.broadcast %620 : vector<1x16x128xf32> to vector<2x16x128xf32>
    %622 = arith.mulf %617, %621 : vector<2x16x128xf32>
    %623 = arith.addf %615, %622 : vector<2x16x128xf32>
    %624 = vector.shape_cast %623 : vector<2x16x128xf32> to vector<32x128xf32>
    %625 = arith.truncf %624 : vector<32x128xf32> to vector<32x128xbf16>
    %c4_160 = arith.constant 4 : index
    %c0_161 = arith.constant 0 : index
    %c0_162 = arith.constant 0 : index
    %626 = vector.load %arg6[%c4_160, %c0_161, %c0_162] : memref<6x128x128xbf16, #tpu.memory_space<vmem>>, vector<1x128x128xbf16>
    %627 = vector.shape_cast %626 : vector<1x128x128xbf16> to vector<128x128xbf16>
    %cst_163 = arith.constant dense<0.000000e+00> : vector<32x128xf32>
    %628 = tpu.matmul %625, %627, %cst_163 {dimension_numbers = #tpu.dot_dimension_numbers<[1], [0], [0], [1], [0, 0, 1, 1], [], []>} : vector<32x128xbf16>, vector<128x128xbf16>, vector<32x128xf32> -> vector<32x128xf32>
    %629 = arith.addf %558, %628 : vector<32x128xf32>
    %630 = vector.extract_strided_slice %560 {offsets = [3, 0], sizes = [1, 128], strides = [1, 1]} : vector<9x128xf32> to vector<1x128xf32>
    %631 = vector.broadcast %630 : vector<1x128xf32> to vector<32x128xf32>
    %632 = arith.addf %629, %631 : vector<32x128xf32>
    %633 = vector.extract_strided_slice %560 {offsets = [4, 0], sizes = [1, 128], strides = [1, 1]} : vector<9x128xf32> to vector<1x128xf32>
    %634 = vector.extract_strided_slice %560 {offsets = [5, 0], sizes = [1, 128], strides = [1, 1]} : vector<9x128xf32> to vector<1x128xf32>
    %cst_164 = arith.constant dense<0.000000e+00> : vector<32xf32>
    %635 = vector.multi_reduction <add>, %632, %cst_164 [1] : vector<32x128xf32> to vector<32xf32>
    %636 = vector.shape_cast %635 : vector<32xf32> to vector<32x1xf32>
    %cst_165 = arith.constant 1.280000e+02 : f32
    %637 = vector.broadcast %cst_165 : f32 to vector<32x1xf32>
    %638 = arith.divf %636, %637 : vector<32x1xf32>
    %639 = vector.broadcast %638 : vector<32x1xf32> to vector<32x128xf32>
    %640 = arith.subf %632, %639 : vector<32x128xf32>
    %641 = arith.mulf %640, %640 : vector<32x128xf32>
    %cst_166 = arith.constant dense<0.000000e+00> : vector<32xf32>
    %642 = vector.multi_reduction <add>, %641, %cst_166 [1] : vector<32x128xf32> to vector<32xf32>
    %643 = vector.shape_cast %642 : vector<32xf32> to vector<32x1xf32>
    %cst_167 = arith.constant 1.280000e+02 : f32
    %644 = vector.broadcast %cst_167 : f32 to vector<32x1xf32>
    %645 = arith.divf %643, %644 : vector<32x1xf32>
    %cst_168 = arith.constant 9.99999974E-6 : f32
    %646 = vector.broadcast %cst_168 : f32 to vector<32x1xf32>
    %647 = arith.addf %645, %646 : vector<32x1xf32>
    %648 = math.rsqrt %647 : vector<32x1xf32>
    %649 = vector.broadcast %648 : vector<32x1xf32> to vector<32x128xf32>
    %650 = arith.mulf %640, %649 : vector<32x128xf32>
    %651 = vector.broadcast %633 : vector<1x128xf32> to vector<32x128xf32>
    %652 = arith.mulf %650, %651 : vector<32x128xf32>
    %653 = vector.broadcast %634 : vector<1x128xf32> to vector<32x128xf32>
    %654 = arith.addf %652, %653 : vector<32x128xf32>
    %655 = arith.truncf %654 : vector<32x128xf32> to vector<32x128xbf16>
    %c4_169 = arith.constant 4 : index
    %c0_170 = arith.constant 0 : index
    %c0_171 = arith.constant 0 : index
    %656 = vector.load %arg7[%c4_169, %c0_170, %c0_171] : memref<6x128x256xbf16, #tpu.memory_space<vmem>>, vector<1x128x256xbf16>
    %657 = vector.shape_cast %656 : vector<1x128x256xbf16> to vector<128x256xbf16>
    %cst_172 = arith.constant dense<0.000000e+00> : vector<32x256xf32>
    %658 = tpu.matmul %655, %657, %cst_172 {dimension_numbers = #tpu.dot_dimension_numbers<[1], [0], [0], [1], [0, 0, 1, 1], [], []>} : vector<32x128xbf16>, vector<128x256xbf16>, vector<32x256xf32> -> vector<32x256xf32>
    %c4_173 = arith.constant 4 : index
    %c0_174 = arith.constant 0 : index
    %c0_175 = arith.constant 0 : index
    %659 = vector.load %arg10[%c4_173, %c0_174, %c0_175] : memref<6x1x256xf32, #tpu.memory_space<vmem>>, vector<1x1x256xf32>
    %660 = vector.shape_cast %659 : vector<1x1x256xf32> to vector<1x256xf32>
    %661 = vector.broadcast %660 : vector<1x256xf32> to vector<32x256xf32>
    %662 = arith.addf %658, %661 : vector<32x256xf32>
    %cst_176 = arith.constant 0.000000e+00 : f32
    %663 = vector.broadcast %cst_176 : f32 to vector<32x256xf32>
    %664 = arith.maximumf %662, %663 : vector<32x256xf32>
    %665 = arith.truncf %664 : vector<32x256xf32> to vector<32x256xbf16>
    %c4_177 = arith.constant 4 : index
    %c0_178 = arith.constant 0 : index
    %c0_179 = arith.constant 0 : index
    %666 = vector.load %arg8[%c4_177, %c0_178, %c0_179] : memref<6x256x128xbf16, #tpu.memory_space<vmem>>, vector<1x256x128xbf16>
    %667 = vector.shape_cast %666 : vector<1x256x128xbf16> to vector<256x128xbf16>
    %cst_180 = arith.constant dense<0.000000e+00> : vector<32x128xf32>
    %668 = tpu.matmul %665, %667, %cst_180 {dimension_numbers = #tpu.dot_dimension_numbers<[1], [0], [0], [1], [0, 0, 1, 1], [], []>} : vector<32x256xbf16>, vector<256x128xbf16>, vector<32x128xf32> -> vector<32x128xf32>
    %669 = vector.extract_strided_slice %560 {offsets = [6, 0], sizes = [1, 128], strides = [1, 1]} : vector<9x128xf32> to vector<1x128xf32>
    %670 = vector.broadcast %669 : vector<1x128xf32> to vector<32x128xf32>
    %671 = arith.addf %668, %670 : vector<32x128xf32>
    %672 = arith.addf %654, %671 : vector<32x128xf32>
    %673 = vector.extract_strided_slice %560 {offsets = [7, 0], sizes = [1, 128], strides = [1, 1]} : vector<9x128xf32> to vector<1x128xf32>
    %674 = vector.extract_strided_slice %560 {offsets = [8, 0], sizes = [1, 128], strides = [1, 1]} : vector<9x128xf32> to vector<1x128xf32>
    %cst_181 = arith.constant dense<0.000000e+00> : vector<32xf32>
    %675 = vector.multi_reduction <add>, %672, %cst_181 [1] : vector<32x128xf32> to vector<32xf32>
    %676 = vector.shape_cast %675 : vector<32xf32> to vector<32x1xf32>
    %cst_182 = arith.constant 1.280000e+02 : f32
    %677 = vector.broadcast %cst_182 : f32 to vector<32x1xf32>
    %678 = arith.divf %676, %677 : vector<32x1xf32>
    %679 = vector.broadcast %678 : vector<32x1xf32> to vector<32x128xf32>
    %680 = arith.subf %672, %679 : vector<32x128xf32>
    %681 = arith.mulf %680, %680 : vector<32x128xf32>
    %cst_183 = arith.constant dense<0.000000e+00> : vector<32xf32>
    %682 = vector.multi_reduction <add>, %681, %cst_183 [1] : vector<32x128xf32> to vector<32xf32>
    %683 = vector.shape_cast %682 : vector<32xf32> to vector<32x1xf32>
    %cst_184 = arith.constant 1.280000e+02 : f32
    %684 = vector.broadcast %cst_184 : f32 to vector<32x1xf32>
    %685 = arith.divf %683, %684 : vector<32x1xf32>
    %cst_185 = arith.constant 9.99999974E-6 : f32
    %686 = vector.broadcast %cst_185 : f32 to vector<32x1xf32>
    %687 = arith.addf %685, %686 : vector<32x1xf32>
    %688 = math.rsqrt %687 : vector<32x1xf32>
    %689 = vector.broadcast %688 : vector<32x1xf32> to vector<32x128xf32>
    %690 = arith.mulf %680, %689 : vector<32x128xf32>
    %691 = vector.broadcast %673 : vector<1x128xf32> to vector<32x128xf32>
    %692 = arith.mulf %690, %691 : vector<32x128xf32>
    %693 = vector.broadcast %674 : vector<1x128xf32> to vector<32x128xf32>
    %694 = arith.addf %692, %693 : vector<32x128xf32>
    %c5 = arith.constant 5 : index
    %c0_186 = arith.constant 0 : index
    %c0_187 = arith.constant 0 : index
    %695 = vector.load %arg9[%c5, %c0_186, %c0_187] : memref<6x9x128xf32, #tpu.memory_space<vmem>>, vector<1x9x128xf32>
    %696 = vector.shape_cast %695 : vector<1x9x128xf32> to vector<9x128xf32>
    %697 = arith.truncf %694 : vector<32x128xf32> to vector<32x128xbf16>
    %c5_188 = arith.constant 5 : index
    %c0_189 = arith.constant 0 : index
    %c0_190 = arith.constant 0 : index
    %698 = vector.load %arg5[%c5_188, %c0_189, %c0_190] : memref<6x128x384xbf16, #tpu.memory_space<vmem>>, vector<1x128x384xbf16>
    %699 = vector.shape_cast %698 : vector<1x128x384xbf16> to vector<128x384xbf16>
    %cst_191 = arith.constant dense<0.000000e+00> : vector<32x384xf32>
    %700 = tpu.matmul %697, %699, %cst_191 {dimension_numbers = #tpu.dot_dimension_numbers<[1], [0], [0], [1], [0, 0, 1, 1], [], []>} : vector<32x128xbf16>, vector<128x384xbf16>, vector<32x384xf32> -> vector<32x384xf32>
    %701 = vector.extract_strided_slice %700 {offsets = [0, 0], sizes = [32, 128], strides = [1, 1]} : vector<32x384xf32> to vector<32x128xf32>
    %702 = vector.extract_strided_slice %696 {offsets = [0, 0], sizes = [1, 128], strides = [1, 1]} : vector<9x128xf32> to vector<1x128xf32>
    %703 = vector.broadcast %702 : vector<1x128xf32> to vector<32x128xf32>
    %704 = arith.addf %701, %703 : vector<32x128xf32>
    %705 = vector.extract_strided_slice %700 {offsets = [0, 128], sizes = [32, 128], strides = [1, 1]} : vector<32x384xf32> to vector<32x128xf32>
    %706 = vector.extract_strided_slice %696 {offsets = [1, 0], sizes = [1, 128], strides = [1, 1]} : vector<9x128xf32> to vector<1x128xf32>
    %707 = vector.broadcast %706 : vector<1x128xf32> to vector<32x128xf32>
    %708 = arith.addf %705, %707 : vector<32x128xf32>
    %709 = vector.extract_strided_slice %700 {offsets = [0, 256], sizes = [32, 128], strides = [1, 1]} : vector<32x384xf32> to vector<32x128xf32>
    %710 = vector.extract_strided_slice %696 {offsets = [2, 0], sizes = [1, 128], strides = [1, 1]} : vector<9x128xf32> to vector<1x128xf32>
    %711 = vector.broadcast %710 : vector<1x128xf32> to vector<32x128xf32>
    %712 = arith.addf %709, %711 : vector<32x128xf32>
    %713 = vector.shape_cast %704 : vector<32x128xf32> to vector<2x1x16x128xf32>
    %714 = vector.shape_cast %708 : vector<32x128xf32> to vector<1x2x16x128xf32>
    %715 = vector.broadcast %713 : vector<2x1x16x128xf32> to vector<2x2x16x128xf32>
    %716 = vector.broadcast %714 : vector<1x2x16x128xf32> to vector<2x2x16x128xf32>
    %717 = arith.mulf %715, %716 : vector<2x2x16x128xf32>
    %718 = arith.truncf %717 : vector<2x2x16x128xf32> to vector<2x2x16x128xbf16>
    %719 = vector.shape_cast %718 : vector<2x2x16x128xbf16> to vector<64x128xbf16>
    %cst_192 = arith.constant dense<0.000000e+00> : vector<64x128xf32>
    %720 = tpu.matmul %719, %1, %cst_192 {dimension_numbers = #tpu.dot_dimension_numbers<[1], [0], [0], [1], [0, 0, 1, 1], [], []>} : vector<64x128xbf16>, vector<128x128xbf16>, vector<64x128xf32> -> vector<64x128xf32>
    %721 = vector.shape_cast %720 : vector<64x128xf32> to vector<2x2x16x128xf32>
    %722 = vector.extract_strided_slice %721 {offsets = [0, 0, 0, 0], sizes = [2, 1, 16, 128], strides = [1, 1, 1, 1]} : vector<2x2x16x128xf32> to vector<2x1x16x128xf32>
    %723 = vector.shape_cast %722 : vector<2x1x16x128xf32> to vector<2x16x128xf32>
    %724 = vector.extract_strided_slice %721 {offsets = [0, 1, 0, 0], sizes = [2, 1, 16, 128], strides = [1, 1, 1, 1]} : vector<2x2x16x128xf32> to vector<2x1x16x128xf32>
    %725 = vector.shape_cast %724 : vector<2x1x16x128xf32> to vector<2x16x128xf32>
    %726 = arith.maximumf %723, %725 : vector<2x16x128xf32>
    %727 = vector.shape_cast %726 : vector<2x16x128xf32> to vector<2x1x16x128xf32>
    %728 = vector.broadcast %727 : vector<2x1x16x128xf32> to vector<2x2x16x128xf32>
    %729 = arith.subf %721, %728 : vector<2x2x16x128xf32>
    %730 = math.exp %729 : vector<2x2x16x128xf32>
    %731 = vector.extract_strided_slice %730 {offsets = [0, 0, 0, 0], sizes = [2, 1, 16, 128], strides = [1, 1, 1, 1]} : vector<2x2x16x128xf32> to vector<2x1x16x128xf32>
    %732 = vector.shape_cast %731 : vector<2x1x16x128xf32> to vector<2x16x128xf32>
    %733 = vector.extract_strided_slice %730 {offsets = [0, 1, 0, 0], sizes = [2, 1, 16, 128], strides = [1, 1, 1, 1]} : vector<2x2x16x128xf32> to vector<2x1x16x128xf32>
    %734 = vector.shape_cast %733 : vector<2x1x16x128xf32> to vector<2x16x128xf32>
    %735 = arith.addf %732, %734 : vector<2x16x128xf32>
    %736 = tpu.reciprocal %735 {approx = true} : vector<2x16x128xf32> -> vector<2x16x128xf32>
    %737 = vector.shape_cast %736 : vector<2x16x128xf32> to vector<2x1x16x128xf32>
    %738 = vector.broadcast %737 : vector<2x1x16x128xf32> to vector<2x2x16x128xf32>
    %739 = arith.mulf %730, %738 : vector<2x2x16x128xf32>
    %740 = vector.shape_cast %739 : vector<2x2x16x128xf32> to vector<64x128xf32>
    %741 = arith.truncf %740 : vector<64x128xf32> to vector<64x128xbf16>
    %cst_193 = arith.constant dense<0.000000e+00> : vector<64x128xf32>
    %742 = tpu.matmul %741, %3, %cst_193 {dimension_numbers = #tpu.dot_dimension_numbers<[1], [0], [0], [1], [0, 0, 1, 1], [], []>} : vector<64x128xbf16>, vector<128x128xbf16>, vector<64x128xf32> -> vector<64x128xf32>
    %743 = vector.shape_cast %742 : vector<64x128xf32> to vector<2x2x16x128xf32>
    %744 = vector.shape_cast %712 : vector<32x128xf32> to vector<2x16x128xf32>
    %745 = vector.extract_strided_slice %743 {offsets = [0, 0, 0, 0], sizes = [2, 1, 16, 128], strides = [1, 1, 1, 1]} : vector<2x2x16x128xf32> to vector<2x1x16x128xf32>
    %746 = vector.shape_cast %745 : vector<2x1x16x128xf32> to vector<2x16x128xf32>
    %747 = vector.extract_strided_slice %744 {offsets = [0, 0, 0], sizes = [1, 16, 128], strides = [1, 1, 1]} : vector<2x16x128xf32> to vector<1x16x128xf32>
    %748 = vector.shape_cast %747 : vector<1x16x128xf32> to vector<16x128xf32>
    %749 = vector.shape_cast %748 : vector<16x128xf32> to vector<1x16x128xf32>
    %750 = vector.broadcast %749 : vector<1x16x128xf32> to vector<2x16x128xf32>
    %751 = arith.mulf %746, %750 : vector<2x16x128xf32>
    %752 = vector.extract_strided_slice %743 {offsets = [0, 1, 0, 0], sizes = [2, 1, 16, 128], strides = [1, 1, 1, 1]} : vector<2x2x16x128xf32> to vector<2x1x16x128xf32>
    %753 = vector.shape_cast %752 : vector<2x1x16x128xf32> to vector<2x16x128xf32>
    %754 = vector.extract_strided_slice %744 {offsets = [1, 0, 0], sizes = [1, 16, 128], strides = [1, 1, 1]} : vector<2x16x128xf32> to vector<1x16x128xf32>
    %755 = vector.shape_cast %754 : vector<1x16x128xf32> to vector<16x128xf32>
    %756 = vector.shape_cast %755 : vector<16x128xf32> to vector<1x16x128xf32>
    %757 = vector.broadcast %756 : vector<1x16x128xf32> to vector<2x16x128xf32>
    %758 = arith.mulf %753, %757 : vector<2x16x128xf32>
    %759 = arith.addf %751, %758 : vector<2x16x128xf32>
    %760 = vector.shape_cast %759 : vector<2x16x128xf32> to vector<32x128xf32>
    %761 = arith.truncf %760 : vector<32x128xf32> to vector<32x128xbf16>
    %c5_194 = arith.constant 5 : index
    %c0_195 = arith.constant 0 : index
    %c0_196 = arith.constant 0 : index
    %762 = vector.load %arg6[%c5_194, %c0_195, %c0_196] : memref<6x128x128xbf16, #tpu.memory_space<vmem>>, vector<1x128x128xbf16>
    %763 = vector.shape_cast %762 : vector<1x128x128xbf16> to vector<128x128xbf16>
    %cst_197 = arith.constant dense<0.000000e+00> : vector<32x128xf32>
    %764 = tpu.matmul %761, %763, %cst_197 {dimension_numbers = #tpu.dot_dimension_numbers<[1], [0], [0], [1], [0, 0, 1, 1], [], []>} : vector<32x128xbf16>, vector<128x128xbf16>, vector<32x128xf32> -> vector<32x128xf32>
    %765 = arith.addf %694, %764 : vector<32x128xf32>
    %766 = vector.extract_strided_slice %696 {offsets = [3, 0], sizes = [1, 128], strides = [1, 1]} : vector<9x128xf32> to vector<1x128xf32>
    %767 = vector.broadcast %766 : vector<1x128xf32> to vector<32x128xf32>
    %768 = arith.addf %765, %767 : vector<32x128xf32>
    %769 = vector.extract_strided_slice %696 {offsets = [4, 0], sizes = [1, 128], strides = [1, 1]} : vector<9x128xf32> to vector<1x128xf32>
    %770 = vector.extract_strided_slice %696 {offsets = [5, 0], sizes = [1, 128], strides = [1, 1]} : vector<9x128xf32> to vector<1x128xf32>
    %cst_198 = arith.constant dense<0.000000e+00> : vector<32xf32>
    %771 = vector.multi_reduction <add>, %768, %cst_198 [1] : vector<32x128xf32> to vector<32xf32>
    %772 = vector.shape_cast %771 : vector<32xf32> to vector<32x1xf32>
    %cst_199 = arith.constant 1.280000e+02 : f32
    %773 = vector.broadcast %cst_199 : f32 to vector<32x1xf32>
    %774 = arith.divf %772, %773 : vector<32x1xf32>
    %775 = vector.broadcast %774 : vector<32x1xf32> to vector<32x128xf32>
    %776 = arith.subf %768, %775 : vector<32x128xf32>
    %777 = arith.mulf %776, %776 : vector<32x128xf32>
    %cst_200 = arith.constant dense<0.000000e+00> : vector<32xf32>
    %778 = vector.multi_reduction <add>, %777, %cst_200 [1] : vector<32x128xf32> to vector<32xf32>
    %779 = vector.shape_cast %778 : vector<32xf32> to vector<32x1xf32>
    %cst_201 = arith.constant 1.280000e+02 : f32
    %780 = vector.broadcast %cst_201 : f32 to vector<32x1xf32>
    %781 = arith.divf %779, %780 : vector<32x1xf32>
    %cst_202 = arith.constant 9.99999974E-6 : f32
    %782 = vector.broadcast %cst_202 : f32 to vector<32x1xf32>
    %783 = arith.addf %781, %782 : vector<32x1xf32>
    %784 = math.rsqrt %783 : vector<32x1xf32>
    %785 = vector.broadcast %784 : vector<32x1xf32> to vector<32x128xf32>
    %786 = arith.mulf %776, %785 : vector<32x128xf32>
    %787 = vector.broadcast %769 : vector<1x128xf32> to vector<32x128xf32>
    %788 = arith.mulf %786, %787 : vector<32x128xf32>
    %789 = vector.broadcast %770 : vector<1x128xf32> to vector<32x128xf32>
    %790 = arith.addf %788, %789 : vector<32x128xf32>
    %791 = arith.truncf %790 : vector<32x128xf32> to vector<32x128xbf16>
    %c5_203 = arith.constant 5 : index
    %c0_204 = arith.constant 0 : index
    %c0_205 = arith.constant 0 : index
    %792 = vector.load %arg7[%c5_203, %c0_204, %c0_205] : memref<6x128x256xbf16, #tpu.memory_space<vmem>>, vector<1x128x256xbf16>
    %793 = vector.shape_cast %792 : vector<1x128x256xbf16> to vector<128x256xbf16>
    %cst_206 = arith.constant dense<0.000000e+00> : vector<32x256xf32>
    %794 = tpu.matmul %791, %793, %cst_206 {dimension_numbers = #tpu.dot_dimension_numbers<[1], [0], [0], [1], [0, 0, 1, 1], [], []>} : vector<32x128xbf16>, vector<128x256xbf16>, vector<32x256xf32> -> vector<32x256xf32>
    %c5_207 = arith.constant 5 : index
    %c0_208 = arith.constant 0 : index
    %c0_209 = arith.constant 0 : index
    %795 = vector.load %arg10[%c5_207, %c0_208, %c0_209] : memref<6x1x256xf32, #tpu.memory_space<vmem>>, vector<1x1x256xf32>
    %796 = vector.shape_cast %795 : vector<1x1x256xf32> to vector<1x256xf32>
    %797 = vector.broadcast %796 : vector<1x256xf32> to vector<32x256xf32>
    %798 = arith.addf %794, %797 : vector<32x256xf32>
    %cst_210 = arith.constant 0.000000e+00 : f32
    %799 = vector.broadcast %cst_210 : f32 to vector<32x256xf32>
    %800 = arith.maximumf %798, %799 : vector<32x256xf32>
    %801 = arith.truncf %800 : vector<32x256xf32> to vector<32x256xbf16>
    %c5_211 = arith.constant 5 : index
    %c0_212 = arith.constant 0 : index
    %c0_213 = arith.constant 0 : index
    %802 = vector.load %arg8[%c5_211, %c0_212, %c0_213] : memref<6x256x128xbf16, #tpu.memory_space<vmem>>, vector<1x256x128xbf16>
    %803 = vector.shape_cast %802 : vector<1x256x128xbf16> to vector<256x128xbf16>
    %cst_214 = arith.constant dense<0.000000e+00> : vector<32x128xf32>
    %804 = tpu.matmul %801, %803, %cst_214 {dimension_numbers = #tpu.dot_dimension_numbers<[1], [0], [0], [1], [0, 0, 1, 1], [], []>} : vector<32x256xbf16>, vector<256x128xbf16>, vector<32x128xf32> -> vector<32x128xf32>
    %805 = vector.extract_strided_slice %696 {offsets = [6, 0], sizes = [1, 128], strides = [1, 1]} : vector<9x128xf32> to vector<1x128xf32>
    %806 = vector.broadcast %805 : vector<1x128xf32> to vector<32x128xf32>
    %807 = arith.addf %804, %806 : vector<32x128xf32>
    %808 = arith.addf %790, %807 : vector<32x128xf32>
    %809 = vector.extract_strided_slice %696 {offsets = [7, 0], sizes = [1, 128], strides = [1, 1]} : vector<9x128xf32> to vector<1x128xf32>
    %810 = vector.extract_strided_slice %696 {offsets = [8, 0], sizes = [1, 128], strides = [1, 1]} : vector<9x128xf32> to vector<1x128xf32>
    %cst_215 = arith.constant dense<0.000000e+00> : vector<32xf32>
    %811 = vector.multi_reduction <add>, %808, %cst_215 [1] : vector<32x128xf32> to vector<32xf32>
    %812 = vector.shape_cast %811 : vector<32xf32> to vector<32x1xf32>
    %cst_216 = arith.constant 1.280000e+02 : f32
    %813 = vector.broadcast %cst_216 : f32 to vector<32x1xf32>
    %814 = arith.divf %812, %813 : vector<32x1xf32>
    %815 = vector.broadcast %814 : vector<32x1xf32> to vector<32x128xf32>
    %816 = arith.subf %808, %815 : vector<32x128xf32>
    %817 = arith.mulf %816, %816 : vector<32x128xf32>
    %cst_217 = arith.constant dense<0.000000e+00> : vector<32xf32>
    %818 = vector.multi_reduction <add>, %817, %cst_217 [1] : vector<32x128xf32> to vector<32xf32>
    %819 = vector.shape_cast %818 : vector<32xf32> to vector<32x1xf32>
    %cst_218 = arith.constant 1.280000e+02 : f32
    %820 = vector.broadcast %cst_218 : f32 to vector<32x1xf32>
    %821 = arith.divf %819, %820 : vector<32x1xf32>
    %cst_219 = arith.constant 9.99999974E-6 : f32
    %822 = vector.broadcast %cst_219 : f32 to vector<32x1xf32>
    %823 = arith.addf %821, %822 : vector<32x1xf32>
    %824 = math.rsqrt %823 : vector<32x1xf32>
    %825 = vector.broadcast %824 : vector<32x1xf32> to vector<32x128xf32>
    %826 = arith.mulf %816, %825 : vector<32x128xf32>
    %827 = vector.broadcast %809 : vector<1x128xf32> to vector<32x128xf32>
    %828 = arith.mulf %826, %827 : vector<32x128xf32>
    %829 = vector.broadcast %810 : vector<1x128xf32> to vector<32x128xf32>
    %830 = arith.addf %828, %829 : vector<32x128xf32>
    %c1_220 = arith.constant 1 : index
    %c0_221 = arith.constant 0 : index
    %831 = vector.load %arg4[%c1_220, %c0_221] : memref<4x128xf32, #tpu.memory_space<vmem>>, vector<1x128xf32>
    %c2_222 = arith.constant 2 : index
    %c0_223 = arith.constant 0 : index
    %832 = vector.load %arg4[%c2_222, %c0_223] : memref<4x128xf32, #tpu.memory_space<vmem>>, vector<1x128xf32>
    %cst_224 = arith.constant dense<0.000000e+00> : vector<32xf32>
    %833 = vector.multi_reduction <add>, %830, %cst_224 [1] : vector<32x128xf32> to vector<32xf32>
    %834 = vector.shape_cast %833 : vector<32xf32> to vector<32x1xf32>
    %cst_225 = arith.constant 1.280000e+02 : f32
    %835 = vector.broadcast %cst_225 : f32 to vector<32x1xf32>
    %836 = arith.divf %834, %835 : vector<32x1xf32>
    %837 = vector.broadcast %836 : vector<32x1xf32> to vector<32x128xf32>
    %838 = arith.subf %830, %837 : vector<32x128xf32>
    %839 = arith.mulf %838, %838 : vector<32x128xf32>
    %cst_226 = arith.constant dense<0.000000e+00> : vector<32xf32>
    %840 = vector.multi_reduction <add>, %839, %cst_226 [1] : vector<32x128xf32> to vector<32xf32>
    %841 = vector.shape_cast %840 : vector<32xf32> to vector<32x1xf32>
    %cst_227 = arith.constant 1.280000e+02 : f32
    %842 = vector.broadcast %cst_227 : f32 to vector<32x1xf32>
    %843 = arith.divf %841, %842 : vector<32x1xf32>
    %cst_228 = arith.constant 9.99999974E-6 : f32
    %844 = vector.broadcast %cst_228 : f32 to vector<32x1xf32>
    %845 = arith.addf %843, %844 : vector<32x1xf32>
    %846 = math.rsqrt %845 : vector<32x1xf32>
    %847 = vector.broadcast %846 : vector<32x1xf32> to vector<32x128xf32>
    %848 = arith.mulf %838, %847 : vector<32x128xf32>
    %849 = vector.broadcast %831 : vector<1x128xf32> to vector<32x128xf32>
    %850 = arith.mulf %848, %849 : vector<32x128xf32>
    %851 = vector.broadcast %832 : vector<1x128xf32> to vector<32x128xf32>
    %852 = arith.addf %850, %851 : vector<32x128xf32>
    %853 = arith.truncf %852 : vector<32x128xf32> to vector<32x128xbf16>
    %cst_229 = arith.constant dense<0.000000e+00> : vector<32x128xf32>
    %854 = tpu.matmul %853, %5, %cst_229 {dimension_numbers = #tpu.dot_dimension_numbers<[1], [0], [0], [1], [0, 0, 1, 1], [], []>} : vector<32x128xbf16>, vector<128x128xbf16>, vector<32x128xf32> -> vector<32x128xf32>
    %c3_230 = arith.constant 3 : index
    %c0_231 = arith.constant 0 : index
    %855 = vector.load %arg4[%c3_230, %c0_231] : memref<4x128xf32, #tpu.memory_space<vmem>>, vector<1x128xf32>
    %856 = vector.broadcast %855 : vector<1x128xf32> to vector<32x128xf32>
    %857 = arith.addf %854, %856 : vector<32x128xf32>
    %cst_232 = arith.constant dense<0xFF800000> : vector<32xf32>
    %858 = vector.multi_reduction <maximumf>, %857, %cst_232 [1] : vector<32x128xf32> to vector<32xf32>
    %859 = vector.shape_cast %858 : vector<32xf32> to vector<32x1xf32>
    %860 = vector.broadcast %859 : vector<32x1xf32> to vector<32x128xf32>
    %861 = arith.subf %857, %860 : vector<32x128xf32>
    %862 = math.exp %861 : vector<32x128xf32>
    %cst_233 = arith.constant dense<0.000000e+00> : vector<32xf32>
    %863 = vector.multi_reduction <add>, %862, %cst_233 [1] : vector<32x128xf32> to vector<32xf32>
    %864 = vector.shape_cast %863 : vector<32xf32> to vector<32x1xf32>
    %865 = math.log %864 : vector<32x1xf32>
    %866 = vector.broadcast %865 : vector<32x1xf32> to vector<32x128xf32>
    %867 = arith.subf %861, %866 : vector<32x128xf32>
    %868 = vector.shape_cast %867 : vector<32x128xf32> to vector<2x16x128xf32>
    %c0_234 = arith.constant 0 : index
    %c0_235 = arith.constant 0 : index
    %c0_236 = arith.constant 0 : index
    %869 = vector.load %arg11[%c0_234, %c0_235, %c0_236] : memref<2x16x128xf32, #tpu.memory_space<vmem>>, vector<2x16x128xf32>
    tpu.vector_store %arg11[%c0_234, %c0_235, %c0_236], %868 {strides = array<i32>} : memref<2x16x128xf32, #tpu.memory_space<vmem>>, vector<2x16x128xf32>,
    return
  }
  func.func @transform_0(%arg0: i32) -> (i32, i32, i32) {
    %c0_i32 = arith.constant 0 : i32
    %c0_i32_0 = arith.constant 0 : i32
    %c0_i32_1 = arith.constant 0 : i32
    return %c0_i32, %arg0, %c0_i32_0 : i32, i32, i32
  }
  func.func @transform_1(%arg0: i32) -> (i32, i32, i32) {
    %c0_i32 = arith.constant 0 : i32
    %c0_i32_0 = arith.constant 0 : i32
    %c0_i32_1 = arith.constant 0 : i32
    return %c0_i32, %arg0, %c0_i32_0 : i32, i32, i32
  }
  func.func @transform_2(%arg0: i32) -> (i32, i32, i32) {
    %c0_i32 = arith.constant 0 : i32
    %c0_i32_0 = arith.constant 0 : i32
    %c0_i32_1 = arith.constant 0 : i32
    %c0_i32_2 = arith.constant 0 : i32
    return %c0_i32, %c0_i32_0, %c0_i32_1 : i32, i32, i32
  }
  func.func @transform_3(%arg0: i32) -> (i32, i32) {
    %c0_i32 = arith.constant 0 : i32
    %c0_i32_0 = arith.constant 0 : i32
    %c0_i32_1 = arith.constant 0 : i32
    return %c0_i32, %c0_i32_0 : i32, i32
  }
  func.func @transform_4(%arg0: i32) -> (i32, i32, i32) {
    %c0_i32 = arith.constant 0 : i32
    %c0_i32_0 = arith.constant 0 : i32
    %c0_i32_1 = arith.constant 0 : i32
    %c0_i32_2 = arith.constant 0 : i32
    return %c0_i32, %c0_i32_0, %c0_i32_1 : i32, i32, i32
  }
  func.func @transform_5(%arg0: i32) -> (i32, i32, i32) {
    %c0_i32 = arith.constant 0 : i32
    %c0_i32_0 = arith.constant 0 : i32
    %c0_i32_1 = arith.constant 0 : i32
    %c0_i32_2 = arith.constant 0 : i32
    return %c0_i32, %c0_i32_0, %c0_i32_1 : i32, i32, i32
  }
  func.func @transform_6(%arg0: i32) -> (i32, i32, i32) {
    %c0_i32 = arith.constant 0 : i32
    %c0_i32_0 = arith.constant 0 : i32
    %c0_i32_1 = arith.constant 0 : i32
    %c0_i32_2 = arith.constant 0 : i32
    return %c0_i32, %c0_i32_0, %c0_i32_1 : i32, i32, i32
  }
  func.func @transform_7(%arg0: i32) -> (i32, i32, i32) {
    %c0_i32 = arith.constant 0 : i32
    %c0_i32_0 = arith.constant 0 : i32
    %c0_i32_1 = arith.constant 0 : i32
    %c0_i32_2 = arith.constant 0 : i32
    return %c0_i32, %c0_i32_0, %c0_i32_1 : i32, i32, i32
  }
  func.func @transform_8(%arg0: i32) -> (i32, i32, i32) {
    %c0_i32 = arith.constant 0 : i32
    %c0_i32_0 = arith.constant 0 : i32
    %c0_i32_1 = arith.constant 0 : i32
    %c0_i32_2 = arith.constant 0 : i32
    return %c0_i32, %c0_i32_0, %c0_i32_1 : i32, i32, i32
  }
  func.func @transform_9(%arg0: i32) -> (i32, i32, i32) {
    %c0_i32 = arith.constant 0 : i32
    %c0_i32_0 = arith.constant 0 : i32
    %c0_i32_1 = arith.constant 0 : i32
    %c0_i32_2 = arith.constant 0 : i32
    return %c0_i32, %c0_i32_0, %c0_i32_1 : i32, i32, i32
  }
  func.func @transform_10(%arg0: i32) -> (i32, i32, i32) {
    %c0_i32 = arith.constant 0 : i32
    %c0_i32_0 = arith.constant 0 : i32
    %c0_i32_1 = arith.constant 0 : i32
    return %c0_i32, %arg0, %c0_i32_0 : i32, i32, i32
  }
}

</mosaic_0001>

<bundles_post_ra>
// kernel: tpu_custom_call.1
= control target key start
LH: loop header
LB: loop body
LE: loop exit
PB: predicated region body
PF: predicated region fallthrough
CT: control target
= control target key end

     0   :  { %15 = vsyncpa [#allocation3], 0  ;;  %s10711_s0 = inlined_call_operand.hbm [shape: f32[2,16,128], index: 0, kind: input, shape index: {}]   ;;  %s10712_s1 = inlined_call_operand.vmem [shape: f32[2,16,1], index: 1, kind: input, shape index: {}]   ;;  %s10713_s2 = inlined_call_operand.vmem [shape: bf16[3,128,128], index: 2, kind: input, shape index: {}]   ;;  %s10714_s3 = inlined_call_operand.hbm [shape: f32[4,128], index: 3, kind: input, shape index: {}]   ;;  %s10715_s4 = inlined_call_operand.hbm [shape: bf16[6,128,384], index: 4, kind: input, shape index: {}]   ;;  %s10716_s5 = inlined_call_operand.hbm [shape: bf16[6,128,128], index: 5, kind: input, shape index: {}]   ;;  %s10717_s6 = inlined_call_operand.hbm [shape: bf16[6,128,256], index: 6, kind: input, shape index: {}]   ;;  %s10718_s7 = inlined_call_operand.hbm [shape: bf16[6,256,128], index: 7, kind: input, shape index: {}]   ;;  %s10719_s8 = inlined_call_operand.vmem [shape: f32[6,9,128], index: 8, kind: input, shape index: {}]   ;;  %s10720_s9 = inlined_call_operand.vmem [shape: f32[6,1,256], index: 9, kind: input, shape index: {}]   ;;  %s10721_s10 = inlined_call_operand.hbm [shape: f32[2,16,128], index: 10, kind: output, shape index: {}]  }
   0x1   :  { %16 = vsyncpa [#allocation6], 0 }
   0x2   :  { %17 = vsyncpa [#allocation9], 0 }
   0x3   :  { %18 = vsyncpa [#allocation12], 0 }
   0x4   :  { %19 = vsyncpa [#allocation4], 0  ;;  %s9620_s13 = smov [#allocation5]   ;;  %s9621_s15 = smov [#allocation8]  }
   0x5   :  { %s42_s14 = sshll.u32 %s9620_s13, 4  ;;  %s63_s16 = sshll.u32 %s9621_s15, 4  ;;  %s43_s14 = int_to_ptr.vmem [resolvable:$true] %s42_s14  ;;  %s64_s16 = int_to_ptr.vmem [resolvable:$true] %s63_s16 }
   0x6   :  { %s9478_s17 = scalar_lea.vmem %s43_s14, 64  ;;  %p9483_p1 = scmp.lt.s32.totalorder %s43_s14, %s43_s14 }
   0x7   :  { %p9479_p0 = scmp.ne.s32.totalorder %s43_s14, %s9478_s17  ;;  %p9484_p2 = scmp.lt.s32.totalorder %s9478_s17, %s9478_s17 }
   0x9   :  { %p9485_p3 = por %p9484_p2, %p9483_p1 }
   0xb   :  { %p9486_p4 = pnand %p9485_p3, %p9479_p0 }
   0xd   :  { %9489 = shalt.err (!%p9486_p4)
}
   0xe   :  { %45 = dma.hbm_to_vmem [thread:$0]  %s10714_s3, 64, %s43_s14, [#allocation6]  }
   0xf   :  { %s9498_s20 = scalar_lea.vmem %s64_s16, 6144  ;;  %p9503_p6 = scmp.lt.s32.totalorder %s64_s16, %s64_s16 }
  0x10   :  { %p9499_p5 = scmp.ne.s32.totalorder %s64_s16, %s9498_s20  ;;  %p9504_p7 = scmp.lt.s32.totalorder %s9498_s20, %s9498_s20 }
  0x12   :  { %p9505_p8 = por %p9504_p7, %p9503_p6 }
  0x14   :  { %p9506_p9 = pnand %p9505_p8, %p9499_p5 }
  0x16   :  { %9509 = shalt.err (!%p9506_p9)
}
  0x17   :  { %s9622_s21 = smov 64   ;;  %s9623_s22 = smov 4  }
  0x18   :  { %69 = dma.hbm_to_vmem [thread:$0]  %s10716_s5, 6144, %s64_s16, [#allocation9], %s9622_s21, %s9622_s21, %s9623_s22  }
  0x19   :  { %s9624_s25 = smov [#allocation2]  }
  0x1a   :  { %s25_s26 = sshll.u32 %s9624_s25, 4  ;;  %s26_s26 = int_to_ptr.vmem [resolvable:$true] %s25_s26 }
  0x1b   :  { %s9518_s3 = scalar_lea.vmem %s26_s26, 512  ;;  %p9523_p11 = scmp.lt.s32.totalorder %s26_s26, %s26_s26 }
  0x1c   :  { %p9519_p10 = scmp.ne.s32.totalorder %s26_s26, %s9518_s3  ;;  %p9524_p12 = scmp.lt.s32.totalorder %s9518_s3, %s9518_s3 }
  0x1e   :  { %p9525_p13 = por %p9524_p12, %p9523_p11 }
  0x20   :  { %p9526_p0 = pnand %p9525_p13, %p9519_p10 }
  0x22   :  { %9529 = shalt.err (!%p9526_p0)
}
  0x23   :  { %s9625_s27 = smov 128   ;;  %s9626_s28 = smov 8  }
  0x24   :  { %31 = dma.hbm_to_vmem [thread:$0]  %s10711_s0, 512, %s26_s26, [#allocation3], %s9625_s27, %s9625_s27, %s9626_s28  }
  0x25   :  { %s9627_s5 = smov [#allocation7]  }
  0x26   :  { %s51_s11 = sshll.u32 %s9627_s5, 4  ;;  %s52_s11 = int_to_ptr.vmem [resolvable:$true] %s51_s11 }
  0x27   :  { %s9538_s12 = scalar_lea.vmem %s52_s11, 18432  ;;  %p9543_p2 = scmp.lt.s32.totalorder %s52_s11, %s52_s11 }
  0x28   :  { %p9539_p1 = scmp.ne.s32.totalorder %s52_s11, %s9538_s12  ;;  %p9544_p3 = scmp.lt.s32.totalorder %s9538_s12, %s9538_s12 }
  0x2a   :  { %p9545_p4 = por %p9544_p3, %p9543_p2 }
  0x2c   :  { %p9546_p5 = pnand %p9545_p4, %p9539_p1 }
  0x2e   :  { %9549 = shalt.err (!%p9546_p5)
}
  0x2f   :  { %s9628_s13 = smov 192   ;;  %s9629_s14 = smov 12  }
  0x30   :  { %57 = dma.hbm_to_vmem [thread:$0]  %s10715_s4, 18432, %s52_s11, [#allocation6], %s9628_s13, %s9628_s13, %s9629_s14  }
  0x31   :  { %s9630_s17 = smov [#allocation10]   ;;  %s9631_s19 = smov [#allocation11]  }
  0x32   :  { %s75_s18 = sshll.u32 %s9630_s17, 4  ;;  %s87_s0 = sshll.u32 %s9631_s19, 4  ;;  %s76_s18 = int_to_ptr.vmem [resolvable:$true] %s75_s18  ;;  %s88_s0 = int_to_ptr.vmem [resolvable:$true] %s87_s0 }
  0x33   :  { %s9558_s20 = scalar_lea.vmem %s76_s18, 12288  ;;  %p9563_p7 = scmp.lt.s32.totalorder %s76_s18, %s76_s18 }
  0x34   :  { %p9559_p6 = scmp.ne.s32.totalorder %s76_s18, %s9558_s20  ;;  %p9564_p8 = scmp.lt.s32.totalorder %s9558_s20, %s9558_s20 }
  0x36   :  { %p9565_p9 = por %p9564_p8, %p9563_p7 }
  0x38   :  { %p9566_p10 = pnand %p9565_p9, %p9559_p6 }
  0x3a   :  { %9569 = shalt.err (!%p9566_p10)
}
  0x3b   :  { %81 = dma.hbm_to_vmem [thread:$0]  %s10717_s6, 12288, %s76_s18, [#allocation9], %s9625_s27, %s9625_s27, %s9626_s28  }
  0x3c   :  { %s9578_s4 = scalar_lea.vmem %s88_s0, 12288  ;;  %p9583_p12 = scmp.lt.s32.totalorder %s88_s0, %s88_s0 }
  0x3d   :  { %p9579_p11 = scmp.ne.s32.totalorder %s88_s0, %s9578_s4  ;;  %p9584_p13 = scmp.lt.s32.totalorder %s9578_s4, %s9578_s4 }
  0x3f   :  { %p9585_p0 = por %p9584_p13, %p9583_p12 }
  0x41   :  { %p9586_p1 = pnand %p9585_p0, %p9579_p11 }
  0x43   :  { %9589 = shalt.err (!%p9586_p1)
}
  0x44   :  { %93 = dma.hbm_to_vmem [thread:$0]  %s10718_s7, 12288, %s88_s0, [#allocation12], %s9622_s21, %s9622_s21, %s9623_s22  }
  0x45   :  { %9610 = dma.done.wait [#allocation3], 512  }
  0x46   :  { %9611 = vsyncadd [#allocation3], 4294966784 }
  0x47   :  { %9612 = dma.done.wait [#allocation6], 18496  }
  0x48   :  { %9613 = vsyncadd [#allocation6], 4294948800 }
  0x49   :  { %9614 = dma.done.wait [#allocation9], 18432  }
  0x4a   :  { %9615 = vsyncadd [#allocation9], 4294948864 }
  0x4b   :  { %9616 = dma.done.wait [#allocation12], 12288  }
  0x4c   :  { %9617 = vsyncadd [#allocation12], 4294955008  ;;  %v9632_v0 = vmov 0   ;;  %v172_v1 = vld [vmem:[%s10712_s1] sm:$0xff]  ;;  %v174_v2 = vld [vmem:[%s10712_s1 + $0x10] sm:$0xff]  ;;  %v474_v56 = vlaneseq }
  0x4d   :  { %8628 = vset.pattern.permute.xlu0 %v9632_v0  ;;  %8629 = vset.pattern.permute.xlu1 %v9632_v0  ;;  %v173_v3 = vld [vmem:[%s10712_s1 + $0x8] sm:$0xff]  ;;  %v175_v4 = vld [vmem:[%s10712_s1 + $0x18] sm:$0xff]  ;;  %v8633_v7 = vld [vmem:[#allocation7 + $0xb0] ss:$12 sps:$4 sm:$0xff]  }
  0x4e   :  { %404 = vmatprep.mubr.bf16.mxu0 %v9632_v0  ;;  %178 = vperm.xlu0 %8628, %v172_v1   ;;  %v8630_v5 = vld [vmem:[#allocation7 + $0xac] ss:$12 sps:$4 sm:$0xff]   ;;  %v8632_v6 = vld [vmem:[#allocation7 + $0xa8] ss:$12 sps:$4 sm:$0xff]   ;;  %v8636_v10 = vld [vmem:[#allocation7 + $0x90] ss:$12 sps:$4 sm:$0xff]  }
  0x4f   :  { %188 = vperm.xlu1 %8629, %v174_v2   ;;  %372 = vmatprep.subr.bf16.mxu0 %v8630_v5  ;;  %v8634_v8 = vld [vmem:[#allocation7 + $0x94] ss:$12 sps:$4 sm:$0xff]   ;;  %v8637_v9 = vld [vmem:[#allocation7 + $0x98] ss:$12 sps:$4 sm:$0xff]   ;;  %v8638_v11 = vld [vmem:[#allocation7 + $0x7c] ss:$12 sps:$4 sm:$0xff]  }
  0x50   :  { %373 = vmatpush1.bf16.msra.mxu0 %v8632_v6  ;;  %8066 = vmatprep.subr.bf16.mxu1 %v8633_v7  ;;  %v8641_v12 = vld [vmem:[#allocation7 + $0x80] ss:$12 sps:$4 sm:$0xff]   ;;  %v8640_v13 = vld [vmem:[#allocation7 + $0x78] ss:$12 sps:$4 sm:$0xff]   ;;  %v8645_v15 = vld [vmem:[#allocation7 + $0x68] ss:$12 sps:$4 sm:$0xff]  }
  0x51   :  { %8067 = vmatpush3.bf16.msra.mxu1 %v8633_v7  ;;  %374 = vmatprep.subr.bf16.mxu0 %v8634_v8  ;;  %v8642_v14 = vld [vmem:[#allocation7 + $0x64] ss:$12 sps:$4 sm:$0xff]   ;;  %v8644_v16 = vld [vmem:[#allocation7 + $0x60] ss:$12 sps:$4 sm:$0xff]   ;;  %v8648_v19 = vld [vmem:[#allocation7 + $0x48] ss:$12 sps:$4 sm:$0xff]  }
  0x52   :  { %183 = vperm.xlu0 %8628, %v173_v3   ;;  %8068 = vmatprep.subr.bf16.mxu1 %v8637_v9  ;;  %v8646_v17 = vld [vmem:[#allocation7 + $0x4c] ss:$12 sps:$4 sm:$0xff]   ;;  %v8649_v18 = vld [vmem:[#allocation7 + $0x50] ss:$12 sps:$4 sm:$0xff]   ;;  %v8650_v20 = vld [vmem:[#allocation7 + $0x34] ss:$12 sps:$4 sm:$0xff]  }
  0x53   :  { %193 = vperm.xlu1 %8629, %v175_v4   ;;  %v8653_v21 = vld [vmem:[#allocation7 + $0x38] ss:$12 sps:$4 sm:$0xff]   ;;  %v8652_v22 = vld [vmem:[#allocation7 + $0x30] ss:$12 sps:$4 sm:$0xff]   ;;  %v8657_v25 = vld [vmem:[#allocation7 + $0x20] ss:$12 sps:$4 sm:$0xff]  }
  0x54   :  { %375 = vmatpush1.bf16.msra.mxu0 %v8636_v10  ;;  %v8654_v23 = vld [vmem:[#allocation7 + $0x1c] ss:$12 sps:$4 sm:$0xff]   ;;  %v8656_v24 = vld [vmem:[#allocation7 + $0x18] ss:$12 sps:$4 sm:$0xff]   ;;  %v8660_v28 = vld [vmem:[#allocation7] ss:$12 sps:$4 sm:$0xff]  }
  0x55   :  { %8069 = vmatpush3.bf16.msra.mxu1 %v8637_v9  ;;  %376 = vmatprep.subr.bf16.mxu0 %v8638_v11  ;;  %v8658_v26 = vld [vmem:[#allocation7 + $0x4] ss:$12 sps:$4 sm:$0xff]   ;;  %v8661_v27 = vld [vmem:[#allocation7 + $0x8] ss:$12 sps:$4 sm:$0xff]   ;;  %v7191_v30 = vld [vmem:[#allocation5] ss:$0 sm:$0xff] }
  0x56   :  { %8070 = vmatprep.subr.bf16.mxu1 %v8641_v12  ;;  %v8662_v29 = vld [vmem:[%s10713_s2 + $0x38] sm:$0xff]   ;;  %v170_v33 = vld [vmem:[#allocation2 + $0x10] sm:$0xff]  ;;  %v168_v35 = vld [vmem:[#allocation2] sm:$0xff]  ;;  %v9771_v57 = vshrl.u32 %v474_v56, 7 }
  0x57   :  { %v169_v36 = vld [vmem:[#allocation2 + $0x8] sm:$0xff]  ;;  %v171_v37 = vld [vmem:[#allocation2 + $0x18] sm:$0xff]  ;;  %v8663_v47 = vld [vmem:[%s10713_s2 + $0x30] sm:$0xff]  }
  0x58   :  { %377 = vmatpush1.bf16.msra.mxu0 %v8640_v13  ;;  %v8664_v50 = vld [vmem:[%s10713_s2 + $0x28] sm:$0xff]   ;;  %v8665_v51 = vld [vmem:[%s10713_s2 + $0x20] sm:$0xff]   ;;  %v8666_v52 = vld [vmem:[%s10713_s2 + $0x18] sm:$0xff]   ;;  %v9774_v58 = vsub.s32 1, %v9771_v57  ;;  %v9777_v59 = vsub.s32 0, %v9771_v57 }
  0x59   :  { %8071 = vmatpush3.bf16.msra.mxu1 %v8641_v12  ;;  %378 = vmatprep.subr.bf16.mxu0 %v8642_v14  ;;  %v8667_v53 = vld [vmem:[%s10713_s2 + $0x10] sm:$0xff]   ;;  %v8668_v54 = vld [vmem:[%s10713_s2 + $0x8] sm:$0xff]   ;;  %v8669_v55 = vld [vmem:[%s10713_s2] sm:$0xff]  }
  0x5a   :  { %8072 = vmatprep.subr.bf16.mxu1 %v8645_v15  ;;  %v9782_v60 = vld [vmem:[%s10719_s8] sm:$0xff] }
  0x5b   :  { %v485_v62 = vrot.slane %v9782_v60, %v9774_v58  ;;  %v477_v1 = vrot.slane %v9782_v60, %v9777_v59 }
  0x5c   :  { %379 = vmatpush1.bf16.msra.mxu0 %v8644_v16 }
  0x5d   :  { %8073 = vmatpush3.bf16.msra.mxu1 %v8645_v15  ;;  %380 = vmatprep.subr.bf16.mxu0 %v8646_v17 }
  0x5e   :  { %8074 = vmatprep.subr.bf16.mxu1 %v8649_v18 }
  0x60   :  { %381 = vmatpush1.bf16.msra.mxu0 %v8648_v19 }
  0x61   :  { %8075 = vmatpush3.bf16.msra.mxu1 %v8649_v18  ;;  %382 = vmatprep.subr.bf16.mxu0 %v8650_v20 }
  0x62   :  { %8076 = vmatprep.subr.bf16.mxu1 %v8653_v21 }
  0x64   :  { %383 = vmatpush1.bf16.msra.mxu0 %v8652_v22 }
  0x65   :  { %8077 = vmatpush3.bf16.msra.mxu1 %v8653_v21  ;;  %384 = vmatprep.subr.bf16.mxu0 %v8654_v23 }
  0x66   :  { %8078 = vmatprep.subr.bf16.mxu1 %v8657_v25 }
  0x68   :  { %385 = vmatpush1.bf16.msra.mxu0 %v8656_v24 }
  0x69   :  { %8079 = vmatpush3.bf16.msra.mxu1 %v8657_v25  ;;  %386 = vmatprep.subr.bf16.mxu0 %v8658_v26 }
  0x6a   :  { %8080 = vmatprep.subr.bf16.mxu1 %v8661_v27 }
  0x6c   :  { %387 = vmatpush1.bf16.msra.mxu0 %v8660_v28  ;;  %v9791_v28 = vld [vmem:[%s10713_s2 + $0x78] sm:$0xff]  }
  0x6d   :  { %8081 = vmatpush3.bf16.msra.mxu1 %v8661_v27  ;;  %8086 = vmatprep.subr.bf16.mxu0 %v8662_v29 }
  0x6e   :  { %8110 = vmatprep.subr.bf16.mxu1 %v9791_v28 }
  0xc9   :  { %v179_v31 = vpop.permute.xlu0 %178 }
  0xca   :  { %v189_v32 = vpop.permute.xlu1 %188  ;;  %v200_v38 = vmul.f32 %v7191_v30, %v179_v31  ;;  %v9812_v31 = vld [vmem:[%s10713_s2 + $0x60] sm:$0xff]  }
  0xcb   :  { %v202_v34 = vmul.f32 %v7191_v30, %v189_v32  ;;  %v9819_v32 = vld [vmem:[%s10713_s2 + $0x58] sm:$0xff]  }
  0xcc   :  { %v9739_v44 = vadd.f32 %v200_v38, %v168_v35  ;;  %v9838_v35 = vld [vmem:[%s10713_s2 + $0x40] sm:$0xff]   ;;  %v8680_v38 = vld [vmem:[#allocation8 + $0x28] sm:$0xff]  }
  0xcd   :  { %v184_v39 = vpop.permute.xlu0 %183  ;;  %v9737_v41 = vadd.f32 %v202_v34, %v170_v33  ;;  %v9826_v33 = vld [vmem:[%s10713_s2 + $0x50] sm:$0xff]   ;;  %v9833_v34 = vld [vmem:[%s10713_s2 + $0x48] sm:$0xff]  }
  0xce   :  { %v194_v40 = vpop.permute.xlu1 %193  ;;  %v201_v42 = vmul.f32 %v7191_v30, %v184_v39 }
  0xcf   :  { %v203_v43 = vmul.f32 %v7191_v30, %v194_v40  ;;  %v9805_v30 = vld [vmem:[%s10713_s2 + $0x68] sm:$0xff]  }
  0xd0   :  { %v9741_v45 = vadd.f32 %v201_v42, %v169_v36  ;;  %v8678_v36 = vld [vmem:[#allocation8 + $0x38] sm:$0xff]  }
  0xd1   :  { %v9743_v46 = vadd.f32 %v203_v43, %v171_v37  ;;  %v8679_v37 = vld [vmem:[#allocation8 + $0x30] sm:$0xff]  }
  0xd2   :  { %v210_v48 = vpack.c.bf16 %v9741_v45, %v9739_v44 }
  0xd3   :  { %v211_v49 = vpack.c.bf16 %v9743_v46, %v9737_v41 }
  0xd4   :  { %405 = vmatmul.mubr.bf16.vlgmr.msra.gmra.mxu0 %v210_v48  ;;  %8082 = vmatprep.mubr.bf16.mxu1 %v210_v48 }
  0xd5   :  { %8083 = vmatmul.mubr.bf16.vlgmr.msra.gmra.mxu1 %v211_v49  ;;  %414 = vmatprep.mubr.bf16.mxu0 %v9632_v0 }
  0xd6   :  { %8087 = vmatpush3.bf16.msra.mxu0 %v8662_v29  ;;  %8111 = vmatpush3.bf16.msra.mxu1 %v9791_v28  ;;  %v9798_v29 = vld [vmem:[%s10713_s2 + $0x70] sm:$0xff]  }
  0xd7   :  { %8088 = vmatprep.subr.bf16.mxu0 %v8663_v47  ;;  %8112 = vmatprep.subr.bf16.mxu1 %v9798_v29 }
  0xda   :  { %8089 = vmatpush3.bf16.msra.mxu0 %v8663_v47  ;;  %8113 = vmatpush3.bf16.msra.mxu1 %v9798_v29 }
  0xdb   :  { %8090 = vmatprep.subr.bf16.mxu0 %v8664_v50  ;;  %8114 = vmatprep.subr.bf16.mxu1 %v9805_v30 }
  0xdc   :  { %415 = vmatmul.mubr.bf16.gmra.mxu0 %v211_v49 }
  0xde   :  { %8091 = vmatpush3.bf16.msra.mxu0 %v8664_v50  ;;  %8115 = vmatpush3.bf16.msra.mxu1 %v9805_v30 }
  0xdf   :  { %8092 = vmatprep.subr.bf16.mxu0 %v8665_v51  ;;  %8116 = vmatprep.subr.bf16.mxu1 %v9812_v31 }
  0xe2   :  { %8093 = vmatpush3.bf16.msra.mxu0 %v8665_v51  ;;  %8117 = vmatpush3.bf16.msra.mxu1 %v9812_v31 }
  0xe3   :  { %8094 = vmatprep.subr.bf16.mxu0 %v8666_v52  ;;  %8118 = vmatprep.subr.bf16.mxu1 %v9819_v32 }
  0xe6   :  { %8095 = vmatpush3.bf16.msra.mxu0 %v8666_v52  ;;  %8119 = vmatpush3.bf16.msra.mxu1 %v9819_v32 }
  0xe7   :  { %8096 = vmatprep.subr.bf16.mxu0 %v8667_v53  ;;  %8120 = vmatprep.subr.bf16.mxu1 %v9826_v33 }
  0xea   :  { %8097 = vmatpush3.bf16.msra.mxu0 %v8667_v53  ;;  %8121 = vmatpush3.bf16.msra.mxu1 %v9826_v33 }
  0xeb   :  { %8098 = vmatprep.subr.bf16.mxu0 %v8668_v54  ;;  %8122 = vmatprep.subr.bf16.mxu1 %v9833_v34 }
  0xee   :  { %8099 = vmatpush3.bf16.msra.mxu0 %v8668_v54  ;;  %8123 = vmatpush3.bf16.msra.mxu1 %v9833_v34 }
  0xef   :  { %8100 = vmatprep.subr.bf16.mxu0 %v8669_v55  ;;  %8124 = vmatprep.subr.bf16.mxu1 %v9838_v35 }
  0xf2   :  { %8101 = vmatpush3.bf16.msra.mxu0 %v8669_v55  ;;  %8125 = vmatpush3.bf16.msra.mxu1 %v9838_v35 }
  0xf3   :  { %8134 = vmatprep.subr.bf16.mxu0 %v8678_v36 }
 0x194   :  { %v406_v61 = vpop.f32.mrf.mxu0 }
 0x195   :  { %v478_v5 = vadd.f32 %v477_v1, %v406_v61 }
 0x196   :  { %v408_v63 = vpop.f32.mrf.mxu0 }
 0x197   :  { %v486_v3 = vadd.f32 %v485_v62, %v408_v63 }
 0x198   :  { %v410_v2 = vpop.f32.mrf.mxu0 }
 0x199   :  { %v479_v6 = vadd.f32 %v477_v1, %v410_v2  ;;  %v498_v9 = vmul.f32 %v486_v3, %v478_v5 }
 0x19a   :  { %v412_v4 = vpop.f32.mrf.mxu0 }
 0x19b   :  { %v487_v7 = vadd.f32 %v485_v62, %v412_v4 }
 0x19c   :  { %v416_v8 = vpop.f32.mrf.mxu0 }
 0x19d   :  { %v499_v10 = vmul.f32 %v487_v7, %v479_v6  ;;  %v480_v16 = vadd.f32 %v477_v1, %v416_v8 }
 0x19e   :  { %v418_v11 = vpop.f32.mrf.mxu0 }
 0x19f   :  { %v506_v12 = vpack.c.bf16 %v499_v10, %v498_v9  ;;  %v488_v14 = vadd.f32 %v485_v62, %v418_v11  ;;  %v502_v22 = vmul.f32 %v486_v3, %v480_v16 }
 0x1a0   :  { %v420_v13 = vpop.f32.mrf.mxu0 }
 0x1a1   :  { %v481_v15 = vadd.f32 %v477_v1, %v420_v13  ;;  %8102 = vmatprep.mubr.bf16.mxu0 %v506_v12  ;;  %v500_v20 = vmul.f32 %v488_v14, %v478_v5  ;;  %v504_v26 = vmul.f32 %v488_v14, %v480_v16 }
 0x1a2   :  { %v422_v17 = vpop.f32.mrf.mxu0 }
 0x1a3   :  { %v489_v18 = vadd.f32 %v485_v62, %v422_v17  ;;  %v503_v19 = vmul.f32 %v487_v7, %v481_v15 }
 0x1a5   :  { %v501_v21 = vmul.f32 %v489_v18, %v479_v6  ;;  %v508_v24 = vpack.c.bf16 %v503_v19, %v502_v22  ;;  %v505_v25 = vmul.f32 %v489_v18, %v481_v15 }
 0x1a7   :  { %v507_v23 = vpack.c.bf16 %v501_v21, %v500_v20  ;;  %v509_v27 = vpack.c.bf16 %v505_v25, %v504_v26 }
 0x1a9   :  { %8103 = vmatmul.mubr.bf16.vlgmr.msra.gmra.mxu0 %v507_v23 }
 0x1aa   :  { %8106 = vmatprep.mubr.bf16.mxu0 %v508_v24  ;;  %8135 = vmatpush3.bf16.msra.mxu0 %v8678_v36 }
 0x1ab   :  { %8136 = vmatprep.subr.bf16.mxu0 %v8679_v37 }
 0x1ae   :  { %8137 = vmatpush3.bf16.msra.mxu0 %v8679_v37 }
 0x1af   :  { %8138 = vmatprep.subr.bf16.mxu0 %v8680_v38 }
 0x1b1   :  { %8107 = vmatmul.mubr.bf16.gmra.mxu0 %v509_v27 }
 0x1b2   :  { %8139 = vmatpush3.bf16.msra.mxu0 %v8680_v38 }
 0x269   :  { %v8104_v39 = vpop.f32.mrf.mxu0 }
 0x26b   :  { %v592_v40 = vpop.f32.mrf.mxu0 }
 0x26c   :  { %v623_v42 = vmax.f32 %v592_v40, %v8104_v39 }
 0x26d   :  { %v8105_v43 = vpop.f32.mrf.mxu0 }
 0x26e   :  { %v627_v47 = vsub.f32 %v592_v40, %v623_v42  ;;  %v629_v48 = vsub.f32 %v8104_v39, %v623_v42 }
 0x26f   :  { %v595_v49 = vpop.f32.mrf.mxu0 }
 0x270   :  { %v635_v50 = vmul.f32 1.442695, %v627_v47  ;;  %v639_v51 = vmul.f32 1.442695, %v629_v48  ;;  %v624_v52 = vmax.f32 %v595_v49, %v8105_v43 }
 0x271   :  { %v8108_v53 = vpop.f32.mrf.mxu0 }
 0x272   :  { %9134 = vpow2.f32 %v635_v50  ;;  %v628_v54 = vsub.f32 %v595_v49, %v624_v52  ;;  %v630_v55 = vsub.f32 %v8105_v43, %v624_v52  ;;  %v8681_v52 = vld [vmem:[#allocation8 + $0x20] sm:$0xff]  }
 0x273   :  { %9136 = vpow2.f32 %v639_v51  ;;  %v608_v56 = vpop.f32.mrf.mxu0  ;;  %8140 = vmatprep.subr.bf16.mxu0 %v8681_v52 }
 0x274   :  { %v637_v61 = vmul.f32 1.442695, %v628_v54  ;;  %v641_v62 = vmul.f32 1.442695, %v630_v55  ;;  %v625_v63 = vmax.f32 %v608_v56, %v8108_v53  ;;  %8141 = vmatpush3.bf16.msra.mxu0 %v8681_v52  ;;  %v8683_v54 = vld [vmem:[#allocation8 + $0x10] sm:$0xff]   ;;  %v8684_v55 = vld [vmem:[#allocation8 + $0x8] sm:$0xff]  }
 0x275   :  { %v8109_v1 = vpop.f32.mrf.mxu0 }
 0x276   :  { %9138 = vpow2.f32 %v637_v61  ;;  %v631_v2 = vsub.f32 %v608_v56, %v625_v63  ;;  %v633_v3 = vsub.f32 %v8108_v53, %v625_v63  ;;  %v8682_v53 = vld [vmem:[#allocation8 + $0x18] sm:$0xff]   ;;  %v8685_v56 = vld [vmem:[#allocation8] sm:$0xff]   ;;  %v8084_v61 = vpop.f32.mrf.mxu1 }
 0x277   :  { %9140 = vpow2.f32 %v641_v62  ;;  %v611_v4 = vpop.f32.mrf.mxu0  ;;  %8142 = vmatprep.subr.bf16.mxu0 %v8682_v53 }
 0x278   :  { %v643_v5 = vmul.f32 1.442695, %v631_v2  ;;  %v647_v6 = vmul.f32 1.442695, %v633_v3  ;;  %v626_v7 = vmax.f32 %v611_v4, %v8109_v1  ;;  %8143 = vmatpush3.bf16.msra.mxu0 %v8682_v53  ;;  %v459_v62 = vpop.f32.mrf.mxu1 }
 0x279   :  { %8144 = vmatprep.subr.bf16.mxu0 %v8683_v54 }
 0x27a   :  { %9142 = vpow2.f32 %v643_v5  ;;  %v632_v8 = vsub.f32 %v611_v4, %v626_v7  ;;  %v634_v9 = vsub.f32 %v8109_v1, %v626_v7  ;;  %v8085_v63 = vpop.f32.mrf.mxu1  ;;  %v9846_v1 = vsub.s32 2, %v9771_v57 }
 0x27b   :  { %9144 = vpow2.f32 %v647_v6 }
 0x27c   :  { %v645_v10 = vmul.f32 1.442695, %v632_v8  ;;  %v649_v11 = vmul.f32 1.442695, %v634_v9  ;;  %8145 = vmatpush3.bf16.msra.mxu0 %v8683_v54  ;;  %v462_v2 = vpop.f32.mrf.mxu1  ;;  %v493_v3 = vrot.slane %v9782_v60, %v9846_v1 }
 0x27d   :  { %8146 = vmatprep.subr.bf16.mxu0 %v8684_v55 }
 0x27e   :  { %9146 = vpow2.f32 %v645_v10  ;;  %v494_v6 = vadd.f32 %v493_v3, %v459_v62  ;;  %v496_v8 = vadd.f32 %v8084_v61, %v493_v3  ;;  %v497_v9 = vadd.f32 %v8085_v63, %v493_v3 }
 0x27f   :  { %v9135_v12 = vpop.eup %9134  ;;  %9148 = vpow2.f32 %v649_v11  ;;  %v495_v10 = vadd.f32 %v493_v3, %v462_v2 }
 0x280   :  { %v9137_v13 = vpop.eup %9136  ;;  %8147 = vmatpush3.bf16.msra.mxu0 %v8684_v55 }
 0x281   :  { %v651_v14 = vadd.f32 %v9137_v13, %v9135_v12  ;;  %8148 = vmatprep.subr.bf16.mxu0 %v8685_v56 }
 0x283   :  { %v9139_v15 = vpop.eup %9138  ;;  %9150 = vrcp.f32 %v651_v14 }
 0x284   :  { %v9141_v16 = vpop.eup %9140  ;;  %8149 = vmatpush3.bf16.msra.mxu0 %v8685_v56  ;;  %v8688_v56 = vld [vmem:[#allocation10 + $0x74] ss:$8 sps:$4 sm:$0xff]  }
 0x285   :  { %v652_v17 = vadd.f32 %v9141_v16, %v9139_v15  ;;  %1094 = vmatprep.subr.bf16.mxu1 %v8688_v56 }
 0x287   :  { %v9143_v18 = vpop.eup %9142  ;;  %9152 = vrcp.f32 %v652_v17 }
 0x288   :  { %v9145_v19 = vpop.eup %9144 }
 0x289   :  { %v653_v20 = vadd.f32 %v9145_v19, %v9143_v18 }
 0x28b   :  { %v9147_v21 = vpop.eup %9146  ;;  %9154 = vrcp.f32 %v653_v20 }
 0x28c   :  { %v9149_v22 = vpop.eup %9148 }
 0x28d   :  { %v654_v23 = vadd.f32 %v9149_v22, %v9147_v21 }
 0x28f   :  { %9156 = vrcp.f32 %v654_v23 }
 0x290   :  { %v9151_v24 = vpop.eup %9150 }
 0x291   :  { %v659_v26 = vmul.f32 %v9151_v24, %v9135_v12  ;;  %v661_v36 = vmul.f32 %v9151_v24, %v9137_v13 }
 0x294   :  { %v9153_v25 = vpop.eup %9152 }
 0x295   :  { %v660_v27 = vmul.f32 %v9153_v25, %v9139_v15  ;;  %v662_v37 = vmul.f32 %v9153_v25, %v9141_v16 }
 0x297   :  { %v667_v38 = vpack.c.bf16 %v660_v27, %v659_v26  ;;  %v668_v39 = vpack.c.bf16 %v662_v37, %v661_v36 }
 0x298   :  { %v9155_v40 = vpop.eup %9154 }
 0x299   :  { %8126 = vmatprep.mubr.bf16.mxu1 %v667_v38  ;;  %v663_v43 = vmul.f32 %v9155_v40, %v9143_v18  ;;  %v665_v48 = vmul.f32 %v9155_v40, %v9145_v19  ;;  %v9851_v38 = vsub.s32 3, %v9771_v57 }
 0x29a   :  { %8127 = vmatmul.mubr.bf16.vlgmr.msra.gmra.mxu1 %v668_v39 }
 0x29c   :  { %v9157_v42 = vpop.eup %9156 }
 0x29d   :  { %v664_v47 = vmul.f32 %v9157_v42, %v9147_v21  ;;  %v666_v49 = vmul.f32 %v9157_v42, %v9149_v22 }
 0x29f   :  { %v669_v50 = vpack.c.bf16 %v664_v47, %v663_v43  ;;  %v670_v51 = vpack.c.bf16 %v666_v49, %v665_v48  ;;  %v918_v43 = vrot.slane %v9782_v60, %v9851_v38 }
 0x2a1   :  { %8130 = vmatprep.mubr.bf16.mxu1 %v669_v50 }
 0x2a2   :  { %8131 = vmatmul.mubr.bf16.gmra.mxu1 %v670_v51 }
 0x2a3   :  { %1126 = vmatprep.mubr.bf16.mxu1 %v9632_v0 }
 0x35a   :  { %v8128_v4 = vpop.f32.mrf.mxu1 }
 0x35b   :  { %v788_v13 = vmul.f32 %v8128_v4, %v496_v8 }
 0x35c   :  { %v753_v5 = vpop.f32.mrf.mxu1 }
 0x35d   :  { %v784_v11 = vmul.f32 %v753_v5, %v494_v6 }
 0x35e   :  { %v8129_v7 = vpop.f32.mrf.mxu1 }
 0x35f   :  { %v789_v14 = vmul.f32 %v8129_v7, %v497_v9  ;;  %v792_v17 = vadd.f32 %v788_v13, %v784_v11  ;;  %v8689_v13 = vld [vmem:[#allocation10 + $0x60] ss:$8 sps:$4 sm:$0xff]  }
 0x360   :  { %v756_v12 = vpop.f32.mrf.mxu1 }
 0x361   :  { %v785_v15 = vmul.f32 %v756_v12, %v495_v10  ;;  %v8691_v12 = vld [vmem:[#allocation10 + $0x64] ss:$8 sps:$4 sm:$0xff]  }
 0x362   :  { %v8132_v16 = vpop.f32.mrf.mxu1 }
 0x363   :  { %v793_v18 = vadd.f32 %v789_v14, %v785_v15  ;;  %v790_v24 = vmul.f32 %v8132_v16, %v496_v8  ;;  %v8694_v14 = vld [vmem:[#allocation10 + $0x54] ss:$8 sps:$4 sm:$0xff]   ;;  %v8692_v15 = vld [vmem:[#allocation10 + $0x50] ss:$8 sps:$4 sm:$0xff]   ;;  %v8697_v16 = vld [vmem:[#allocation10 + $0x44] ss:$8 sps:$4 sm:$0xff]  }
 0x364   :  { %v769_v19 = vpop.f32.mrf.mxu1 }
 0x365   :  { %v796_v20 = vpack.c.bf16 %v793_v18, %v792_v17  ;;  %v786_v22 = vmul.f32 %v769_v19, %v494_v6  ;;  %v8695_v17 = vld [vmem:[#allocation10 + $0x40] ss:$8 sps:$4 sm:$0xff]   ;;  %v8700_v18 = vld [vmem:[#allocation10 + $0x34] ss:$8 sps:$4 sm:$0xff]   ;;  %v8698_v19 = vld [vmem:[#allocation10 + $0x30] ss:$8 sps:$4 sm:$0xff]  }
 0x366   :  { %v8133_v21 = vpop.f32.mrf.mxu1 }
 0x367   :  { %8150 = vmatprep.mubr.bf16.mxu0 %v796_v20  ;;  %v791_v25 = vmul.f32 %v8133_v21, %v497_v9  ;;  %v794_v27 = vadd.f32 %v790_v24, %v786_v22  ;;  %v8703_v20 = vld [vmem:[#allocation10 + $0x24] ss:$8 sps:$4 sm:$0xff]   ;;  %v8701_v21 = vld [vmem:[#allocation10 + $0x20] ss:$8 sps:$4 sm:$0xff]   ;;  %v8706_v22 = vld [vmem:[#allocation10 + $0x14] ss:$8 sps:$4 sm:$0xff]  }
 0x368   :  { %v772_v23 = vpop.f32.mrf.mxu1  ;;  %v8709_v24 = vld [vmem:[#allocation10 + $0x4] ss:$8 sps:$4 sm:$0xff]  }
 0x369   :  { %v787_v26 = vmul.f32 %v772_v23, %v495_v10  ;;  %v8704_v23 = vld [vmem:[#allocation10 + $0x10] ss:$8 sps:$4 sm:$0xff]  }
 0x36b   :  { %v795_v36 = vadd.f32 %v791_v25, %v787_v26  ;;  %v8707_v25 = vld [vmem:[#allocation10] ss:$8 sps:$4 sm:$0xff]   ;;  %v8710_v26 = vld [vmem:[#allocation11 + $0x78] sm:$0xff]  }
 0x36c   :  { %7668 = vmatprep.subr.bf16.mxu0 %v8710_v26  ;;  %v8725_v26 = vld [vmem:[#allocation11] sm:$0xff]  }
 0x36d   :  { %v797_v37 = vpack.c.bf16 %v795_v36, %v794_v27  ;;  %v8711_v27 = vld [vmem:[#allocation11 + $0x38] sm:$0xff]   ;;  %v8712_v36 = vld [vmem:[#allocation11 + $0x70] sm:$0xff]  }
 0x36f   :  { %8151 = vmatmul.mubr.bf16.vlgmr.msra.gmra.mxu0 %v797_v37  ;;  %v8713_v37 = vld [vmem:[#allocation11 + $0x30] sm:$0xff]  }
 0x370   :  { %7669 = vmatpush3.bf16.msra.mxu0 %v8711_v27  ;;  %v1002_v27 = vld [vmem:[%s10720_s9] sm:$0x3] }
 0x371   :  { %7670 = vmatprep.subr.bf16.mxu0 %v8712_v36 }
 0x374   :  { %7671 = vmatpush3.bf16.msra.mxu0 %v8713_v37  ;;  %v1011_v37 = vrot.slane %v1002_v27, %v9774_v58 }
 0x42f   :  { %v8152_v39 = vpop.f32.mrf.mxu0 }
 0x430   :  { %v913_v48 = vadd.f32 %v8152_v39, %v9737_v41  ;;  %v8714_v39 = vld [vmem:[#allocation11 + $0x68] sm:$0xff]  }
 0x431   :  { %v896_v40 = vpop.f32.mrf.mxu0  ;;  %7672 = vmatprep.subr.bf16.mxu0 %v8714_v39  ;;  %v1007_v39 = vrot.slane %v1002_v27, %v9777_v59 }
 0x432   :  { %v911_v42 = vadd.f32 %v896_v40, %v9739_v44  ;;  %v921_v53 = vadd.f32 %v918_v43, %v913_v48  ;;  %v8686_v44 = vld [vmem:[#allocation10 + $0x70] ss:$8 sps:$4 sm:$0xff]   ;;  %v8715_v40 = vld [vmem:[#allocation11 + $0x28] sm:$0xff]  }
 0x433   :  { %v8153_v47 = vpop.f32.mrf.mxu0  ;;  %1095 = vmatpush1.bf16.msra.mxu1 %v8686_v44  ;;  %7673 = vmatpush3.bf16.msra.mxu0 %v8715_v40  ;;  %v8719_v48 = vld [vmem:[#allocation11 + $0x18] sm:$0xff]  }
 0x434   :  { %v919_v49 = vadd.f32 %v918_v43, %v911_v42  ;;  %v914_v52 = vadd.f32 %v8153_v47, %v9743_v46  ;;  %1096 = vmatprep.subr.bf16.mxu1 %v8691_v12  ;;  %v8716_v42 = vld [vmem:[#allocation11 + $0x60] sm:$0xff]   ;;  %v8718_v47 = vld [vmem:[#allocation11 + $0x58] sm:$0xff]  }
 0x435   :  { %v899_v50 = vpop.f32.mrf.mxu0  ;;  %7674 = vmatprep.subr.bf16.mxu0 %v8716_v42 }
 0x436   :  { %v912_v51 = vadd.f32 %v899_v50, %v9741_v45  ;;  %923 = vadd.xlane.f32.xlu0 %v919_v49  ;;  %v922_v55 = vadd.f32 %v918_v43, %v914_v52 }
 0x437   :  { %1097 = vmatpush1.bf16.msra.mxu1 %v8689_v13 }
 0x438   :  { %v920_v54 = vadd.f32 %v918_v43, %v912_v51  ;;  %1098 = vmatprep.subr.bf16.mxu1 %v8694_v14  ;;  %v8717_v43 = vld [vmem:[#allocation11 + $0x20] sm:$0xff]  }
 0x439   :  { %7675 = vmatpush3.bf16.msra.mxu0 %v8717_v43 }
 0x43a   :  { %927 = vadd.xlane.f32.xlu0 %v921_v53  ;;  %925 = vadd.xlane.f32.xlu1 %v920_v54 }
 0x43b   :  { %1099 = vmatpush1.bf16.msra.mxu1 %v8692_v15  ;;  %7676 = vmatprep.subr.bf16.mxu0 %v8718_v47 }
 0x43c   :  { %1100 = vmatprep.subr.bf16.mxu1 %v8697_v16 }
 0x43d   :  { %7677 = vmatpush3.bf16.msra.mxu0 %v8719_v48 }
 0x43e   :  { %929 = vadd.xlane.f32.xlu0 %v922_v55 }
 0x43f   :  { %1101 = vmatpush1.bf16.msra.mxu1 %v8695_v17 }
 0x440   :  { %1102 = vmatprep.subr.bf16.mxu1 %v8700_v18 }
 0x443   :  { %1103 = vmatpush1.bf16.msra.mxu1 %v8698_v19 }
 0x444   :  { %1104 = vmatprep.subr.bf16.mxu1 %v8703_v20 }
 0x447   :  { %1105 = vmatpush1.bf16.msra.mxu1 %v8701_v21 }
 0x448   :  { %1106 = vmatprep.subr.bf16.mxu1 %v8706_v22 }
 0x44b   :  { %1107 = vmatpush1.bf16.msra.mxu1 %v8704_v23  ;;  %v8722_v23 = vld [vmem:[#allocation11 + $0x48] sm:$0xff]  }
 0x44c   :  { %1108 = vmatprep.subr.bf16.mxu1 %v8709_v24  ;;  %v8723_v24 = vld [vmem:[#allocation11 + $0x8] sm:$0xff]  }
 0x44f   :  { %1109 = vmatpush1.bf16.msra.mxu1 %v8707_v25  ;;  %v8724_v25 = vld [vmem:[#allocation11 + $0x40] sm:$0xff]  }
 0x4bf   :  { %v924_v61 = vpop.xlane.xlu0 %923 }
 0x4c0   :  { %v932_v62 = vmul.f32 0.0078125, %v924_v61 }
 0x4c2   :  { %v9859_v41 = vsub.f32 %v919_v49, %v932_v62 }
 0x4c3   :  { %v928_v63 = vpop.xlane.xlu0 %927  ;;  %v926_v2 = vpop.xlane.xlu1 %925 }
 0x4c4   :  { %v934_v45 = vmul.f32 0.0078125, %v928_v63  ;;  %v933_v3 = vmul.f32 0.0078125, %v926_v2  ;;  %v940_v46 = vmul.f32 %v9859_v41, %v9859_v41  ;;  %v9876_v2 = vsub.s32 4, %v9771_v57 }
 0x4c6   :  { %944 = vadd.xlane.f32.xlu1 %v940_v46  ;;  %v9863_v4 = vsub.f32 %v921_v53, %v934_v45  ;;  %v9865_v5 = vsub.f32 %v920_v54, %v933_v3  ;;  %v971_v46 = vrot.slane %v9782_v60, %v9876_v2 }
 0x4c7   :  { %v930_v6 = vpop.xlane.xlu0 %929 }
 0x4c8   :  { %v935_v7 = vmul.f32 0.0078125, %v930_v6  ;;  %v942_v8 = vmul.f32 %v9863_v4, %v9863_v4  ;;  %v941_v9 = vmul.f32 %v9865_v5, %v9865_v5  ;;  %v9882_v6 = vsub.s32 5, %v9771_v57 }
 0x4ca   :  { %948 = vadd.xlane.f32.xlu1 %v942_v8  ;;  %946 = vadd.xlane.f32.xlu0 %v941_v9  ;;  %v9871_v10 = vsub.f32 %v922_v55, %v935_v7 }
 0x4cc   :  { %v943_v11 = vmul.f32 %v9871_v10, %v9871_v10 }
 0x4ce   :  { %950 = vadd.xlane.f32.xlu0 %v943_v11  ;;  %v979_v11 = vrot.slane %v9782_v60, %v9882_v6 }
 0x54f   :  { %v945_v49 = vpop.xlane.xlu1 %944 }
 0x550   :  { %v952_v50 = vmul.f32 0.0078125, %v945_v49 }
 0x552   :  { %v956_v51 = vadd.f32 1e-05, %v952_v50 }
 0x553   :  { %v947_v52 = vpop.xlane.xlu0 %946  ;;  %v949_v53 = vpop.xlane.xlu1 %948 }
 0x554   :  { %9158 = vrsqrt.f32 %v956_v51  ;;  %v953_v54 = vmul.f32 0.0078125, %v947_v52  ;;  %v954_v55 = vmul.f32 0.0078125, %v949_v53 }
 0x556   :  { %v957_v44 = vadd.f32 1e-05, %v953_v54  ;;  %v958_v56 = vadd.f32 1e-05, %v954_v55 }
 0x557   :  { %v951_v61 = vpop.xlane.xlu0 %950 }
 0x558   :  { %9160 = vrsqrt.f32 %v957_v44  ;;  %v955_v62 = vmul.f32 0.0078125, %v951_v61 }
 0x559   :  { %9162 = vrsqrt.f32 %v958_v56 }
 0x55a   :  { %v959_v63 = vadd.f32 1e-05, %v955_v62 }
 0x55c   :  { %9164 = vrsqrt.f32 %v959_v63 }
 0x561   :  { %v9159_v45 = vpop.eup %9158 }
 0x562   :  { %v964_v3 = vmul.f32 %v9159_v45, %v9859_v41 }
 0x564   :  { %v972_v9 = vmul.f32 %v971_v46, %v964_v3 }
 0x565   :  { %v9161_v7 = vpop.eup %9160 }
 0x566   :  { %v965_v8 = vmul.f32 %v9161_v7, %v9865_v5  ;;  %v9163_v12 = vpop.eup %9162  ;;  %v9887_v15 = vadd.f32 %v979_v11, %v972_v9 }
 0x567   :  { %v966_v41 = vmul.f32 %v9163_v12, %v9863_v4  ;;  %v8720_v4 = vld [vmem:[#allocation11 + $0x50] sm:$0xff]  }
 0x568   :  { %v973_v13 = vmul.f32 %v971_v46, %v965_v8  ;;  %7678 = vmatprep.subr.bf16.mxu0 %v8720_v4 }
 0x569   :  { %v9165_v14 = vpop.eup %9164  ;;  %v974_v5 = vmul.f32 %v971_v46, %v966_v41  ;;  %v9909_v41 = vsub.s32 6, %v9771_v57 }
 0x56a   :  { %v9889_v16 = vadd.f32 %v979_v11, %v973_v13  ;;  %v967_v17 = vmul.f32 %v9165_v14, %v9871_v10  ;;  %v8721_v10 = vld [vmem:[#allocation11 + $0x10] sm:$0xff]  }
 0x56b   :  { %v9898_v21 = vadd.f32 %v979_v11, %v974_v5  ;;  %7679 = vmatpush3.bf16.msra.mxu0 %v8721_v10 }
 0x56c   :  { %v984_v18 = vpack.c.bf16 %v9889_v16, %v9887_v15  ;;  %v975_v19 = vmul.f32 %v971_v46, %v967_v17  ;;  %7680 = vmatprep.subr.bf16.mxu0 %v8722_v23 }
 0x56e   :  { %1127 = vmatmul.mubr.bf16.vlgmr.msra.gmra.mxu1 %v984_v18  ;;  %v9896_v20 = vadd.f32 %v979_v11, %v975_v19  ;;  %v1194_v18 = vrot.slane %v9782_v60, %v9909_v41 }
 0x56f   :  { %1136 = vmatprep.mubr.bf16.mxu1 %v9632_v0  ;;  %7681 = vmatpush3.bf16.msra.mxu0 %v8723_v24 }
 0x570   :  { %v985_v22 = vpack.c.bf16 %v9896_v20, %v9898_v21  ;;  %7682 = vmatprep.subr.bf16.mxu0 %v8724_v25 }
 0x573   :  { %7683 = vmatpush3.bf16.msra.mxu0 %v8725_v26 }
 0x576   :  { %1137 = vmatmul.mubr.bf16.gmra.mxu1 %v985_v22 }
 0x577   :  { %1602 = vmatprep.mubr.bf16.mxu1 %v9632_v0 }
 0x62e   :  { %v1128_v36 = vpop.f32.mrf.mxu1 }
 0x62f   :  { %v1129_v48 = vadd.f32 %v1128_v36, %v1007_v39 }
 0x630   :  { %v1130_v40 = vpop.f32.mrf.mxu1 }
 0x631   :  { %v1131_v43 = vadd.f32 %v1130_v40, %v1011_v37  ;;  %v1147_v55 = vmax.f32 %v1129_v48, 0.0 }
 0x632   :  { %v1132_v42 = vpop.f32.mrf.mxu1 }
 0x633   :  { %v1133_v47 = vadd.f32 %v1132_v42, %v1007_v39  ;;  %v1148_v53 = vmax.f32 %v1131_v43, 0.0 }
 0x634   :  { %v1134_v49 = vpop.f32.mrf.mxu1 }
 0x635   :  { %v1135_v50 = vadd.f32 %v1134_v49, %v1011_v37  ;;  %v1149_v51 = vmax.f32 %v1133_v47, 0.0 }
 0x636   :  { %v1138_v52 = vpop.f32.mrf.mxu1 }
 0x637   :  { %v1150_v54 = vmax.f32 %v1135_v50, 0.0  ;;  %v1155_v61 = vpack.c.bf16 %v1149_v51, %v1147_v55  ;;  %v1139_v3 = vadd.f32 %v1138_v52, %v1007_v39  ;;  %v8728_v50 = vld [vmem:[#allocation7 + $0x16c] ss:$12 sps:$4 sm:$0xff]  }
 0x638   :  { %v1140_v44 = vpop.f32.mrf.mxu1  ;;  %1570 = vmatprep.subr.bf16.mxu1 %v8728_v50 }
 0x639   :  { %v1156_v56 = vpack.c.bf16 %v1150_v54, %v1148_v53  ;;  %v1141_v63 = vadd.f32 %v1140_v44, %v1011_v37  ;;  %v1151_v12 = vmax.f32 %v1139_v3, 0.0 }
 0x63a   :  { %v1142_v62 = vpop.f32.mrf.mxu1 }
 0x63b   :  { %v1143_v45 = vadd.f32 %v1142_v62, %v1007_v39  ;;  %1323 = vmatprep.mubr.bf16.mxu0 %v1156_v56  ;;  %v1152_v9 = vmax.f32 %v1141_v63, 0.0 }
 0x63c   :  { %v1144_v46 = vpop.f32.mrf.mxu1  ;;  %1324 = vmatmul.mubr.bf16.vlgmr.msra.gmra.mxu0 %v1155_v61 }
 0x63d   :  { %v1145_v7 = vadd.f32 %v1144_v46, %v1011_v37  ;;  %v1153_v8 = vmax.f32 %v1143_v45, 0.0 }
 0x63f   :  { %v1154_v11 = vmax.f32 %v1145_v7, 0.0  ;;  %v1157_v14 = vpack.c.bf16 %v1153_v8, %v1151_v12  ;;  %v8731_v7 = vld [vmem:[#allocation7 + $0x154] ss:$12 sps:$4 sm:$0xff]   ;;  %v8729_v8 = vld [vmem:[#allocation7 + $0x150] ss:$12 sps:$4 sm:$0xff]  }
 0x640   :  { %v8732_v12 = vld [vmem:[#allocation7 + $0x138] ss:$12 sps:$4 sm:$0xff]  }
 0x641   :  { %v1158_v13 = vpack.c.bf16 %v1154_v11, %v1152_v9  ;;  %v8734_v9 = vld [vmem:[#allocation7 + $0x13c] ss:$12 sps:$4 sm:$0xff]  }
 0x642   :  { %v8735_v11 = vld [vmem:[#allocation7 + $0x170] ss:$12 sps:$4 sm:$0xff]  }
 0x643   :  { %1331 = vmatprep.mubr.bf16.mxu0 %v1158_v13  ;;  %8154 = vmatprep.subr.bf16.mxu0 %v8735_v11  ;;  %v8738_v13 = vld [vmem:[#allocation7 + $0x124] ss:$12 sps:$4 sm:$0xff]  }
 0x644   :  { %1332 = vmatmul.mubr.bf16.gmra.mxu0 %v1157_v14  ;;  %v8739_v14 = vld [vmem:[#allocation7 + $0x158] ss:$12 sps:$4 sm:$0xff]  }
 0x645   :  { %8155 = vmatpush3.bf16.msra.mxu0 %v8735_v11 }
 0x646   :  { %8156 = vmatprep.subr.bf16.mxu0 %v8739_v14 }
 0x649   :  { %8157 = vmatpush3.bf16.msra.mxu0 %v8739_v14 }
 0x6fc   :  { %v7684_v17 = vpop.f32.mrf.mxu0 }
 0x6fe   :  { %v7685_v19 = vpop.f32.mrf.mxu0 }
 0x6ff   :  { %v7686_v5 = vadd.f32 %v7685_v19, %v7684_v17  ;;  %v8736_v17 = vld [vmem:[#allocation7 + $0x120] ss:$12 sps:$4 sm:$0xff]  }
 0x700   :  { %v7687_v22 = vpop.f32.mrf.mxu0  ;;  %v8743_v19 = vld [vmem:[#allocation7 + $0x140] ss:$12 sps:$4 sm:$0xff]  }
 0x701   :  { %v1326_v4 = vadd.f32 %v7686_v5, %v1194_v18  ;;  %v8740_v5 = vld [vmem:[#allocation7 + $0x108] ss:$12 sps:$4 sm:$0xff]   ;;  %8158 = vmatprep.subr.bf16.mxu0 %v8743_v19 }
 0x702   :  { %v7688_v10 = vpop.f32.mrf.mxu0  ;;  %8159 = vmatpush3.bf16.msra.mxu0 %v8743_v19 }
 0x703   :  { %v7689_v23 = vadd.f32 %v7688_v10, %v7687_v22  ;;  %v1340_v24 = vadd.f32 %v1326_v4, %v9887_v15  ;;  %v8726_v15 = vld [vmem:[#allocation7 + $0x168] ss:$12 sps:$4 sm:$0xff]   ;;  %v8744_v10 = vld [vmem:[#allocation7 + $0xf0] ss:$12 sps:$4 sm:$0xff]  }
 0x704   :  { %v7690_v25 = vpop.f32.mrf.mxu0  ;;  %1571 = vmatpush1.bf16.msra.mxu1 %v8726_v15  ;;  %v8746_v22 = vld [vmem:[#allocation7 + $0xf4] ss:$12 sps:$4 sm:$0xff]  }
 0x705   :  { %1344 = vadd.xlane.f32.xlu1 %v1340_v24  ;;  %v1329_v26 = vadd.f32 %v7689_v23, %v1194_v18  ;;  %1572 = vmatprep.subr.bf16.mxu1 %v8731_v7  ;;  %v8747_v4 = vld [vmem:[#allocation7 + $0x128] ss:$12 sps:$4 sm:$0xff]   ;;  %v7272_v7 = vld [vmem:[%s10719_s8 + $0x8] ss:$0 sm:$0xff] }
 0x706   :  { %v7691_v27 = vpop.f32.mrf.mxu0  ;;  %8160 = vmatprep.subr.bf16.mxu0 %v8747_v4  ;;  %v8750_v23 = vld [vmem:[#allocation7 + $0xdc] ss:$12 sps:$4 sm:$0xff]  }
 0x707   :  { %v7692_v36 = vadd.f32 %v7691_v27, %v7690_v25  ;;  %v1341_v37 = vadd.f32 %v1329_v26, %v9889_v16  ;;  %8161 = vmatpush3.bf16.msra.mxu0 %v8747_v4  ;;  %v8748_v25 = vld [vmem:[#allocation7 + $0xd8] ss:$12 sps:$4 sm:$0xff]  }
 0x708   :  { %v7693_v39 = vpop.f32.mrf.mxu0  ;;  %1573 = vmatpush1.bf16.msra.mxu1 %v8729_v8  ;;  %v8754_v26 = vld [vmem:[#allocation7 + $0xc4] ss:$12 sps:$4 sm:$0xff]  }
 0x709   :  { %v1334_v40 = vadd.f32 %v7692_v36, %v1194_v18  ;;  %1346 = vadd.xlane.f32.xlu0 %v1341_v37  ;;  %1574 = vmatprep.subr.bf16.mxu1 %v8734_v9  ;;  %v8755_v27 = vld [vmem:[#allocation7 + $0xf8] ss:$12 sps:$4 sm:$0xff]   ;;  %v8752_v36 = vld [vmem:[#allocation7 + $0xc0] ss:$12 sps:$4 sm:$0xff]  }
 0x70a   :  { %v7694_v42 = vpop.f32.mrf.mxu0 }
 0x70b   :  { %v7695_v43 = vadd.f32 %v7694_v42, %v7693_v39  ;;  %v1342_v47 = vadd.f32 %v1334_v40, %v9898_v21  ;;  %v9398_v39 = vld [vmem:[%s10713_s2 + $0x38] sm:$0xff]  }
 0x70c   :  { %1575 = vmatpush1.bf16.msra.mxu1 %v8732_v12  ;;  %v8757_v40 = vld [vmem:[#allocation7 + $0xc8] ss:$12 sps:$4 sm:$0xff]  }
 0x70d   :  { %1348 = vadd.xlane.f32.xlu1 %v1342_v47  ;;  %v1337_v48 = vadd.f32 %v7695_v43, %v1194_v18  ;;  %1576 = vmatprep.subr.bf16.mxu1 %v8738_v13  ;;  %v8742_v18 = vld [vmem:[#allocation7 + $0x10c] ss:$12 sps:$4 sm:$0xff]  }
 0x70f   :  { %v1343_v49 = vadd.f32 %v1337_v48, %v9896_v20 }
 0x710   :  { %1577 = vmatpush1.bf16.msra.mxu1 %v8736_v17  ;;  %v9399_v17 = vld [vmem:[%s10713_s2 + $0x30] sm:$0xff]  }
 0x711   :  { %1350 = vadd.xlane.f32.xlu0 %v1343_v49  ;;  %1578 = vmatprep.subr.bf16.mxu1 %v8742_v18 }
 0x714   :  { %1579 = vmatpush1.bf16.msra.mxu1 %v8740_v5  ;;  %v9401_v5 = vld [vmem:[%s10713_s2 + $0x20] sm:$0xff]  }
 0x715   :  { %1580 = vmatprep.subr.bf16.mxu1 %v8746_v22  ;;  %v9402_v22 = vld [vmem:[%s10713_s2 + $0x18] sm:$0xff]  }
 0x718   :  { %1581 = vmatpush1.bf16.msra.mxu1 %v8744_v10 }
 0x719   :  { %1582 = vmatprep.subr.bf16.mxu1 %v8750_v23 }
 0x71c   :  { %1583 = vmatpush1.bf16.msra.mxu1 %v8748_v25 }
 0x71d   :  { %1584 = vmatprep.subr.bf16.mxu1 %v8754_v26 }
 0x720   :  { %1585 = vmatpush1.bf16.msra.mxu1 %v8752_v36 }
 0x721   :  { %8174 = vmatprep.subr.bf16.mxu1 %v9398_v39 }
 0x78e   :  { %v1345_v51 = vpop.xlane.xlu1 %1344 }
 0x78f   :  { %v1352_v52 = vmul.f32 0.0078125, %v1345_v51 }
 0x791   :  { %v9917_v53 = vsub.f32 %v1340_v24, %v1352_v52  ;;  %v8751_v24 = vld [vmem:[#allocation7 + $0x110] ss:$12 sps:$4 sm:$0xff]  }
 0x792   :  { %v1347_v16 = vpop.xlane.xlu0 %1346  ;;  %8162 = vmatprep.subr.bf16.mxu0 %v8751_v24 }
 0x793   :  { %v1353_v54 = vmul.f32 0.0078125, %v1347_v16  ;;  %v1360_v55 = vmul.f32 %v9917_v53, %v9917_v53  ;;  %8163 = vmatpush3.bf16.msra.mxu0 %v8751_v24 }
 0x794   :  { %8164 = vmatprep.subr.bf16.mxu0 %v8755_v27 }
 0x795   :  { %1364 = vadd.xlane.f32.xlu1 %v1360_v55  ;;  %v9921_v21 = vsub.f32 %v1341_v37, %v1353_v54  ;;  %v8756_v37 = vld [vmem:[#allocation7 + $0xe0] ss:$12 sps:$4 sm:$0xff]  }
 0x796   :  { %v1349_v44 = vpop.xlane.xlu1 %1348 }
 0x797   :  { %v1354_v56 = vmul.f32 0.0078125, %v1349_v44  ;;  %v1361_v20 = vmul.f32 %v9921_v21, %v9921_v21  ;;  %8165 = vmatpush3.bf16.msra.mxu0 %v8755_v27  ;;  %v9938_v44 = vsub.s32 7, %v9771_v57 }
 0x798   :  { %8166 = vmatprep.subr.bf16.mxu0 %v8756_v37 }
 0x799   :  { %1366 = vadd.xlane.f32.xlu0 %v1361_v20  ;;  %v9925_v61 = vsub.f32 %v1342_v47, %v1354_v56 }
 0x79a   :  { %v1351_v62 = vpop.xlane.xlu0 %1350 }
 0x79b   :  { %v1355_v63 = vmul.f32 0.0078125, %v1351_v62  ;;  %v1362_v45 = vmul.f32 %v9925_v61, %v9925_v61  ;;  %8167 = vmatpush3.bf16.msra.mxu0 %v8756_v37  ;;  %v1391_v62 = vrot.slane %v9782_v60, %v9938_v44 }
 0x79c   :  { %8168 = vmatprep.subr.bf16.mxu0 %v8757_v40 }
 0x79d   :  { %1368 = vadd.xlane.f32.xlu1 %v1362_v45  ;;  %v9929_v3 = vsub.f32 %v1343_v49, %v1355_v63 }
 0x79f   :  { %v1363_v46 = vmul.f32 %v9929_v3, %v9929_v3  ;;  %8169 = vmatpush3.bf16.msra.mxu0 %v8757_v40 }
 0x7a0   :  { %8198 = vmatprep.subr.bf16.mxu0 %v9791_v28 }
 0x7a1   :  { %1370 = vadd.xlane.f32.xlu0 %v1363_v46 }
 0x81e   :  { %v1365_v42 = vpop.xlane.xlu1 %1364 }
 0x81f   :  { %v1372_v43 = vmul.f32 0.0078125, %v1365_v42 }
 0x821   :  { %v1376_v47 = vadd.f32 1e-05, %v1372_v43 }
 0x822   :  { %v1367_v48 = vpop.xlane.xlu0 %1366 }
 0x823   :  { %9166 = vrsqrt.f32 %v1376_v47  ;;  %v1373_v49 = vmul.f32 0.0078125, %v1367_v48 }
 0x825   :  { %v1377_v15 = vadd.f32 1e-05, %v1373_v49 }
 0x826   :  { %v1369_v50 = vpop.xlane.xlu1 %1368 }
 0x827   :  { %9168 = vrsqrt.f32 %v1377_v15  ;;  %v1374_v51 = vmul.f32 0.0078125, %v1369_v50 }
 0x829   :  { %v1378_v52 = vadd.f32 1e-05, %v1374_v51 }
 0x82a   :  { %v1371_v16 = vpop.xlane.xlu0 %1370 }
 0x82b   :  { %9170 = vrsqrt.f32 %v1378_v52  ;;  %v1375_v54 = vmul.f32 0.0078125, %v1371_v16 }
 0x82d   :  { %v1379_v55 = vadd.f32 1e-05, %v1375_v54 }
 0x82f   :  { %9172 = vrsqrt.f32 %v1379_v55 }
 0x830   :  { %v9167_v56 = vpop.eup %9166 }
 0x831   :  { %v1384_v20 = vmul.f32 %v9167_v56, %v9917_v53 }
 0x833   :  { %v1392_v46 = vmul.f32 %v1391_v62, %v1384_v20 }
 0x834   :  { %v9169_v63 = vpop.eup %9168 }
 0x835   :  { %v1385_v45 = vmul.f32 %v9169_v63, %v9921_v21  ;;  %v9947_v11 = vadd.f32 %v7272_v7, %v1392_v46  ;;  %v8758_v63 = vld [vmem:[#allocation8 + $0x78] sm:$0xff]   ;;  %v8760_v46 = vld [vmem:[#allocation8 + $0x68] sm:$0xff]  }
 0x837   :  { %v1393_v8 = vmul.f32 %v1391_v62, %v1385_v45  ;;  %v8759_v45 = vld [vmem:[#allocation8 + $0x70] sm:$0xff]  }
 0x838   :  { %v9171_v9 = vpop.eup %9170 }
 0x839   :  { %v9949_v57 = vadd.f32 %v7272_v7, %v1393_v8  ;;  %v1386_v12 = vmul.f32 %v9171_v9, %v9925_v61 }
 0x83b   :  { %v1407_v53 = vpack.c.bf16 %v9949_v57, %v9947_v11  ;;  %v1394_v13 = vmul.f32 %v1391_v62, %v1386_v12 }
 0x83c   :  { %v9173_v60 = vpop.eup %9172 }
 0x83d   :  { %1603 = vmatmul.mubr.bf16.vlgmr.msra.gmra.mxu1 %v1407_v53  ;;  %8170 = vmatprep.mubr.bf16.mxu0 %v1407_v53  ;;  %v1387_v21 = vmul.f32 %v9173_v60, %v9929_v3  ;;  %v9959_v18 = vadd.f32 %v7272_v7, %v1394_v13  ;;  %v9400_v3 = vld [vmem:[%s10713_s2 + $0x28] sm:$0xff]  }
 0x83e   :  { %1612 = vmatprep.mubr.bf16.mxu1 %v9632_v0  ;;  %8175 = vmatpush3.bf16.msra.mxu1 %v9398_v39 }
 0x83f   :  { %v1395_v14 = vmul.f32 %v1391_v62, %v1387_v21  ;;  %8176 = vmatprep.subr.bf16.mxu1 %v9399_v17 }
 0x841   :  { %v9961_v61 = vadd.f32 %v7272_v7, %v1395_v14 }
 0x842   :  { %8177 = vmatpush3.bf16.msra.mxu1 %v9399_v17 }
 0x843   :  { %v1408_v19 = vpack.c.bf16 %v9961_v61, %v9959_v18  ;;  %8178 = vmatprep.subr.bf16.mxu1 %v9400_v3 }
 0x845   :  { %1613 = vmatmul.mubr.bf16.gmra.mxu1 %v1408_v19  ;;  %8171 = vmatmul.mubr.bf16.vlgmr.msra.gmra.mxu0 %v1408_v19 }
 0x846   :  { %8179 = vmatpush3.bf16.msra.mxu1 %v9400_v3  ;;  %8199 = vmatpush3.bf16.msra.mxu0 %v9791_v28  ;;  %v9403_v28 = vld [vmem:[%s10713_s2 + $0x10] sm:$0xff]  }
 0x847   :  { %8180 = vmatprep.subr.bf16.mxu1 %v9401_v5  ;;  %8200 = vmatprep.subr.bf16.mxu0 %v9798_v29 }
 0x84a   :  { %8181 = vmatpush3.bf16.msra.mxu1 %v9401_v5  ;;  %8201 = vmatpush3.bf16.msra.mxu0 %v9798_v29  ;;  %v9404_v29 = vld [vmem:[%s10713_s2 + $0x8] sm:$0xff]  }
 0x84b   :  { %8182 = vmatprep.subr.bf16.mxu1 %v9402_v22  ;;  %8202 = vmatprep.subr.bf16.mxu0 %v9805_v30 }
 0x84e   :  { %8183 = vmatpush3.bf16.msra.mxu1 %v9402_v22  ;;  %8203 = vmatpush3.bf16.msra.mxu0 %v9805_v30  ;;  %v9405_v30 = vld [vmem:[%s10713_s2] sm:$0xff]  }
 0x84f   :  { %8184 = vmatprep.subr.bf16.mxu1 %v9403_v28  ;;  %8204 = vmatprep.subr.bf16.mxu0 %v9812_v31 }
 0x852   :  { %8185 = vmatpush3.bf16.msra.mxu1 %v9403_v28  ;;  %8205 = vmatpush3.bf16.msra.mxu0 %v9812_v31  ;;  %v10001_v31 = vld [vmem:[%s10719_s8 + $0x10] sm:$0xff] }
 0x853   :  { %8186 = vmatprep.subr.bf16.mxu1 %v9404_v29  ;;  %8206 = vmatprep.subr.bf16.mxu0 %v9819_v32  ;;  %v1683_v4 = vrot.slane %v10001_v31, %v9774_v58 }
 0x856   :  { %8187 = vmatpush3.bf16.msra.mxu1 %v9404_v29  ;;  %8207 = vmatpush3.bf16.msra.mxu0 %v9819_v32 }
 0x857   :  { %8188 = vmatprep.subr.bf16.mxu1 %v9405_v30  ;;  %8208 = vmatprep.subr.bf16.mxu0 %v9826_v33 }
 0x85a   :  { %8189 = vmatpush3.bf16.msra.mxu1 %v9405_v30  ;;  %8209 = vmatpush3.bf16.msra.mxu0 %v9826_v33  ;;  %v1675_v33 = vrot.slane %v10001_v31, %v9777_v59 }
 0x85b   :  { %8210 = vmatprep.subr.bf16.mxu0 %v9833_v34  ;;  %8222 = vmatprep.subr.bf16.mxu1 %v8758_v63 }
 0x85e   :  { %8211 = vmatpush3.bf16.msra.mxu0 %v9833_v34 }
 0x85f   :  { %8212 = vmatprep.subr.bf16.mxu0 %v9838_v35 }
 0x862   :  { %8213 = vmatpush3.bf16.msra.mxu0 %v9838_v35 }
 0x8fd   :  { %v1604_v32 = vpop.f32.mrf.mxu1 }
 0x8fe   :  { %v1676_v25 = vadd.f32 %v1675_v33, %v1604_v32 }
 0x8ff   :  { %v1606_v10 = vpop.f32.mrf.mxu1 }
 0x900   :  { %v1684_v24 = vadd.f32 %v1683_v4, %v1606_v10 }
 0x901   :  { %v1608_v23 = vpop.f32.mrf.mxu1 }
 0x902   :  { %v1677_v26 = vadd.f32 %v1675_v33, %v1608_v23  ;;  %v1696_v36 = vmul.f32 %v1684_v24, %v1676_v25 }
 0x903   :  { %v1610_v34 = vpop.f32.mrf.mxu1 }
 0x904   :  { %v1685_v27 = vadd.f32 %v1683_v4, %v1610_v34 }
 0x905   :  { %v1614_v35 = vpop.f32.mrf.mxu1 }
 0x906   :  { %v1697_v37 = vmul.f32 %v1685_v27, %v1677_v26  ;;  %v1678_v48 = vadd.f32 %v1675_v33, %v1614_v35 }
 0x907   :  { %v1616_v39 = vpop.f32.mrf.mxu1 }
 0x908   :  { %v1704_v40 = vpack.c.bf16 %v1697_v37, %v1696_v36  ;;  %v1686_v43 = vadd.f32 %v1683_v4, %v1616_v39  ;;  %v1700_v16 = vmul.f32 %v1684_v24, %v1678_v48 }
 0x909   :  { %v1618_v42 = vpop.f32.mrf.mxu1 }
 0x90a   :  { %v1679_v47 = vadd.f32 %v1675_v33, %v1618_v42  ;;  %8190 = vmatprep.mubr.bf16.mxu1 %v1704_v40  ;;  %v1698_v51 = vmul.f32 %v1686_v43, %v1676_v25  ;;  %v1702_v20 = vmul.f32 %v1686_v43, %v1678_v48 }
 0x90b   :  { %v1620_v49 = vpop.f32.mrf.mxu1 }
 0x90c   :  { %v1687_v15 = vadd.f32 %v1683_v4, %v1620_v49  ;;  %v1701_v50 = vmul.f32 %v1685_v27, %v1679_v47 }
 0x90e   :  { %v1699_v52 = vmul.f32 %v1687_v15, %v1677_v26  ;;  %v1706_v55 = vpack.c.bf16 %v1701_v50, %v1700_v16  ;;  %v1703_v56 = vmul.f32 %v1687_v15, %v1679_v47 }
 0x910   :  { %v1705_v54 = vpack.c.bf16 %v1699_v52, %v1698_v51  ;;  %v1707_v62 = vpack.c.bf16 %v1703_v56, %v1702_v20 }
 0x912   :  { %8191 = vmatmul.mubr.bf16.vlgmr.msra.gmra.mxu1 %v1705_v54 }
 0x913   :  { %8194 = vmatprep.mubr.bf16.mxu1 %v1706_v55  ;;  %8223 = vmatpush3.bf16.msra.mxu1 %v8758_v63 }
 0x914   :  { %8224 = vmatprep.subr.bf16.mxu1 %v8759_v45 }
 0x917   :  { %8225 = vmatpush3.bf16.msra.mxu1 %v8759_v45 }
 0x918   :  { %8226 = vmatprep.subr.bf16.mxu1 %v8760_v46 }
 0x91a   :  { %8195 = vmatmul.mubr.bf16.gmra.mxu1 %v1707_v62 }
 0x91b   :  { %8227 = vmatpush3.bf16.msra.mxu1 %v8760_v46 }
 0x9d2   :  { %v8192_v7 = vpop.f32.mrf.mxu1 }
 0x9d4   :  { %v1742_v8 = vpop.f32.mrf.mxu1 }
 0x9d5   :  { %v1773_v9 = vmax.f32 %v1742_v8, %v8192_v7 }
 0x9d6   :  { %v8193_v12 = vpop.f32.mrf.mxu1 }
 0x9d7   :  { %v1777_v53 = vsub.f32 %v1742_v8, %v1773_v9  ;;  %v1779_v60 = vsub.f32 %v8192_v7, %v1773_v9 }
 0x9d8   :  { %v1745_v21 = vpop.f32.mrf.mxu1 }
 0x9d9   :  { %v1785_v13 = vmul.f32 1.442695, %v1777_v53  ;;  %v1789_v14 = vmul.f32 1.442695, %v1779_v60  ;;  %v1774_v17 = vmax.f32 %v1745_v21, %v8193_v12 }
 0x9da   :  { %v8196_v19 = vpop.f32.mrf.mxu1 }
 0x9db   :  { %9174 = vpow2.f32 %v1785_v13  ;;  %v1778_v3 = vsub.f32 %v1745_v21, %v1774_v17  ;;  %v1780_v5 = vsub.f32 %v8193_v12, %v1774_v17  ;;  %v8761_v21 = vld [vmem:[#allocation8 + $0x60] sm:$0xff]   ;;  %v8762_v13 = vld [vmem:[#allocation8 + $0x58] sm:$0xff]   ;;  %v8764_v17 = vld [vmem:[#allocation8 + $0x48] sm:$0xff]  }
 0x9dc   :  { %9176 = vpow2.f32 %v1789_v14  ;;  %v1758_v22 = vpop.f32.mrf.mxu1  ;;  %8228 = vmatprep.subr.bf16.mxu1 %v8761_v21  ;;  %v8763_v14 = vld [vmem:[#allocation8 + $0x50] sm:$0xff]  }
 0x9dd   :  { %v1787_v28 = vmul.f32 1.442695, %v1778_v3  ;;  %v1791_v29 = vmul.f32 1.442695, %v1780_v5  ;;  %v1775_v30 = vmax.f32 %v1758_v22, %v8196_v19  ;;  %8229 = vmatpush3.bf16.msra.mxu1 %v8761_v21  ;;  %v8172_v3 = vpop.f32.mrf.mxu0 }
 0x9de   :  { %v8197_v32 = vpop.f32.mrf.mxu1  ;;  %8230 = vmatprep.subr.bf16.mxu1 %v8762_v13 }
 0x9df   :  { %9178 = vpow2.f32 %v1787_v28  ;;  %v1781_v4 = vsub.f32 %v1758_v22, %v1775_v30  ;;  %v1783_v10 = vsub.f32 %v8196_v19, %v1775_v30  ;;  %v8765_v19 = vld [vmem:[#allocation8 + $0x40] sm:$0xff]   ;;  %v1657_v5 = vpop.f32.mrf.mxu0  ;;  %v1691_v30 = vrot.slane %v10001_v31, %v9846_v1 }
 0x9e0   :  { %9180 = vpow2.f32 %v1791_v29  ;;  %v1761_v33 = vpop.f32.mrf.mxu1 }
 0x9e1   :  { %v1793_v23 = vmul.f32 1.442695, %v1781_v4  ;;  %v1797_v24 = vmul.f32 1.442695, %v1783_v10  ;;  %v1776_v34 = vmax.f32 %v1761_v33, %v8197_v32  ;;  %8231 = vmatpush3.bf16.msra.mxu1 %v8762_v13  ;;  %v8173_v22 = vpop.f32.mrf.mxu0  ;;  %v1692_v4 = vadd.f32 %v1691_v30, %v1657_v5 }
 0x9e2   :  { %8232 = vmatprep.subr.bf16.mxu1 %v8763_v14 }
 0x9e3   :  { %9182 = vpow2.f32 %v1793_v23  ;;  %v1782_v25 = vsub.f32 %v1761_v33, %v1776_v34  ;;  %v1784_v26 = vsub.f32 %v8197_v32, %v1776_v34  ;;  %v1660_v28 = vpop.f32.mrf.mxu0  ;;  %v1694_v33 = vadd.f32 %v8172_v3, %v1691_v30 }
 0x9e4   :  { %9184 = vpow2.f32 %v1797_v24  ;;  %v1695_v23 = vadd.f32 %v8173_v22, %v1691_v30  ;;  %v1693_v24 = vadd.f32 %v1691_v30, %v1660_v28 }
 0x9e5   :  { %v1795_v27 = vmul.f32 1.442695, %v1782_v25  ;;  %v1799_v35 = vmul.f32 1.442695, %v1784_v26  ;;  %8233 = vmatpush3.bf16.msra.mxu1 %v8763_v14 }
 0x9e6   :  { %8234 = vmatprep.subr.bf16.mxu1 %v8764_v17 }
 0x9e7   :  { %9186 = vpow2.f32 %v1795_v27 }
 0x9e8   :  { %v9175_v36 = vpop.eup %9174  ;;  %9188 = vpow2.f32 %v1799_v35 }
 0x9e9   :  { %v9177_v37 = vpop.eup %9176  ;;  %8235 = vmatpush3.bf16.msra.mxu1 %v8764_v17 }
 0x9ea   :  { %v1801_v39 = vadd.f32 %v9177_v37, %v9175_v36  ;;  %8236 = vmatprep.subr.bf16.mxu1 %v8765_v19 }
 0x9ec   :  { %v9179_v40 = vpop.eup %9178  ;;  %9190 = vrcp.f32 %v1801_v39 }
 0x9ed   :  { %v9181_v42 = vpop.eup %9180  ;;  %8237 = vmatpush3.bf16.msra.mxu1 %v8765_v19 }
 0x9ee   :  { %v1802_v43 = vadd.f32 %v9181_v42, %v9179_v40 }
 0x9f0   :  { %v9183_v47 = vpop.eup %9182  ;;  %9192 = vrcp.f32 %v1802_v43 }
 0x9f1   :  { %v9185_v48 = vpop.eup %9184 }
 0x9f2   :  { %v1803_v49 = vadd.f32 %v9185_v48, %v9183_v47 }
 0x9f4   :  { %v9187_v15 = vpop.eup %9186  ;;  %9194 = vrcp.f32 %v1803_v49 }
 0x9f5   :  { %v9189_v50 = vpop.eup %9188 }
 0x9f6   :  { %v1804_v51 = vadd.f32 %v9189_v50, %v9187_v15 }
 0x9f8   :  { %9196 = vrcp.f32 %v1804_v51 }
 0x9f9   :  { %v9191_v52 = vpop.eup %9190 }
 0x9fa   :  { %v1809_v54 = vmul.f32 %v9191_v52, %v9175_v36  ;;  %v1811_v56 = vmul.f32 %v9191_v52, %v9177_v37 }
 0x9fd   :  { %v9193_v16 = vpop.eup %9192 }
 0x9fe   :  { %v1810_v55 = vmul.f32 %v9193_v16, %v9179_v40  ;;  %v1812_v20 = vmul.f32 %v9193_v16, %v9181_v42 }
 0xa00   :  { %v1817_v62 = vpack.c.bf16 %v1810_v55, %v1809_v54  ;;  %v1818_v63 = vpack.c.bf16 %v1812_v20, %v1811_v56  ;;  %v2021_v20 = vrot.slane %v10001_v31, %v9851_v38 }
 0xa01   :  { %v9195_v45 = vpop.eup %9194 }
 0xa02   :  { %8214 = vmatprep.mubr.bf16.mxu0 %v1817_v62  ;;  %v1813_v7 = vmul.f32 %v9195_v45, %v9183_v47  ;;  %v1815_v9 = vmul.f32 %v9195_v45, %v9185_v48 }
 0xa03   :  { %8215 = vmatmul.mubr.bf16.vlgmr.msra.gmra.mxu0 %v1818_v63 }
 0xa05   :  { %v9197_v46 = vpop.eup %9196 }
 0xa06   :  { %v1814_v8 = vmul.f32 %v9197_v46, %v9187_v15  ;;  %v1816_v12 = vmul.f32 %v9197_v46, %v9189_v50 }
 0xa08   :  { %v1819_v53 = vpack.c.bf16 %v1814_v8, %v1813_v7  ;;  %v1820_v60 = vpack.c.bf16 %v1816_v12, %v1815_v9 }
 0xa0a   :  { %8218 = vmatprep.mubr.bf16.mxu0 %v1819_v53 }
 0xa0b   :  { %8219 = vmatmul.mubr.bf16.gmra.mxu0 %v1820_v60  ;;  %v8768_v60 = vld [vmem:[#allocation10 + $0xf4] ss:$8 sps:$4 sm:$0xff]  }
 0xa0c   :  { %2230 = vmatprep.mubr.bf16.mxu0 %v9632_v0  ;;  %2198 = vmatprep.subr.bf16.mxu0 %v8768_v60 }
 0xac3   :  { %v8216_v29 = vpop.f32.mrf.mxu0 }
 0xac4   :  { %v1890_v26 = vmul.f32 %v8216_v29, %v1694_v33 }
 0xac5   :  { %v1855_v32 = vpop.f32.mrf.mxu0 }
 0xac6   :  { %v1886_v34 = vmul.f32 %v1855_v32, %v1692_v4 }
 0xac7   :  { %v8217_v10 = vpop.f32.mrf.mxu0 }
 0xac8   :  { %v1891_v27 = vmul.f32 %v8217_v10, %v1695_v23  ;;  %v1894_v37 = vadd.f32 %v1890_v26, %v1886_v34  ;;  %v8771_v10 = vld [vmem:[#allocation10 + $0xe4] ss:$8 sps:$4 sm:$0xff]   ;;  %v8780_v26 = vld [vmem:[#allocation10 + $0xb4] ss:$8 sps:$4 sm:$0xff]  }
 0xac9   :  { %v1858_v25 = vpop.f32.mrf.mxu0  ;;  %v8777_v34 = vld [vmem:[#allocation10 + $0xc4] ss:$8 sps:$4 sm:$0xff]  }
 0xaca   :  { %v1887_v35 = vmul.f32 %v1858_v25, %v1693_v24  ;;  %v8775_v25 = vld [vmem:[#allocation10 + $0xc0] ss:$8 sps:$4 sm:$0xff]  }
 0xacb   :  { %v8220_v36 = vpop.f32.mrf.mxu0 }
 0xacc   :  { %v1895_v39 = vadd.f32 %v1891_v27, %v1887_v35  ;;  %v1892_v49 = vmul.f32 %v8220_v36, %v1694_v33  ;;  %v8769_v33 = vld [vmem:[#allocation10 + $0xe0] ss:$8 sps:$4 sm:$0xff]   ;;  %v8778_v27 = vld [vmem:[#allocation10 + $0xb0] ss:$8 sps:$4 sm:$0xff]   ;;  %v8783_v35 = vld [vmem:[#allocation10 + $0xa4] ss:$8 sps:$4 sm:$0xff]  }
 0xacd   :  { %v1871_v40 = vpop.f32.mrf.mxu0  ;;  %v8781_v36 = vld [vmem:[#allocation10 + $0xa0] ss:$8 sps:$4 sm:$0xff]  }
 0xace   :  { %v1898_v42 = vpack.c.bf16 %v1895_v39, %v1894_v37  ;;  %v1888_v47 = vmul.f32 %v1871_v40, %v1692_v4  ;;  %v8786_v37 = vld [vmem:[#allocation10 + $0x94] ss:$8 sps:$4 sm:$0xff]   ;;  %v8784_v39 = vld [vmem:[#allocation10 + $0x90] ss:$8 sps:$4 sm:$0xff]   ;;  %v8789_v40 = vld [vmem:[#allocation10 + $0x84] ss:$8 sps:$4 sm:$0xff]  }
 0xacf   :  { %v8221_v43 = vpop.f32.mrf.mxu0 }
 0xad0   :  { %8238 = vmatprep.mubr.bf16.mxu1 %v1898_v42  ;;  %v1893_v15 = vmul.f32 %v8221_v43, %v1695_v23  ;;  %v1896_v51 = vadd.f32 %v1892_v49, %v1888_v47  ;;  %v8774_v23 = vld [vmem:[#allocation10 + $0xd4] ss:$8 sps:$4 sm:$0xff]   ;;  %v8787_v42 = vld [vmem:[#allocation10 + $0x80] ss:$8 sps:$4 sm:$0xff]  }
 0xad1   :  { %v1874_v48 = vpop.f32.mrf.mxu0  ;;  %v8790_v43 = vld [vmem:[#allocation11 + $0xf8] sm:$0xff]   ;;  %v8793_v49 = vld [vmem:[#allocation11 + $0xb0] sm:$0xff]  }
 0xad2   :  { %v1889_v50 = vmul.f32 %v1874_v48, %v1693_v24  ;;  %v8772_v24 = vld [vmem:[#allocation10 + $0xd0] ss:$8 sps:$4 sm:$0xff]   ;;  %7740 = vmatprep.subr.bf16.mxu1 %v8790_v43 }
 0xad3   :  { %v8791_v47 = vld [vmem:[#allocation11 + $0xb8] sm:$0xff]   ;;  %v8792_v48 = vld [vmem:[#allocation11 + $0xf0] sm:$0xff]  }
 0xad4   :  { %v1897_v52 = vadd.f32 %v1893_v15, %v1889_v50  ;;  %v8794_v15 = vld [vmem:[#allocation11 + $0xe8] sm:$0xff]  }
 0xad5   :  { %v8795_v50 = vld [vmem:[#allocation11 + $0xa8] sm:$0xff]  }
 0xad6   :  { %v1899_v16 = vpack.c.bf16 %v1897_v52, %v1896_v51  ;;  %v8796_v51 = vld [vmem:[#allocation11 + $0xe0] sm:$0xff]  }
 0xad7   :  { %v8797_v52 = vld [vmem:[#allocation11 + $0xa0] sm:$0xff]  }
 0xad8   :  { %8239 = vmatmul.mubr.bf16.vlgmr.msra.gmra.mxu1 %v1899_v16  ;;  %v8798_v16 = vld [vmem:[#allocation11 + $0xd8] sm:$0xff]  }
 0xad9   :  { %7741 = vmatpush3.bf16.msra.mxu1 %v8791_v47 }
 0xada   :  { %7742 = vmatprep.subr.bf16.mxu1 %v8792_v48 }
 0xadd   :  { %7743 = vmatpush3.bf16.msra.mxu1 %v8793_v49 }
 0xade   :  { %7744 = vmatprep.subr.bf16.mxu1 %v8794_v15 }
 0xae1   :  { %7745 = vmatpush3.bf16.msra.mxu1 %v8795_v50 }
 0xae2   :  { %7746 = vmatprep.subr.bf16.mxu1 %v8796_v51 }
 0xae5   :  { %7747 = vmatpush3.bf16.msra.mxu1 %v8797_v52 }
 0xae6   :  { %7748 = vmatprep.subr.bf16.mxu1 %v8798_v16 }
 0xb98   :  { %v8240_v54 = vpop.f32.mrf.mxu1 }
 0xb99   :  { %v2016_v63 = vadd.f32 %v8240_v54, %v9959_v18  ;;  %v8799_v54 = vld [vmem:[#allocation11 + $0x98] sm:$0xff]  }
 0xb9a   :  { %v1999_v55 = vpop.f32.mrf.mxu1  ;;  %7749 = vmatpush3.bf16.msra.mxu1 %v8799_v54 }
 0xb9b   :  { %v2014_v56 = vadd.f32 %v1999_v55, %v9947_v11  ;;  %v2024_v9 = vadd.f32 %v2021_v20, %v2016_v63  ;;  %v8766_v11 = vld [vmem:[#allocation10 + $0xf0] ss:$8 sps:$4 sm:$0xff]  }
 0xb9c   :  { %v8241_v62 = vpop.f32.mrf.mxu1  ;;  %2199 = vmatpush1.bf16.msra.mxu0 %v8766_v11 }
 0xb9d   :  { %v2022_v45 = vadd.f32 %v2021_v20, %v2014_v56  ;;  %v2017_v8 = vadd.f32 %v8241_v62, %v9961_v61  ;;  %2200 = vmatprep.subr.bf16.mxu0 %v8771_v10 }
 0xb9e   :  { %v2002_v46 = vpop.f32.mrf.mxu1 }
 0xb9f   :  { %v2015_v7 = vadd.f32 %v2002_v46, %v9949_v57  ;;  %2026 = vadd.xlane.f32.xlu1 %v2022_v45  ;;  %v2025_v53 = vadd.f32 %v2021_v20, %v2017_v8 }
 0xba0   :  { %2201 = vmatpush1.bf16.msra.mxu0 %v8769_v33 }
 0xba1   :  { %v2023_v12 = vadd.f32 %v2021_v20, %v2015_v7  ;;  %2202 = vmatprep.subr.bf16.mxu0 %v8774_v23 }
 0xba3   :  { %2030 = vadd.xlane.f32.xlu1 %v2024_v9  ;;  %2028 = vadd.xlane.f32.xlu0 %v2023_v12 }
 0xba4   :  { %2203 = vmatpush1.bf16.msra.mxu0 %v8772_v24  ;;  %v8800_v24 = vld [vmem:[#allocation11 + $0xd0] sm:$0xff]  }
 0xba5   :  { %2204 = vmatprep.subr.bf16.mxu0 %v8777_v34  ;;  %7750 = vmatprep.subr.bf16.mxu1 %v8800_v24  ;;  %v8802_v34 = vld [vmem:[#allocation11 + $0xc8] sm:$0xff]  }
 0xba7   :  { %2032 = vadd.xlane.f32.xlu0 %v2025_v53 }
 0xba8   :  { %2205 = vmatpush1.bf16.msra.mxu0 %v8775_v25  ;;  %v8803_v25 = vld [vmem:[#allocation11 + $0x88] sm:$0xff]  }
 0xba9   :  { %2206 = vmatprep.subr.bf16.mxu0 %v8780_v26  ;;  %v8804_v26 = vld [vmem:[#allocation11 + $0xc0] sm:$0xff]  }
 0xbac   :  { %2207 = vmatpush1.bf16.msra.mxu0 %v8778_v27  ;;  %v8805_v27 = vld [vmem:[#allocation11 + $0x80] sm:$0xff]  }
 0xbad   :  { %2208 = vmatprep.subr.bf16.mxu0 %v8783_v35  ;;  %v7307_v35 = vld [vmem:[%s10720_s9 + $0x2] sm:$0x3] }
 0xbb0   :  { %2209 = vmatpush1.bf16.msra.mxu0 %v8781_v36 }
 0xbb1   :  { %2210 = vmatprep.subr.bf16.mxu0 %v8786_v37  ;;  %v2115_v37 = vrot.slane %v7307_v35, %v9774_v58 }
 0xbb4   :  { %2211 = vmatpush1.bf16.msra.mxu0 %v8784_v39  ;;  %v2111_v39 = vrot.slane %v7307_v35, %v9777_v59 }
 0xbb5   :  { %2212 = vmatprep.subr.bf16.mxu0 %v8789_v40 }
 0xbb8   :  { %2213 = vmatpush1.bf16.msra.mxu0 %v8787_v42 }
 0xc28   :  { %v2027_v21 = vpop.xlane.xlu1 %2026 }
 0xc29   :  { %v2034_v13 = vmul.f32 0.0078125, %v2027_v21  ;;  %v2073_v21 = vrot.slane %v10001_v31, %v9876_v2 }
 0xc2b   :  { %v10016_v18 = vsub.f32 %v2022_v45, %v2034_v13 }
 0xc2c   :  { %v2031_v14 = vpop.xlane.xlu1 %2030  ;;  %v2029_v17 = vpop.xlane.xlu0 %2028 }
 0xc2d   :  { %v2036_v57 = vmul.f32 0.0078125, %v2031_v14  ;;  %v2035_v19 = vmul.f32 0.0078125, %v2029_v17  ;;  %v2042_v61 = vmul.f32 %v10016_v18, %v10016_v18 }
 0xc2f   :  { %v10020_v3 = vsub.f32 %v2024_v9, %v2036_v57  ;;  %v10022_v5 = vsub.f32 %v2023_v12, %v2035_v19  ;;  %2046 = vadd.xlane.f32.xlu1 %v2042_v61  ;;  %v2081_v57 = vrot.slane %v10001_v31, %v9882_v6 }
 0xc30   :  { %v2033_v22 = vpop.xlane.xlu0 %2032 }
 0xc31   :  { %v2037_v28 = vmul.f32 0.0078125, %v2033_v22  ;;  %v2044_v29 = vmul.f32 %v10020_v3, %v10020_v3  ;;  %v2043_v30 = vmul.f32 %v10022_v5, %v10022_v5 }
 0xc33   :  { %v10028_v32 = vsub.f32 %v2025_v53, %v2037_v28  ;;  %2050 = vadd.xlane.f32.xlu1 %v2044_v29  ;;  %2048 = vadd.xlane.f32.xlu0 %v2043_v30 }
 0xc35   :  { %v2045_v4 = vmul.f32 %v10028_v32, %v10028_v32 }
 0xc37   :  { %2052 = vadd.xlane.f32.xlu0 %v2045_v4 }
 0xcb8   :  { %v2047_v55 = vpop.xlane.xlu1 %2046 }
 0xcb9   :  { %v2054_v56 = vmul.f32 0.0078125, %v2047_v55 }
 0xcbb   :  { %v2058_v20 = vadd.f32 1e-05, %v2054_v56 }
 0xcbc   :  { %v2051_v62 = vpop.xlane.xlu1 %2050  ;;  %v2049_v63 = vpop.xlane.xlu0 %2048 }
 0xcbd   :  { %9198 = vrsqrt.f32 %v2058_v20  ;;  %v2056_v45 = vmul.f32 0.0078125, %v2051_v62  ;;  %v2055_v46 = vmul.f32 0.0078125, %v2049_v63 }
 0xcbf   :  { %v2059_v7 = vadd.f32 1e-05, %v2055_v46  ;;  %v2060_v8 = vadd.f32 1e-05, %v2056_v45 }
 0xcc0   :  { %v2053_v9 = vpop.xlane.xlu0 %2052 }
 0xcc1   :  { %v2057_v12 = vmul.f32 0.0078125, %v2053_v9  ;;  %9200 = vrsqrt.f32 %v2059_v7 }
 0xcc2   :  { %9202 = vrsqrt.f32 %v2060_v8 }
 0xcc3   :  { %v2061_v53 = vadd.f32 1e-05, %v2057_v12 }
 0xcc5   :  { %9204 = vrsqrt.f32 %v2061_v53 }
 0xcca   :  { %v9199_v11 = vpop.eup %9198 }
 0xccb   :  { %v2066_v60 = vmul.f32 %v9199_v11, %v10016_v18 }
 0xccd   :  { %v2074_v17 = vmul.f32 %v2073_v21, %v2066_v60 }
 0xcce   :  { %v9201_v13 = vpop.eup %9200 }
 0xccf   :  { %v2067_v14 = vmul.f32 %v9201_v13, %v10022_v5  ;;  %v9203_v19 = vpop.eup %9202  ;;  %v10039_v29 = vadd.f32 %v2081_v57, %v2074_v17 }
 0xcd0   :  { %v2068_v18 = vmul.f32 %v9203_v19, %v10020_v3  ;;  %v8801_v3 = vld [vmem:[#allocation11 + $0x90] sm:$0xff]  }
 0xcd1   :  { %v2075_v22 = vmul.f32 %v2073_v21, %v2067_v14  ;;  %7751 = vmatpush3.bf16.msra.mxu1 %v8801_v3  ;;  %v2299_v14 = vrot.slane %v10001_v31, %v9909_v41 }
 0xcd2   :  { %v9205_v61 = vpop.eup %9204  ;;  %v2076_v5 = vmul.f32 %v2073_v21, %v2068_v18  ;;  %7752 = vmatprep.subr.bf16.mxu1 %v8802_v34 }
 0xcd3   :  { %v2069_v28 = vmul.f32 %v9205_v61, %v10028_v32  ;;  %v10041_v30 = vadd.f32 %v2081_v57, %v2075_v22 }
 0xcd4   :  { %v10049_v23 = vadd.f32 %v2081_v57, %v2076_v5 }
 0xcd5   :  { %v2086_v4 = vpack.c.bf16 %v10041_v30, %v10039_v29  ;;  %v2077_v10 = vmul.f32 %v2073_v21, %v2069_v28  ;;  %7753 = vmatpush3.bf16.msra.mxu1 %v8803_v25 }
 0xcd6   :  { %7754 = vmatprep.subr.bf16.mxu1 %v8804_v26 }
 0xcd7   :  { %2231 = vmatmul.mubr.bf16.vlgmr.msra.gmra.mxu0 %v2086_v4  ;;  %v10047_v33 = vadd.f32 %v2081_v57, %v2077_v10 }
 0xcd8   :  { %2240 = vmatprep.mubr.bf16.mxu0 %v9632_v0 }
 0xcd9   :  { %v2087_v32 = vpack.c.bf16 %v10047_v33, %v10049_v23  ;;  %7755 = vmatpush3.bf16.msra.mxu1 %v8805_v27 }
 0xcdf   :  { %2241 = vmatmul.mubr.bf16.gmra.mxu0 %v2087_v32 }
 0xce0   :  { %2707 = vmatprep.mubr.bf16.mxu0 %v9632_v0 }
 0xd97   :  { %v2232_v36 = vpop.f32.mrf.mxu0 }
 0xd98   :  { %v2233_v48 = vadd.f32 %v2232_v36, %v2111_v39 }
 0xd99   :  { %v2234_v40 = vpop.f32.mrf.mxu0 }
 0xd9a   :  { %v2235_v43 = vadd.f32 %v2234_v40, %v2115_v37  ;;  %v2251_v54 = vmax.f32 %v2233_v48, 0.0 }
 0xd9b   :  { %v2236_v42 = vpop.f32.mrf.mxu0 }
 0xd9c   :  { %v2237_v47 = vadd.f32 %v2236_v42, %v2111_v39  ;;  %v2252_v52 = vmax.f32 %v2235_v43, 0.0 }
 0xd9d   :  { %v2238_v49 = vpop.f32.mrf.mxu0 }
 0xd9e   :  { %v2239_v15 = vadd.f32 %v2238_v49, %v2115_v37  ;;  %v2253_v50 = vmax.f32 %v2237_v47, 0.0 }
 0xd9f   :  { %v2242_v51 = vpop.f32.mrf.mxu0 }
 0xda0   :  { %v2254_v16 = vmax.f32 %v2239_v15, 0.0  ;;  %v2259_v20 = vpack.c.bf16 %v2253_v50, %v2251_v54  ;;  %v2243_v46 = vadd.f32 %v2242_v51, %v2111_v39 }
 0xda1   :  { %v2244_v55 = vpop.f32.mrf.mxu0 }
 0xda2   :  { %v2260_v56 = vpack.c.bf16 %v2254_v16, %v2252_v52  ;;  %v2245_v63 = vadd.f32 %v2244_v55, %v2115_v37  ;;  %v2255_v11 = vmax.f32 %v2243_v46, 0.0  ;;  %v8811_v55 = vld [vmem:[#allocation7 + $0x214] ss:$12 sps:$4 sm:$0xff]   ;;  %v8819_v46 = vld [vmem:[#allocation7 + $0x218] ss:$12 sps:$4 sm:$0xff]  }
 0xda3   :  { %v2246_v62 = vpop.f32.mrf.mxu0 }
 0xda4   :  { %v2247_v45 = vadd.f32 %v2246_v62, %v2111_v39  ;;  %2428 = vmatprep.mubr.bf16.mxu1 %v2260_v56  ;;  %v2256_v12 = vmax.f32 %v2245_v63, 0.0  ;;  %v8809_v56 = vld [vmem:[#allocation7 + $0x210] ss:$12 sps:$4 sm:$0xff]   ;;  %v8812_v63 = vld [vmem:[#allocation7 + $0x1f8] ss:$12 sps:$4 sm:$0xff]  }
 0xda5   :  { %v2248_v7 = vpop.f32.mrf.mxu0  ;;  %2429 = vmatmul.mubr.bf16.vlgmr.msra.gmra.mxu1 %v2259_v20  ;;  %v8814_v20 = vld [vmem:[#allocation7 + $0x1fc] ss:$12 sps:$4 sm:$0xff]  }
 0xda6   :  { %v2249_v8 = vadd.f32 %v2248_v7, %v2115_v37  ;;  %v2257_v9 = vmax.f32 %v2247_v45, 0.0  ;;  %v8808_v37 = vld [vmem:[#allocation7 + $0x22c] ss:$12 sps:$4 sm:$0xff]   ;;  %v8815_v62 = vld [vmem:[#allocation7 + $0x230] ss:$12 sps:$4 sm:$0xff]  }
 0xda7   :  { %2675 = vmatprep.subr.bf16.mxu0 %v8808_v37  ;;  %8242 = vmatprep.subr.bf16.mxu1 %v8815_v62  ;;  %v8818_v45 = vld [vmem:[#allocation7 + $0x1e4] ss:$12 sps:$4 sm:$0xff]   ;;  %v8816_v7 = vld [vmem:[#allocation7 + $0x1e0] ss:$12 sps:$4 sm:$0xff]  }
 0xda8   :  { %v2258_v53 = vmax.f32 %v2249_v8, 0.0  ;;  %v2261_v21 = vpack.c.bf16 %v2257_v9, %v2255_v11  ;;  %8243 = vmatpush3.bf16.msra.mxu1 %v8815_v62  ;;  %v8822_v8 = vld [vmem:[#allocation7 + $0x1cc] ss:$12 sps:$4 sm:$0xff]   ;;  %v8827_v11 = vld [vmem:[#allocation7 + $0x1e8] ss:$12 sps:$4 sm:$0xff]   ;;  %v9410_v62 = vld [vmem:[%s10713_s2 + $0x20] sm:$0xff]  }
 0xda9   :  { %8244 = vmatprep.subr.bf16.mxu1 %v8819_v46  ;;  %v8823_v9 = vld [vmem:[#allocation7 + $0x200] ss:$12 sps:$4 sm:$0xff]  }
 0xdaa   :  { %v2262_v60 = vpack.c.bf16 %v2258_v53, %v2256_v12  ;;  %v8820_v12 = vld [vmem:[#allocation7 + $0x1c8] ss:$12 sps:$4 sm:$0xff]  }
 0xdab   :  { %v8826_v53 = vld [vmem:[#allocation7 + $0x1b4] ss:$12 sps:$4 sm:$0xff]  }
 0xdac   :  { %2436 = vmatprep.mubr.bf16.mxu1 %v2262_v60  ;;  %8245 = vmatpush3.bf16.msra.mxu1 %v8819_v46  ;;  %v8824_v60 = vld [vmem:[#allocation7 + $0x1b0] ss:$12 sps:$4 sm:$0xff]   ;;  %v9413_v46 = vld [vmem:[%s10713_s2 + $0x68] sm:$0xff]  }
 0xdad   :  { %2437 = vmatmul.mubr.bf16.gmra.mxu1 %v2261_v21  ;;  %8246 = vmatprep.subr.bf16.mxu1 %v8823_v9  ;;  %v8830_v21 = vld [vmem:[#allocation7 + $0x19c] ss:$12 sps:$4 sm:$0xff]  }
 0xdb0   :  { %8247 = vmatpush3.bf16.msra.mxu1 %v8823_v9  ;;  %v9416_v9 = vld [vmem:[%s10713_s2 + $0x8] sm:$0xff]  }
 0xdb1   :  { %8248 = vmatprep.subr.bf16.mxu1 %v8827_v11 }
 0xdb4   :  { %8249 = vmatpush3.bf16.msra.mxu1 %v8827_v11  ;;  %v9419_v11 = vld [vmem:[%s10713_s2 + $0x50] sm:$0xff]  }
 0xe65   :  { %v7756_v13 = vpop.f32.mrf.mxu1 }
 0xe67   :  { %v7757_v17 = vpop.f32.mrf.mxu1 }
 0xe68   :  { %v7758_v57 = vadd.f32 %v7757_v17, %v7756_v13  ;;  %v8831_v13 = vld [vmem:[#allocation7 + $0x1d0] ss:$12 sps:$4 sm:$0xff]  }
 0xe69   :  { %v7759_v19 = vpop.f32.mrf.mxu1  ;;  %8250 = vmatprep.subr.bf16.mxu1 %v8831_v13  ;;  %v8834_v17 = vld [vmem:[#allocation7 + $0x184] ss:$12 sps:$4 sm:$0xff]  }
 0xe6a   :  { %v2431_v61 = vadd.f32 %v7758_v57, %v2299_v14  ;;  %v8835_v57 = vld [vmem:[#allocation7 + $0x1b8] ss:$12 sps:$4 sm:$0xff]   ;;  %8251 = vmatpush3.bf16.msra.mxu1 %v8831_v13  ;;  %v10154_v13 = vld [vmem:[%s10719_s8 + $0x20] sm:$0xff] }
 0xe6b   :  { %v7760_v22 = vpop.f32.mrf.mxu1  ;;  %8252 = vmatprep.subr.bf16.mxu1 %v8835_v57 }
 0xe6c   :  { %v7761_v28 = vadd.f32 %v7760_v22, %v7759_v19  ;;  %v2445_v18 = vadd.f32 %v2431_v61, %v10039_v29  ;;  %v8806_v29 = vld [vmem:[#allocation7 + $0x228] ss:$12 sps:$4 sm:$0xff]   ;;  %v8832_v19 = vld [vmem:[#allocation7 + $0x180] ss:$12 sps:$4 sm:$0xff]  }
 0xe6d   :  { %v7762_v4 = vpop.f32.mrf.mxu1  ;;  %2676 = vmatpush1.bf16.msra.mxu0 %v8806_v29  ;;  %v8836_v61 = vld [vmem:[#allocation7 + $0x1a0] ss:$12 sps:$4 sm:$0xff]   ;;  %v9406_v22 = vld [vmem:[%s10713_s2 + $0x38] sm:$0xff]  }
 0xe6e   :  { %v2434_v10 = vadd.f32 %v7761_v28, %v2299_v14  ;;  %2449 = vadd.xlane.f32.xlu1 %v2445_v18  ;;  %2677 = vmatprep.subr.bf16.mxu0 %v8811_v55  ;;  %v8837_v28 = vld [vmem:[#allocation7 + $0x188] ss:$12 sps:$4 sm:$0xff]   ;;  %v9408_v55 = vld [vmem:[%s10713_s2 + $0x30] sm:$0xff]  }
 0xe6f   :  { %v7763_v5 = vpop.f32.mrf.mxu1  ;;  %8253 = vmatpush3.bf16.msra.mxu1 %v8835_v57 }
 0xe70   :  { %v7764_v32 = vadd.f32 %v7763_v5, %v7762_v4  ;;  %v2446_v24 = vadd.f32 %v2434_v10, %v10041_v30  ;;  %8254 = vmatprep.subr.bf16.mxu1 %v8836_v61 }
 0xe71   :  { %v7765_v3 = vpop.f32.mrf.mxu1  ;;  %2678 = vmatpush1.bf16.msra.mxu0 %v8809_v56 }
 0xe72   :  { %v2439_v34 = vadd.f32 %v7764_v32, %v2299_v14  ;;  %2451 = vadd.xlane.f32.xlu0 %v2446_v24  ;;  %2679 = vmatprep.subr.bf16.mxu0 %v8814_v20 }
 0xe73   :  { %v7766_v25 = vpop.f32.mrf.mxu1  ;;  %8255 = vmatpush3.bf16.msra.mxu1 %v8836_v61 }
 0xe74   :  { %v7767_v26 = vadd.f32 %v7766_v25, %v7765_v3  ;;  %v2447_v27 = vadd.f32 %v2439_v34, %v10049_v23  ;;  %8256 = vmatprep.subr.bf16.mxu1 %v8837_v28 }
 0xe75   :  { %2680 = vmatpush1.bf16.msra.mxu0 %v8812_v63  ;;  %v9411_v63 = vld [vmem:[%s10713_s2 + $0x70] sm:$0xff]  }
 0xe76   :  { %v2442_v35 = vadd.f32 %v7767_v26, %v2299_v14  ;;  %2453 = vadd.xlane.f32.xlu1 %v2447_v27  ;;  %2681 = vmatprep.subr.bf16.mxu0 %v8818_v45  ;;  %v8828_v14 = vld [vmem:[#allocation7 + $0x198] ss:$12 sps:$4 sm:$0xff]  }
 0xe77   :  { %8257 = vmatpush3.bf16.msra.mxu1 %v8837_v28  ;;  %v9412_v45 = vld [vmem:[%s10713_s2 + $0x18] sm:$0xff]  }
 0xe78   :  { %v2448_v36 = vadd.f32 %v2442_v35, %v10047_v33 }
 0xe79   :  { %2682 = vmatpush1.bf16.msra.mxu0 %v8816_v7  ;;  %v9414_v7 = vld [vmem:[%s10713_s2 + $0x10] sm:$0xff]  }
 0xe7a   :  { %2455 = vadd.xlane.f32.xlu0 %v2448_v36  ;;  %2683 = vmatprep.subr.bf16.mxu0 %v8822_v8  ;;  %v9415_v8 = vld [vmem:[%s10713_s2 + $0x60] sm:$0xff]  }
 0xe7d   :  { %2684 = vmatpush1.bf16.msra.mxu0 %v8820_v12  ;;  %v9417_v12 = vld [vmem:[%s10713_s2 + $0x58] sm:$0xff]  }
 0xe7e   :  { %2685 = vmatprep.subr.bf16.mxu0 %v8826_v53  ;;  %v9418_v53 = vld [vmem:[%s10713_s2] sm:$0xff]  }
 0xe81   :  { %2686 = vmatpush1.bf16.msra.mxu0 %v8824_v60  ;;  %v9420_v60 = vld [vmem:[%s10713_s2 + $0x48] sm:$0xff]  }
 0xe82   :  { %2687 = vmatprep.subr.bf16.mxu0 %v8830_v21  ;;  %v9421_v21 = vld [vmem:[%s10713_s2 + $0x40] sm:$0xff]  }
 0xe85   :  { %2688 = vmatpush1.bf16.msra.mxu0 %v8828_v14 }
 0xe86   :  { %2689 = vmatprep.subr.bf16.mxu0 %v8834_v17  ;;  %v2788_v17 = vrot.slane %v10154_v13, %v9774_v58 }
 0xe89   :  { %2690 = vmatpush1.bf16.msra.mxu0 %v8832_v19  ;;  %v2780_v19 = vrot.slane %v10154_v13, %v9777_v59 }
 0xe8a   :  { %8262 = vmatprep.subr.bf16.mxu0 %v9406_v22 }
 0xef7   :  { %v2450_v39 = vpop.xlane.xlu1 %2449 }
 0xef8   :  { %v2457_v40 = vmul.f32 0.0078125, %v2450_v39  ;;  %v2496_v39 = vrot.slane %v10001_v31, %v9938_v44 }
 0xefa   :  { %v10065_v42 = vsub.f32 %v2445_v18, %v2457_v40  ;;  %v9407_v18 = vld [vmem:[%s10713_s2 + $0x78] sm:$0xff]  }
 0xefb   :  { %v2452_v30 = vpop.xlane.xlu0 %2451  ;;  %8286 = vmatprep.subr.bf16.mxu1 %v9407_v18 }
 0xefc   :  { %v2458_v43 = vmul.f32 0.0078125, %v2452_v30  ;;  %v2465_v47 = vmul.f32 %v10065_v42, %v10065_v42 }
 0xefe   :  { %v10069_v48 = vsub.f32 %v2446_v24, %v2458_v43  ;;  %2469 = vadd.xlane.f32.xlu1 %v2465_v47  ;;  %v7340_v47 = vld [vmem:[%s10719_s8 + $0x18] ss:$0 sm:$0xff] }
 0xeff   :  { %v2454_v23 = vpop.xlane.xlu1 %2453 }
 0xf00   :  { %v2459_v49 = vmul.f32 0.0078125, %v2454_v23  ;;  %v2466_v33 = vmul.f32 %v10069_v48, %v10069_v48 }
 0xf02   :  { %v10073_v15 = vsub.f32 %v2447_v27, %v2459_v49  ;;  %2471 = vadd.xlane.f32.xlu0 %v2466_v33 }
 0xf03   :  { %v2456_v50 = vpop.xlane.xlu0 %2455 }
 0xf04   :  { %v2460_v51 = vmul.f32 0.0078125, %v2456_v50  ;;  %v2467_v52 = vmul.f32 %v10073_v15, %v10073_v15 }
 0xf06   :  { %v10077_v16 = vsub.f32 %v2448_v36, %v2460_v51  ;;  %2473 = vadd.xlane.f32.xlu1 %v2467_v52 }
 0xf08   :  { %v2468_v54 = vmul.f32 %v10077_v16, %v10077_v16 }
 0xf0a   :  { %2475 = vadd.xlane.f32.xlu0 %v2468_v54 }
 0xf87   :  { %v2470_v4 = vpop.xlane.xlu1 %2469 }
 0xf88   :  { %v2477_v10 = vmul.f32 0.0078125, %v2470_v4 }
 0xf8a   :  { %v2481_v5 = vadd.f32 1e-05, %v2477_v10 }
 0xf8b   :  { %v2472_v32 = vpop.xlane.xlu0 %2471 }
 0xf8c   :  { %9206 = vrsqrt.f32 %v2481_v5  ;;  %v2478_v24 = vmul.f32 0.0078125, %v2472_v32 }
 0xf8e   :  { %v2482_v3 = vadd.f32 1e-05, %v2478_v24 }
 0xf8f   :  { %v2474_v34 = vpop.xlane.xlu1 %2473 }
 0xf90   :  { %9208 = vrsqrt.f32 %v2482_v3  ;;  %v2479_v25 = vmul.f32 0.0078125, %v2474_v34 }
 0xf92   :  { %v2483_v26 = vadd.f32 1e-05, %v2479_v25 }
 0xf93   :  { %v2476_v27 = vpop.xlane.xlu0 %2475 }
 0xf94   :  { %9210 = vrsqrt.f32 %v2483_v26  ;;  %v2480_v35 = vmul.f32 0.0078125, %v2476_v27 }
 0xf96   :  { %v2484_v36 = vadd.f32 1e-05, %v2480_v35 }
 0xf98   :  { %9212 = vrsqrt.f32 %v2484_v36 }
 0xf99   :  { %v9207_v29 = vpop.eup %9206 }
 0xf9a   :  { %v2489_v37 = vmul.f32 %v9207_v29, %v10065_v42 }
 0xf9c   :  { %v2497_v43 = vmul.f32 %v2496_v39, %v2489_v37 }
 0xf9d   :  { %v9209_v40 = vpop.eup %9208 }
 0xf9e   :  { %v2490_v30 = vmul.f32 %v9209_v40, %v10069_v48  ;;  %v10094_v33 = vadd.f32 %v7340_v47, %v2497_v43 }
 0xfa0   :  { %v2498_v23 = vmul.f32 %v2496_v39, %v2490_v30 }
 0xfa1   :  { %v9211_v49 = vpop.eup %9210 }
 0xfa2   :  { %v10096_v50 = vadd.f32 %v7340_v47, %v2498_v23  ;;  %v2491_v51 = vmul.f32 %v9211_v49, %v10073_v15 }
 0xfa4   :  { %v2512_v42 = vpack.c.bf16 %v10096_v50, %v10094_v33  ;;  %v2499_v52 = vmul.f32 %v2496_v39, %v2491_v51 }
 0xfa5   :  { %v9213_v31 = vpop.eup %9212 }
 0xfa6   :  { %2708 = vmatmul.mubr.bf16.vlgmr.msra.gmra.mxu0 %v2512_v42  ;;  %8258 = vmatprep.mubr.bf16.mxu1 %v2512_v42  ;;  %v2492_v48 = vmul.f32 %v9213_v31, %v10077_v16  ;;  %v10106_v56 = vadd.f32 %v7340_v47, %v2499_v52  ;;  %v9409_v16 = vld [vmem:[%s10713_s2 + $0x28] sm:$0xff]   ;;  %v8838_v42 = vld [vmem:[#allocation8 + $0xb8] sm:$0xff]   ;;  %v8839_v31 = vld [vmem:[#allocation8 + $0xb0] sm:$0xff]  }
 0xfa7   :  { %2717 = vmatprep.mubr.bf16.mxu0 %v9632_v0  ;;  %8263 = vmatpush3.bf16.msra.mxu0 %v9406_v22 }
 0xfa8   :  { %v2500_v54 = vmul.f32 %v2496_v39, %v2492_v48  ;;  %8264 = vmatprep.subr.bf16.mxu0 %v9408_v55  ;;  %v8840_v48 = vld [vmem:[#allocation8 + $0xa8] sm:$0xff]  }
 0xfaa   :  { %v10108_v15 = vadd.f32 %v7340_v47, %v2500_v54 }
 0xfab   :  { %8265 = vmatpush3.bf16.msra.mxu0 %v9408_v55 }
 0xfac   :  { %v2513_v20 = vpack.c.bf16 %v10108_v15, %v10106_v56  ;;  %8266 = vmatprep.subr.bf16.mxu0 %v9409_v16 }
 0xfae   :  { %2718 = vmatmul.mubr.bf16.gmra.mxu0 %v2513_v20  ;;  %8259 = vmatmul.mubr.bf16.vlgmr.msra.gmra.mxu1 %v2513_v20 }
 0xfaf   :  { %8267 = vmatpush3.bf16.msra.mxu0 %v9409_v16  ;;  %8287 = vmatpush3.bf16.msra.mxu1 %v9407_v18 }
 0xfb0   :  { %8268 = vmatprep.subr.bf16.mxu0 %v9410_v62  ;;  %8288 = vmatprep.subr.bf16.mxu1 %v9411_v63 }
 0xfb3   :  { %8269 = vmatpush3.bf16.msra.mxu0 %v9410_v62  ;;  %8289 = vmatpush3.bf16.msra.mxu1 %v9411_v63 }
 0xfb4   :  { %8270 = vmatprep.subr.bf16.mxu0 %v9412_v45  ;;  %8290 = vmatprep.subr.bf16.mxu1 %v9413_v46 }
 0xfb7   :  { %8271 = vmatpush3.bf16.msra.mxu0 %v9412_v45  ;;  %8291 = vmatpush3.bf16.msra.mxu1 %v9413_v46 }
 0xfb8   :  { %8272 = vmatprep.subr.bf16.mxu0 %v9414_v7  ;;  %8292 = vmatprep.subr.bf16.mxu1 %v9415_v8 }
 0xfbb   :  { %8273 = vmatpush3.bf16.msra.mxu0 %v9414_v7  ;;  %8293 = vmatpush3.bf16.msra.mxu1 %v9415_v8 }
 0xfbc   :  { %8274 = vmatprep.subr.bf16.mxu0 %v9416_v9  ;;  %8294 = vmatprep.subr.bf16.mxu1 %v9417_v12 }
 0xfbf   :  { %8275 = vmatpush3.bf16.msra.mxu0 %v9416_v9  ;;  %8295 = vmatpush3.bf16.msra.mxu1 %v9417_v12 }
 0xfc0   :  { %8276 = vmatprep.subr.bf16.mxu0 %v9418_v53  ;;  %8296 = vmatprep.subr.bf16.mxu1 %v9419_v11 }
 0xfc3   :  { %8277 = vmatpush3.bf16.msra.mxu0 %v9418_v53  ;;  %8297 = vmatpush3.bf16.msra.mxu1 %v9419_v11 }
 0xfc4   :  { %8298 = vmatprep.subr.bf16.mxu1 %v9420_v60  ;;  %8310 = vmatprep.subr.bf16.mxu0 %v8838_v42 }
 0xfc7   :  { %8299 = vmatpush3.bf16.msra.mxu1 %v9420_v60 }
 0xfc8   :  { %8300 = vmatprep.subr.bf16.mxu1 %v9421_v21 }
 0xfcb   :  { %8301 = vmatpush3.bf16.msra.mxu1 %v9421_v21 }
0x1066   :  { %v2709_v14 = vpop.f32.mrf.mxu0 }
0x1067   :  { %v2781_v18 = vadd.f32 %v2780_v19, %v2709_v14 }
0x1068   :  { %v2711_v57 = vpop.f32.mrf.mxu0 }
0x1069   :  { %v2789_v22 = vadd.f32 %v2788_v17, %v2711_v57 }
0x106a   :  { %v2713_v61 = vpop.f32.mrf.mxu0 }
0x106b   :  { %v2782_v4 = vadd.f32 %v2780_v19, %v2713_v61  ;;  %v2801_v32 = vmul.f32 %v2789_v22, %v2781_v18 }
0x106c   :  { %v2715_v28 = vpop.f32.mrf.mxu0 }
0x106d   :  { %v2790_v10 = vadd.f32 %v2788_v17, %v2715_v28 }
0x106e   :  { %v2719_v5 = vpop.f32.mrf.mxu0 }
0x106f   :  { %v2802_v24 = vmul.f32 %v2790_v10, %v2782_v4  ;;  %v2783_v35 = vadd.f32 %v2780_v19, %v2719_v5 }
0x1070   :  { %v2721_v3 = vpop.f32.mrf.mxu0 }
0x1071   :  { %v2809_v34 = vpack.c.bf16 %v2802_v24, %v2801_v32  ;;  %v2791_v26 = vadd.f32 %v2788_v17, %v2721_v3  ;;  %v2805_v30 = vmul.f32 %v2789_v22, %v2783_v35 }
0x1072   :  { %v2723_v25 = vpop.f32.mrf.mxu0 }
0x1073   :  { %v2784_v27 = vadd.f32 %v2780_v19, %v2723_v25  ;;  %8278 = vmatprep.mubr.bf16.mxu0 %v2809_v34  ;;  %v2803_v39 = vmul.f32 %v2791_v26, %v2781_v18  ;;  %v2807_v49 = vmul.f32 %v2791_v26, %v2783_v35 }
0x1074   :  { %v2725_v36 = vpop.f32.mrf.mxu0 }
0x1075   :  { %v2792_v29 = vadd.f32 %v2788_v17, %v2725_v36  ;;  %v2806_v37 = vmul.f32 %v2790_v10, %v2784_v27 }
0x1077   :  { %v2804_v40 = vmul.f32 %v2792_v29, %v2782_v4  ;;  %v2811_v47 = vpack.c.bf16 %v2806_v37, %v2805_v30  ;;  %v2808_v23 = vmul.f32 %v2792_v29, %v2784_v27 }
0x1079   :  { %v2810_v43 = vpack.c.bf16 %v2804_v40, %v2803_v39  ;;  %v2812_v51 = vpack.c.bf16 %v2808_v23, %v2807_v49 }
0x107b   :  { %8279 = vmatmul.mubr.bf16.vlgmr.msra.gmra.mxu0 %v2810_v43 }
0x107c   :  { %8282 = vmatprep.mubr.bf16.mxu0 %v2811_v47  ;;  %8311 = vmatpush3.bf16.msra.mxu0 %v8838_v42 }
0x107d   :  { %8312 = vmatprep.subr.bf16.mxu0 %v8839_v31 }
0x1080   :  { %8313 = vmatpush3.bf16.msra.mxu0 %v8839_v31 }
0x1081   :  { %8314 = vmatprep.subr.bf16.mxu0 %v8840_v48 }
0x1083   :  { %8283 = vmatmul.mubr.bf16.gmra.mxu0 %v2812_v51 }
0x1084   :  { %8315 = vmatpush3.bf16.msra.mxu0 %v8840_v48 }
0x113b   :  { %v8280_v52 = vpop.f32.mrf.mxu0 }
0x113d   :  { %v2847_v54 = vpop.f32.mrf.mxu0 }
0x113e   :  { %v2878_v55 = vmax.f32 %v2847_v54, %v8280_v52 }
0x113f   :  { %v8281_v20 = vpop.f32.mrf.mxu0 }
0x1140   :  { %v2882_v16 = vsub.f32 %v2847_v54, %v2878_v55  ;;  %v2884_v62 = vsub.f32 %v8280_v52, %v2878_v55 }
0x1141   :  { %v2850_v63 = vpop.f32.mrf.mxu0 }
0x1142   :  { %v2890_v45 = vmul.f32 1.442695, %v2882_v16  ;;  %v2894_v46 = vmul.f32 1.442695, %v2884_v62  ;;  %v2879_v7 = vmax.f32 %v2850_v63, %v8281_v20 }
0x1143   :  { %v8284_v8 = vpop.f32.mrf.mxu0 }
0x1144   :  { %9214 = vpow2.f32 %v2890_v45  ;;  %v2883_v9 = vsub.f32 %v2850_v63, %v2879_v7  ;;  %v2885_v12 = vsub.f32 %v8281_v20, %v2879_v7  ;;  %v8841_v63 = vld [vmem:[#allocation8 + $0xa0] sm:$0xff]   ;;  %v8842_v45 = vld [vmem:[#allocation8 + $0x98] sm:$0xff]   ;;  %v8844_v7 = vld [vmem:[#allocation8 + $0x88] sm:$0xff]  }
0x1145   :  { %9216 = vpow2.f32 %v2894_v46  ;;  %v2863_v53 = vpop.f32.mrf.mxu0  ;;  %8316 = vmatprep.subr.bf16.mxu0 %v8841_v63  ;;  %v8843_v46 = vld [vmem:[#allocation8 + $0x90] sm:$0xff]  }
0x1146   :  { %v2892_v11 = vmul.f32 1.442695, %v2883_v9  ;;  %v2896_v60 = vmul.f32 1.442695, %v2885_v12  ;;  %v2880_v21 = vmax.f32 %v2863_v53, %v8284_v8  ;;  %8317 = vmatpush3.bf16.msra.mxu0 %v8841_v63  ;;  %v8260_v9 = vpop.f32.mrf.mxu1 }
0x1147   :  { %v8285_v14 = vpop.f32.mrf.mxu0  ;;  %8318 = vmatprep.subr.bf16.mxu0 %v8842_v45 }
0x1148   :  { %9218 = vpow2.f32 %v2892_v11  ;;  %v2886_v17 = vsub.f32 %v2863_v53, %v2880_v21  ;;  %v2888_v57 = vsub.f32 %v8284_v8, %v2880_v21  ;;  %v8845_v8 = vld [vmem:[#allocation8 + $0x80] sm:$0xff]   ;;  %v2762_v12 = vpop.f32.mrf.mxu1  ;;  %v2796_v21 = vrot.slane %v10154_v13, %v9846_v1 }
0x1149   :  { %9220 = vpow2.f32 %v2896_v60  ;;  %v2866_v19 = vpop.f32.mrf.mxu0 }
0x114a   :  { %v2898_v61 = vmul.f32 1.442695, %v2886_v17  ;;  %v2902_v22 = vmul.f32 1.442695, %v2888_v57  ;;  %v2881_v28 = vmax.f32 %v2866_v19, %v8285_v14  ;;  %8319 = vmatpush3.bf16.msra.mxu0 %v8842_v45  ;;  %v8261_v53 = vpop.f32.mrf.mxu1  ;;  %v2797_v17 = vadd.f32 %v2796_v21, %v2762_v12 }
0x114b   :  { %8320 = vmatprep.subr.bf16.mxu0 %v8843_v46 }
0x114c   :  { %9222 = vpow2.f32 %v2898_v61  ;;  %v2887_v18 = vsub.f32 %v2866_v19, %v2881_v28  ;;  %v2889_v4 = vsub.f32 %v8285_v14, %v2881_v28  ;;  %v2765_v11 = vpop.f32.mrf.mxu1  ;;  %v2799_v19 = vadd.f32 %v8260_v9, %v2796_v21 }
0x114d   :  { %9224 = vpow2.f32 %v2902_v22  ;;  %v2800_v61 = vadd.f32 %v8261_v53, %v2796_v21  ;;  %v2798_v22 = vadd.f32 %v2796_v21, %v2765_v11 }
0x114e   :  { %v2900_v10 = vmul.f32 1.442695, %v2887_v18  ;;  %v2904_v5 = vmul.f32 1.442695, %v2889_v4  ;;  %8321 = vmatpush3.bf16.msra.mxu0 %v8843_v46 }
0x114f   :  { %8322 = vmatprep.subr.bf16.mxu0 %v8844_v7 }
0x1150   :  { %9226 = vpow2.f32 %v2900_v10 }
0x1151   :  { %v9215_v32 = vpop.eup %9214  ;;  %9228 = vpow2.f32 %v2904_v5 }
0x1152   :  { %v9217_v24 = vpop.eup %9216  ;;  %8323 = vmatpush3.bf16.msra.mxu0 %v8844_v7 }
0x1153   :  { %v2906_v3 = vadd.f32 %v9217_v24, %v9215_v32  ;;  %8324 = vmatprep.subr.bf16.mxu0 %v8845_v8 }
0x1155   :  { %v9219_v34 = vpop.eup %9218  ;;  %9230 = vrcp.f32 %v2906_v3 }
0x1156   :  { %v9221_v25 = vpop.eup %9220  ;;  %8325 = vmatpush3.bf16.msra.mxu0 %v8845_v8 }
0x1157   :  { %v2907_v26 = vadd.f32 %v9221_v25, %v9219_v34 }
0x1159   :  { %v9223_v27 = vpop.eup %9222  ;;  %9232 = vrcp.f32 %v2907_v26 }
0x115a   :  { %v9225_v35 = vpop.eup %9224 }
0x115b   :  { %v2908_v36 = vadd.f32 %v9225_v35, %v9223_v27 }
0x115d   :  { %v9227_v29 = vpop.eup %9226  ;;  %9234 = vrcp.f32 %v2908_v36 }
0x115e   :  { %v9229_v37 = vpop.eup %9228 }
0x115f   :  { %v2909_v39 = vadd.f32 %v9229_v37, %v9227_v29 }
0x1161   :  { %9236 = vrcp.f32 %v2909_v39 }
0x1162   :  { %v9231_v40 = vpop.eup %9230 }
0x1163   :  { %v2914_v43 = vmul.f32 %v9231_v40, %v9215_v32  ;;  %v2916_v23 = vmul.f32 %v9231_v40, %v9217_v24 }
0x1166   :  { %v9233_v30 = vpop.eup %9232 }
0x1167   :  { %v2915_v47 = vmul.f32 %v9233_v30, %v9219_v34  ;;  %v2917_v49 = vmul.f32 %v9233_v30, %v9221_v25 }
0x1169   :  { %v2922_v51 = vpack.c.bf16 %v2915_v47, %v2914_v43  ;;  %v2923_v42 = vpack.c.bf16 %v2917_v49, %v2916_v23  ;;  %v3126_v49 = vrot.slane %v10154_v13, %v9851_v38 }
0x116a   :  { %v9235_v31 = vpop.eup %9234 }
0x116b   :  { %8302 = vmatprep.mubr.bf16.mxu1 %v2922_v51  ;;  %v2918_v52 = vmul.f32 %v9235_v31, %v9223_v27  ;;  %v2920_v55 = vmul.f32 %v9235_v31, %v9225_v35 }
0x116c   :  { %8303 = vmatmul.mubr.bf16.vlgmr.msra.gmra.mxu1 %v2923_v42 }
0x116e   :  { %v9237_v48 = vpop.eup %9236 }
0x116f   :  { %v2919_v54 = vmul.f32 %v9237_v48, %v9227_v29  ;;  %v2921_v20 = vmul.f32 %v9237_v48, %v9229_v37 }
0x1171   :  { %v2924_v16 = vpack.c.bf16 %v2919_v54, %v2918_v52  ;;  %v2925_v62 = vpack.c.bf16 %v2921_v20, %v2920_v55 }
0x1173   :  { %8306 = vmatprep.mubr.bf16.mxu1 %v2924_v16 }
0x1174   :  { %8307 = vmatmul.mubr.bf16.gmra.mxu1 %v2925_v62  ;;  %v8848_v62 = vld [vmem:[#allocation10 + $0x174] ss:$8 sps:$4 sm:$0xff]  }
0x1175   :  { %3335 = vmatprep.mubr.bf16.mxu1 %v9632_v0  ;;  %3303 = vmatprep.subr.bf16.mxu1 %v8848_v62 }
0x122c   :  { %v8304_v60 = vpop.f32.mrf.mxu1 }
0x122d   :  { %v2995_v4 = vmul.f32 %v8304_v60, %v2799_v19 }
0x122e   :  { %v2960_v14 = vpop.f32.mrf.mxu1 }
0x122f   :  { %v2991_v28 = vmul.f32 %v2960_v14, %v2797_v17 }
0x1230   :  { %v8305_v57 = vpop.f32.mrf.mxu1 }
0x1231   :  { %v2996_v10 = vmul.f32 %v8305_v57, %v2800_v61  ;;  %v2999_v24 = vadd.f32 %v2995_v4, %v2991_v28  ;;  %v8851_v57 = vld [vmem:[#allocation10 + $0x164] ss:$8 sps:$4 sm:$0xff]   ;;  %v8860_v4 = vld [vmem:[#allocation10 + $0x134] ss:$8 sps:$4 sm:$0xff]  }
0x1232   :  { %v2963_v18 = vpop.f32.mrf.mxu1  ;;  %v8857_v28 = vld [vmem:[#allocation10 + $0x144] ss:$8 sps:$4 sm:$0xff]  }
0x1233   :  { %v2992_v5 = vmul.f32 %v2963_v18, %v2798_v22  ;;  %v8855_v18 = vld [vmem:[#allocation10 + $0x140] ss:$8 sps:$4 sm:$0xff]  }
0x1234   :  { %v8308_v32 = vpop.f32.mrf.mxu1 }
0x1235   :  { %v3000_v3 = vadd.f32 %v2996_v10, %v2992_v5  ;;  %v2997_v36 = vmul.f32 %v8308_v32, %v2799_v19  ;;  %v8849_v19 = vld [vmem:[#allocation10 + $0x160] ss:$8 sps:$4 sm:$0xff]   ;;  %v8858_v10 = vld [vmem:[#allocation10 + $0x130] ss:$8 sps:$4 sm:$0xff]   ;;  %v8863_v5 = vld [vmem:[#allocation10 + $0x124] ss:$8 sps:$4 sm:$0xff]  }
0x1236   :  { %v2976_v34 = vpop.f32.mrf.mxu1  ;;  %v8861_v32 = vld [vmem:[#allocation10 + $0x120] ss:$8 sps:$4 sm:$0xff]  }
0x1237   :  { %v3003_v25 = vpack.c.bf16 %v3000_v3, %v2999_v24  ;;  %v2993_v27 = vmul.f32 %v2976_v34, %v2797_v17  ;;  %v8866_v24 = vld [vmem:[#allocation10 + $0x114] ss:$8 sps:$4 sm:$0xff]   ;;  %v8864_v3 = vld [vmem:[#allocation10 + $0x110] ss:$8 sps:$4 sm:$0xff]   ;;  %v8869_v34 = vld [vmem:[#allocation10 + $0x104] ss:$8 sps:$4 sm:$0xff]  }
0x1238   :  { %v8309_v26 = vpop.f32.mrf.mxu1 }
0x1239   :  { %8326 = vmatprep.mubr.bf16.mxu0 %v3003_v25  ;;  %v2998_v29 = vmul.f32 %v8309_v26, %v2800_v61  ;;  %v3001_v39 = vadd.f32 %v2997_v36, %v2993_v27  ;;  %v8854_v61 = vld [vmem:[#allocation10 + $0x154] ss:$8 sps:$4 sm:$0xff]   ;;  %v8867_v25 = vld [vmem:[#allocation10 + $0x100] ss:$8 sps:$4 sm:$0xff]  }
0x123a   :  { %v2979_v35 = vpop.f32.mrf.mxu1  ;;  %v8870_v26 = vld [vmem:[#allocation11 + $0x178] sm:$0xff]   ;;  %v8873_v36 = vld [vmem:[#allocation11 + $0x130] sm:$0xff]  }
0x123b   :  { %v2994_v37 = vmul.f32 %v2979_v35, %v2798_v22  ;;  %v8852_v22 = vld [vmem:[#allocation10 + $0x150] ss:$8 sps:$4 sm:$0xff]   ;;  %7812 = vmatprep.subr.bf16.mxu0 %v8870_v26 }
0x123c   :  { %v8871_v27 = vld [vmem:[#allocation11 + $0x138] sm:$0xff]   ;;  %v8872_v35 = vld [vmem:[#allocation11 + $0x170] sm:$0xff]  }
0x123d   :  { %v3002_v40 = vadd.f32 %v2998_v29, %v2994_v37  ;;  %v8874_v29 = vld [vmem:[#allocation11 + $0x168] sm:$0xff]  }
0x123e   :  { %v8875_v37 = vld [vmem:[#allocation11 + $0x128] sm:$0xff]  }
0x123f   :  { %v3004_v30 = vpack.c.bf16 %v3002_v40, %v3001_v39  ;;  %v8876_v39 = vld [vmem:[#allocation11 + $0x160] sm:$0xff]  }
0x1240   :  { %v8877_v40 = vld [vmem:[#allocation11 + $0x120] sm:$0xff]  }
0x1241   :  { %8327 = vmatmul.mubr.bf16.vlgmr.msra.gmra.mxu0 %v3004_v30  ;;  %v8878_v30 = vld [vmem:[#allocation11 + $0x158] sm:$0xff]  }
0x1242   :  { %7813 = vmatpush3.bf16.msra.mxu0 %v8871_v27 }
0x1243   :  { %7814 = vmatprep.subr.bf16.mxu0 %v8872_v35 }
0x1246   :  { %7815 = vmatpush3.bf16.msra.mxu0 %v8873_v36 }
0x1247   :  { %7816 = vmatprep.subr.bf16.mxu0 %v8874_v29 }
0x124a   :  { %7817 = vmatpush3.bf16.msra.mxu0 %v8875_v37 }
0x124b   :  { %7818 = vmatprep.subr.bf16.mxu0 %v8876_v39 }
0x124e   :  { %7819 = vmatpush3.bf16.msra.mxu0 %v8877_v40 }
0x124f   :  { %7820 = vmatprep.subr.bf16.mxu0 %v8878_v30 }
0x1301   :  { %v8328_v43 = vpop.f32.mrf.mxu0 }
0x1302   :  { %v3121_v42 = vadd.f32 %v8328_v43, %v10106_v56  ;;  %v8879_v43 = vld [vmem:[#allocation11 + $0x118] sm:$0xff]  }
0x1303   :  { %v3104_v47 = vpop.f32.mrf.mxu0  ;;  %7821 = vmatpush3.bf16.msra.mxu0 %v8879_v43 }
0x1304   :  { %v3119_v23 = vadd.f32 %v3104_v47, %v10094_v33  ;;  %v3129_v55 = vadd.f32 %v3126_v49, %v3121_v42  ;;  %v8846_v33 = vld [vmem:[#allocation10 + $0x170] ss:$8 sps:$4 sm:$0xff]  }
0x1305   :  { %v8329_v51 = vpop.f32.mrf.mxu0  ;;  %3304 = vmatpush1.bf16.msra.mxu1 %v8846_v33 }
0x1306   :  { %v3127_v31 = vadd.f32 %v3126_v49, %v3119_v23  ;;  %v3122_v54 = vadd.f32 %v8329_v51, %v10108_v15  ;;  %3305 = vmatprep.subr.bf16.mxu1 %v8851_v57 }
0x1307   :  { %v3107_v48 = vpop.f32.mrf.mxu0 }
0x1308   :  { %v3120_v52 = vadd.f32 %v3107_v48, %v10096_v50  ;;  %3131 = vadd.xlane.f32.xlu1 %v3127_v31  ;;  %v3130_v16 = vadd.f32 %v3126_v49, %v3122_v54 }
0x1309   :  { %3306 = vmatpush1.bf16.msra.mxu1 %v8849_v19 }
0x130a   :  { %v3128_v20 = vadd.f32 %v3126_v49, %v3120_v52  ;;  %3307 = vmatprep.subr.bf16.mxu1 %v8854_v61 }
0x130c   :  { %3135 = vadd.xlane.f32.xlu1 %v3129_v55  ;;  %3133 = vadd.xlane.f32.xlu0 %v3128_v20 }
0x130d   :  { %3308 = vmatpush1.bf16.msra.mxu1 %v8852_v22  ;;  %v8880_v22 = vld [vmem:[#allocation11 + $0x150] sm:$0xff]  }
0x130e   :  { %3309 = vmatprep.subr.bf16.mxu1 %v8857_v28  ;;  %7822 = vmatprep.subr.bf16.mxu0 %v8880_v22  ;;  %v8882_v28 = vld [vmem:[#allocation11 + $0x148] sm:$0xff]  }
0x1310   :  { %3137 = vadd.xlane.f32.xlu0 %v3130_v16 }
0x1311   :  { %3310 = vmatpush1.bf16.msra.mxu1 %v8855_v18  ;;  %v8883_v18 = vld [vmem:[#allocation11 + $0x108] sm:$0xff]  }
0x1312   :  { %3311 = vmatprep.subr.bf16.mxu1 %v8860_v4  ;;  %v8884_v4 = vld [vmem:[#allocation11 + $0x140] sm:$0xff]  }
0x1315   :  { %3312 = vmatpush1.bf16.msra.mxu1 %v8858_v10  ;;  %v8885_v10 = vld [vmem:[#allocation11 + $0x100] sm:$0xff]  }
0x1316   :  { %3313 = vmatprep.subr.bf16.mxu1 %v8863_v5  ;;  %v7375_v5 = vld [vmem:[%s10720_s9 + $0x4] sm:$0x3] }
0x1319   :  { %3314 = vmatpush1.bf16.msra.mxu1 %v8861_v32 }
0x131a   :  { %3315 = vmatprep.subr.bf16.mxu1 %v8866_v24  ;;  %v3220_v24 = vrot.slane %v7375_v5, %v9774_v58 }
0x131d   :  { %3316 = vmatpush1.bf16.msra.mxu1 %v8864_v3  ;;  %v3216_v3 = vrot.slane %v7375_v5, %v9777_v59 }
0x131e   :  { %3317 = vmatprep.subr.bf16.mxu1 %v8869_v34 }
0x1321   :  { %3318 = vmatpush1.bf16.msra.mxu1 %v8867_v25 }
0x1391   :  { %v3132_v63 = vpop.xlane.xlu1 %3131 }
0x1392   :  { %v3139_v45 = vmul.f32 0.0078125, %v3132_v63  ;;  %v3178_v63 = vrot.slane %v10154_v13, %v9876_v2 }
0x1394   :  { %v10169_v56 = vsub.f32 %v3127_v31, %v3139_v45 }
0x1395   :  { %v3136_v46 = vpop.xlane.xlu1 %3135  ;;  %v3134_v7 = vpop.xlane.xlu0 %3133 }
0x1396   :  { %v3141_v50 = vmul.f32 0.0078125, %v3136_v46  ;;  %v3140_v8 = vmul.f32 0.0078125, %v3134_v7  ;;  %v3147_v15 = vmul.f32 %v10169_v56, %v10169_v56 }
0x1398   :  { %v10173_v9 = vsub.f32 %v3129_v55, %v3141_v50  ;;  %v10175_v12 = vsub.f32 %v3128_v20, %v3140_v8  ;;  %3151 = vadd.xlane.f32.xlu1 %v3147_v15  ;;  %v3186_v50 = vrot.slane %v10154_v13, %v9882_v6 }
0x1399   :  { %v3138_v53 = vpop.xlane.xlu0 %3137 }
0x139a   :  { %v3142_v11 = vmul.f32 0.0078125, %v3138_v53  ;;  %v3149_v60 = vmul.f32 %v10173_v9, %v10173_v9  ;;  %v3148_v21 = vmul.f32 %v10175_v12, %v10175_v12 }
0x139c   :  { %v10181_v14 = vsub.f32 %v3130_v16, %v3142_v11  ;;  %3155 = vadd.xlane.f32.xlu1 %v3149_v60  ;;  %3153 = vadd.xlane.f32.xlu0 %v3148_v21 }
0x139e   :  { %v3150_v17 = vmul.f32 %v10181_v14, %v10181_v14 }
0x13a0   :  { %3157 = vadd.xlane.f32.xlu0 %v3150_v17 }
0x1421   :  { %v3152_v47 = vpop.xlane.xlu1 %3151 }
0x1422   :  { %v3159_v23 = vmul.f32 0.0078125, %v3152_v47 }
0x1424   :  { %v3163_v49 = vadd.f32 1e-05, %v3159_v23 }
0x1425   :  { %v3156_v51 = vpop.xlane.xlu1 %3155  ;;  %v3154_v42 = vpop.xlane.xlu0 %3153 }
0x1426   :  { %9238 = vrsqrt.f32 %v3163_v49  ;;  %v3161_v31 = vmul.f32 0.0078125, %v3156_v51  ;;  %v3160_v48 = vmul.f32 0.0078125, %v3154_v42 }
0x1428   :  { %v3164_v52 = vadd.f32 1e-05, %v3160_v48  ;;  %v3165_v54 = vadd.f32 1e-05, %v3161_v31 }
0x1429   :  { %v3158_v55 = vpop.xlane.xlu0 %3157 }
0x142a   :  { %v3162_v20 = vmul.f32 0.0078125, %v3158_v55  ;;  %9240 = vrsqrt.f32 %v3164_v52 }
0x142b   :  { %9242 = vrsqrt.f32 %v3165_v54 }
0x142c   :  { %v3166_v16 = vadd.f32 1e-05, %v3162_v20 }
0x142e   :  { %9244 = vrsqrt.f32 %v3166_v16 }
0x1433   :  { %v9239_v33 = vpop.eup %9238 }
0x1434   :  { %v3171_v62 = vmul.f32 %v9239_v33, %v10169_v56 }
0x1436   :  { %v3179_v7 = vmul.f32 %v3178_v63, %v3171_v62 }
0x1437   :  { %v9241_v45 = vpop.eup %9240 }
0x1438   :  { %v3172_v46 = vmul.f32 %v9241_v45, %v10175_v12  ;;  %v9243_v8 = vpop.eup %9242  ;;  %v10192_v60 = vadd.f32 %v3186_v50, %v3179_v7 }
0x1439   :  { %v3173_v56 = vmul.f32 %v9243_v8, %v10173_v9  ;;  %v8881_v9 = vld [vmem:[#allocation11 + $0x110] sm:$0xff]  }
0x143a   :  { %v3180_v53 = vmul.f32 %v3178_v63, %v3172_v46  ;;  %7823 = vmatpush3.bf16.msra.mxu0 %v8881_v9  ;;  %v3404_v46 = vrot.slane %v10154_v13, %v9909_v41 }
0x143b   :  { %v9245_v15 = vpop.eup %9244  ;;  %v3181_v12 = vmul.f32 %v3178_v63, %v3173_v56  ;;  %7824 = vmatprep.subr.bf16.mxu0 %v8882_v28 }
0x143c   :  { %v3174_v11 = vmul.f32 %v9245_v15, %v10181_v14  ;;  %v10194_v21 = vadd.f32 %v3186_v50, %v3180_v53 }
0x143d   :  { %v10202_v61 = vadd.f32 %v3186_v50, %v3181_v12 }
0x143e   :  { %v3191_v17 = vpack.c.bf16 %v10194_v21, %v10192_v60  ;;  %v3182_v57 = vmul.f32 %v3178_v63, %v3174_v11  ;;  %7825 = vmatpush3.bf16.msra.mxu0 %v8883_v18 }
0x143f   :  { %7826 = vmatprep.subr.bf16.mxu0 %v8884_v4 }
0x1440   :  { %3336 = vmatmul.mubr.bf16.vlgmr.msra.gmra.mxu1 %v3191_v17  ;;  %v10200_v19 = vadd.f32 %v3186_v50, %v3182_v57 }
0x1441   :  { %3345 = vmatprep.mubr.bf16.mxu1 %v9632_v0 }
0x1442   :  { %v3192_v14 = vpack.c.bf16 %v10200_v19, %v10202_v61  ;;  %7827 = vmatpush3.bf16.msra.mxu0 %v8885_v10 }
0x1448   :  { %3346 = vmatmul.mubr.bf16.gmra.mxu1 %v3192_v14 }
0x1449   :  { %3812 = vmatprep.mubr.bf16.mxu1 %v9632_v0 }
0x1500   :  { %v3337_v32 = vpop.f32.mrf.mxu1 }
0x1501   :  { %v3338_v35 = vadd.f32 %v3337_v32, %v3216_v3 }
0x1502   :  { %v3339_v34 = vpop.f32.mrf.mxu1 }
0x1503   :  { %v3340_v26 = vadd.f32 %v3339_v34, %v3220_v24  ;;  %v3356_v43 = vmax.f32 %v3338_v35, 0.0 }
0x1504   :  { %v3341_v25 = vpop.f32.mrf.mxu1 }
0x1505   :  { %v3342_v27 = vadd.f32 %v3341_v25, %v3216_v3  ;;  %v3357_v40 = vmax.f32 %v3340_v26, 0.0 }
0x1506   :  { %v3343_v36 = vpop.f32.mrf.mxu1 }
0x1507   :  { %v3344_v29 = vadd.f32 %v3343_v36, %v3220_v24  ;;  %v3358_v37 = vmax.f32 %v3342_v27, 0.0 }
0x1508   :  { %v3347_v39 = vpop.f32.mrf.mxu1 }
0x1509   :  { %v3359_v30 = vmax.f32 %v3344_v29, 0.0  ;;  %v3364_v49 = vpack.c.bf16 %v3358_v37, %v3356_v43  ;;  %v3348_v48 = vadd.f32 %v3347_v39, %v3216_v3 }
0x150a   :  { %v3349_v47 = vpop.f32.mrf.mxu1 }
0x150b   :  { %v3365_v23 = vpack.c.bf16 %v3359_v30, %v3357_v40  ;;  %v3350_v42 = vadd.f32 %v3349_v47, %v3220_v24  ;;  %v3360_v33 = vmax.f32 %v3348_v48, 0.0  ;;  %v8891_v47 = vld [vmem:[#allocation7 + $0x2d4] ss:$12 sps:$4 sm:$0xff]   ;;  %v8899_v48 = vld [vmem:[#allocation7 + $0x2d8] ss:$12 sps:$4 sm:$0xff]  }
0x150c   :  { %v3351_v51 = vpop.f32.mrf.mxu1 }
0x150d   :  { %v3352_v31 = vadd.f32 %v3351_v51, %v3216_v3  ;;  %3533 = vmatprep.mubr.bf16.mxu0 %v3365_v23  ;;  %v3361_v20 = vmax.f32 %v3350_v42, 0.0  ;;  %v8889_v23 = vld [vmem:[#allocation7 + $0x2d0] ss:$12 sps:$4 sm:$0xff]   ;;  %v8892_v42 = vld [vmem:[#allocation7 + $0x2b8] ss:$12 sps:$4 sm:$0xff]  }
0x150e   :  { %v3353_v52 = vpop.f32.mrf.mxu1  ;;  %3534 = vmatmul.mubr.bf16.vlgmr.msra.gmra.mxu0 %v3364_v49  ;;  %v8894_v49 = vld [vmem:[#allocation7 + $0x2bc] ss:$12 sps:$4 sm:$0xff]  }
0x150f   :  { %v3354_v54 = vadd.f32 %v3353_v52, %v3220_v24  ;;  %v3362_v55 = vmax.f32 %v3352_v31, 0.0  ;;  %v8888_v24 = vld [vmem:[#allocation7 + $0x2ec] ss:$12 sps:$4 sm:$0xff]   ;;  %v8895_v51 = vld [vmem:[#allocation7 + $0x2f0] ss:$12 sps:$4 sm:$0xff]  }
0x1510   :  { %3780 = vmatprep.subr.bf16.mxu1 %v8888_v24  ;;  %8330 = vmatprep.subr.bf16.mxu0 %v8895_v51  ;;  %v8898_v31 = vld [vmem:[#allocation7 + $0x2a4] ss:$12 sps:$4 sm:$0xff]   ;;  %v8896_v52 = vld [vmem:[#allocation7 + $0x2a0] ss:$12 sps:$4 sm:$0xff]  }
0x1511   :  { %v3363_v16 = vmax.f32 %v3354_v54, 0.0  ;;  %v3366_v63 = vpack.c.bf16 %v3362_v55, %v3360_v33  ;;  %8331 = vmatpush3.bf16.msra.mxu0 %v8895_v51  ;;  %v8902_v54 = vld [vmem:[#allocation7 + $0x28c] ss:$12 sps:$4 sm:$0xff]   ;;  %v8907_v33 = vld [vmem:[#allocation7 + $0x2a8] ss:$12 sps:$4 sm:$0xff]   ;;  %v9426_v51 = vld [vmem:[%s10713_s2 + $0x20] sm:$0xff]  }
0x1512   :  { %8332 = vmatprep.subr.bf16.mxu0 %v8899_v48  ;;  %v8903_v55 = vld [vmem:[#allocation7 + $0x2c0] ss:$12 sps:$4 sm:$0xff]  }
0x1513   :  { %v3367_v62 = vpack.c.bf16 %v3363_v16, %v3361_v20  ;;  %v8900_v20 = vld [vmem:[#allocation7 + $0x288] ss:$12 sps:$4 sm:$0xff]  }
0x1514   :  { %v8906_v16 = vld [vmem:[#allocation7 + $0x274] ss:$12 sps:$4 sm:$0xff]  }
0x1515   :  { %3541 = vmatprep.mubr.bf16.mxu0 %v3367_v62  ;;  %8333 = vmatpush3.bf16.msra.mxu0 %v8899_v48  ;;  %v8904_v62 = vld [vmem:[#allocation7 + $0x270] ss:$12 sps:$4 sm:$0xff]   ;;  %v9429_v48 = vld [vmem:[%s10713_s2 + $0x68] sm:$0xff]  }
0x1516   :  { %3542 = vmatmul.mubr.bf16.gmra.mxu0 %v3366_v63  ;;  %8334 = vmatprep.subr.bf16.mxu0 %v8903_v55  ;;  %v8910_v63 = vld [vmem:[#allocation7 + $0x25c] ss:$12 sps:$4 sm:$0xff]  }
0x1519   :  { %8335 = vmatpush3.bf16.msra.mxu0 %v8903_v55  ;;  %v9432_v55 = vld [vmem:[%s10713_s2 + $0x8] sm:$0xff]  }
0x151a   :  { %8336 = vmatprep.subr.bf16.mxu0 %v8907_v33 }
0x151d   :  { %8337 = vmatpush3.bf16.msra.mxu0 %v8907_v33  ;;  %v9435_v33 = vld [vmem:[%s10713_s2 + $0x50] sm:$0xff]  }
0x15ce   :  { %v7828_v45 = vpop.f32.mrf.mxu0 }
0x15d0   :  { %v7829_v7 = vpop.f32.mrf.mxu0 }
0x15d1   :  { %v7830_v50 = vadd.f32 %v7829_v7, %v7828_v45  ;;  %v8911_v45 = vld [vmem:[#allocation7 + $0x290] ss:$12 sps:$4 sm:$0xff]  }
0x15d2   :  { %v7831_v8 = vpop.f32.mrf.mxu0  ;;  %8338 = vmatprep.subr.bf16.mxu0 %v8911_v45  ;;  %v8914_v7 = vld [vmem:[#allocation7 + $0x244] ss:$12 sps:$4 sm:$0xff]  }
0x15d3   :  { %v3536_v15 = vadd.f32 %v7830_v50, %v3404_v46  ;;  %v8915_v50 = vld [vmem:[#allocation7 + $0x278] ss:$12 sps:$4 sm:$0xff]   ;;  %8339 = vmatpush3.bf16.msra.mxu0 %v8911_v45  ;;  %v10307_v45 = vld [vmem:[%s10719_s8 + $0x30] sm:$0xff] }
0x15d4   :  { %v7832_v53 = vpop.f32.mrf.mxu0  ;;  %8340 = vmatprep.subr.bf16.mxu0 %v8915_v50 }
0x15d5   :  { %v7833_v11 = vadd.f32 %v7832_v53, %v7831_v8  ;;  %v3550_v56 = vadd.f32 %v3536_v15, %v10192_v60  ;;  %v8886_v60 = vld [vmem:[#allocation7 + $0x2e8] ss:$12 sps:$4 sm:$0xff]   ;;  %v8912_v8 = vld [vmem:[#allocation7 + $0x240] ss:$12 sps:$4 sm:$0xff]  }
0x15d6   :  { %v7834_v17 = vpop.f32.mrf.mxu0  ;;  %3781 = vmatpush1.bf16.msra.mxu1 %v8886_v60  ;;  %v8916_v15 = vld [vmem:[#allocation7 + $0x260] ss:$12 sps:$4 sm:$0xff]   ;;  %v9422_v53 = vld [vmem:[%s10713_s2 + $0x38] sm:$0xff]  }
0x15d7   :  { %v3539_v57 = vadd.f32 %v7833_v11, %v3404_v46  ;;  %3554 = vadd.xlane.f32.xlu1 %v3550_v56  ;;  %3782 = vmatprep.subr.bf16.mxu1 %v8891_v47  ;;  %v8917_v11 = vld [vmem:[#allocation7 + $0x248] ss:$12 sps:$4 sm:$0xff]   ;;  %v9424_v47 = vld [vmem:[%s10713_s2 + $0x30] sm:$0xff]  }
0x15d8   :  { %v7835_v12 = vpop.f32.mrf.mxu0  ;;  %8341 = vmatpush3.bf16.msra.mxu0 %v8915_v50 }
0x15d9   :  { %v7836_v14 = vadd.f32 %v7835_v12, %v7834_v17  ;;  %v3551_v22 = vadd.f32 %v3539_v57, %v10194_v21  ;;  %8342 = vmatprep.subr.bf16.mxu0 %v8916_v15 }
0x15da   :  { %v7837_v9 = vpop.f32.mrf.mxu0  ;;  %3783 = vmatpush1.bf16.msra.mxu1 %v8889_v23 }
0x15db   :  { %v3544_v28 = vadd.f32 %v7836_v14, %v3404_v46  ;;  %3556 = vadd.xlane.f32.xlu0 %v3551_v22  ;;  %3784 = vmatprep.subr.bf16.mxu1 %v8894_v49 }
0x15dc   :  { %v7838_v18 = vpop.f32.mrf.mxu0  ;;  %8343 = vmatpush3.bf16.msra.mxu0 %v8916_v15 }
0x15dd   :  { %v7839_v4 = vadd.f32 %v7838_v18, %v7837_v9  ;;  %v3552_v10 = vadd.f32 %v3544_v28, %v10202_v61  ;;  %8344 = vmatprep.subr.bf16.mxu0 %v8917_v11 }
0x15de   :  { %3785 = vmatpush1.bf16.msra.mxu1 %v8892_v42  ;;  %v9427_v42 = vld [vmem:[%s10713_s2 + $0x70] sm:$0xff]  }
0x15df   :  { %v3547_v5 = vadd.f32 %v7839_v4, %v3404_v46  ;;  %3558 = vadd.xlane.f32.xlu1 %v3552_v10  ;;  %3786 = vmatprep.subr.bf16.mxu1 %v8898_v31  ;;  %v8908_v46 = vld [vmem:[#allocation7 + $0x258] ss:$12 sps:$4 sm:$0xff]  }
0x15e0   :  { %8345 = vmatpush3.bf16.msra.mxu0 %v8917_v11  ;;  %v9428_v31 = vld [vmem:[%s10713_s2 + $0x18] sm:$0xff]  }
0x15e1   :  { %v3553_v32 = vadd.f32 %v3547_v5, %v10200_v19 }
0x15e2   :  { %3787 = vmatpush1.bf16.msra.mxu1 %v8896_v52  ;;  %v9430_v52 = vld [vmem:[%s10713_s2 + $0x10] sm:$0xff]  }
0x15e3   :  { %3560 = vadd.xlane.f32.xlu0 %v3553_v32  ;;  %3788 = vmatprep.subr.bf16.mxu1 %v8902_v54  ;;  %v9431_v54 = vld [vmem:[%s10713_s2 + $0x60] sm:$0xff]  }
0x15e6   :  { %3789 = vmatpush1.bf16.msra.mxu1 %v8900_v20  ;;  %v9433_v20 = vld [vmem:[%s10713_s2 + $0x58] sm:$0xff]  }
0x15e7   :  { %3790 = vmatprep.subr.bf16.mxu1 %v8906_v16  ;;  %v9434_v16 = vld [vmem:[%s10713_s2] sm:$0xff]  }
0x15ea   :  { %3791 = vmatpush1.bf16.msra.mxu1 %v8904_v62  ;;  %v9436_v62 = vld [vmem:[%s10713_s2 + $0x48] sm:$0xff]  }
0x15eb   :  { %3792 = vmatprep.subr.bf16.mxu1 %v8910_v63  ;;  %v9437_v63 = vld [vmem:[%s10713_s2 + $0x40] sm:$0xff]  }
0x15ee   :  { %3793 = vmatpush1.bf16.msra.mxu1 %v8908_v46 }
0x15ef   :  { %3794 = vmatprep.subr.bf16.mxu1 %v8914_v7  ;;  %v3893_v7 = vrot.slane %v10307_v45, %v9774_v58 }
0x15f2   :  { %3795 = vmatpush1.bf16.msra.mxu1 %v8912_v8  ;;  %v3885_v8 = vrot.slane %v10307_v45, %v9777_v59 }
0x15f3   :  { %8350 = vmatprep.subr.bf16.mxu1 %v9422_v53 }
0x1660   :  { %v3555_v3 = vpop.xlane.xlu1 %3554 }
0x1661   :  { %v3562_v34 = vmul.f32 0.0078125, %v3555_v3  ;;  %v3601_v3 = vrot.slane %v10154_v13, %v9938_v44 }
0x1663   :  { %v10218_v25 = vsub.f32 %v3550_v56, %v3562_v34  ;;  %v9423_v56 = vld [vmem:[%s10713_s2 + $0x78] sm:$0xff]  }
0x1664   :  { %v3557_v21 = vpop.xlane.xlu0 %3556  ;;  %8374 = vmatprep.subr.bf16.mxu0 %v9423_v56 }
0x1665   :  { %v3563_v26 = vmul.f32 0.0078125, %v3557_v21  ;;  %v3570_v27 = vmul.f32 %v10218_v25, %v10218_v25 }
0x1667   :  { %v10222_v35 = vsub.f32 %v3551_v22, %v3563_v26  ;;  %3574 = vadd.xlane.f32.xlu1 %v3570_v27  ;;  %v7408_v27 = vld [vmem:[%s10719_s8 + $0x28] ss:$0 sm:$0xff] }
0x1668   :  { %v3559_v61 = vpop.xlane.xlu1 %3558 }
0x1669   :  { %v3564_v36 = vmul.f32 0.0078125, %v3559_v61  ;;  %v3571_v19 = vmul.f32 %v10222_v35, %v10222_v35 }
0x166b   :  { %v10226_v29 = vsub.f32 %v3552_v10, %v3564_v36  ;;  %3576 = vadd.xlane.f32.xlu0 %v3571_v19 }
0x166c   :  { %v3561_v37 = vpop.xlane.xlu0 %3560 }
0x166d   :  { %v3565_v39 = vmul.f32 0.0078125, %v3561_v37  ;;  %v3572_v40 = vmul.f32 %v10226_v29, %v10226_v29 }
0x166f   :  { %v10230_v30 = vsub.f32 %v3553_v32, %v3565_v39  ;;  %3578 = vadd.xlane.f32.xlu1 %v3572_v40 }
0x1671   :  { %v3573_v43 = vmul.f32 %v10230_v30, %v10230_v30 }
0x1673   :  { %3580 = vadd.xlane.f32.xlu0 %v3573_v43 }
0x16f0   :  { %v3575_v17 = vpop.xlane.xlu1 %3574 }
0x16f1   :  { %v3582_v57 = vmul.f32 0.0078125, %v3575_v17 }
0x16f3   :  { %v3586_v12 = vadd.f32 1e-05, %v3582_v57 }
0x16f4   :  { %v3577_v14 = vpop.xlane.xlu0 %3576 }
0x16f5   :  { %9246 = vrsqrt.f32 %v3586_v12  ;;  %v3583_v22 = vmul.f32 0.0078125, %v3577_v14 }
0x16f7   :  { %v3587_v9 = vadd.f32 1e-05, %v3583_v22 }
0x16f8   :  { %v3579_v28 = vpop.xlane.xlu1 %3578 }
0x16f9   :  { %9248 = vrsqrt.f32 %v3587_v9  ;;  %v3584_v18 = vmul.f32 0.0078125, %v3579_v28 }
0x16fb   :  { %v3588_v4 = vadd.f32 1e-05, %v3584_v18 }
0x16fc   :  { %v3581_v10 = vpop.xlane.xlu0 %3580 }
0x16fd   :  { %9250 = vrsqrt.f32 %v3588_v4  ;;  %v3585_v5 = vmul.f32 0.0078125, %v3581_v10 }
0x16ff   :  { %v3589_v32 = vadd.f32 1e-05, %v3585_v5 }
0x1701   :  { %9252 = vrsqrt.f32 %v3589_v32 }
0x1702   :  { %v9247_v60 = vpop.eup %9246 }
0x1703   :  { %v3594_v24 = vmul.f32 %v9247_v60, %v10218_v25 }
0x1705   :  { %v3602_v26 = vmul.f32 %v3601_v3, %v3594_v24 }
0x1706   :  { %v9249_v34 = vpop.eup %9248 }
0x1707   :  { %v3595_v21 = vmul.f32 %v9249_v34, %v10222_v35  ;;  %v10247_v19 = vadd.f32 %v7408_v27, %v3602_v26 }
0x1709   :  { %v3603_v61 = vmul.f32 %v3601_v3, %v3595_v21 }
0x170a   :  { %v9251_v36 = vpop.eup %9250 }
0x170b   :  { %v10249_v37 = vadd.f32 %v7408_v27, %v3603_v61  ;;  %v3596_v39 = vmul.f32 %v9251_v36, %v10226_v29 }
0x170d   :  { %v3617_v25 = vpack.c.bf16 %v10249_v37, %v10247_v19  ;;  %v3604_v40 = vmul.f32 %v3601_v3, %v3596_v39 }
0x170e   :  { %v9253_v13 = vpop.eup %9252 }
0x170f   :  { %3813 = vmatmul.mubr.bf16.vlgmr.msra.gmra.mxu1 %v3617_v25  ;;  %8346 = vmatprep.mubr.bf16.mxu0 %v3617_v25  ;;  %v3597_v35 = vmul.f32 %v9253_v13, %v10230_v30  ;;  %v10259_v23 = vadd.f32 %v7408_v27, %v3604_v40  ;;  %v9425_v30 = vld [vmem:[%s10713_s2 + $0x28] sm:$0xff]   ;;  %v8918_v25 = vld [vmem:[#allocation8 + $0xf8] sm:$0xff]   ;;  %v8919_v13 = vld [vmem:[#allocation8 + $0xf0] sm:$0xff]  }
0x1710   :  { %3822 = vmatprep.mubr.bf16.mxu1 %v9632_v0  ;;  %8351 = vmatpush3.bf16.msra.mxu1 %v9422_v53 }
0x1711   :  { %v3605_v43 = vmul.f32 %v3601_v3, %v3597_v35  ;;  %8352 = vmatprep.subr.bf16.mxu1 %v9424_v47  ;;  %v8920_v35 = vld [vmem:[#allocation8 + $0xe8] sm:$0xff]  }
0x1713   :  { %v10261_v29 = vadd.f32 %v7408_v27, %v3605_v43 }
0x1714   :  { %8353 = vmatpush3.bf16.msra.mxu1 %v9424_v47 }
0x1715   :  { %v3618_v49 = vpack.c.bf16 %v10261_v29, %v10259_v23  ;;  %8354 = vmatprep.subr.bf16.mxu1 %v9425_v30 }
0x1717   :  { %3823 = vmatmul.mubr.bf16.gmra.mxu1 %v3618_v49  ;;  %8347 = vmatmul.mubr.bf16.vlgmr.msra.gmra.mxu0 %v3618_v49 }
0x1718   :  { %8355 = vmatpush3.bf16.msra.mxu1 %v9425_v30  ;;  %8375 = vmatpush3.bf16.msra.mxu0 %v9423_v56 }
0x1719   :  { %8356 = vmatprep.subr.bf16.mxu1 %v9426_v51  ;;  %8376 = vmatprep.subr.bf16.mxu0 %v9427_v42 }
0x171c   :  { %8357 = vmatpush3.bf16.msra.mxu1 %v9426_v51  ;;  %8377 = vmatpush3.bf16.msra.mxu0 %v9427_v42 }
0x171d   :  { %8358 = vmatprep.subr.bf16.mxu1 %v9428_v31  ;;  %8378 = vmatprep.subr.bf16.mxu0 %v9429_v48 }
0x1720   :  { %8359 = vmatpush3.bf16.msra.mxu1 %v9428_v31  ;;  %8379 = vmatpush3.bf16.msra.mxu0 %v9429_v48 }
0x1721   :  { %8360 = vmatprep.subr.bf16.mxu1 %v9430_v52  ;;  %8380 = vmatprep.subr.bf16.mxu0 %v9431_v54 }
0x1724   :  { %8361 = vmatpush3.bf16.msra.mxu1 %v9430_v52  ;;  %8381 = vmatpush3.bf16.msra.mxu0 %v9431_v54 }
0x1725   :  { %8362 = vmatprep.subr.bf16.mxu1 %v9432_v55  ;;  %8382 = vmatprep.subr.bf16.mxu0 %v9433_v20 }
0x1728   :  { %8363 = vmatpush3.bf16.msra.mxu1 %v9432_v55  ;;  %8383 = vmatpush3.bf16.msra.mxu0 %v9433_v20 }
0x1729   :  { %8364 = vmatprep.subr.bf16.mxu1 %v9434_v16  ;;  %8384 = vmatprep.subr.bf16.mxu0 %v9435_v33 }
0x172c   :  { %8365 = vmatpush3.bf16.msra.mxu1 %v9434_v16  ;;  %8385 = vmatpush3.bf16.msra.mxu0 %v9435_v33 }
0x172d   :  { %8386 = vmatprep.subr.bf16.mxu0 %v9436_v62  ;;  %8398 = vmatprep.subr.bf16.mxu1 %v8918_v25 }
0x1730   :  { %8387 = vmatpush3.bf16.msra.mxu0 %v9436_v62 }
0x1731   :  { %8388 = vmatprep.subr.bf16.mxu0 %v9437_v63 }
0x1734   :  { %8389 = vmatpush3.bf16.msra.mxu0 %v9437_v63 }
0x17cf   :  { %v3814_v46 = vpop.f32.mrf.mxu1 }
0x17d0   :  { %v3886_v56 = vadd.f32 %v3885_v8, %v3814_v46 }
0x17d1   :  { %v3816_v50 = vpop.f32.mrf.mxu1 }
0x17d2   :  { %v3894_v53 = vadd.f32 %v3893_v7, %v3816_v50 }
0x17d3   :  { %v3818_v15 = vpop.f32.mrf.mxu1 }
0x17d4   :  { %v3887_v17 = vadd.f32 %v3885_v8, %v3818_v15  ;;  %v3906_v14 = vmul.f32 %v3894_v53, %v3886_v56 }
0x17d5   :  { %v3820_v11 = vpop.f32.mrf.mxu1 }
0x17d6   :  { %v3895_v57 = vadd.f32 %v3893_v7, %v3820_v11 }
0x17d7   :  { %v3824_v12 = vpop.f32.mrf.mxu1 }
0x17d8   :  { %v3907_v22 = vmul.f32 %v3895_v57, %v3887_v17  ;;  %v3888_v5 = vadd.f32 %v3885_v8, %v3824_v12 }
0x17d9   :  { %v3826_v9 = vpop.f32.mrf.mxu1 }
0x17da   :  { %v3914_v28 = vpack.c.bf16 %v3907_v22, %v3906_v14  ;;  %v3896_v4 = vadd.f32 %v3893_v7, %v3826_v9  ;;  %v3910_v21 = vmul.f32 %v3894_v53, %v3888_v5 }
0x17db   :  { %v3828_v18 = vpop.f32.mrf.mxu1 }
0x17dc   :  { %v3889_v10 = vadd.f32 %v3885_v8, %v3828_v18  ;;  %8366 = vmatprep.mubr.bf16.mxu1 %v3914_v28  ;;  %v3908_v3 = vmul.f32 %v3896_v4, %v3886_v56  ;;  %v3912_v36 = vmul.f32 %v3896_v4, %v3888_v5 }
0x17dd   :  { %v3830_v32 = vpop.f32.mrf.mxu1 }
0x17de   :  { %v3897_v60 = vadd.f32 %v3893_v7, %v3830_v32  ;;  %v3911_v24 = vmul.f32 %v3895_v57, %v3889_v10 }
0x17e0   :  { %v3909_v34 = vmul.f32 %v3897_v60, %v3887_v17  ;;  %v3916_v27 = vpack.c.bf16 %v3911_v24, %v3910_v21  ;;  %v3913_v61 = vmul.f32 %v3897_v60, %v3889_v10 }
0x17e2   :  { %v3915_v26 = vpack.c.bf16 %v3909_v34, %v3908_v3  ;;  %v3917_v39 = vpack.c.bf16 %v3913_v61, %v3912_v36 }
0x17e4   :  { %8367 = vmatmul.mubr.bf16.vlgmr.msra.gmra.mxu1 %v3915_v26 }
0x17e5   :  { %8370 = vmatprep.mubr.bf16.mxu1 %v3916_v27  ;;  %8399 = vmatpush3.bf16.msra.mxu1 %v8918_v25 }
0x17e6   :  { %8400 = vmatprep.subr.bf16.mxu1 %v8919_v13 }
0x17e9   :  { %8401 = vmatpush3.bf16.msra.mxu1 %v8919_v13 }
0x17ea   :  { %8402 = vmatprep.subr.bf16.mxu1 %v8920_v35 }
0x17ec   :  { %8371 = vmatmul.mubr.bf16.gmra.mxu1 %v3917_v39 }
0x17ed   :  { %8403 = vmatpush3.bf16.msra.mxu1 %v8920_v35 }
0x18a4   :  { %v8368_v40 = vpop.f32.mrf.mxu1 }
0x18a6   :  { %v3952_v43 = vpop.f32.mrf.mxu1 }
0x18a7   :  { %v3983_v47 = vmax.f32 %v3952_v43, %v8368_v40 }
0x18a8   :  { %v8369_v49 = vpop.f32.mrf.mxu1 }
0x18a9   :  { %v3987_v30 = vsub.f32 %v3952_v43, %v3983_v47  ;;  %v3989_v51 = vsub.f32 %v8368_v40, %v3983_v47 }
0x18aa   :  { %v3955_v42 = vpop.f32.mrf.mxu1 }
0x18ab   :  { %v3995_v31 = vmul.f32 1.442695, %v3987_v30  ;;  %v3999_v48 = vmul.f32 1.442695, %v3989_v51  ;;  %v3984_v52 = vmax.f32 %v3955_v42, %v8369_v49 }
0x18ac   :  { %v8372_v54 = vpop.f32.mrf.mxu1 }
0x18ad   :  { %9254 = vpow2.f32 %v3995_v31  ;;  %v3988_v55 = vsub.f32 %v3955_v42, %v3984_v52  ;;  %v3990_v20 = vsub.f32 %v8369_v49, %v3984_v52  ;;  %v8921_v42 = vld [vmem:[#allocation8 + $0xe0] sm:$0xff]   ;;  %v8922_v31 = vld [vmem:[#allocation8 + $0xd8] sm:$0xff]   ;;  %v8924_v52 = vld [vmem:[#allocation8 + $0xc8] sm:$0xff]  }
0x18ae   :  { %9256 = vpow2.f32 %v3999_v48  ;;  %v3968_v16 = vpop.f32.mrf.mxu1  ;;  %8404 = vmatprep.subr.bf16.mxu1 %v8921_v42  ;;  %v8923_v48 = vld [vmem:[#allocation8 + $0xd0] sm:$0xff]  }
0x18af   :  { %v3997_v33 = vmul.f32 1.442695, %v3988_v55  ;;  %v4001_v62 = vmul.f32 1.442695, %v3990_v20  ;;  %v3985_v63 = vmax.f32 %v3968_v16, %v8372_v54  ;;  %8405 = vmatpush3.bf16.msra.mxu1 %v8921_v42  ;;  %v8348_v55 = vpop.f32.mrf.mxu0 }
0x18b0   :  { %v8373_v46 = vpop.f32.mrf.mxu1  ;;  %8406 = vmatprep.subr.bf16.mxu1 %v8922_v31 }
0x18b1   :  { %9258 = vpow2.f32 %v3997_v33  ;;  %v3991_v7 = vsub.f32 %v3968_v16, %v3985_v63  ;;  %v3993_v50 = vsub.f32 %v8372_v54, %v3985_v63  ;;  %v8925_v54 = vld [vmem:[#allocation8 + $0xc0] sm:$0xff]   ;;  %v3867_v20 = vpop.f32.mrf.mxu0  ;;  %v3901_v63 = vrot.slane %v10307_v45, %v9846_v1 }
0x18b2   :  { %9260 = vpow2.f32 %v4001_v62  ;;  %v3971_v8 = vpop.f32.mrf.mxu1 }
0x18b3   :  { %v4003_v15 = vmul.f32 1.442695, %v3991_v7  ;;  %v4007_v53 = vmul.f32 1.442695, %v3993_v50  ;;  %v3986_v11 = vmax.f32 %v3971_v8, %v8373_v46  ;;  %8407 = vmatpush3.bf16.msra.mxu1 %v8922_v31  ;;  %v8349_v16 = vpop.f32.mrf.mxu0  ;;  %v3902_v7 = vadd.f32 %v3901_v63, %v3867_v20 }
0x18b4   :  { %8408 = vmatprep.subr.bf16.mxu1 %v8923_v48 }
0x18b5   :  { %9262 = vpow2.f32 %v4003_v15  ;;  %v3992_v56 = vsub.f32 %v3971_v8, %v3986_v11  ;;  %v3994_v17 = vsub.f32 %v8373_v46, %v3986_v11  ;;  %v3870_v33 = vpop.f32.mrf.mxu0  ;;  %v3904_v8 = vadd.f32 %v8348_v55, %v3901_v63 }
0x18b6   :  { %9264 = vpow2.f32 %v4007_v53  ;;  %v3905_v15 = vadd.f32 %v8349_v16, %v3901_v63  ;;  %v3903_v53 = vadd.f32 %v3901_v63, %v3870_v33 }
0x18b7   :  { %v4005_v57 = vmul.f32 1.442695, %v3992_v56  ;;  %v4009_v12 = vmul.f32 1.442695, %v3994_v17  ;;  %8409 = vmatpush3.bf16.msra.mxu1 %v8923_v48 }
0x18b8   :  { %8410 = vmatprep.subr.bf16.mxu1 %v8924_v52 }
0x18b9   :  { %9266 = vpow2.f32 %v4005_v57 }
0x18ba   :  { %v9255_v14 = vpop.eup %9254  ;;  %9268 = vpow2.f32 %v4009_v12 }
0x18bb   :  { %v9257_v22 = vpop.eup %9256  ;;  %8411 = vmatpush3.bf16.msra.mxu1 %v8924_v52 }
0x18bc   :  { %v4011_v9 = vadd.f32 %v9257_v22, %v9255_v14  ;;  %8412 = vmatprep.subr.bf16.mxu1 %v8925_v54 }
0x18be   :  { %v9259_v28 = vpop.eup %9258  ;;  %9270 = vrcp.f32 %v4011_v9 }
0x18bf   :  { %v9261_v18 = vpop.eup %9260  ;;  %8413 = vmatpush3.bf16.msra.mxu1 %v8925_v54 }
0x18c0   :  { %v4012_v4 = vadd.f32 %v9261_v18, %v9259_v28 }
0x18c2   :  { %v9263_v10 = vpop.eup %9262  ;;  %9272 = vrcp.f32 %v4012_v4 }
0x18c3   :  { %v9265_v5 = vpop.eup %9264 }
0x18c4   :  { %v4013_v32 = vadd.f32 %v9265_v5, %v9263_v10 }
0x18c6   :  { %v9267_v60 = vpop.eup %9266  ;;  %9274 = vrcp.f32 %v4013_v32 }
0x18c7   :  { %v9269_v24 = vpop.eup %9268 }
0x18c8   :  { %v4014_v3 = vadd.f32 %v9269_v24, %v9267_v60 }
0x18ca   :  { %9276 = vrcp.f32 %v4014_v3 }
0x18cb   :  { %v9271_v34 = vpop.eup %9270 }
0x18cc   :  { %v4019_v26 = vmul.f32 %v9271_v34, %v9255_v14  ;;  %v4021_v61 = vmul.f32 %v9271_v34, %v9257_v22 }
0x18cf   :  { %v9273_v21 = vpop.eup %9272 }
0x18d0   :  { %v4020_v27 = vmul.f32 %v9273_v21, %v9259_v28  ;;  %v4022_v36 = vmul.f32 %v9273_v21, %v9261_v18 }
0x18d2   :  { %v4027_v39 = vpack.c.bf16 %v4020_v27, %v4019_v26  ;;  %v4028_v25 = vpack.c.bf16 %v4022_v36, %v4021_v61  ;;  %v4231_v36 = vrot.slane %v10307_v45, %v9851_v38 }
0x18d3   :  { %v9275_v13 = vpop.eup %9274 }
0x18d4   :  { %8390 = vmatprep.mubr.bf16.mxu0 %v4027_v39  ;;  %v4023_v40 = vmul.f32 %v9275_v13, %v9263_v10  ;;  %v4025_v47 = vmul.f32 %v9275_v13, %v9265_v5 }
0x18d5   :  { %8391 = vmatmul.mubr.bf16.vlgmr.msra.gmra.mxu0 %v4028_v25 }
0x18d7   :  { %v9277_v35 = vpop.eup %9276 }
0x18d8   :  { %v4024_v43 = vmul.f32 %v9277_v35, %v9267_v60  ;;  %v4026_v49 = vmul.f32 %v9277_v35, %v9269_v24 }
0x18da   :  { %v4029_v30 = vpack.c.bf16 %v4024_v43, %v4023_v40  ;;  %v4030_v51 = vpack.c.bf16 %v4026_v49, %v4025_v47 }
0x18dc   :  { %8394 = vmatprep.mubr.bf16.mxu0 %v4029_v30 }
0x18dd   :  { %8395 = vmatmul.mubr.bf16.gmra.mxu0 %v4030_v51  ;;  %v8928_v51 = vld [vmem:[#allocation10 + $0x1f4] ss:$8 sps:$4 sm:$0xff]  }
0x18de   :  { %4440 = vmatprep.mubr.bf16.mxu0 %v9632_v0  ;;  %4408 = vmatprep.subr.bf16.mxu0 %v8928_v51 }
0x1995   :  { %v8392_v62 = vpop.f32.mrf.mxu0 }
0x1996   :  { %v4100_v17 = vmul.f32 %v8392_v62, %v3904_v8 }
0x1997   :  { %v4065_v46 = vpop.f32.mrf.mxu0 }
0x1998   :  { %v4096_v11 = vmul.f32 %v4065_v46, %v3902_v7 }
0x1999   :  { %v8393_v50 = vpop.f32.mrf.mxu0 }
0x199a   :  { %v4101_v57 = vmul.f32 %v8393_v50, %v3905_v15  ;;  %v4104_v22 = vadd.f32 %v4100_v17, %v4096_v11  ;;  %v8931_v50 = vld [vmem:[#allocation10 + $0x1e4] ss:$8 sps:$4 sm:$0xff]   ;;  %v8940_v17 = vld [vmem:[#allocation10 + $0x1b4] ss:$8 sps:$4 sm:$0xff]  }
0x199b   :  { %v4068_v56 = vpop.f32.mrf.mxu0  ;;  %v8937_v11 = vld [vmem:[#allocation10 + $0x1c4] ss:$8 sps:$4 sm:$0xff]  }
0x199c   :  { %v4097_v12 = vmul.f32 %v4068_v56, %v3903_v53  ;;  %v8935_v56 = vld [vmem:[#allocation10 + $0x1c0] ss:$8 sps:$4 sm:$0xff]  }
0x199d   :  { %v8396_v14 = vpop.f32.mrf.mxu0 }
0x199e   :  { %v4105_v9 = vadd.f32 %v4101_v57, %v4097_v12  ;;  %v4102_v32 = vmul.f32 %v8396_v14, %v3904_v8  ;;  %v8929_v8 = vld [vmem:[#allocation10 + $0x1e0] ss:$8 sps:$4 sm:$0xff]   ;;  %v8938_v57 = vld [vmem:[#allocation10 + $0x1b0] ss:$8 sps:$4 sm:$0xff]   ;;  %v8943_v12 = vld [vmem:[#allocation10 + $0x1a4] ss:$8 sps:$4 sm:$0xff]  }
0x199f   :  { %v4081_v28 = vpop.f32.mrf.mxu0  ;;  %v8941_v14 = vld [vmem:[#allocation10 + $0x1a0] ss:$8 sps:$4 sm:$0xff]  }
0x19a0   :  { %v4108_v18 = vpack.c.bf16 %v4105_v9, %v4104_v22  ;;  %v4098_v10 = vmul.f32 %v4081_v28, %v3902_v7  ;;  %v8946_v22 = vld [vmem:[#allocation10 + $0x194] ss:$8 sps:$4 sm:$0xff]   ;;  %v8944_v9 = vld [vmem:[#allocation10 + $0x190] ss:$8 sps:$4 sm:$0xff]   ;;  %v8949_v28 = vld [vmem:[#allocation10 + $0x184] ss:$8 sps:$4 sm:$0xff]  }
0x19a1   :  { %v8397_v4 = vpop.f32.mrf.mxu0 }
0x19a2   :  { %8414 = vmatprep.mubr.bf16.mxu1 %v4108_v18  ;;  %v4103_v60 = vmul.f32 %v8397_v4, %v3905_v15  ;;  %v4106_v3 = vadd.f32 %v4102_v32, %v4098_v10  ;;  %v8934_v15 = vld [vmem:[#allocation10 + $0x1d4] ss:$8 sps:$4 sm:$0xff]   ;;  %v8947_v18 = vld [vmem:[#allocation10 + $0x180] ss:$8 sps:$4 sm:$0xff]  }
0x19a3   :  { %v4084_v5 = vpop.f32.mrf.mxu0  ;;  %v8950_v4 = vld [vmem:[#allocation11 + $0x1f8] sm:$0xff]   ;;  %v8953_v32 = vld [vmem:[#allocation11 + $0x1b0] sm:$0xff]  }
0x19a4   :  { %v4099_v24 = vmul.f32 %v4084_v5, %v3903_v53  ;;  %v8932_v53 = vld [vmem:[#allocation10 + $0x1d0] ss:$8 sps:$4 sm:$0xff]   ;;  %7884 = vmatprep.subr.bf16.mxu1 %v8950_v4 }
0x19a5   :  { %v8951_v10 = vld [vmem:[#allocation11 + $0x1b8] sm:$0xff]   ;;  %v8952_v5 = vld [vmem:[#allocation11 + $0x1f0] sm:$0xff]  }
0x19a6   :  { %v4107_v34 = vadd.f32 %v4103_v60, %v4099_v24  ;;  %v8954_v60 = vld [vmem:[#allocation11 + $0x1e8] sm:$0xff]  }
0x19a7   :  { %v8955_v24 = vld [vmem:[#allocation11 + $0x1a8] sm:$0xff]  }
0x19a8   :  { %v4109_v21 = vpack.c.bf16 %v4107_v34, %v4106_v3  ;;  %v8956_v3 = vld [vmem:[#allocation11 + $0x1e0] sm:$0xff]  }
0x19a9   :  { %v8957_v34 = vld [vmem:[#allocation11 + $0x1a0] sm:$0xff]  }
0x19aa   :  { %8415 = vmatmul.mubr.bf16.vlgmr.msra.gmra.mxu1 %v4109_v21  ;;  %v8958_v21 = vld [vmem:[#allocation11 + $0x1d8] sm:$0xff]  }
0x19ab   :  { %7885 = vmatpush3.bf16.msra.mxu1 %v8951_v10 }
0x19ac   :  { %7886 = vmatprep.subr.bf16.mxu1 %v8952_v5 }
0x19af   :  { %7887 = vmatpush3.bf16.msra.mxu1 %v8953_v32 }
0x19b0   :  { %7888 = vmatprep.subr.bf16.mxu1 %v8954_v60 }
0x19b3   :  { %7889 = vmatpush3.bf16.msra.mxu1 %v8955_v24 }
0x19b4   :  { %7890 = vmatprep.subr.bf16.mxu1 %v8956_v3 }
0x19b7   :  { %7891 = vmatpush3.bf16.msra.mxu1 %v8957_v34 }
0x19b8   :  { %7892 = vmatprep.subr.bf16.mxu1 %v8958_v21 }
0x1a6a   :  { %v8416_v26 = vpop.f32.mrf.mxu1 }
0x1a6b   :  { %v4226_v25 = vadd.f32 %v8416_v26, %v10259_v23  ;;  %v8959_v26 = vld [vmem:[#allocation11 + $0x198] sm:$0xff]  }
0x1a6c   :  { %v4209_v27 = vpop.f32.mrf.mxu1  ;;  %7893 = vmatpush3.bf16.msra.mxu1 %v8959_v26 }
0x1a6d   :  { %v4224_v61 = vadd.f32 %v4209_v27, %v10247_v19  ;;  %v4234_v47 = vadd.f32 %v4231_v36, %v4226_v25  ;;  %v8926_v19 = vld [vmem:[#allocation10 + $0x1f0] ss:$8 sps:$4 sm:$0xff]  }
0x1a6e   :  { %v8417_v39 = vpop.f32.mrf.mxu1  ;;  %4409 = vmatpush1.bf16.msra.mxu0 %v8926_v19 }
0x1a6f   :  { %v4232_v13 = vadd.f32 %v4231_v36, %v4224_v61  ;;  %v4227_v43 = vadd.f32 %v8417_v39, %v10261_v29  ;;  %4410 = vmatprep.subr.bf16.mxu0 %v8931_v50 }
0x1a70   :  { %v4212_v35 = vpop.f32.mrf.mxu1 }
0x1a71   :  { %v4225_v40 = vadd.f32 %v4212_v35, %v10249_v37  ;;  %4236 = vadd.xlane.f32.xlu1 %v4232_v13  ;;  %v4235_v30 = vadd.f32 %v4231_v36, %v4227_v43 }
0x1a72   :  { %4411 = vmatpush1.bf16.msra.mxu0 %v8929_v8 }
0x1a73   :  { %v4233_v49 = vadd.f32 %v4231_v36, %v4225_v40  ;;  %4412 = vmatprep.subr.bf16.mxu0 %v8934_v15 }
0x1a75   :  { %4240 = vadd.xlane.f32.xlu1 %v4234_v47  ;;  %4238 = vadd.xlane.f32.xlu0 %v4233_v49 }
0x1a76   :  { %4413 = vmatpush1.bf16.msra.mxu0 %v8932_v53  ;;  %v8960_v53 = vld [vmem:[#allocation11 + $0x1d0] sm:$0xff]  }
0x1a77   :  { %4414 = vmatprep.subr.bf16.mxu0 %v8937_v11  ;;  %7894 = vmatprep.subr.bf16.mxu1 %v8960_v53  ;;  %v8962_v11 = vld [vmem:[#allocation11 + $0x1c8] sm:$0xff]  }
0x1a79   :  { %4242 = vadd.xlane.f32.xlu0 %v4235_v30 }
0x1a7a   :  { %4415 = vmatpush1.bf16.msra.mxu0 %v8935_v56  ;;  %v8963_v56 = vld [vmem:[#allocation11 + $0x188] sm:$0xff]  }
0x1a7b   :  { %4416 = vmatprep.subr.bf16.mxu0 %v8940_v17  ;;  %v8964_v17 = vld [vmem:[#allocation11 + $0x1c0] sm:$0xff]  }
0x1a7e   :  { %4417 = vmatpush1.bf16.msra.mxu0 %v8938_v57  ;;  %v8965_v57 = vld [vmem:[#allocation11 + $0x180] sm:$0xff]  }
0x1a7f   :  { %4418 = vmatprep.subr.bf16.mxu0 %v8943_v12  ;;  %v7443_v12 = vld [vmem:[%s10720_s9 + $0x6] sm:$0x3] }
0x1a82   :  { %4419 = vmatpush1.bf16.msra.mxu0 %v8941_v14 }
0x1a83   :  { %4420 = vmatprep.subr.bf16.mxu0 %v8946_v22  ;;  %v4325_v22 = vrot.slane %v7443_v12, %v9774_v58 }
0x1a86   :  { %4421 = vmatpush1.bf16.msra.mxu0 %v8944_v9  ;;  %v4321_v9 = vrot.slane %v7443_v12, %v9777_v59 }
0x1a87   :  { %4422 = vmatprep.subr.bf16.mxu0 %v8949_v28 }
0x1a8a   :  { %4423 = vmatpush1.bf16.msra.mxu0 %v8947_v18 }
0x1afa   :  { %v4237_v42 = vpop.xlane.xlu1 %4236 }
0x1afb   :  { %v4244_v31 = vmul.f32 0.0078125, %v4237_v42  ;;  %v4283_v42 = vrot.slane %v10307_v45, %v9876_v2 }
0x1afd   :  { %v10322_v23 = vsub.f32 %v4232_v13, %v4244_v31 }
0x1afe   :  { %v4241_v48 = vpop.xlane.xlu1 %4240  ;;  %v4239_v52 = vpop.xlane.xlu0 %4238 }
0x1aff   :  { %v4246_v37 = vmul.f32 0.0078125, %v4241_v48  ;;  %v4245_v54 = vmul.f32 0.0078125, %v4239_v52  ;;  %v4252_v29 = vmul.f32 %v10322_v23, %v10322_v23 }
0x1b01   :  { %v10326_v55 = vsub.f32 %v4234_v47, %v4246_v37  ;;  %v10328_v20 = vsub.f32 %v4233_v49, %v4245_v54  ;;  %4256 = vadd.xlane.f32.xlu1 %v4252_v29  ;;  %v4291_v37 = vrot.slane %v10307_v45, %v9882_v6 }
0x1b02   :  { %v4243_v16 = vpop.xlane.xlu0 %4242 }
0x1b03   :  { %v4247_v33 = vmul.f32 0.0078125, %v4243_v16  ;;  %v4254_v62 = vmul.f32 %v10326_v55, %v10326_v55  ;;  %v4253_v63 = vmul.f32 %v10328_v20, %v10328_v20 }
0x1b05   :  { %v10334_v46 = vsub.f32 %v4235_v30, %v4247_v33  ;;  %4260 = vadd.xlane.f32.xlu1 %v4254_v62  ;;  %4258 = vadd.xlane.f32.xlu0 %v4253_v63 }
0x1b07   :  { %v4255_v7 = vmul.f32 %v10334_v46, %v10334_v46 }
0x1b09   :  { %4262 = vadd.xlane.f32.xlu0 %v4255_v7 }
0x1b8a   :  { %v4257_v27 = vpop.xlane.xlu1 %4256 }
0x1b8b   :  { %v4264_v61 = vmul.f32 0.0078125, %v4257_v27 }
0x1b8d   :  { %v4268_v36 = vadd.f32 1e-05, %v4264_v61 }
0x1b8e   :  { %v4261_v39 = vpop.xlane.xlu1 %4260  ;;  %v4259_v25 = vpop.xlane.xlu0 %4258 }
0x1b8f   :  { %9278 = vrsqrt.f32 %v4268_v36  ;;  %v4266_v13 = vmul.f32 0.0078125, %v4261_v39  ;;  %v4265_v35 = vmul.f32 0.0078125, %v4259_v25 }
0x1b91   :  { %v4269_v40 = vadd.f32 1e-05, %v4265_v35  ;;  %v4270_v43 = vadd.f32 1e-05, %v4266_v13 }
0x1b92   :  { %v4263_v47 = vpop.xlane.xlu0 %4262 }
0x1b93   :  { %v4267_v49 = vmul.f32 0.0078125, %v4263_v47  ;;  %9280 = vrsqrt.f32 %v4269_v40 }
0x1b94   :  { %9282 = vrsqrt.f32 %v4270_v43 }
0x1b95   :  { %v4271_v30 = vadd.f32 1e-05, %v4267_v49 }
0x1b97   :  { %9284 = vrsqrt.f32 %v4271_v30 }
0x1b9c   :  { %v9279_v19 = vpop.eup %9278 }
0x1b9d   :  { %v4276_v51 = vmul.f32 %v9279_v19, %v10322_v23 }
0x1b9f   :  { %v4284_v52 = vmul.f32 %v4283_v42, %v4276_v51 }
0x1ba0   :  { %v9281_v31 = vpop.eup %9280 }
0x1ba1   :  { %v4277_v48 = vmul.f32 %v9281_v31, %v10328_v20  ;;  %v9283_v54 = vpop.eup %9282  ;;  %v10345_v62 = vadd.f32 %v4291_v37, %v4284_v52 }
0x1ba2   :  { %v4278_v23 = vmul.f32 %v9283_v54, %v10326_v55  ;;  %v8961_v55 = vld [vmem:[#allocation11 + $0x190] sm:$0xff]  }
0x1ba3   :  { %v4285_v16 = vmul.f32 %v4283_v42, %v4277_v48  ;;  %7895 = vmatpush3.bf16.msra.mxu1 %v8961_v55  ;;  %v4509_v48 = vrot.slane %v10307_v45, %v9909_v41 }
0x1ba4   :  { %v9285_v29 = vpop.eup %9284  ;;  %v4286_v20 = vmul.f32 %v4283_v42, %v4278_v23  ;;  %7896 = vmatprep.subr.bf16.mxu1 %v8962_v11 }
0x1ba5   :  { %v4279_v33 = vmul.f32 %v9285_v29, %v10334_v46  ;;  %v10347_v63 = vadd.f32 %v4291_v37, %v4285_v16 }
0x1ba6   :  { %v10355_v15 = vadd.f32 %v4291_v37, %v4286_v20 }
0x1ba7   :  { %v4296_v7 = vpack.c.bf16 %v10347_v63, %v10345_v62  ;;  %v4287_v50 = vmul.f32 %v4283_v42, %v4279_v33  ;;  %7897 = vmatpush3.bf16.msra.mxu1 %v8963_v56 }
0x1ba8   :  { %7898 = vmatprep.subr.bf16.mxu1 %v8964_v17 }
0x1ba9   :  { %4441 = vmatmul.mubr.bf16.vlgmr.msra.gmra.mxu0 %v4296_v7  ;;  %v10353_v8 = vadd.f32 %v4291_v37, %v4287_v50 }
0x1baa   :  { %4450 = vmatprep.mubr.bf16.mxu0 %v9632_v0 }
0x1bab   :  { %v4297_v46 = vpack.c.bf16 %v10353_v8, %v10355_v15  ;;  %7899 = vmatpush3.bf16.msra.mxu1 %v8965_v57 }
0x1bb1   :  { %4451 = vmatmul.mubr.bf16.gmra.mxu0 %v4297_v46 }
0x1bb2   :  { %4917 = vmatprep.mubr.bf16.mxu0 %v9632_v0 }
0x1c69   :  { %v4442_v14 = vpop.f32.mrf.mxu0 }
0x1c6a   :  { %v4443_v5 = vadd.f32 %v4442_v14, %v4321_v9 }
0x1c6b   :  { %v4444_v28 = vpop.f32.mrf.mxu0 }
0x1c6c   :  { %v4445_v4 = vadd.f32 %v4444_v28, %v4325_v22  ;;  %v4461_v26 = vmax.f32 %v4443_v5, 0.0 }
0x1c6d   :  { %v4446_v18 = vpop.f32.mrf.mxu0 }
0x1c6e   :  { %v4447_v10 = vadd.f32 %v4446_v18, %v4321_v9  ;;  %v4462_v34 = vmax.f32 %v4445_v4, 0.0 }
0x1c6f   :  { %v4448_v32 = vpop.f32.mrf.mxu0 }
0x1c70   :  { %v4449_v60 = vadd.f32 %v4448_v32, %v4325_v22  ;;  %v4463_v24 = vmax.f32 %v4447_v10, 0.0 }
0x1c71   :  { %v4452_v3 = vpop.f32.mrf.mxu0 }
0x1c72   :  { %v4464_v21 = vmax.f32 %v4449_v60, 0.0  ;;  %v4469_v36 = vpack.c.bf16 %v4463_v24, %v4461_v26  ;;  %v4453_v35 = vadd.f32 %v4452_v3, %v4321_v9 }
0x1c73   :  { %v4454_v27 = vpop.f32.mrf.mxu0 }
0x1c74   :  { %v4470_v61 = vpack.c.bf16 %v4464_v21, %v4462_v34  ;;  %v4455_v25 = vadd.f32 %v4454_v27, %v4325_v22  ;;  %v4465_v19 = vmax.f32 %v4453_v35, 0.0  ;;  %v8971_v27 = vld [vmem:[#allocation7 + $0x394] ss:$12 sps:$4 sm:$0xff]   ;;  %v8979_v35 = vld [vmem:[#allocation7 + $0x398] ss:$12 sps:$4 sm:$0xff]  }
0x1c75   :  { %v4456_v39 = vpop.f32.mrf.mxu0 }
0x1c76   :  { %v4457_v13 = vadd.f32 %v4456_v39, %v4321_v9  ;;  %4638 = vmatprep.mubr.bf16.mxu1 %v4470_v61  ;;  %v4466_v49 = vmax.f32 %v4455_v25, 0.0  ;;  %v8969_v61 = vld [vmem:[#allocation7 + $0x390] ss:$12 sps:$4 sm:$0xff]   ;;  %v8972_v25 = vld [vmem:[#allocation7 + $0x378] ss:$12 sps:$4 sm:$0xff]  }
0x1c77   :  { %v4458_v40 = vpop.f32.mrf.mxu0  ;;  %4639 = vmatmul.mubr.bf16.vlgmr.msra.gmra.mxu1 %v4469_v36  ;;  %v8974_v36 = vld [vmem:[#allocation7 + $0x37c] ss:$12 sps:$4 sm:$0xff]  }
0x1c78   :  { %v4459_v43 = vadd.f32 %v4458_v40, %v4325_v22  ;;  %v4467_v47 = vmax.f32 %v4457_v13, 0.0  ;;  %v8968_v22 = vld [vmem:[#allocation7 + $0x3ac] ss:$12 sps:$4 sm:$0xff]   ;;  %v8975_v39 = vld [vmem:[#allocation7 + $0x3b0] ss:$12 sps:$4 sm:$0xff]  }
0x1c79   :  { %4885 = vmatprep.subr.bf16.mxu0 %v8968_v22  ;;  %8418 = vmatprep.subr.bf16.mxu1 %v8975_v39  ;;  %v8978_v13 = vld [vmem:[#allocation7 + $0x364] ss:$12 sps:$4 sm:$0xff]   ;;  %v8976_v40 = vld [vmem:[#allocation7 + $0x360] ss:$12 sps:$4 sm:$0xff]  }
0x1c7a   :  { %v4468_v30 = vmax.f32 %v4459_v43, 0.0  ;;  %v4471_v42 = vpack.c.bf16 %v4467_v47, %v4465_v19  ;;  %8419 = vmatpush3.bf16.msra.mxu1 %v8975_v39  ;;  %v8982_v43 = vld [vmem:[#allocation7 + $0x34c] ss:$12 sps:$4 sm:$0xff]   ;;  %v8987_v19 = vld [vmem:[#allocation7 + $0x368] ss:$12 sps:$4 sm:$0xff]   ;;  %v9442_v39 = vld [vmem:[%s10713_s2 + $0x20] sm:$0xff]  }
0x1c7b   :  { %8420 = vmatprep.subr.bf16.mxu1 %v8979_v35  ;;  %v8983_v47 = vld [vmem:[#allocation7 + $0x380] ss:$12 sps:$4 sm:$0xff]  }
0x1c7c   :  { %v4472_v51 = vpack.c.bf16 %v4468_v30, %v4466_v49  ;;  %v8980_v49 = vld [vmem:[#allocation7 + $0x348] ss:$12 sps:$4 sm:$0xff]  }
0x1c7d   :  { %v8986_v30 = vld [vmem:[#allocation7 + $0x334] ss:$12 sps:$4 sm:$0xff]  }
0x1c7e   :  { %4646 = vmatprep.mubr.bf16.mxu1 %v4472_v51  ;;  %8421 = vmatpush3.bf16.msra.mxu1 %v8979_v35  ;;  %v8984_v51 = vld [vmem:[#allocation7 + $0x330] ss:$12 sps:$4 sm:$0xff]   ;;  %v9445_v35 = vld [vmem:[%s10713_s2 + $0x68] sm:$0xff]  }
0x1c7f   :  { %4647 = vmatmul.mubr.bf16.gmra.mxu1 %v4471_v42  ;;  %8422 = vmatprep.subr.bf16.mxu1 %v8983_v47  ;;  %v8990_v42 = vld [vmem:[#allocation7 + $0x31c] ss:$12 sps:$4 sm:$0xff]  }
0x1c82   :  { %8423 = vmatpush3.bf16.msra.mxu1 %v8983_v47  ;;  %v9448_v47 = vld [vmem:[%s10713_s2 + $0x8] sm:$0xff]  }
0x1c83   :  { %8424 = vmatprep.subr.bf16.mxu1 %v8987_v19 }
0x1c86   :  { %8425 = vmatpush3.bf16.msra.mxu1 %v8987_v19  ;;  %v9451_v19 = vld [vmem:[%s10713_s2 + $0x50] sm:$0xff]  }
0x1d37   :  { %v7900_v31 = vpop.f32.mrf.mxu1 }
0x1d39   :  { %v7901_v52 = vpop.f32.mrf.mxu1 }
0x1d3a   :  { %v7902_v37 = vadd.f32 %v7901_v52, %v7900_v31  ;;  %v8991_v31 = vld [vmem:[#allocation7 + $0x350] ss:$12 sps:$4 sm:$0xff]  }
0x1d3b   :  { %v7903_v54 = vpop.f32.mrf.mxu1  ;;  %8426 = vmatprep.subr.bf16.mxu1 %v8991_v31  ;;  %v8994_v52 = vld [vmem:[#allocation7 + $0x304] ss:$12 sps:$4 sm:$0xff]  }
0x1d3c   :  { %v4641_v29 = vadd.f32 %v7902_v37, %v4509_v48  ;;  %v8995_v37 = vld [vmem:[#allocation7 + $0x338] ss:$12 sps:$4 sm:$0xff]   ;;  %8427 = vmatpush3.bf16.msra.mxu1 %v8991_v31  ;;  %v10460_v31 = vld [vmem:[%s10719_s8 + $0x40] sm:$0xff] }
0x1d3d   :  { %v7904_v16 = vpop.f32.mrf.mxu1  ;;  %8428 = vmatprep.subr.bf16.mxu1 %v8995_v37 }
0x1d3e   :  { %v7905_v33 = vadd.f32 %v7904_v16, %v7903_v54  ;;  %v4655_v23 = vadd.f32 %v4641_v29, %v10345_v62  ;;  %v8966_v62 = vld [vmem:[#allocation7 + $0x3a8] ss:$12 sps:$4 sm:$0xff]   ;;  %v8992_v54 = vld [vmem:[#allocation7 + $0x300] ss:$12 sps:$4 sm:$0xff]  }
0x1d3f   :  { %v7906_v7 = vpop.f32.mrf.mxu1  ;;  %4886 = vmatpush1.bf16.msra.mxu0 %v8966_v62  ;;  %v8996_v29 = vld [vmem:[#allocation7 + $0x320] ss:$12 sps:$4 sm:$0xff]   ;;  %v9438_v16 = vld [vmem:[%s10713_s2 + $0x38] sm:$0xff]  }
0x1d40   :  { %v4644_v50 = vadd.f32 %v7905_v33, %v4509_v48  ;;  %4659 = vadd.xlane.f32.xlu1 %v4655_v23  ;;  %4887 = vmatprep.subr.bf16.mxu0 %v8971_v27  ;;  %v8997_v33 = vld [vmem:[#allocation7 + $0x308] ss:$12 sps:$4 sm:$0xff]   ;;  %v9440_v27 = vld [vmem:[%s10713_s2 + $0x30] sm:$0xff]  }
0x1d41   :  { %v7907_v20 = vpop.f32.mrf.mxu1  ;;  %8429 = vmatpush3.bf16.msra.mxu1 %v8995_v37 }
0x1d42   :  { %v7908_v46 = vadd.f32 %v7907_v20, %v7906_v7  ;;  %v4656_v53 = vadd.f32 %v4644_v50, %v10347_v63  ;;  %8430 = vmatprep.subr.bf16.mxu1 %v8996_v29 }
0x1d43   :  { %v7909_v55 = vpop.f32.mrf.mxu1  ;;  %4888 = vmatpush1.bf16.msra.mxu0 %v8969_v61 }
0x1d44   :  { %v4649_v11 = vadd.f32 %v7908_v46, %v4509_v48  ;;  %4661 = vadd.xlane.f32.xlu0 %v4656_v53  ;;  %4889 = vmatprep.subr.bf16.mxu0 %v8974_v36 }
0x1d45   :  { %v7910_v56 = vpop.f32.mrf.mxu1  ;;  %8431 = vmatpush3.bf16.msra.mxu1 %v8996_v29 }
0x1d46   :  { %v7911_v17 = vadd.f32 %v7910_v56, %v7909_v55  ;;  %v4657_v57 = vadd.f32 %v4649_v11, %v10355_v15  ;;  %8432 = vmatprep.subr.bf16.mxu1 %v8997_v33 }
0x1d47   :  { %4890 = vmatpush1.bf16.msra.mxu0 %v8972_v25  ;;  %v9443_v25 = vld [vmem:[%s10713_s2 + $0x70] sm:$0xff]  }
0x1d48   :  { %v4652_v12 = vadd.f32 %v7911_v17, %v4509_v48  ;;  %4663 = vadd.xlane.f32.xlu1 %v4657_v57  ;;  %4891 = vmatprep.subr.bf16.mxu0 %v8978_v13  ;;  %v8988_v48 = vld [vmem:[#allocation7 + $0x318] ss:$12 sps:$4 sm:$0xff]  }
0x1d49   :  { %8433 = vmatpush3.bf16.msra.mxu1 %v8997_v33  ;;  %v9444_v13 = vld [vmem:[%s10713_s2 + $0x18] sm:$0xff]  }
0x1d4a   :  { %v4658_v14 = vadd.f32 %v4652_v12, %v10353_v8 }
0x1d4b   :  { %4892 = vmatpush1.bf16.msra.mxu0 %v8976_v40  ;;  %v9446_v40 = vld [vmem:[%s10713_s2 + $0x10] sm:$0xff]  }
0x1d4c   :  { %4665 = vadd.xlane.f32.xlu0 %v4658_v14  ;;  %4893 = vmatprep.subr.bf16.mxu0 %v8982_v43  ;;  %v9447_v43 = vld [vmem:[%s10713_s2 + $0x60] sm:$0xff]  }
0x1d4f   :  { %4894 = vmatpush1.bf16.msra.mxu0 %v8980_v49  ;;  %v9449_v49 = vld [vmem:[%s10713_s2 + $0x58] sm:$0xff]  }
0x1d50   :  { %4895 = vmatprep.subr.bf16.mxu0 %v8986_v30  ;;  %v9450_v30 = vld [vmem:[%s10713_s2] sm:$0xff]  }
0x1d53   :  { %4896 = vmatpush1.bf16.msra.mxu0 %v8984_v51  ;;  %v9452_v51 = vld [vmem:[%s10713_s2 + $0x48] sm:$0xff]  }
0x1d54   :  { %4897 = vmatprep.subr.bf16.mxu0 %v8990_v42  ;;  %v9453_v42 = vld [vmem:[%s10713_s2 + $0x40] sm:$0xff]  }
0x1d57   :  { %4898 = vmatpush1.bf16.msra.mxu0 %v8988_v48 }
0x1d58   :  { %4899 = vmatprep.subr.bf16.mxu0 %v8994_v52  ;;  %v4998_v52 = vrot.slane %v10460_v31, %v9774_v58 }
0x1d5b   :  { %4900 = vmatpush1.bf16.msra.mxu0 %v8992_v54  ;;  %v4990_v54 = vrot.slane %v10460_v31, %v9777_v59 }
0x1d5c   :  { %8438 = vmatprep.subr.bf16.mxu0 %v9438_v16 }
0x1dc9   :  { %v4660_v9 = vpop.xlane.xlu1 %4659 }
0x1dca   :  { %v4667_v28 = vmul.f32 0.0078125, %v4660_v9  ;;  %v4706_v9 = vrot.slane %v10307_v45, %v9938_v44 }
0x1dcc   :  { %v10371_v18 = vsub.f32 %v4655_v23, %v4667_v28  ;;  %v9439_v23 = vld [vmem:[%s10713_s2 + $0x78] sm:$0xff]  }
0x1dcd   :  { %v4662_v63 = vpop.xlane.xlu0 %4661  ;;  %8462 = vmatprep.subr.bf16.mxu1 %v9439_v23 }
0x1dce   :  { %v4668_v4 = vmul.f32 0.0078125, %v4662_v63  ;;  %v4675_v10 = vmul.f32 %v10371_v18, %v10371_v18 }
0x1dd0   :  { %v10375_v5 = vsub.f32 %v4656_v53, %v4668_v4  ;;  %4679 = vadd.xlane.f32.xlu1 %v4675_v10  ;;  %v7476_v10 = vld [vmem:[%s10719_s8 + $0x38] ss:$0 sm:$0xff] }
0x1dd1   :  { %v4664_v15 = vpop.xlane.xlu1 %4663 }
0x1dd2   :  { %v4669_v32 = vmul.f32 0.0078125, %v4664_v15  ;;  %v4676_v8 = vmul.f32 %v10375_v5, %v10375_v5 }
0x1dd4   :  { %v10379_v60 = vsub.f32 %v4657_v57, %v4669_v32  ;;  %4681 = vadd.xlane.f32.xlu0 %v4676_v8 }
0x1dd5   :  { %v4666_v24 = vpop.xlane.xlu0 %4665 }
0x1dd6   :  { %v4670_v3 = vmul.f32 0.0078125, %v4666_v24  ;;  %v4677_v34 = vmul.f32 %v10379_v60, %v10379_v60 }
0x1dd8   :  { %v10383_v21 = vsub.f32 %v4658_v14, %v4670_v3  ;;  %4683 = vadd.xlane.f32.xlu1 %v4677_v34 }
0x1dda   :  { %v4678_v26 = vmul.f32 %v10383_v21, %v10383_v21 }
0x1ddc   :  { %4685 = vadd.xlane.f32.xlu0 %v4678_v26 }
0x1e59   :  { %v4680_v7 = vpop.xlane.xlu1 %4679 }
0x1e5a   :  { %v4687_v50 = vmul.f32 0.0078125, %v4680_v7 }
0x1e5c   :  { %v4691_v20 = vadd.f32 1e-05, %v4687_v50 }
0x1e5d   :  { %v4682_v46 = vpop.xlane.xlu0 %4681 }
0x1e5e   :  { %9286 = vrsqrt.f32 %v4691_v20  ;;  %v4688_v53 = vmul.f32 0.0078125, %v4682_v46 }
0x1e60   :  { %v4692_v55 = vadd.f32 1e-05, %v4688_v53 }
0x1e61   :  { %v4684_v11 = vpop.xlane.xlu1 %4683 }
0x1e62   :  { %9288 = vrsqrt.f32 %v4692_v55  ;;  %v4689_v56 = vmul.f32 0.0078125, %v4684_v11 }
0x1e64   :  { %v4693_v17 = vadd.f32 1e-05, %v4689_v56 }
0x1e65   :  { %v4686_v57 = vpop.xlane.xlu0 %4685 }
0x1e66   :  { %9290 = vrsqrt.f32 %v4693_v17  ;;  %v4690_v12 = vmul.f32 0.0078125, %v4686_v57 }
0x1e68   :  { %v4694_v14 = vadd.f32 1e-05, %v4690_v12 }
0x1e6a   :  { %9292 = vrsqrt.f32 %v4694_v14 }
0x1e6b   :  { %v9287_v62 = vpop.eup %9286 }
0x1e6c   :  { %v4699_v22 = vmul.f32 %v9287_v62, %v10371_v18 }
0x1e6e   :  { %v4707_v4 = vmul.f32 %v4706_v9, %v4699_v22 }
0x1e6f   :  { %v9289_v28 = vpop.eup %9288 }
0x1e70   :  { %v4700_v63 = vmul.f32 %v9289_v28, %v10375_v5  ;;  %v10400_v8 = vadd.f32 %v7476_v10, %v4707_v4 }
0x1e72   :  { %v4708_v15 = vmul.f32 %v4706_v9, %v4700_v63 }
0x1e73   :  { %v9291_v32 = vpop.eup %9290 }
0x1e74   :  { %v10402_v24 = vadd.f32 %v7476_v10, %v4708_v15  ;;  %v4701_v3 = vmul.f32 %v9291_v32, %v10379_v60 }
0x1e76   :  { %v4722_v18 = vpack.c.bf16 %v10402_v24, %v10400_v8  ;;  %v4709_v34 = vmul.f32 %v4706_v9, %v4701_v3 }
0x1e77   :  { %v9293_v45 = vpop.eup %9292 }
0x1e78   :  { %4918 = vmatmul.mubr.bf16.vlgmr.msra.gmra.mxu0 %v4722_v18  ;;  %8434 = vmatprep.mubr.bf16.mxu1 %v4722_v18  ;;  %v4702_v5 = vmul.f32 %v9293_v45, %v10383_v21  ;;  %v10412_v61 = vadd.f32 %v7476_v10, %v4709_v34  ;;  %v9441_v21 = vld [vmem:[%s10713_s2 + $0x28] sm:$0xff]   ;;  %v8998_v18 = vld [vmem:[#allocation8 + $0x138] sm:$0xff]   ;;  %v8999_v45 = vld [vmem:[#allocation8 + $0x130] sm:$0xff]  }
0x1e79   :  { %4927 = vmatprep.mubr.bf16.mxu0 %v9632_v0  ;;  %8439 = vmatpush3.bf16.msra.mxu0 %v9438_v16 }
0x1e7a   :  { %v4710_v26 = vmul.f32 %v4706_v9, %v4702_v5  ;;  %8440 = vmatprep.subr.bf16.mxu0 %v9440_v27  ;;  %v9000_v5 = vld [vmem:[#allocation8 + $0x128] sm:$0xff]  }
0x1e7c   :  { %v10414_v60 = vadd.f32 %v7476_v10, %v4710_v26 }
0x1e7d   :  { %8441 = vmatpush3.bf16.msra.mxu0 %v9440_v27 }
0x1e7e   :  { %v4723_v36 = vpack.c.bf16 %v10414_v60, %v10412_v61  ;;  %8442 = vmatprep.subr.bf16.mxu0 %v9441_v21 }
0x1e80   :  { %4928 = vmatmul.mubr.bf16.gmra.mxu0 %v4723_v36  ;;  %8435 = vmatmul.mubr.bf16.vlgmr.msra.gmra.mxu1 %v4723_v36 }
0x1e81   :  { %8443 = vmatpush3.bf16.msra.mxu0 %v9441_v21  ;;  %8463 = vmatpush3.bf16.msra.mxu1 %v9439_v23 }
0x1e82   :  { %8444 = vmatprep.subr.bf16.mxu0 %v9442_v39  ;;  %8464 = vmatprep.subr.bf16.mxu1 %v9443_v25 }
0x1e85   :  { %8445 = vmatpush3.bf16.msra.mxu0 %v9442_v39  ;;  %8465 = vmatpush3.bf16.msra.mxu1 %v9443_v25 }
0x1e86   :  { %8446 = vmatprep.subr.bf16.mxu0 %v9444_v13  ;;  %8466 = vmatprep.subr.bf16.mxu1 %v9445_v35 }
0x1e89   :  { %8447 = vmatpush3.bf16.msra.mxu0 %v9444_v13  ;;  %8467 = vmatpush3.bf16.msra.mxu1 %v9445_v35 }
0x1e8a   :  { %8448 = vmatprep.subr.bf16.mxu0 %v9446_v40  ;;  %8468 = vmatprep.subr.bf16.mxu1 %v9447_v43 }
0x1e8d   :  { %8449 = vmatpush3.bf16.msra.mxu0 %v9446_v40  ;;  %8469 = vmatpush3.bf16.msra.mxu1 %v9447_v43 }
0x1e8e   :  { %8450 = vmatprep.subr.bf16.mxu0 %v9448_v47  ;;  %8470 = vmatprep.subr.bf16.mxu1 %v9449_v49 }
0x1e91   :  { %8451 = vmatpush3.bf16.msra.mxu0 %v9448_v47  ;;  %8471 = vmatpush3.bf16.msra.mxu1 %v9449_v49 }
0x1e92   :  { %8452 = vmatprep.subr.bf16.mxu0 %v9450_v30  ;;  %8472 = vmatprep.subr.bf16.mxu1 %v9451_v19 }
0x1e95   :  { %8453 = vmatpush3.bf16.msra.mxu0 %v9450_v30  ;;  %8473 = vmatpush3.bf16.msra.mxu1 %v9451_v19 }
0x1e96   :  { %8474 = vmatprep.subr.bf16.mxu1 %v9452_v51  ;;  %8486 = vmatprep.subr.bf16.mxu0 %v8998_v18 }
0x1e99   :  { %8475 = vmatpush3.bf16.msra.mxu1 %v9452_v51 }
0x1e9a   :  { %8476 = vmatprep.subr.bf16.mxu1 %v9453_v42 }
0x1e9d   :  { %8477 = vmatpush3.bf16.msra.mxu1 %v9453_v42 }
0x1f38   :  { %v4919_v48 = vpop.f32.mrf.mxu0 }
0x1f39   :  { %v4991_v23 = vadd.f32 %v4990_v54, %v4919_v48 }
0x1f3a   :  { %v4921_v37 = vpop.f32.mrf.mxu0 }
0x1f3b   :  { %v4999_v16 = vadd.f32 %v4998_v52, %v4921_v37 }
0x1f3c   :  { %v4923_v29 = vpop.f32.mrf.mxu0 }
0x1f3d   :  { %v4992_v7 = vadd.f32 %v4990_v54, %v4923_v29  ;;  %v5011_v46 = vmul.f32 %v4999_v16, %v4991_v23 }
0x1f3e   :  { %v4925_v33 = vpop.f32.mrf.mxu0 }
0x1f3f   :  { %v5000_v50 = vadd.f32 %v4998_v52, %v4925_v33 }
0x1f40   :  { %v4929_v20 = vpop.f32.mrf.mxu0 }
0x1f41   :  { %v5012_v53 = vmul.f32 %v5000_v50, %v4992_v7  ;;  %v4993_v12 = vadd.f32 %v4990_v54, %v4929_v20 }
0x1f42   :  { %v4931_v55 = vpop.f32.mrf.mxu0 }
0x1f43   :  { %v5019_v11 = vpack.c.bf16 %v5012_v53, %v5011_v46  ;;  %v5001_v17 = vadd.f32 %v4998_v52, %v4931_v55  ;;  %v5015_v63 = vmul.f32 %v4999_v16, %v4993_v12 }
0x1f44   :  { %v4933_v56 = vpop.f32.mrf.mxu0 }
0x1f45   :  { %v4994_v57 = vadd.f32 %v4990_v54, %v4933_v56  ;;  %8454 = vmatprep.mubr.bf16.mxu0 %v5019_v11  ;;  %v5013_v9 = vmul.f32 %v5001_v17, %v4991_v23  ;;  %v5017_v32 = vmul.f32 %v5001_v17, %v4993_v12 }
0x1f46   :  { %v4935_v14 = vpop.f32.mrf.mxu0 }
0x1f47   :  { %v5002_v62 = vadd.f32 %v4998_v52, %v4935_v14  ;;  %v5016_v22 = vmul.f32 %v5000_v50, %v4994_v57 }
0x1f49   :  { %v5014_v28 = vmul.f32 %v5002_v62, %v4992_v7  ;;  %v5021_v10 = vpack.c.bf16 %v5016_v22, %v5015_v63  ;;  %v5018_v15 = vmul.f32 %v5002_v62, %v4994_v57 }
0x1f4b   :  { %v5020_v4 = vpack.c.bf16 %v5014_v28, %v5013_v9  ;;  %v5022_v3 = vpack.c.bf16 %v5018_v15, %v5017_v32 }
0x1f4d   :  { %8455 = vmatmul.mubr.bf16.vlgmr.msra.gmra.mxu0 %v5020_v4 }
0x1f4e   :  { %8458 = vmatprep.mubr.bf16.mxu0 %v5021_v10  ;;  %8487 = vmatpush3.bf16.msra.mxu0 %v8998_v18 }
0x1f4f   :  { %8488 = vmatprep.subr.bf16.mxu0 %v8999_v45 }
0x1f52   :  { %8489 = vmatpush3.bf16.msra.mxu0 %v8999_v45 }
0x1f53   :  { %8490 = vmatprep.subr.bf16.mxu0 %v9000_v5 }
0x1f55   :  { %8459 = vmatmul.mubr.bf16.gmra.mxu0 %v5022_v3 }
0x1f56   :  { %8491 = vmatpush3.bf16.msra.mxu0 %v9000_v5 }
0x200d   :  { %v8456_v34 = vpop.f32.mrf.mxu0 }
0x200f   :  { %v5057_v26 = vpop.f32.mrf.mxu0 }
0x2010   :  { %v5088_v27 = vmax.f32 %v5057_v26, %v8456_v34 }
0x2011   :  { %v8457_v36 = vpop.f32.mrf.mxu0 }
0x2012   :  { %v5092_v21 = vsub.f32 %v5057_v26, %v5088_v27  ;;  %v5094_v39 = vsub.f32 %v8456_v34, %v5088_v27 }
0x2013   :  { %v5060_v25 = vpop.f32.mrf.mxu0 }
0x2014   :  { %v5100_v13 = vmul.f32 1.442695, %v5092_v21  ;;  %v5104_v35 = vmul.f32 1.442695, %v5094_v39  ;;  %v5089_v40 = vmax.f32 %v5060_v25, %v8457_v36 }
0x2015   :  { %v8460_v43 = vpop.f32.mrf.mxu0 }
0x2016   :  { %9294 = vpow2.f32 %v5100_v13  ;;  %v5093_v47 = vsub.f32 %v5060_v25, %v5089_v40  ;;  %v5095_v49 = vsub.f32 %v8457_v36, %v5089_v40  ;;  %v9001_v25 = vld [vmem:[#allocation8 + $0x120] sm:$0xff]   ;;  %v9002_v13 = vld [vmem:[#allocation8 + $0x118] sm:$0xff]   ;;  %v9004_v40 = vld [vmem:[#allocation8 + $0x108] sm:$0xff]  }
0x2017   :  { %9296 = vpow2.f32 %v5104_v35  ;;  %v5073_v30 = vpop.f32.mrf.mxu0  ;;  %8492 = vmatprep.subr.bf16.mxu0 %v9001_v25  ;;  %v9003_v35 = vld [vmem:[#allocation8 + $0x110] sm:$0xff]  }
0x2018   :  { %v5102_v19 = vmul.f32 1.442695, %v5093_v47  ;;  %v5106_v51 = vmul.f32 1.442695, %v5095_v49  ;;  %v5090_v42 = vmax.f32 %v5073_v30, %v8460_v43  ;;  %8493 = vmatpush3.bf16.msra.mxu0 %v9001_v25  ;;  %v8436_v47 = vpop.f32.mrf.mxu1 }
0x2019   :  { %v8461_v48 = vpop.f32.mrf.mxu0  ;;  %8494 = vmatprep.subr.bf16.mxu0 %v9002_v13 }
0x201a   :  { %9298 = vpow2.f32 %v5102_v19  ;;  %v5096_v52 = vsub.f32 %v5073_v30, %v5090_v42  ;;  %v5098_v37 = vsub.f32 %v8460_v43, %v5090_v42  ;;  %v9005_v43 = vld [vmem:[#allocation8 + $0x100] sm:$0xff]   ;;  %v4972_v49 = vpop.f32.mrf.mxu1  ;;  %v5006_v42 = vrot.slane %v10460_v31, %v9846_v1 }
0x201b   :  { %9300 = vpow2.f32 %v5106_v51  ;;  %v5076_v54 = vpop.f32.mrf.mxu0 }
0x201c   :  { %v5108_v29 = vmul.f32 1.442695, %v5096_v52  ;;  %v5112_v16 = vmul.f32 1.442695, %v5098_v37  ;;  %v5091_v33 = vmax.f32 %v5076_v54, %v8461_v48  ;;  %8495 = vmatpush3.bf16.msra.mxu0 %v9002_v13  ;;  %v8437_v30 = vpop.f32.mrf.mxu1  ;;  %v5007_v52 = vadd.f32 %v5006_v42, %v4972_v49 }
0x201d   :  { %8496 = vmatprep.subr.bf16.mxu0 %v9003_v35 }
0x201e   :  { %9302 = vpow2.f32 %v5108_v29  ;;  %v5097_v23 = vsub.f32 %v5076_v54, %v5091_v33  ;;  %v5099_v7 = vsub.f32 %v8461_v48, %v5091_v33  ;;  %v4975_v19 = vpop.f32.mrf.mxu1  ;;  %v5009_v54 = vadd.f32 %v8436_v47, %v5006_v42 }
0x201f   :  { %9304 = vpow2.f32 %v5112_v16  ;;  %v5010_v29 = vadd.f32 %v8437_v30, %v5006_v42  ;;  %v5008_v16 = vadd.f32 %v5006_v42, %v4975_v19 }
0x2020   :  { %v5110_v50 = vmul.f32 1.442695, %v5097_v23  ;;  %v5114_v20 = vmul.f32 1.442695, %v5099_v7  ;;  %8497 = vmatpush3.bf16.msra.mxu0 %v9003_v35 }
0x2021   :  { %8498 = vmatprep.subr.bf16.mxu0 %v9004_v40 }
0x2022   :  { %9306 = vpow2.f32 %v5110_v50 }
0x2023   :  { %v9295_v46 = vpop.eup %9294  ;;  %9308 = vpow2.f32 %v5114_v20 }
0x2024   :  { %v9297_v53 = vpop.eup %9296  ;;  %8499 = vmatpush3.bf16.msra.mxu0 %v9004_v40 }
0x2025   :  { %v5116_v55 = vadd.f32 %v9297_v53, %v9295_v46  ;;  %8500 = vmatprep.subr.bf16.mxu0 %v9005_v43 }
0x2027   :  { %v9299_v11 = vpop.eup %9298  ;;  %9310 = vrcp.f32 %v5116_v55 }
0x2028   :  { %v9301_v56 = vpop.eup %9300  ;;  %8501 = vmatpush3.bf16.msra.mxu0 %v9005_v43 }
0x2029   :  { %v5117_v17 = vadd.f32 %v9301_v56, %v9299_v11 }
0x202b   :  { %v9303_v57 = vpop.eup %9302  ;;  %9312 = vrcp.f32 %v5117_v17 }
0x202c   :  { %v9305_v12 = vpop.eup %9304 }
0x202d   :  { %v5118_v14 = vadd.f32 %v9305_v12, %v9303_v57 }
0x202f   :  { %v9307_v62 = vpop.eup %9306  ;;  %9314 = vrcp.f32 %v5118_v14 }
0x2030   :  { %v9309_v22 = vpop.eup %9308 }
0x2031   :  { %v5119_v9 = vadd.f32 %v9309_v22, %v9307_v62 }
0x2033   :  { %9316 = vrcp.f32 %v5119_v9 }
0x2034   :  { %v9311_v28 = vpop.eup %9310 }
0x2035   :  { %v5124_v4 = vmul.f32 %v9311_v28, %v9295_v46  ;;  %v5126_v15 = vmul.f32 %v9311_v28, %v9297_v53 }
0x2038   :  { %v9313_v63 = vpop.eup %9312 }
0x2039   :  { %v5125_v10 = vmul.f32 %v9313_v63, %v9299_v11  ;;  %v5127_v32 = vmul.f32 %v9313_v63, %v9301_v56 }
0x203b   :  { %v5132_v3 = vpack.c.bf16 %v5125_v10, %v5124_v4  ;;  %v5133_v18 = vpack.c.bf16 %v5127_v32, %v5126_v15  ;;  %v5336_v32 = vrot.slane %v10460_v31, %v9851_v38 }
0x203c   :  { %v9315_v45 = vpop.eup %9314 }
0x203d   :  { %8478 = vmatprep.mubr.bf16.mxu1 %v5132_v3  ;;  %v5128_v34 = vmul.f32 %v9315_v45, %v9303_v57  ;;  %v5130_v27 = vmul.f32 %v9315_v45, %v9305_v12 }
0x203e   :  { %8479 = vmatmul.mubr.bf16.vlgmr.msra.gmra.mxu1 %v5133_v18 }
0x2040   :  { %v9317_v5 = vpop.eup %9316 }
0x2041   :  { %v5129_v26 = vmul.f32 %v9317_v5, %v9307_v62  ;;  %v5131_v36 = vmul.f32 %v9317_v5, %v9309_v22 }
0x2043   :  { %v5134_v21 = vpack.c.bf16 %v5129_v26, %v5128_v34  ;;  %v5135_v39 = vpack.c.bf16 %v5131_v36, %v5130_v27 }
0x2045   :  { %8482 = vmatprep.mubr.bf16.mxu1 %v5134_v21 }
0x2046   :  { %8483 = vmatmul.mubr.bf16.gmra.mxu1 %v5135_v39  ;;  %v9008_v39 = vld [vmem:[#allocation10 + $0x274] ss:$8 sps:$4 sm:$0xff]  }
0x2047   :  { %5545 = vmatprep.mubr.bf16.mxu1 %v9632_v0  ;;  %5513 = vmatprep.subr.bf16.mxu1 %v9008_v39 }
0x20fe   :  { %v8480_v51 = vpop.f32.mrf.mxu1 }
0x20ff   :  { %v5205_v7 = vmul.f32 %v8480_v51, %v5009_v54 }
0x2100   :  { %v5170_v48 = vpop.f32.mrf.mxu1 }
0x2101   :  { %v5201_v33 = vmul.f32 %v5170_v48, %v5007_v52 }
0x2102   :  { %v8481_v37 = vpop.f32.mrf.mxu1 }
0x2103   :  { %v5206_v50 = vmul.f32 %v8481_v37, %v5010_v29  ;;  %v5209_v53 = vadd.f32 %v5205_v7, %v5201_v33  ;;  %v9011_v37 = vld [vmem:[#allocation10 + $0x264] ss:$8 sps:$4 sm:$0xff]   ;;  %v9020_v7 = vld [vmem:[#allocation10 + $0x234] ss:$8 sps:$4 sm:$0xff]  }
0x2104   :  { %v5173_v23 = vpop.f32.mrf.mxu1  ;;  %v9017_v33 = vld [vmem:[#allocation10 + $0x244] ss:$8 sps:$4 sm:$0xff]  }
0x2105   :  { %v5202_v20 = vmul.f32 %v5173_v23, %v5008_v16  ;;  %v9015_v23 = vld [vmem:[#allocation10 + $0x240] ss:$8 sps:$4 sm:$0xff]  }
0x2106   :  { %v8484_v46 = vpop.f32.mrf.mxu1 }
0x2107   :  { %v5210_v55 = vadd.f32 %v5206_v50, %v5202_v20  ;;  %v5207_v14 = vmul.f32 %v8484_v46, %v5009_v54  ;;  %v9009_v54 = vld [vmem:[#allocation10 + $0x260] ss:$8 sps:$4 sm:$0xff]   ;;  %v9018_v50 = vld [vmem:[#allocation10 + $0x230] ss:$8 sps:$4 sm:$0xff]   ;;  %v9023_v20 = vld [vmem:[#allocation10 + $0x224] ss:$8 sps:$4 sm:$0xff]  }
0x2108   :  { %v5186_v11 = vpop.f32.mrf.mxu1  ;;  %v9021_v46 = vld [vmem:[#allocation10 + $0x220] ss:$8 sps:$4 sm:$0xff]  }
0x2109   :  { %v5213_v56 = vpack.c.bf16 %v5210_v55, %v5209_v53  ;;  %v5203_v57 = vmul.f32 %v5186_v11, %v5007_v52  ;;  %v9026_v53 = vld [vmem:[#allocation10 + $0x214] ss:$8 sps:$4 sm:$0xff]   ;;  %v9024_v55 = vld [vmem:[#allocation10 + $0x210] ss:$8 sps:$4 sm:$0xff]   ;;  %v9029_v11 = vld [vmem:[#allocation10 + $0x204] ss:$8 sps:$4 sm:$0xff]  }
0x210a   :  { %v8485_v17 = vpop.f32.mrf.mxu1 }
0x210b   :  { %8502 = vmatprep.mubr.bf16.mxu0 %v5213_v56  ;;  %v5208_v62 = vmul.f32 %v8485_v17, %v5010_v29  ;;  %v5211_v9 = vadd.f32 %v5207_v14, %v5203_v57  ;;  %v9014_v29 = vld [vmem:[#allocation10 + $0x254] ss:$8 sps:$4 sm:$0xff]   ;;  %v9027_v56 = vld [vmem:[#allocation10 + $0x200] ss:$8 sps:$4 sm:$0xff]  }
0x210c   :  { %v5189_v12 = vpop.f32.mrf.mxu1  ;;  %v9030_v17 = vld [vmem:[#allocation11 + $0x278] sm:$0xff]   ;;  %v9033_v14 = vld [vmem:[#allocation11 + $0x230] sm:$0xff]  }
0x210d   :  { %v5204_v22 = vmul.f32 %v5189_v12, %v5008_v16  ;;  %v9012_v16 = vld [vmem:[#allocation10 + $0x250] ss:$8 sps:$4 sm:$0xff]   ;;  %7956 = vmatprep.subr.bf16.mxu0 %v9030_v17 }
0x210e   :  { %v9031_v57 = vld [vmem:[#allocation11 + $0x238] sm:$0xff]   ;;  %v9032_v12 = vld [vmem:[#allocation11 + $0x270] sm:$0xff]  }
0x210f   :  { %v5212_v28 = vadd.f32 %v5208_v62, %v5204_v22  ;;  %v9034_v62 = vld [vmem:[#allocation11 + $0x268] sm:$0xff]  }
0x2110   :  { %v9035_v22 = vld [vmem:[#allocation11 + $0x228] sm:$0xff]  }
0x2111   :  { %v5214_v63 = vpack.c.bf16 %v5212_v28, %v5211_v9  ;;  %v9036_v9 = vld [vmem:[#allocation11 + $0x260] sm:$0xff]  }
0x2112   :  { %v9037_v28 = vld [vmem:[#allocation11 + $0x220] sm:$0xff]  }
0x2113   :  { %8503 = vmatmul.mubr.bf16.vlgmr.msra.gmra.mxu0 %v5214_v63  ;;  %v9038_v63 = vld [vmem:[#allocation11 + $0x258] sm:$0xff]  }
0x2114   :  { %7957 = vmatpush3.bf16.msra.mxu0 %v9031_v57 }
0x2115   :  { %7958 = vmatprep.subr.bf16.mxu0 %v9032_v12 }
0x2118   :  { %7959 = vmatpush3.bf16.msra.mxu0 %v9033_v14 }
0x2119   :  { %7960 = vmatprep.subr.bf16.mxu0 %v9034_v62 }
0x211c   :  { %7961 = vmatpush3.bf16.msra.mxu0 %v9035_v22 }
0x211d   :  { %7962 = vmatprep.subr.bf16.mxu0 %v9036_v9 }
0x2120   :  { %7963 = vmatpush3.bf16.msra.mxu0 %v9037_v28 }
0x2121   :  { %7964 = vmatprep.subr.bf16.mxu0 %v9038_v63 }
0x21d3   :  { %v8504_v4 = vpop.f32.mrf.mxu0 }
0x21d4   :  { %v5331_v18 = vadd.f32 %v8504_v4, %v10412_v61  ;;  %v9039_v4 = vld [vmem:[#allocation11 + $0x218] sm:$0xff]  }
0x21d5   :  { %v5314_v10 = vpop.f32.mrf.mxu0  ;;  %7965 = vmatpush3.bf16.msra.mxu0 %v9039_v4 }
0x21d6   :  { %v5329_v15 = vadd.f32 %v5314_v10, %v10400_v8  ;;  %v5339_v27 = vadd.f32 %v5336_v32, %v5331_v18  ;;  %v9006_v8 = vld [vmem:[#allocation10 + $0x270] ss:$8 sps:$4 sm:$0xff]  }
0x21d7   :  { %v8505_v3 = vpop.f32.mrf.mxu0  ;;  %5514 = vmatpush1.bf16.msra.mxu1 %v9006_v8 }
0x21d8   :  { %v5337_v45 = vadd.f32 %v5336_v32, %v5329_v15  ;;  %v5332_v26 = vadd.f32 %v8505_v3, %v10414_v60  ;;  %5515 = vmatprep.subr.bf16.mxu1 %v9011_v37 }
0x21d9   :  { %v5317_v5 = vpop.f32.mrf.mxu0 }
0x21da   :  { %v5330_v34 = vadd.f32 %v5317_v5, %v10402_v24  ;;  %5341 = vadd.xlane.f32.xlu1 %v5337_v45  ;;  %v5340_v21 = vadd.f32 %v5336_v32, %v5332_v26 }
0x21db   :  { %5516 = vmatpush1.bf16.msra.mxu1 %v9009_v54 }
0x21dc   :  { %v5338_v36 = vadd.f32 %v5336_v32, %v5330_v34  ;;  %5517 = vmatprep.subr.bf16.mxu1 %v9014_v29 }
0x21de   :  { %5345 = vadd.xlane.f32.xlu1 %v5339_v27  ;;  %5343 = vadd.xlane.f32.xlu0 %v5338_v36 }
0x21df   :  { %5518 = vmatpush1.bf16.msra.mxu1 %v9012_v16  ;;  %v9040_v16 = vld [vmem:[#allocation11 + $0x250] sm:$0xff]  }
0x21e0   :  { %5519 = vmatprep.subr.bf16.mxu1 %v9017_v33  ;;  %7966 = vmatprep.subr.bf16.mxu0 %v9040_v16  ;;  %v9042_v33 = vld [vmem:[#allocation11 + $0x248] sm:$0xff]  }
0x21e2   :  { %5347 = vadd.xlane.f32.xlu0 %v5340_v21 }
0x21e3   :  { %5520 = vmatpush1.bf16.msra.mxu1 %v9015_v23  ;;  %v9043_v23 = vld [vmem:[#allocation11 + $0x208] sm:$0xff]  }
0x21e4   :  { %5521 = vmatprep.subr.bf16.mxu1 %v9020_v7  ;;  %v9044_v7 = vld [vmem:[#allocation11 + $0x240] sm:$0xff]  }
0x21e7   :  { %5522 = vmatpush1.bf16.msra.mxu1 %v9018_v50  ;;  %v9045_v50 = vld [vmem:[#allocation11 + $0x200] sm:$0xff]  }
0x21e8   :  { %5523 = vmatprep.subr.bf16.mxu1 %v9023_v20  ;;  %v7511_v20 = vld [vmem:[%s10720_s9 + $0x8] sm:$0x3] }
0x21eb   :  { %5524 = vmatpush1.bf16.msra.mxu1 %v9021_v46 }
0x21ec   :  { %5525 = vmatprep.subr.bf16.mxu1 %v9026_v53  ;;  %v5430_v53 = vrot.slane %v7511_v20, %v9774_v58 }
0x21ef   :  { %5526 = vmatpush1.bf16.msra.mxu1 %v9024_v55  ;;  %v5426_v55 = vrot.slane %v7511_v20, %v9777_v59 }
0x21f0   :  { %5527 = vmatprep.subr.bf16.mxu1 %v9029_v11 }
0x21f3   :  { %5528 = vmatpush1.bf16.msra.mxu1 %v9027_v56 }
0x2263   :  { %v5342_v25 = vpop.xlane.xlu1 %5341 }
0x2264   :  { %v5349_v13 = vmul.f32 0.0078125, %v5342_v25  ;;  %v5388_v25 = vrot.slane %v10460_v31, %v9876_v2 }
0x2266   :  { %v10475_v61 = vsub.f32 %v5337_v45, %v5349_v13 }
0x2267   :  { %v5346_v35 = vpop.xlane.xlu1 %5345  ;;  %v5344_v40 = vpop.xlane.xlu0 %5343 }
0x2268   :  { %v5351_v24 = vmul.f32 0.0078125, %v5346_v35  ;;  %v5350_v43 = vmul.f32 0.0078125, %v5344_v40  ;;  %v5357_v60 = vmul.f32 %v10475_v61, %v10475_v61 }
0x226a   :  { %v10479_v47 = vsub.f32 %v5339_v27, %v5351_v24  ;;  %v10481_v49 = vsub.f32 %v5338_v36, %v5350_v43  ;;  %5361 = vadd.xlane.f32.xlu1 %v5357_v60  ;;  %v5396_v24 = vrot.slane %v10460_v31, %v9882_v6 }
0x226b   :  { %v5348_v30 = vpop.xlane.xlu0 %5347 }
0x226c   :  { %v5352_v19 = vmul.f32 0.0078125, %v5348_v30  ;;  %v5359_v51 = vmul.f32 %v10479_v47, %v10479_v47  ;;  %v5358_v42 = vmul.f32 %v10481_v49, %v10481_v49 }
0x226e   :  { %v10487_v48 = vsub.f32 %v5340_v21, %v5352_v19  ;;  %5365 = vadd.xlane.f32.xlu1 %v5359_v51  ;;  %5363 = vadd.xlane.f32.xlu0 %v5358_v42 }
0x2270   :  { %v5360_v52 = vmul.f32 %v10487_v48, %v10487_v48 }
0x2272   :  { %5367 = vadd.xlane.f32.xlu0 %v5360_v52 }
0x22f3   :  { %v5362_v10 = vpop.xlane.xlu1 %5361 }
0x22f4   :  { %v5369_v15 = vmul.f32 0.0078125, %v5362_v10 }
0x22f6   :  { %v5373_v32 = vadd.f32 1e-05, %v5369_v15 }
0x22f7   :  { %v5366_v3 = vpop.xlane.xlu1 %5365  ;;  %v5364_v18 = vpop.xlane.xlu0 %5363 }
0x22f8   :  { %9318 = vrsqrt.f32 %v5373_v32  ;;  %v5371_v45 = vmul.f32 0.0078125, %v5366_v3  ;;  %v5370_v5 = vmul.f32 0.0078125, %v5364_v18 }
0x22fa   :  { %v5374_v34 = vadd.f32 1e-05, %v5370_v5  ;;  %v5375_v26 = vadd.f32 1e-05, %v5371_v45 }
0x22fb   :  { %v5368_v27 = vpop.xlane.xlu0 %5367 }
0x22fc   :  { %v5372_v36 = vmul.f32 0.0078125, %v5368_v27  ;;  %9320 = vrsqrt.f32 %v5374_v34 }
0x22fd   :  { %9322 = vrsqrt.f32 %v5375_v26 }
0x22fe   :  { %v5376_v21 = vadd.f32 1e-05, %v5372_v36 }
0x2300   :  { %9324 = vrsqrt.f32 %v5376_v21 }
0x2305   :  { %v9319_v8 = vpop.eup %9318 }
0x2306   :  { %v5381_v39 = vmul.f32 %v9319_v8, %v10475_v61 }
0x2308   :  { %v5389_v40 = vmul.f32 %v5388_v25, %v5381_v39 }
0x2309   :  { %v9321_v13 = vpop.eup %9320 }
0x230a   :  { %v5382_v35 = vmul.f32 %v9321_v13, %v10481_v49  ;;  %v9323_v43 = vpop.eup %9322  ;;  %v10498_v51 = vadd.f32 %v5396_v24, %v5389_v40 }
0x230b   :  { %v5383_v61 = vmul.f32 %v9323_v43, %v10479_v47  ;;  %v9041_v47 = vld [vmem:[#allocation11 + $0x210] sm:$0xff]  }
0x230c   :  { %v5390_v30 = vmul.f32 %v5388_v25, %v5382_v35  ;;  %7967 = vmatpush3.bf16.msra.mxu0 %v9041_v47  ;;  %v5614_v35 = vrot.slane %v10460_v31, %v9909_v41 }
0x230d   :  { %v9325_v60 = vpop.eup %9324  ;;  %v5391_v49 = vmul.f32 %v5388_v25, %v5383_v61  ;;  %7968 = vmatprep.subr.bf16.mxu0 %v9042_v33 }
0x230e   :  { %v5384_v19 = vmul.f32 %v9325_v60, %v10487_v48  ;;  %v10500_v42 = vadd.f32 %v5396_v24, %v5390_v30 }
0x230f   :  { %v10508_v29 = vadd.f32 %v5396_v24, %v5391_v49 }
0x2310   :  { %v5401_v52 = vpack.c.bf16 %v10500_v42, %v10498_v51  ;;  %v5392_v37 = vmul.f32 %v5388_v25, %v5384_v19  ;;  %7969 = vmatpush3.bf16.msra.mxu0 %v9043_v23 }
0x2311   :  { %7970 = vmatprep.subr.bf16.mxu0 %v9044_v7 }
0x2312   :  { %5546 = vmatmul.mubr.bf16.vlgmr.msra.gmra.mxu1 %v5401_v52  ;;  %v10506_v54 = vadd.f32 %v5396_v24, %v5392_v37 }
0x2313   :  { %5555 = vmatprep.mubr.bf16.mxu1 %v9632_v0 }
0x2314   :  { %v5402_v48 = vpack.c.bf16 %v10506_v54, %v10508_v29  ;;  %7971 = vmatpush3.bf16.msra.mxu0 %v9045_v50 }
0x231a   :  { %5556 = vmatmul.mubr.bf16.gmra.mxu1 %v5402_v48 }
0x231b   :  { %6022 = vmatprep.mubr.bf16.mxu1 %v9632_v0 }
0x23d2   :  { %v5547_v46 = vpop.f32.mrf.mxu1 }
0x23d3   :  { %v5548_v12 = vadd.f32 %v5547_v46, %v5426_v55 }
0x23d4   :  { %v5549_v11 = vpop.f32.mrf.mxu1 }
0x23d5   :  { %v5550_v17 = vadd.f32 %v5549_v11, %v5430_v53  ;;  %v5566_v4 = vmax.f32 %v5548_v12, 0.0 }
0x23d6   :  { %v5551_v56 = vpop.f32.mrf.mxu1 }
0x23d7   :  { %v5552_v57 = vadd.f32 %v5551_v56, %v5426_v55  ;;  %v5567_v28 = vmax.f32 %v5550_v17, 0.0 }
0x23d8   :  { %v5553_v14 = vpop.f32.mrf.mxu1 }
0x23d9   :  { %v5554_v62 = vadd.f32 %v5553_v14, %v5430_v53  ;;  %v5568_v22 = vmax.f32 %v5552_v57, 0.0 }
0x23da   :  { %v5557_v9 = vpop.f32.mrf.mxu1 }
0x23db   :  { %v5569_v63 = vmax.f32 %v5554_v62, 0.0  ;;  %v5574_v32 = vpack.c.bf16 %v5568_v22, %v5566_v4  ;;  %v5558_v5 = vadd.f32 %v5557_v9, %v5426_v55 }
0x23dc   :  { %v5559_v10 = vpop.f32.mrf.mxu1 }
0x23dd   :  { %v5575_v15 = vpack.c.bf16 %v5569_v63, %v5567_v28  ;;  %v5560_v18 = vadd.f32 %v5559_v10, %v5430_v53  ;;  %v5570_v8 = vmax.f32 %v5558_v5, 0.0  ;;  %v9051_v10 = vld [vmem:[#allocation7 + $0x454] ss:$12 sps:$4 sm:$0xff]   ;;  %v9059_v5 = vld [vmem:[#allocation7 + $0x458] ss:$12 sps:$4 sm:$0xff]  }
0x23de   :  { %v5561_v3 = vpop.f32.mrf.mxu1 }
0x23df   :  { %v5562_v45 = vadd.f32 %v5561_v3, %v5426_v55  ;;  %5743 = vmatprep.mubr.bf16.mxu0 %v5575_v15  ;;  %v5571_v36 = vmax.f32 %v5560_v18, 0.0  ;;  %v9049_v15 = vld [vmem:[#allocation7 + $0x450] ss:$12 sps:$4 sm:$0xff]   ;;  %v9052_v18 = vld [vmem:[#allocation7 + $0x438] ss:$12 sps:$4 sm:$0xff]  }
0x23e0   :  { %v5563_v34 = vpop.f32.mrf.mxu1  ;;  %5744 = vmatmul.mubr.bf16.vlgmr.msra.gmra.mxu0 %v5574_v32  ;;  %v9054_v32 = vld [vmem:[#allocation7 + $0x43c] ss:$12 sps:$4 sm:$0xff]  }
0x23e1   :  { %v5564_v26 = vadd.f32 %v5563_v34, %v5430_v53  ;;  %v5572_v27 = vmax.f32 %v5562_v45, 0.0  ;;  %v9048_v53 = vld [vmem:[#allocation7 + $0x46c] ss:$12 sps:$4 sm:$0xff]   ;;  %v9055_v3 = vld [vmem:[#allocation7 + $0x470] ss:$12 sps:$4 sm:$0xff]  }
0x23e2   :  { %5990 = vmatprep.subr.bf16.mxu1 %v9048_v53  ;;  %8506 = vmatprep.subr.bf16.mxu0 %v9055_v3  ;;  %v9058_v45 = vld [vmem:[#allocation7 + $0x424] ss:$12 sps:$4 sm:$0xff]   ;;  %v9056_v34 = vld [vmem:[#allocation7 + $0x420] ss:$12 sps:$4 sm:$0xff]   ;;  %v5811_v53 = vrot.slane %v10460_v31, %v9938_v44 }
0x23e3   :  { %v5573_v21 = vmax.f32 %v5564_v26, 0.0  ;;  %v5576_v25 = vpack.c.bf16 %v5572_v27, %v5570_v8  ;;  %8507 = vmatpush3.bf16.msra.mxu0 %v9055_v3  ;;  %v9062_v26 = vld [vmem:[#allocation7 + $0x40c] ss:$12 sps:$4 sm:$0xff]   ;;  %v9067_v8 = vld [vmem:[#allocation7 + $0x428] ss:$12 sps:$4 sm:$0xff]   ;;  %v9458_v3 = vld [vmem:[%s10713_s2 + $0x20] sm:$0xff]  }
0x23e4   :  { %8508 = vmatprep.subr.bf16.mxu0 %v9059_v5  ;;  %v9063_v27 = vld [vmem:[#allocation7 + $0x440] ss:$12 sps:$4 sm:$0xff]  }
0x23e5   :  { %v5577_v39 = vpack.c.bf16 %v5573_v21, %v5571_v36  ;;  %v9060_v36 = vld [vmem:[#allocation7 + $0x408] ss:$12 sps:$4 sm:$0xff]  }
0x23e6   :  { %v9066_v21 = vld [vmem:[#allocation7 + $0x3f4] ss:$12 sps:$4 sm:$0xff]  }
0x23e7   :  { %5751 = vmatprep.mubr.bf16.mxu0 %v5577_v39  ;;  %8509 = vmatpush3.bf16.msra.mxu0 %v9059_v5  ;;  %v9064_v39 = vld [vmem:[#allocation7 + $0x3f0] ss:$12 sps:$4 sm:$0xff]   ;;  %v9461_v5 = vld [vmem:[%s10713_s2 + $0x68] sm:$0xff]  }
0x23e8   :  { %5752 = vmatmul.mubr.bf16.gmra.mxu0 %v5576_v25  ;;  %8510 = vmatprep.subr.bf16.mxu0 %v9063_v27  ;;  %v9070_v25 = vld [vmem:[#allocation7 + $0x3dc] ss:$12 sps:$4 sm:$0xff]  }
0x23eb   :  { %8511 = vmatpush3.bf16.msra.mxu0 %v9063_v27  ;;  %v9464_v27 = vld [vmem:[%s10713_s2 + $0x8] sm:$0xff]  }
0x23ec   :  { %8512 = vmatprep.subr.bf16.mxu0 %v9067_v8 }
0x23ef   :  { %8513 = vmatpush3.bf16.msra.mxu0 %v9067_v8  ;;  %v9467_v8 = vld [vmem:[%s10713_s2 + $0x50] sm:$0xff]  }
0x24a0   :  { %v7972_v13 = vpop.f32.mrf.mxu0 }
0x24a2   :  { %v7973_v40 = vpop.f32.mrf.mxu0 }
0x24a3   :  { %v7974_v24 = vadd.f32 %v7973_v40, %v7972_v13  ;;  %v9071_v13 = vld [vmem:[#allocation7 + $0x410] ss:$12 sps:$4 sm:$0xff]   ;;  %v9072_v40 = vld [vmem:[#allocation7 + $0x3c0] ss:$12 sps:$4 sm:$0xff]  }
0x24a4   :  { %v7975_v43 = vpop.f32.mrf.mxu0  ;;  %8514 = vmatprep.subr.bf16.mxu0 %v9071_v13 }
0x24a5   :  { %v5746_v60 = vadd.f32 %v7974_v24, %v5614_v35  ;;  %8515 = vmatpush3.bf16.msra.mxu0 %v9071_v13  ;;  %v9074_v24 = vld [vmem:[#allocation7 + $0x3c4] ss:$12 sps:$4 sm:$0xff]  }
0x24a6   :  { %v7976_v30 = vpop.f32.mrf.mxu0  ;;  %v10613_v13 = vld [vmem:[%s10719_s8 + $0x50] sm:$0xff] }
0x24a7   :  { %v7977_v19 = vadd.f32 %v7976_v30, %v7975_v43  ;;  %v5760_v61 = vadd.f32 %v5746_v60, %v10498_v51  ;;  %v9046_v51 = vld [vmem:[#allocation7 + $0x468] ss:$12 sps:$4 sm:$0xff]   ;;  %v9075_v43 = vld [vmem:[#allocation7 + $0x3f8] ss:$12 sps:$4 sm:$0xff]   ;;  %v9076_v60 = vld [vmem:[#allocation7 + $0x3e0] ss:$12 sps:$4 sm:$0xff]  }
0x24a8   :  { %v7978_v52 = vpop.f32.mrf.mxu0  ;;  %5991 = vmatpush1.bf16.msra.mxu1 %v9046_v51  ;;  %8516 = vmatprep.subr.bf16.mxu0 %v9075_v43  ;;  %v9454_v30 = vld [vmem:[%s10713_s2 + $0x38] sm:$0xff]  }
0x24a9   :  { %v5749_v37 = vadd.f32 %v7977_v19, %v5614_v35  ;;  %5764 = vadd.xlane.f32.xlu1 %v5760_v61  ;;  %5992 = vmatprep.subr.bf16.mxu1 %v9051_v10  ;;  %v9077_v19 = vld [vmem:[#allocation7 + $0x3c8] ss:$12 sps:$4 sm:$0xff]   ;;  %v9456_v10 = vld [vmem:[%s10713_s2 + $0x30] sm:$0xff]  }
0x24aa   :  { %v7979_v49 = vpop.f32.mrf.mxu0  ;;  %8517 = vmatpush3.bf16.msra.mxu0 %v9075_v43  ;;  %v6095_v43 = vrot.slane %v10613_v13, %v9777_v59 }
0x24ab   :  { %v7980_v48 = vadd.f32 %v7979_v49, %v7978_v52  ;;  %v5761_v16 = vadd.f32 %v5749_v37, %v10500_v42  ;;  %8518 = vmatprep.subr.bf16.mxu0 %v9076_v60 }
0x24ac   :  { %v7981_v47 = vpop.f32.mrf.mxu0  ;;  %5993 = vmatpush1.bf16.msra.mxu1 %v9049_v15 }
0x24ad   :  { %v5754_v33 = vadd.f32 %v7980_v48, %v5614_v35  ;;  %5766 = vadd.xlane.f32.xlu0 %v5761_v16  ;;  %5994 = vmatprep.subr.bf16.mxu1 %v9054_v32 }
0x24ae   :  { %v7982_v23 = vpop.f32.mrf.mxu0  ;;  %8519 = vmatpush3.bf16.msra.mxu0 %v9076_v60 }
0x24af   :  { %v7983_v7 = vadd.f32 %v7982_v23, %v7981_v47  ;;  %v5762_v50 = vadd.f32 %v5754_v33, %v10508_v29  ;;  %8520 = vmatprep.subr.bf16.mxu0 %v9077_v19 }
0x24b0   :  { %5995 = vmatpush1.bf16.msra.mxu1 %v9052_v18  ;;  %v9459_v18 = vld [vmem:[%s10713_s2 + $0x70] sm:$0xff]  }
0x24b1   :  { %v5757_v20 = vadd.f32 %v7983_v7, %v5614_v35  ;;  %5768 = vadd.xlane.f32.xlu1 %v5762_v50  ;;  %5996 = vmatprep.subr.bf16.mxu1 %v9058_v45  ;;  %v9068_v35 = vld [vmem:[#allocation7 + $0x3d8] ss:$12 sps:$4 sm:$0xff]  }
0x24b2   :  { %8521 = vmatpush3.bf16.msra.mxu0 %v9077_v19  ;;  %v9460_v45 = vld [vmem:[%s10713_s2 + $0x18] sm:$0xff]  }
0x24b3   :  { %v5763_v46 = vadd.f32 %v5757_v20, %v10506_v54 }
0x24b4   :  { %5997 = vmatpush1.bf16.msra.mxu1 %v9056_v34  ;;  %v9462_v34 = vld [vmem:[%s10713_s2 + $0x10] sm:$0xff]  }
0x24b5   :  { %5770 = vadd.xlane.f32.xlu0 %v5763_v46  ;;  %5998 = vmatprep.subr.bf16.mxu1 %v9062_v26  ;;  %v9463_v26 = vld [vmem:[%s10713_s2 + $0x60] sm:$0xff]  }
0x24b8   :  { %5999 = vmatpush1.bf16.msra.mxu1 %v9060_v36  ;;  %v9465_v36 = vld [vmem:[%s10713_s2 + $0x58] sm:$0xff]  }
0x24b9   :  { %6000 = vmatprep.subr.bf16.mxu1 %v9066_v21  ;;  %v9466_v21 = vld [vmem:[%s10713_s2] sm:$0xff]  }
0x24bc   :  { %6001 = vmatpush1.bf16.msra.mxu1 %v9064_v39  ;;  %v9468_v39 = vld [vmem:[%s10713_s2 + $0x48] sm:$0xff]  }
0x24bd   :  { %6002 = vmatprep.subr.bf16.mxu1 %v9070_v25  ;;  %v9469_v25 = vld [vmem:[%s10713_s2 + $0x40] sm:$0xff]  }
0x24c0   :  { %6003 = vmatpush1.bf16.msra.mxu1 %v9068_v35 }
0x24c1   :  { %6004 = vmatprep.subr.bf16.mxu1 %v9074_v24 }
0x24c4   :  { %6005 = vmatpush1.bf16.msra.mxu1 %v9072_v40  ;;  %v6103_v40 = vrot.slane %v10613_v13, %v9774_v58 }
0x24c5   :  { %8526 = vmatprep.subr.bf16.mxu1 %v9454_v30 }
0x2532   :  { %v5765_v55 = vpop.xlane.xlu1 %5764 }
0x2533   :  { %v5772_v11 = vmul.f32 0.0078125, %v5765_v55 }
0x2535   :  { %v10524_v56 = vsub.f32 %v5760_v61, %v5772_v11  ;;  %v9455_v61 = vld [vmem:[%s10713_s2 + $0x78] sm:$0xff]  }
0x2536   :  { %v5767_v42 = vpop.xlane.xlu0 %5766  ;;  %8550 = vmatprep.subr.bf16.mxu0 %v9455_v61 }
0x2537   :  { %v5773_v17 = vmul.f32 0.0078125, %v5767_v42  ;;  %v5780_v57 = vmul.f32 %v10524_v56, %v10524_v56 }
0x2539   :  { %v10528_v12 = vsub.f32 %v5761_v16, %v5773_v17  ;;  %5784 = vadd.xlane.f32.xlu1 %v5780_v57  ;;  %v7544_v57 = vld [vmem:[%s10719_s8 + $0x48] ss:$0 sm:$0xff] }
0x253a   :  { %v5769_v29 = vpop.xlane.xlu1 %5768 }
0x253b   :  { %v5774_v14 = vmul.f32 0.0078125, %v5769_v29  ;;  %v5781_v54 = vmul.f32 %v10528_v12, %v10528_v12 }
0x253d   :  { %v10532_v62 = vsub.f32 %v5762_v50, %v5774_v14  ;;  %5786 = vadd.xlane.f32.xlu0 %v5781_v54 }
0x253e   :  { %v5771_v22 = vpop.xlane.xlu0 %5770 }
0x253f   :  { %v5775_v9 = vmul.f32 0.0078125, %v5771_v22  ;;  %v5782_v28 = vmul.f32 %v10532_v62, %v10532_v62 }
0x2541   :  { %v10536_v63 = vsub.f32 %v5763_v46, %v5775_v9  ;;  %5788 = vadd.xlane.f32.xlu1 %v5782_v28 }
0x2543   :  { %v5783_v4 = vmul.f32 %v10536_v63, %v10536_v63 }
0x2545   :  { %5790 = vadd.xlane.f32.xlu0 %v5783_v4 }
0x25c2   :  { %v5785_v52 = vpop.xlane.xlu1 %5784 }
0x25c3   :  { %v5792_v37 = vmul.f32 0.0078125, %v5785_v52 }
0x25c5   :  { %v5796_v49 = vadd.f32 1e-05, %v5792_v37 }
0x25c6   :  { %v5787_v48 = vpop.xlane.xlu0 %5786 }
0x25c7   :  { %9326 = vrsqrt.f32 %v5796_v49  ;;  %v5793_v16 = vmul.f32 0.0078125, %v5787_v48 }
0x25c9   :  { %v5797_v47 = vadd.f32 1e-05, %v5793_v16 }
0x25ca   :  { %v5789_v33 = vpop.xlane.xlu1 %5788 }
0x25cb   :  { %9328 = vrsqrt.f32 %v5797_v47  ;;  %v5794_v23 = vmul.f32 0.0078125, %v5789_v33 }
0x25cd   :  { %v5798_v7 = vadd.f32 1e-05, %v5794_v23 }
0x25ce   :  { %v5791_v50 = vpop.xlane.xlu0 %5790 }
0x25cf   :  { %9330 = vrsqrt.f32 %v5798_v7  ;;  %v5795_v20 = vmul.f32 0.0078125, %v5791_v50 }
0x25d1   :  { %v5799_v46 = vadd.f32 1e-05, %v5795_v20 }
0x25d3   :  { %9332 = vrsqrt.f32 %v5799_v46 }
0x25d4   :  { %v9327_v51 = vpop.eup %9326 }
0x25d5   :  { %v5804_v55 = vmul.f32 %v9327_v51, %v10524_v56 }
0x25d7   :  { %v5812_v42 = vmul.f32 %v5811_v53, %v5804_v55 }
0x25d8   :  { %v9329_v11 = vpop.eup %9328 }
0x25d9   :  { %v5805_v17 = vmul.f32 %v9329_v11, %v10528_v12  ;;  %v10553_v54 = vadd.f32 %v7544_v57, %v5812_v42 }
0x25db   :  { %v5813_v29 = vmul.f32 %v5811_v53, %v5805_v17 }
0x25dc   :  { %v9331_v14 = vpop.eup %9330 }
0x25dd   :  { %v10555_v22 = vadd.f32 %v7544_v57, %v5813_v29  ;;  %v5806_v9 = vmul.f32 %v9331_v14, %v10532_v62 }
0x25df   :  { %v5827_v31 = vpack.c.bf16 %v10555_v22, %v10553_v54  ;;  %v5814_v28 = vmul.f32 %v5811_v53, %v5806_v9 }
0x25e0   :  { %v9333_v56 = vpop.eup %9332 }
0x25e1   :  { %6023 = vmatmul.mubr.bf16.vlgmr.msra.gmra.mxu1 %v5827_v31  ;;  %8522 = vmatprep.mubr.bf16.mxu0 %v5827_v31  ;;  %v5807_v12 = vmul.f32 %v9333_v56, %v10536_v63  ;;  %v10565_v15 = vadd.f32 %v7544_v57, %v5814_v28  ;;  %v9457_v63 = vld [vmem:[%s10713_s2 + $0x28] sm:$0xff]   ;;  %v9078_v31 = vld [vmem:[#allocation8 + $0x178] sm:$0xff]   ;;  %v9079_v56 = vld [vmem:[#allocation8 + $0x170] sm:$0xff]  }
0x25e2   :  { %6032 = vmatprep.mubr.bf16.mxu1 %v9632_v0  ;;  %8527 = vmatpush3.bf16.msra.mxu1 %v9454_v30 }
0x25e3   :  { %v5815_v4 = vmul.f32 %v5811_v53, %v5807_v12  ;;  %8528 = vmatprep.subr.bf16.mxu1 %v9456_v10  ;;  %v9080_v12 = vld [vmem:[#allocation8 + $0x168] sm:$0xff]  }
0x25e5   :  { %v10567_v62 = vadd.f32 %v7544_v57, %v5815_v4 }
0x25e6   :  { %8529 = vmatpush3.bf16.msra.mxu1 %v9456_v10 }
0x25e7   :  { %v5828_v32 = vpack.c.bf16 %v10567_v62, %v10565_v15  ;;  %8530 = vmatprep.subr.bf16.mxu1 %v9457_v63 }
0x25e9   :  { %6033 = vmatmul.mubr.bf16.gmra.mxu1 %v5828_v32  ;;  %8523 = vmatmul.mubr.bf16.vlgmr.msra.gmra.mxu0 %v5828_v32 }
0x25ea   :  { %8531 = vmatpush3.bf16.msra.mxu1 %v9457_v63  ;;  %8551 = vmatpush3.bf16.msra.mxu0 %v9455_v61 }
0x25eb   :  { %8532 = vmatprep.subr.bf16.mxu1 %v9458_v3  ;;  %8552 = vmatprep.subr.bf16.mxu0 %v9459_v18 }
0x25ee   :  { %8533 = vmatpush3.bf16.msra.mxu1 %v9458_v3  ;;  %8553 = vmatpush3.bf16.msra.mxu0 %v9459_v18 }
0x25ef   :  { %8534 = vmatprep.subr.bf16.mxu1 %v9460_v45  ;;  %8554 = vmatprep.subr.bf16.mxu0 %v9461_v5 }
0x25f2   :  { %8535 = vmatpush3.bf16.msra.mxu1 %v9460_v45  ;;  %8555 = vmatpush3.bf16.msra.mxu0 %v9461_v5 }
0x25f3   :  { %8536 = vmatprep.subr.bf16.mxu1 %v9462_v34  ;;  %8556 = vmatprep.subr.bf16.mxu0 %v9463_v26 }
0x25f6   :  { %8537 = vmatpush3.bf16.msra.mxu1 %v9462_v34  ;;  %8557 = vmatpush3.bf16.msra.mxu0 %v9463_v26 }
0x25f7   :  { %8538 = vmatprep.subr.bf16.mxu1 %v9464_v27  ;;  %8558 = vmatprep.subr.bf16.mxu0 %v9465_v36 }
0x25fa   :  { %8539 = vmatpush3.bf16.msra.mxu1 %v9464_v27  ;;  %8559 = vmatpush3.bf16.msra.mxu0 %v9465_v36 }
0x25fb   :  { %8540 = vmatprep.subr.bf16.mxu1 %v9466_v21  ;;  %8560 = vmatprep.subr.bf16.mxu0 %v9467_v8 }
0x25fe   :  { %8541 = vmatpush3.bf16.msra.mxu1 %v9466_v21  ;;  %8561 = vmatpush3.bf16.msra.mxu0 %v9467_v8 }
0x25ff   :  { %8562 = vmatprep.subr.bf16.mxu0 %v9468_v39  ;;  %8574 = vmatprep.subr.bf16.mxu1 %v9078_v31 }
0x2602   :  { %8563 = vmatpush3.bf16.msra.mxu0 %v9468_v39 }
0x2603   :  { %8564 = vmatprep.subr.bf16.mxu0 %v9469_v25 }
0x2606   :  { %8565 = vmatpush3.bf16.msra.mxu0 %v9469_v25 }
0x26a1   :  { %v6024_v35 = vpop.f32.mrf.mxu1 }
0x26a2   :  { %v6096_v61 = vadd.f32 %v6095_v43, %v6024_v35 }
0x26a3   :  { %v6026_v24 = vpop.f32.mrf.mxu1 }
0x26a4   :  { %v6104_v30 = vadd.f32 %v6103_v40, %v6026_v24 }
0x26a5   :  { %v6028_v60 = vpop.f32.mrf.mxu1 }
0x26a6   :  { %v6097_v52 = vadd.f32 %v6095_v43, %v6028_v60  ;;  %v6116_v48 = vmul.f32 %v6104_v30, %v6096_v61 }
0x26a7   :  { %v6030_v19 = vpop.f32.mrf.mxu1 }
0x26a8   :  { %v6105_v37 = vadd.f32 %v6103_v40, %v6030_v19 }
0x26a9   :  { %v6034_v49 = vpop.f32.mrf.mxu1 }
0x26aa   :  { %v6117_v16 = vmul.f32 %v6105_v37, %v6097_v52  ;;  %v6098_v20 = vadd.f32 %v6095_v43, %v6034_v49 }
0x26ab   :  { %v6036_v47 = vpop.f32.mrf.mxu1 }
0x26ac   :  { %v6124_v33 = vpack.c.bf16 %v6117_v16, %v6116_v48  ;;  %v6106_v7 = vadd.f32 %v6103_v40, %v6036_v47  ;;  %v6120_v42 = vmul.f32 %v6104_v30, %v6098_v20 }
0x26ad   :  { %v6038_v23 = vpop.f32.mrf.mxu1 }
0x26ae   :  { %v6099_v50 = vadd.f32 %v6095_v43, %v6038_v23  ;;  %8542 = vmatprep.mubr.bf16.mxu1 %v6124_v33  ;;  %v6118_v55 = vmul.f32 %v6106_v7, %v6096_v61  ;;  %v6122_v14 = vmul.f32 %v6106_v7, %v6098_v20 }
0x26af   :  { %v6040_v46 = vpop.f32.mrf.mxu1 }
0x26b0   :  { %v6107_v51 = vadd.f32 %v6103_v40, %v6040_v46  ;;  %v6121_v53 = vmul.f32 %v6105_v37, %v6099_v50 }
0x26b2   :  { %v6119_v11 = vmul.f32 %v6107_v51, %v6097_v52  ;;  %v6126_v57 = vpack.c.bf16 %v6121_v53, %v6120_v42  ;;  %v6123_v29 = vmul.f32 %v6107_v51, %v6099_v50 }
0x26b4   :  { %v6125_v17 = vpack.c.bf16 %v6119_v11, %v6118_v55  ;;  %v6127_v9 = vpack.c.bf16 %v6123_v29, %v6122_v14 }
0x26b6   :  { %8543 = vmatmul.mubr.bf16.vlgmr.msra.gmra.mxu1 %v6125_v17 }
0x26b7   :  { %8546 = vmatprep.mubr.bf16.mxu1 %v6126_v57  ;;  %8575 = vmatpush3.bf16.msra.mxu1 %v9078_v31 }
0x26b8   :  { %8576 = vmatprep.subr.bf16.mxu1 %v9079_v56 }
0x26bb   :  { %8577 = vmatpush3.bf16.msra.mxu1 %v9079_v56 }
0x26bc   :  { %8578 = vmatprep.subr.bf16.mxu1 %v9080_v12 }
0x26be   :  { %8547 = vmatmul.mubr.bf16.gmra.mxu1 %v6127_v9 }
0x26bf   :  { %8579 = vmatpush3.bf16.msra.mxu1 %v9080_v12 }
0x2776   :  { %v8544_v28 = vpop.f32.mrf.mxu1 }
0x2778   :  { %v6162_v4 = vpop.f32.mrf.mxu1 }
0x2779   :  { %v6193_v10 = vmax.f32 %v6162_v4, %v8544_v28 }
0x277a   :  { %v8545_v32 = vpop.f32.mrf.mxu1 }
0x277b   :  { %v6197_v63 = vsub.f32 %v6162_v4, %v6193_v10  ;;  %v6199_v3 = vsub.f32 %v8544_v28, %v6193_v10 }
0x277c   :  { %v6165_v18 = vpop.f32.mrf.mxu1 }
0x277d   :  { %v6205_v45 = vmul.f32 1.442695, %v6197_v63  ;;  %v6209_v5 = vmul.f32 1.442695, %v6199_v3  ;;  %v6194_v34 = vmax.f32 %v6165_v18, %v8545_v32 }
0x277e   :  { %v8548_v26 = vpop.f32.mrf.mxu1 }
0x277f   :  { %9334 = vpow2.f32 %v6205_v45  ;;  %v6198_v27 = vsub.f32 %v6165_v18, %v6194_v34  ;;  %v6200_v36 = vsub.f32 %v8545_v32, %v6194_v34  ;;  %v9081_v18 = vld [vmem:[#allocation8 + $0x160] sm:$0xff]   ;;  %v9082_v45 = vld [vmem:[#allocation8 + $0x158] sm:$0xff]   ;;  %v9084_v34 = vld [vmem:[#allocation8 + $0x148] sm:$0xff]  }
0x2780   :  { %9336 = vpow2.f32 %v6209_v5  ;;  %v6178_v21 = vpop.f32.mrf.mxu1  ;;  %8580 = vmatprep.subr.bf16.mxu1 %v9081_v18  ;;  %v9083_v5 = vld [vmem:[#allocation8 + $0x150] sm:$0xff]  }
0x2781   :  { %v6207_v8 = vmul.f32 1.442695, %v6198_v27  ;;  %v6211_v39 = vmul.f32 1.442695, %v6200_v36  ;;  %v6195_v25 = vmax.f32 %v6178_v21, %v8548_v26  ;;  %8581 = vmatpush3.bf16.msra.mxu1 %v9081_v18  ;;  %v8524_v27 = vpop.f32.mrf.mxu0 }
0x2782   :  { %v8549_v35 = vpop.f32.mrf.mxu1  ;;  %8582 = vmatprep.subr.bf16.mxu1 %v9082_v45 }
0x2783   :  { %9338 = vpow2.f32 %v6207_v8  ;;  %v6201_v40 = vsub.f32 %v6178_v21, %v6195_v25  ;;  %v6203_v24 = vsub.f32 %v8548_v26, %v6195_v25  ;;  %v9085_v26 = vld [vmem:[#allocation8 + $0x140] sm:$0xff]   ;;  %v6077_v36 = vpop.f32.mrf.mxu0  ;;  %v6111_v25 = vrot.slane %v10613_v13, %v9846_v1 }
0x2784   :  { %9340 = vpow2.f32 %v6211_v39  ;;  %v6181_v43 = vpop.f32.mrf.mxu1 }
0x2785   :  { %v6213_v60 = vmul.f32 1.442695, %v6201_v40  ;;  %v6217_v30 = vmul.f32 1.442695, %v6203_v24  ;;  %v6196_v19 = vmax.f32 %v6181_v43, %v8549_v35  ;;  %8583 = vmatpush3.bf16.msra.mxu1 %v9082_v45  ;;  %v8525_v21 = vpop.f32.mrf.mxu0  ;;  %v6112_v40 = vadd.f32 %v6111_v25, %v6077_v36 }
0x2786   :  { %8584 = vmatprep.subr.bf16.mxu1 %v9083_v5 }
0x2787   :  { %9342 = vpow2.f32 %v6213_v60  ;;  %v6202_v61 = vsub.f32 %v6181_v43, %v6196_v19  ;;  %v6204_v52 = vsub.f32 %v8549_v35, %v6196_v19  ;;  %v6080_v8 = vpop.f32.mrf.mxu0  ;;  %v6114_v43 = vadd.f32 %v8524_v27, %v6111_v25 }
0x2788   :  { %9344 = vpow2.f32 %v6217_v30  ;;  %v6115_v60 = vadd.f32 %v8525_v21, %v6111_v25  ;;  %v6113_v30 = vadd.f32 %v6111_v25, %v6080_v8 }
0x2789   :  { %v6215_v37 = vmul.f32 1.442695, %v6202_v61  ;;  %v6219_v49 = vmul.f32 1.442695, %v6204_v52  ;;  %8585 = vmatpush3.bf16.msra.mxu1 %v9083_v5 }
0x278a   :  { %8586 = vmatprep.subr.bf16.mxu1 %v9084_v34 }
0x278b   :  { %9346 = vpow2.f32 %v6215_v37 }
0x278c   :  { %v9335_v48 = vpop.eup %9334  ;;  %9348 = vpow2.f32 %v6219_v49 }
0x278d   :  { %v9337_v16 = vpop.eup %9336  ;;  %8587 = vmatpush3.bf16.msra.mxu1 %v9084_v34 }
0x278e   :  { %v6221_v47 = vadd.f32 %v9337_v16, %v9335_v48  ;;  %8588 = vmatprep.subr.bf16.mxu1 %v9085_v26 }
0x2790   :  { %v9339_v33 = vpop.eup %9338  ;;  %9350 = vrcp.f32 %v6221_v47 }
0x2791   :  { %v9341_v23 = vpop.eup %9340  ;;  %8589 = vmatpush3.bf16.msra.mxu1 %v9085_v26 }
0x2792   :  { %v6222_v7 = vadd.f32 %v9341_v23, %v9339_v33 }
0x2794   :  { %v9343_v50 = vpop.eup %9342  ;;  %9352 = vrcp.f32 %v6222_v7 }
0x2795   :  { %v9345_v20 = vpop.eup %9344 }
0x2796   :  { %v6223_v46 = vadd.f32 %v9345_v20, %v9343_v50 }
0x2798   :  { %v9347_v51 = vpop.eup %9346  ;;  %9354 = vrcp.f32 %v6223_v46 }
0x2799   :  { %v9349_v53 = vpop.eup %9348 }
0x279a   :  { %v6224_v55 = vadd.f32 %v9349_v53, %v9347_v51 }
0x279c   :  { %9356 = vrcp.f32 %v6224_v55 }
0x279d   :  { %v9351_v11 = vpop.eup %9350 }
0x279e   :  { %v6229_v17 = vmul.f32 %v9351_v11, %v9335_v48  ;;  %v6231_v29 = vmul.f32 %v9351_v11, %v9337_v16 }
0x27a1   :  { %v9353_v42 = vpop.eup %9352 }
0x27a2   :  { %v6230_v57 = vmul.f32 %v9353_v42, %v9339_v33  ;;  %v6232_v14 = vmul.f32 %v9353_v42, %v9341_v23 }
0x27a4   :  { %v6237_v9 = vpack.c.bf16 %v6230_v57, %v6229_v17  ;;  %v6238_v31 = vpack.c.bf16 %v6232_v14, %v6231_v29  ;;  %v6441_v29 = vrot.slane %v10613_v13, %v9851_v38 }
0x27a5   :  { %v9355_v56 = vpop.eup %9354 }
0x27a6   :  { %8566 = vmatprep.mubr.bf16.mxu0 %v6237_v9  ;;  %v6233_v28 = vmul.f32 %v9355_v56, %v9343_v50  ;;  %v6235_v10 = vmul.f32 %v9355_v56, %v9345_v20 }
0x27a7   :  { %8567 = vmatmul.mubr.bf16.vlgmr.msra.gmra.mxu0 %v6238_v31 }
0x27a9   :  { %v9357_v12 = vpop.eup %9356 }
0x27aa   :  { %v6234_v4 = vmul.f32 %v9357_v12, %v9347_v51  ;;  %v6236_v32 = vmul.f32 %v9357_v12, %v9349_v53 }
0x27ac   :  { %v6239_v63 = vpack.c.bf16 %v6234_v4, %v6233_v28  ;;  %v6240_v3 = vpack.c.bf16 %v6236_v32, %v6235_v10 }
0x27ae   :  { %8570 = vmatprep.mubr.bf16.mxu0 %v6239_v63  ;;  %v9088_v63 = vld [vmem:[#allocation10 + $0x2f4] ss:$8 sps:$4 sm:$0xff]  }
0x27af   :  { %8571 = vmatmul.mubr.bf16.gmra.mxu0 %v6240_v3  ;;  %6618 = vmatprep.subr.bf16.mxu0 %v9088_v63 }
0x27b0   :  { %6650 = vmatprep.mubr.bf16.mxu0 %v9632_v0 }
0x2867   :  { %v8568_v39 = vpop.f32.mrf.mxu0 }
0x2868   :  { %v6310_v52 = vmul.f32 %v8568_v39, %v6114_v43 }
0x2869   :  { %v6275_v35 = vpop.f32.mrf.mxu0 }
0x286a   :  { %v6306_v19 = vmul.f32 %v6275_v35, %v6112_v40  ;;  %v9091_v35 = vld [vmem:[#allocation10 + $0x2e4] ss:$8 sps:$4 sm:$0xff]  }
0x286b   :  { %v8569_v24 = vpop.f32.mrf.mxu0 }
0x286c   :  { %v6311_v37 = vmul.f32 %v8569_v24, %v6115_v60  ;;  %v6314_v16 = vadd.f32 %v6310_v52, %v6306_v19  ;;  %v9094_v24 = vld [vmem:[#allocation10 + $0x2d4] ss:$8 sps:$4 sm:$0xff]   ;;  %v9103_v52 = vld [vmem:[#allocation10 + $0x2a4] ss:$8 sps:$4 sm:$0xff]  }
0x286d   :  { %v6278_v61 = vpop.f32.mrf.mxu0  ;;  %v9100_v19 = vld [vmem:[#allocation10 + $0x2b4] ss:$8 sps:$4 sm:$0xff]  }
0x286e   :  { %v6307_v49 = vmul.f32 %v6278_v61, %v6113_v30  ;;  %v9098_v61 = vld [vmem:[#allocation10 + $0x2b0] ss:$8 sps:$4 sm:$0xff]  }
0x286f   :  { %v8572_v48 = vpop.f32.mrf.mxu0 }
0x2870   :  { %v6315_v47 = vadd.f32 %v6311_v37, %v6307_v49  ;;  %v6312_v20 = vmul.f32 %v8572_v48, %v6114_v43  ;;  %v9092_v43 = vld [vmem:[#allocation10 + $0x2d0] ss:$8 sps:$4 sm:$0xff]   ;;  %v9101_v37 = vld [vmem:[#allocation10 + $0x2a0] ss:$8 sps:$4 sm:$0xff]   ;;  %v9106_v49 = vld [vmem:[#allocation10 + $0x294] ss:$8 sps:$4 sm:$0xff]  }
0x2871   :  { %v6291_v33 = vpop.f32.mrf.mxu0  ;;  %v9104_v48 = vld [vmem:[#allocation10 + $0x290] ss:$8 sps:$4 sm:$0xff]  }
0x2872   :  { %v6318_v23 = vpack.c.bf16 %v6315_v47, %v6314_v16  ;;  %v6308_v50 = vmul.f32 %v6291_v33, %v6112_v40  ;;  %v9089_v40 = vld [vmem:[#allocation10 + $0x2e0] ss:$8 sps:$4 sm:$0xff]   ;;  %v9109_v47 = vld [vmem:[#allocation10 + $0x284] ss:$8 sps:$4 sm:$0xff]   ;;  %v9110_v33 = vld [vmem:[#allocation11 + $0x2f8] sm:$0xff]  }
0x2873   :  { %v8573_v7 = vpop.f32.mrf.mxu0  ;;  %v9107_v16 = vld [vmem:[#allocation10 + $0x280] ss:$8 sps:$4 sm:$0xff]   ;;  %8028 = vmatprep.subr.bf16.mxu1 %v9110_v33 }
0x2874   :  { %8590 = vmatprep.mubr.bf16.mxu1 %v6318_v23  ;;  %v6313_v46 = vmul.f32 %v8573_v7, %v6115_v60  ;;  %v6316_v53 = vadd.f32 %v6312_v20, %v6308_v50  ;;  %v9097_v60 = vld [vmem:[#allocation10 + $0x2c4] ss:$8 sps:$4 sm:$0xff]   ;;  %v9111_v23 = vld [vmem:[#allocation11 + $0x2b8] sm:$0xff]   ;;  %v9112_v7 = vld [vmem:[#allocation11 + $0x2f0] sm:$0xff]  }
0x2875   :  { %v6294_v1 = vpop.f32.mrf.mxu0  ;;  %v9113_v50 = vld [vmem:[#allocation11 + $0x2b0] sm:$0xff]   ;;  %v9115_v20 = vld [vmem:[#allocation11 + $0x2a8] sm:$0xff]  }
0x2876   :  { %v6309_v51 = vmul.f32 %v6294_v1, %v6113_v30  ;;  %v9095_v30 = vld [vmem:[#allocation10 + $0x2c0] ss:$8 sps:$4 sm:$0xff]  }
0x2877   :  { %v9114_v1 = vld [vmem:[#allocation11 + $0x2e8] sm:$0xff]  }
0x2878   :  { %v6317_v55 = vadd.f32 %v6313_v46, %v6309_v51  ;;  %v9116_v46 = vld [vmem:[#allocation11 + $0x2e0] sm:$0xff]  }
0x2879   :  { %v9117_v51 = vld [vmem:[#allocation11 + $0x2a0] sm:$0xff]  }
0x287a   :  { %v6319_v11 = vpack.c.bf16 %v6317_v55, %v6316_v53  ;;  %v9118_v53 = vld [vmem:[#allocation11 + $0x2d8] sm:$0xff]  }
0x287b   :  { %v9119_v55 = vld [vmem:[#allocation11 + $0x298] sm:$0xff]  }
0x287c   :  { %8591 = vmatmul.mubr.bf16.vlgmr.msra.gmra.mxu1 %v6319_v11 }
0x287d   :  { %8029 = vmatpush3.bf16.msra.mxu1 %v9111_v23 }
0x287e   :  { %8030 = vmatprep.subr.bf16.mxu1 %v9112_v7 }
0x2881   :  { %8031 = vmatpush3.bf16.msra.mxu1 %v9113_v50 }
0x2882   :  { %8032 = vmatprep.subr.bf16.mxu1 %v9114_v1 }
0x2885   :  { %8033 = vmatpush3.bf16.msra.mxu1 %v9115_v20 }
0x2886   :  { %8034 = vmatprep.subr.bf16.mxu1 %v9116_v46 }
0x2889   :  { %8035 = vmatpush3.bf16.msra.mxu1 %v9117_v51 }
0x288a   :  { %8036 = vmatprep.subr.bf16.mxu1 %v9118_v53 }
0x288d   :  { %8037 = vmatpush3.bf16.msra.mxu1 %v9119_v55 }
0x293c   :  { %v8592_v42 = vpop.f32.mrf.mxu1 }
0x293d   :  { %v6436_v9 = vadd.f32 %v8592_v42, %v10565_v15 }
0x293e   :  { %v6419_v17 = vpop.f32.mrf.mxu1 }
0x293f   :  { %v6434_v57 = vadd.f32 %v6419_v17, %v10553_v54  ;;  %v6444_v4 = vadd.f32 %v6441_v29, %v6436_v9  ;;  %v9086_v54 = vld [vmem:[#allocation10 + $0x2f0] ss:$8 sps:$4 sm:$0xff]  }
0x2940   :  { %v8593_v14 = vpop.f32.mrf.mxu1  ;;  %6619 = vmatpush1.bf16.msra.mxu0 %v9086_v54 }
0x2941   :  { %v6442_v31 = vadd.f32 %v6441_v29, %v6434_v57  ;;  %v6437_v28 = vadd.f32 %v8593_v14, %v10567_v62  ;;  %6620 = vmatprep.subr.bf16.mxu0 %v9091_v35  ;;  %v9121_v35 = vld [vmem:[#allocation11 + $0x290] sm:$0xff]  }
0x2942   :  { %v6422_v56 = vpop.f32.mrf.mxu1 }
0x2943   :  { %v6435_v12 = vadd.f32 %v6422_v56, %v10555_v22  ;;  %6446 = vadd.xlane.f32.xlu1 %v6442_v31  ;;  %v6445_v32 = vadd.f32 %v6441_v29, %v6437_v28 }
0x2944   :  { %6621 = vmatpush1.bf16.msra.mxu0 %v9089_v40  ;;  %v9123_v40 = vld [vmem:[#allocation11 + $0x288] sm:$0xff]  }
0x2945   :  { %v6443_v10 = vadd.f32 %v6441_v29, %v6435_v12  ;;  %6622 = vmatprep.subr.bf16.mxu0 %v9094_v24  ;;  %v9124_v24 = vld [vmem:[#allocation11 + $0x2c0] sm:$0xff]  }
0x2947   :  { %6450 = vadd.xlane.f32.xlu1 %v6444_v4  ;;  %6448 = vadd.xlane.f32.xlu0 %v6443_v10 }
0x2948   :  { %6623 = vmatpush1.bf16.msra.mxu0 %v9092_v43  ;;  %v9125_v43 = vld [vmem:[#allocation11 + $0x280] sm:$0xff]  }
0x2949   :  { %6624 = vmatprep.subr.bf16.mxu0 %v9097_v60 }
0x294b   :  { %6452 = vadd.xlane.f32.xlu0 %v6445_v32 }
0x294c   :  { %6625 = vmatpush1.bf16.msra.mxu0 %v9095_v30 }
0x294d   :  { %6626 = vmatprep.subr.bf16.mxu0 %v9100_v19 }
0x2950   :  { %6627 = vmatpush1.bf16.msra.mxu0 %v9098_v61 }
0x2951   :  { %6628 = vmatprep.subr.bf16.mxu0 %v9103_v52 }
0x2954   :  { %6629 = vmatpush1.bf16.msra.mxu0 %v9101_v37 }
0x2955   :  { %6630 = vmatprep.subr.bf16.mxu0 %v9106_v49 }
0x2958   :  { %6631 = vmatpush1.bf16.msra.mxu0 %v9104_v48 }
0x2959   :  { %6632 = vmatprep.subr.bf16.mxu0 %v9109_v47 }
0x295c   :  { %6633 = vmatpush1.bf16.msra.mxu0 %v9107_v16 }
0x29cc   :  { %v6447_v38 = vpop.xlane.xlu1 %6446 }
0x29cd   :  { %v6454_v3 = vmul.f32 0.0078125, %v6447_v38 }
0x29cf   :  { %v10628_v15 = vsub.f32 %v6442_v31, %v6454_v3 }
0x29d0   :  { %v6451_v18 = vpop.xlane.xlu1 %6450  ;;  %v6449_v45 = vpop.xlane.xlu0 %6448 }
0x29d1   :  { %v6456_v22 = vmul.f32 0.0078125, %v6451_v18  ;;  %v6455_v5 = vmul.f32 0.0078125, %v6449_v45  ;;  %v6462_v62 = vmul.f32 %v10628_v15, %v10628_v15  ;;  %v6501_v18 = vrot.slane %v10613_v13, %v9882_v6 }
0x29d3   :  { %v10632_v34 = vsub.f32 %v6444_v4, %v6456_v22  ;;  %v10634_v26 = vsub.f32 %v6443_v10, %v6455_v5  ;;  %6466 = vadd.xlane.f32.xlu1 %v6462_v62 }
0x29d4   :  { %v6453_v27 = vpop.xlane.xlu0 %6452 }
0x29d5   :  { %v6457_v36 = vmul.f32 0.0078125, %v6453_v27  ;;  %v6464_v21 = vmul.f32 %v10632_v34, %v10632_v34  ;;  %v6463_v8 = vmul.f32 %v10634_v26, %v10634_v26 }
0x29d7   :  { %v10640_v39 = vsub.f32 %v6445_v32, %v6457_v36  ;;  %6470 = vadd.xlane.f32.xlu1 %v6464_v21  ;;  %6468 = vadd.xlane.f32.xlu0 %v6463_v8  ;;  %v6493_v32 = vrot.slane %v10613_v13, %v9876_v2 }
0x29d9   :  { %v6465_v25 = vmul.f32 %v10640_v39, %v10640_v39 }
0x29db   :  { %6472 = vadd.xlane.f32.xlu0 %v6465_v25  ;;  %v9120_v25 = vld [vmem:[#allocation11 + $0x2d0] sm:$0xff]  }
0x29dc   :  { %8038 = vmatprep.subr.bf16.mxu1 %v9120_v25 }
0x29dd   :  { %8039 = vmatpush3.bf16.msra.mxu1 %v9121_v35 }
0x2a5c   :  { %v6467_v11 = vpop.xlane.xlu1 %6466 }
0x2a5d   :  { %v6474_v42 = vmul.f32 0.0078125, %v6467_v11 }
0x2a5f   :  { %v6478_v17 = vadd.f32 1e-05, %v6474_v42 }
0x2a60   :  { %v6471_v57 = vpop.xlane.xlu1 %6470  ;;  %v6469_v29 = vpop.xlane.xlu0 %6468 }
0x2a61   :  { %9358 = vrsqrt.f32 %v6478_v17  ;;  %v6476_v14 = vmul.f32 0.0078125, %v6471_v57  ;;  %v6475_v9 = vmul.f32 0.0078125, %v6469_v29 }
0x2a63   :  { %v6479_v31 = vadd.f32 1e-05, %v6475_v9  ;;  %v6480_v56 = vadd.f32 1e-05, %v6476_v14 }
0x2a64   :  { %v6473_v12 = vpop.xlane.xlu0 %6472 }
0x2a65   :  { %v6477_v28 = vmul.f32 0.0078125, %v6473_v12  ;;  %9360 = vrsqrt.f32 %v6479_v31  ;;  %v6719_v12 = vrot.slane %v10613_v13, %v9909_v41 }
0x2a66   :  { %9362 = vrsqrt.f32 %v6480_v56 }
0x2a67   :  { %v6481_v4 = vadd.f32 1e-05, %v6477_v28 }
0x2a69   :  { %9364 = vrsqrt.f32 %v6481_v4 }
0x2a6e   :  { %v9359_v10 = vpop.eup %9358 }
0x2a6f   :  { %v6486_v54 = vmul.f32 %v9359_v10, %v10628_v15 }
0x2a71   :  { %v6494_v38 = vmul.f32 %v6493_v32, %v6486_v54 }
0x2a72   :  { %v9361_v63 = vpop.eup %9360 }
0x2a73   :  { %v6487_v3 = vmul.f32 %v9361_v63, %v10634_v26  ;;  %v9363_v45 = vpop.eup %9362  ;;  %v10651_v27 = vadd.f32 %v6501_v18, %v6494_v38 }
0x2a74   :  { %v6488_v2 = vmul.f32 %v9363_v45, %v10632_v34  ;;  %v9122_v34 = vld [vmem:[#allocation11 + $0x2c8] sm:$0xff]  }
0x2a75   :  { %v6495_v5 = vmul.f32 %v6493_v32, %v6487_v3  ;;  %8040 = vmatprep.subr.bf16.mxu1 %v9122_v34 }
0x2a76   :  { %v9365_v22 = vpop.eup %9364  ;;  %v6496_v26 = vmul.f32 %v6493_v32, %v6488_v2  ;;  %8041 = vmatpush3.bf16.msra.mxu1 %v9123_v40 }
0x2a77   :  { %v6489_v62 = vmul.f32 %v9365_v22, %v10640_v39  ;;  %v10653_v36 = vadd.f32 %v6501_v18, %v6495_v5  ;;  %8042 = vmatprep.subr.bf16.mxu1 %v9124_v24 }
0x2a78   :  { %v10661_v8 = vadd.f32 %v6501_v18, %v6496_v26 }
0x2a79   :  { %v6506_v15 = vpack.c.bf16 %v10653_v36, %v10651_v27  ;;  %v6497_v21 = vmul.f32 %v6493_v32, %v6489_v62 }
0x2a7a   :  { %8043 = vmatpush3.bf16.msra.mxu1 %v9125_v43 }
0x2a7b   :  { %6651 = vmatmul.mubr.bf16.vlgmr.msra.gmra.mxu0 %v6506_v15  ;;  %v10659_v6 = vadd.f32 %v6501_v18, %v6497_v21 }
0x2a7c   :  { %6660 = vmatprep.mubr.bf16.mxu0 %v9632_v0  ;;  %v7579_v0 = vld [vmem:[%s10720_s9 + $0xa] sm:$0x3] }
0x2a7d   :  { %v6507_v39 = vpack.c.bf16 %v10659_v6, %v10661_v8  ;;  %v6535_v30 = vrot.slane %v7579_v0, %v9774_v58  ;;  %v6531_v19 = vrot.slane %v7579_v0, %v9777_v59 }
0x2a83   :  { %6661 = vmatmul.mubr.bf16.gmra.mxu0 %v6507_v39 }
0x2b3b   :  { %v6652_v60 = vpop.f32.mrf.mxu0 }
0x2b3c   :  { %v6653_v48 = vadd.f32 %v6652_v60, %v6531_v19 }
0x2b3d   :  { %v6654_v61 = vpop.f32.mrf.mxu0 }
0x2b3e   :  { %v6655_v37 = vadd.f32 %v6654_v61, %v6535_v30  ;;  %v6671_v1 = vmax.f32 %v6653_v48, 0.0 }
0x2b3f   :  { %v6656_v52 = vpop.f32.mrf.mxu0 }
0x2b40   :  { %v6657_v49 = vadd.f32 %v6656_v52, %v6531_v19  ;;  %v6672_v7 = vmax.f32 %v6655_v37, 0.0 }
0x2b41   :  { %v6658_v16 = vpop.f32.mrf.mxu0 }
0x2b42   :  { %v6659_v47 = vadd.f32 %v6658_v16, %v6535_v30  ;;  %v6673_v33 = vmax.f32 %v6657_v49, 0.0 }
0x2b43   :  { %v6662_v23 = vpop.f32.mrf.mxu0 }
0x2b44   :  { %v6674_v50 = vmax.f32 %v6659_v47, 0.0  ;;  %v6679_v51 = vpack.c.bf16 %v6673_v33, %v6671_v1  ;;  %v6663_v59 = vadd.f32 %v6662_v23, %v6531_v19 }
0x2b45   :  { %v6664_v20 = vpop.f32.mrf.mxu0 }
0x2b46   :  { %v6680_v46 = vpack.c.bf16 %v6674_v50, %v6672_v7  ;;  %v6665_v55 = vadd.f32 %v6664_v20, %v6535_v30  ;;  %v6675_v14 = vmax.f32 %v6663_v59, 0.0 }
0x2b47   :  { %v6666_v53 = vpop.f32.mrf.mxu0 }
0x2b48   :  { %v6667_v58 = vadd.f32 %v6666_v53, %v6531_v19  ;;  %6848 = vmatprep.mubr.bf16.mxu1 %v6680_v46  ;;  %v6676_v57 = vmax.f32 %v6665_v55, 0.0 }
0x2b49   :  { %v6668_v11 = vpop.f32.mrf.mxu0  ;;  %6849 = vmatmul.mubr.bf16.vlgmr.msra.gmra.mxu1 %v6679_v51  ;;  %v6916_v51 = vrot.slane %v10613_v13, %v9938_v44 }
0x2b4a   :  { %v6669_v42 = vadd.f32 %v6668_v11, %v6535_v30  ;;  %v6677_v17 = vmax.f32 %v6667_v58, 0.0  ;;  %v7612_v58 = vld [vmem:[%s10719_s8 + $0x58] ss:$0 sm:$0xff] }
0x2b4c   :  { %v6678_v29 = vmax.f32 %v6669_v42, 0.0  ;;  %v6681_v31 = vpack.c.bf16 %v6677_v17, %v6675_v14 }
0x2b4e   :  { %v6682_v9 = vpack.c.bf16 %v6678_v29, %v6676_v57 }
0x2b50   :  { %6856 = vmatprep.mubr.bf16.mxu1 %v6682_v9 }
0x2b51   :  { %6857 = vmatmul.mubr.bf16.gmra.mxu1 %v6681_v31 }
0x2c09   :  { %v8044_v56 = vpop.f32.mrf.mxu1 }
0x2c0b   :  { %v8045_v28 = vpop.f32.mrf.mxu1 }
0x2c0c   :  { %v8046_v4 = vadd.f32 %v8045_v28, %v8044_v56 }
0x2c0d   :  { %v8047_v10 = vpop.f32.mrf.mxu1 }
0x2c0e   :  { %v6851_v32 = vadd.f32 %v8046_v4, %v6719_v12 }
0x2c0f   :  { %v8048_v54 = vpop.f32.mrf.mxu1 }
0x2c10   :  { %v8049_v63 = vadd.f32 %v8048_v54, %v8047_v10  ;;  %v6865_v38 = vadd.f32 %v6851_v32, %v10651_v27 }
0x2c11   :  { %v8050_v3 = vpop.f32.mrf.mxu1 }
0x2c12   :  { %v6854_v18 = vadd.f32 %v8049_v63, %v6719_v12  ;;  %6869 = vadd.xlane.f32.xlu1 %v6865_v38 }
0x2c13   :  { %v8051_v45 = vpop.f32.mrf.mxu1 }
0x2c14   :  { %v8052_v22 = vadd.f32 %v8051_v45, %v8050_v3  ;;  %v6866_v5 = vadd.f32 %v6854_v18, %v10653_v36 }
0x2c15   :  { %v8053_v62 = vpop.f32.mrf.mxu1 }
0x2c16   :  { %v6859_v2 = vadd.f32 %v8052_v22, %v6719_v12  ;;  %6871 = vadd.xlane.f32.xlu0 %v6866_v5 }
0x2c17   :  { %v8054_v15 = vpop.f32.mrf.mxu1 }
0x2c18   :  { %v8055_v41 = vadd.f32 %v8054_v15, %v8053_v62  ;;  %v6867_v21 = vadd.f32 %v6859_v2, %v10661_v8 }
0x2c1a   :  { %v6862_v26 = vadd.f32 %v8055_v41, %v6719_v12  ;;  %6873 = vadd.xlane.f32.xlu1 %v6867_v21 }
0x2c1c   :  { %v6868_v39 = vadd.f32 %v6862_v26, %v10659_v6  ;;  %v9126_v26 = vld [vmem:[%s10713_s2 + $0xb8] sm:$0xff]  }
0x2c1d   :  { %8594 = vmatprep.subr.bf16.mxu0 %v9126_v26 }
0x2c1e   :  { %6875 = vadd.xlane.f32.xlu0 %v6868_v39  ;;  %8595 = vmatpush3.bf16.msra.mxu0 %v9126_v26 }
0x2c9b   :  { %v6870_v27 = vpop.xlane.xlu1 %6869 }
0x2c9c   :  { %v6877_v25 = vmul.f32 0.0078125, %v6870_v27  ;;  %v9128_v27 = vld [vmem:[%s10713_s2 + $0xa8] sm:$0xff]  }
0x2c9e   :  { %v6881_v35 = vsub.f32 %v6865_v38, %v6877_v25  ;;  %v9129_v25 = vld [vmem:[%s10713_s2 + $0xa0] sm:$0xff]  }
0x2c9f   :  { %v6872_v34 = vpop.xlane.xlu0 %6871 }
0x2ca0   :  { %v6878_v40 = vmul.f32 0.0078125, %v6872_v34  ;;  %v6885_v24 = vmul.f32 %v6881_v35, %v6881_v35  ;;  %v9131_v34 = vld [vmem:[%s10713_s2 + $0x90] sm:$0xff]  }
0x2ca2   :  { %v6882_v43 = vsub.f32 %v6866_v5, %v6878_v40  ;;  %6889 = vadd.xlane.f32.xlu1 %v6885_v24  ;;  %v9132_v40 = vld [vmem:[%s10713_s2 + $0x88] sm:$0xff]   ;;  %v9133_v24 = vld [vmem:[%s10713_s2 + $0x80] sm:$0xff]  }
0x2ca3   :  { %v6874_v36 = vpop.xlane.xlu1 %6873 }
0x2ca4   :  { %v6879_v0 = vmul.f32 0.0078125, %v6874_v36  ;;  %v6886_v60 = vmul.f32 %v6882_v43, %v6882_v43 }
0x2ca6   :  { %v6883_v30 = vsub.f32 %v6867_v21, %v6879_v0  ;;  %6891 = vadd.xlane.f32.xlu0 %v6886_v60 }
0x2ca7   :  { %v6876_v19 = vpop.xlane.xlu0 %6875 }
0x2ca8   :  { %v6880_v8 = vmul.f32 0.0078125, %v6876_v19  ;;  %v6887_v61 = vmul.f32 %v6883_v30, %v6883_v30 }
0x2caa   :  { %v6884_v52 = vsub.f32 %v6868_v39, %v6880_v8  ;;  %6893 = vadd.xlane.f32.xlu1 %v6887_v61  ;;  %v9127_v39 = vld [vmem:[%s10713_s2 + $0xb0] sm:$0xff]  }
0x2cab   :  { %8596 = vmatprep.subr.bf16.mxu0 %v9127_v39 }
0x2cac   :  { %v6888_v6 = vmul.f32 %v6884_v52, %v6884_v52  ;;  %8597 = vmatpush3.bf16.msra.mxu0 %v9127_v39 }
0x2cad   :  { %8598 = vmatprep.subr.bf16.mxu0 %v9128_v27 }
0x2cae   :  { %6895 = vadd.xlane.f32.xlu0 %v6888_v6 }
0x2cb0   :  { %8599 = vmatpush3.bf16.msra.mxu0 %v9128_v27 }
0x2cb1   :  { %8600 = vmatprep.subr.bf16.mxu0 %v9129_v25 }
0x2cb4   :  { %8601 = vmatpush3.bf16.msra.mxu0 %v9129_v25 }
0x2d2b   :  { %v6890_v37 = vpop.xlane.xlu1 %6889 }
0x2d2c   :  { %v6897_v49 = vmul.f32 0.0078125, %v6890_v37 }
0x2d2e   :  { %v6901_v48 = vadd.f32 1e-05, %v6897_v49 }
0x2d2f   :  { %v6892_v16 = vpop.xlane.xlu0 %6891 }
0x2d30   :  { %9366 = vrsqrt.f32 %v6901_v48  ;;  %v6898_v47 = vmul.f32 0.0078125, %v6892_v16 }
0x2d32   :  { %v6902_v33 = vadd.f32 1e-05, %v6898_v47  ;;  %v7613_v47 = vld [vmem:[#allocation5 + $0x1] ss:$0 sm:$0xff] }
0x2d33   :  { %v6894_v23 = vpop.xlane.xlu1 %6893 }
0x2d34   :  { %9368 = vrsqrt.f32 %v6902_v33  ;;  %v6899_v7 = vmul.f32 0.0078125, %v6894_v23 }
0x2d36   :  { %v6903_v50 = vadd.f32 1e-05, %v6899_v7 }
0x2d37   :  { %v6896_v1 = vpop.xlane.xlu0 %6895 }
0x2d38   :  { %9370 = vrsqrt.f32 %v6903_v50  ;;  %v6900_v20 = vmul.f32 0.0078125, %v6896_v1  ;;  %v7614_v50 = vld [vmem:[#allocation5 + $0x2] ss:$0 sm:$0xff] }
0x2d3a   :  { %v6904_v46 = vadd.f32 1e-05, %v6900_v20 }
0x2d3c   :  { %9372 = vrsqrt.f32 %v6904_v46 }
0x2d3d   :  { %v9367_v53 = vpop.eup %9366 }
0x2d3e   :  { %v6909_v55 = vmul.f32 %v9367_v53, %v6881_v35  ;;  %v9130_v35 = vld [vmem:[%s10713_s2 + $0x98] sm:$0xff]   ;;  %s9633_s2 = smov [#allocation13]  }
0x2d3f   :  { %8602 = vmatprep.subr.bf16.mxu0 %v9130_v35  ;;  %s7144_s11 = sshll.u32 %s9633_s2, 4  ;;  %s7145_s11 = int_to_ptr.vmem [resolvable:$true] %s7144_s11 }
0x2d40   :  { %v6917_v59 = vmul.f32 %v6916_v51, %v6909_v55  ;;  %8603 = vmatpush3.bf16.msra.mxu0 %v9130_v35  ;;  %s9590_s12 = scalar_lea.vmem %s7145_s11, 512  ;;  %p9595_p3 = scmp.lt.s32.totalorder %s7145_s11, %s7145_s11 }
0x2d41   :  { %v9369_v11 = vpop.eup %9368  ;;  %8604 = vmatprep.subr.bf16.mxu0 %v9131_v34  ;;  %p9591_p2 = scmp.ne.s32.totalorder %s7145_s11, %s9590_s12  ;;  %p9596_p4 = scmp.lt.s32.totalorder %s9590_s12, %s9590_s12 }
0x2d42   :  { %v6925_v42 = vadd.f32 %v7612_v58, %v6917_v59  ;;  %v6910_v17 = vmul.f32 %v9369_v11, %v6882_v43 }
0x2d43   :  { %p9597_p5 = por %p9596_p4, %p9595_p3 }
0x2d44   :  { %6931 = vadd.xlane.f32.xlu1 %v6925_v42  ;;  %v6918_v57 = vmul.f32 %v6916_v51, %v6910_v17  ;;  %8605 = vmatpush3.bf16.msra.mxu0 %v9131_v34 }
0x2d45   :  { %v9371_v29 = vpop.eup %9370  ;;  %8606 = vmatprep.subr.bf16.mxu0 %v9132_v40  ;;  %p9598_p6 = pnand %p9597_p5, %p9591_p2 }
0x2d46   :  { %v6926_v14 = vadd.f32 %v7612_v58, %v6918_v57  ;;  %v6911_v9 = vmul.f32 %v9371_v29, %v6883_v30 }
0x2d48   :  { %6933 = vadd.xlane.f32.xlu0 %v6926_v14  ;;  %v6919_v31 = vmul.f32 %v6916_v51, %v6911_v9  ;;  %8607 = vmatpush3.bf16.msra.mxu0 %v9132_v40  ;;  %v7615_v9 = vld [vmem:[#allocation5 + $0x3] ss:$0 sm:$0xff] }
0x2d49   :  { %v9373_v56 = vpop.eup %9372  ;;  %8608 = vmatprep.subr.bf16.mxu0 %v9133_v24 }
0x2d4a   :  { %v6927_v12 = vadd.f32 %v7612_v58, %v6919_v31  ;;  %v6912_v44 = vmul.f32 %v9373_v56, %v6884_v52 }
0x2d4c   :  { %6935 = vadd.xlane.f32.xlu1 %v6927_v12  ;;  %v6920_v13 = vmul.f32 %v6916_v51, %v6912_v44  ;;  %8609 = vmatpush3.bf16.msra.mxu0 %v9133_v24 }
0x2d4e   :  { %v6928_v28 = vadd.f32 %v7612_v58, %v6920_v13 }
0x2d50   :  { %6937 = vadd.xlane.f32.xlu0 %v6928_v28 }
0x2dcd   :  { %v6932_v4 = vpop.xlane.xlu1 %6931 }
0x2dce   :  { %v6939_v10 = vmul.f32 0.0078125, %v6932_v4 }
0x2dd0   :  { %v6943_v32 = vsub.f32 %v6925_v42, %v6939_v10 }
0x2dd1   :  { %v6934_v54 = vpop.xlane.xlu0 %6933 }
0x2dd2   :  { %v6940_v63 = vmul.f32 0.0078125, %v6934_v54  ;;  %v6947_v38 = vmul.f32 %v6943_v32, %v6943_v32 }
0x2dd4   :  { %v6944_v3 = vsub.f32 %v6926_v14, %v6940_v63  ;;  %6951 = vadd.xlane.f32.xlu1 %v6947_v38 }
0x2dd5   :  { %v6936_v18 = vpop.xlane.xlu1 %6935 }
0x2dd6   :  { %v6941_v45 = vmul.f32 0.0078125, %v6936_v18  ;;  %v6948_v22 = vmul.f32 %v6944_v3, %v6944_v3 }
0x2dd8   :  { %v6945_v5 = vsub.f32 %v6927_v12, %v6941_v45  ;;  %6953 = vadd.xlane.f32.xlu0 %v6948_v22 }
0x2dd9   :  { %v6938_v62 = vpop.xlane.xlu0 %6937 }
0x2dda   :  { %v6942_v2 = vmul.f32 0.0078125, %v6938_v62  ;;  %v6949_v15 = vmul.f32 %v6945_v5, %v6945_v5 }
0x2ddc   :  { %v6946_v41 = vsub.f32 %v6928_v28, %v6942_v2  ;;  %6955 = vadd.xlane.f32.xlu1 %v6949_v15 }
0x2dde   :  { %v6950_v21 = vmul.f32 %v6946_v41, %v6946_v41 }
0x2de0   :  { %6957 = vadd.xlane.f32.xlu0 %v6950_v21 }
0x2e5d   :  { %v6952_v43 = vpop.xlane.xlu1 %6951 }
0x2e5e   :  { %v6959_v36 = vmul.f32 0.0078125, %v6952_v43 }
0x2e60   :  { %v6963_v0 = vadd.f32 1e-05, %v6959_v36 }
0x2e61   :  { %v6954_v60 = vpop.xlane.xlu0 %6953 }
0x2e62   :  { %9374 = vrsqrt.f32 %v6963_v0  ;;  %v6960_v30 = vmul.f32 0.0078125, %v6954_v60 }
0x2e64   :  { %v6964_v19 = vadd.f32 1e-05, %v6960_v30 }
0x2e65   :  { %v6956_v8 = vpop.xlane.xlu1 %6955 }
0x2e66   :  { %9376 = vrsqrt.f32 %v6964_v19  ;;  %v6961_v61 = vmul.f32 0.0078125, %v6956_v8 }
0x2e68   :  { %v6965_v52 = vadd.f32 1e-05, %v6961_v61 }
0x2e69   :  { %v6958_v6 = vpop.xlane.xlu0 %6957 }
0x2e6a   :  { %9378 = vrsqrt.f32 %v6965_v52  ;;  %v6962_v37 = vmul.f32 0.0078125, %v6958_v6 }
0x2e6c   :  { %v6966_v49 = vadd.f32 1e-05, %v6962_v37 }
0x2e6e   :  { %9380 = vrsqrt.f32 %v6966_v49 }
0x2e6f   :  { %v9375_v48 = vpop.eup %9374 }
0x2e70   :  { %v6971_v16 = vmul.f32 %v9375_v48, %v6943_v32 }
0x2e72   :  { %v6979_v7 = vmul.f32 %v7613_v47, %v6971_v16 }
0x2e73   :  { %v9377_v33 = vpop.eup %9376 }
0x2e74   :  { %v6972_v23 = vmul.f32 %v9377_v33, %v6944_v3  ;;  %v6987_v51 = vadd.f32 %v7614_v50, %v6979_v7 }
0x2e76   :  { %v6980_v1 = vmul.f32 %v7613_v47, %v6972_v23 }
0x2e77   :  { %v9379_v20 = vpop.eup %9378 }
0x2e78   :  { %v6973_v46 = vmul.f32 %v9379_v20, %v6945_v5  ;;  %v6988_v53 = vadd.f32 %v7614_v50, %v6980_v1 }
0x2e7a   :  { %v6991_v55 = vpack.c.bf16 %v6988_v53, %v6987_v51  ;;  %v6981_v11 = vmul.f32 %v7613_v47, %v6973_v46 }
0x2e7b   :  { %v9381_v58 = vpop.eup %9380 }
0x2e7c   :  { %v6974_v59 = vmul.f32 %v9381_v58, %v6946_v41  ;;  %8610 = vmatprep.mubr.bf16.mxu0 %v6991_v55  ;;  %v6989_v17 = vadd.f32 %v7614_v50, %v6981_v11 }
0x2e7e   :  { %v6982_v42 = vmul.f32 %v7613_v47, %v6974_v59 }
0x2e80   :  { %v6990_v57 = vadd.f32 %v7614_v50, %v6982_v42 }
0x2e82   :  { %v6992_v29 = vpack.c.bf16 %v6990_v57, %v6989_v17 }
0x2e84   :  { %8611 = vmatmul.mubr.bf16.vlgmr.msra.gmra.mxu0 %v6992_v29 }
0x2f44   :  { %v8612_v14 = vpop.f32.mrf.mxu0 }
0x2f45   :  { %v7089_v13 = vadd.f32 %v8612_v14, %v7615_v9 }
0x2f46   :  { %v7080_v31 = vpop.f32.mrf.mxu0 }
0x2f47   :  { %v7081_v56 = vadd.f32 %v7615_v9, %v7080_v31 }
0x2f48   :  { %v8613_v12 = vpop.f32.mrf.mxu0 }
0x2f49   :  { %7095 = vmax.xlane.f32.xlu1 %v7081_v56  ;;  %v7092_v4 = vadd.f32 %v8613_v12, %v7615_v9 }
0x2f4a   :  { %v7083_v44 = vpop.f32.mrf.mxu0 }
0x2f4b   :  { %v7084_v28 = vadd.f32 %v7615_v9, %v7083_v44 }
0x2f4d   :  { %7097 = vmax.xlane.f32.xlu0 %v7084_v28  ;;  %7099 = vmax.xlane.f32.xlu1 %v7089_v13 }
0x2f51   :  { %7101 = vmax.xlane.f32.xlu0 %v7092_v4 }
0x2fd2   :  { %v7096_v10 = vpop.xlane.xlu1 %7095 }
0x2fd3   :  { %v7103_v32 = vsub.f32 %v7081_v56, %v7096_v10 }
0x2fd5   :  { %v7107_v54 = vmul.f32 1.442695, %v7103_v32 }
0x2fd6   :  { %v7098_v63 = vpop.xlane.xlu0 %7097  ;;  %v7100_v38 = vpop.xlane.xlu1 %7099 }
0x2fd7   :  { %9382 = vpow2.f32 %v7107_v54  ;;  %v7104_v3 = vsub.f32 %v7084_v28, %v7098_v63  ;;  %v7105_v18 = vsub.f32 %v7089_v13, %v7100_v38 }
0x2fd9   :  { %v7109_v45 = vmul.f32 1.442695, %v7104_v3  ;;  %v7111_v22 = vmul.f32 1.442695, %v7105_v18 }
0x2fda   :  { %v7102_v5 = vpop.xlane.xlu0 %7101 }
0x2fdb   :  { %9384 = vpow2.f32 %v7109_v45  ;;  %v7106_v62 = vsub.f32 %v7092_v4, %v7102_v5 }
0x2fdc   :  { %9386 = vpow2.f32 %v7111_v22 }
0x2fdd   :  { %v7113_v2 = vmul.f32 1.442695, %v7106_v62 }
0x2fdf   :  { %9388 = vpow2.f32 %v7113_v2 }
0x2fe4   :  { %v9383_v15 = vpop.eup %9382 }
0x2fe5   :  { %7115 = vadd.xlane.f32.xlu1 %v9383_v15 }
0x2fe8   :  { %v9385_v41 = vpop.eup %9384 }
0x2fe9   :  { %v9387_v21 = vpop.eup %9386  ;;  %7117 = vadd.xlane.f32.xlu0 %v9385_v41 }
0x2fea   :  { %7119 = vadd.xlane.f32.xlu1 %v9387_v21 }
0x2fec   :  { %v9389_v26 = vpop.eup %9388 }
0x2fed   :  { %7121 = vadd.xlane.f32.xlu0 %v9389_v26 }
0x306e   :  { %v7116_v39 = vpop.xlane.xlu1 %7115 }
0x306f   :  { %9390 = vlog2.f32 %v7116_v39 }
0x3072   :  { %v7118_v27 = vpop.xlane.xlu0 %7117 }
0x3073   :  { %9392 = vlog2.f32 %v7118_v27  ;;  %v7120_v25 = vpop.xlane.xlu1 %7119 }
0x3074   :  { %9394 = vlog2.f32 %v7120_v25 }
0x3076   :  { %v7122_v35 = vpop.xlane.xlu0 %7121 }
0x3077   :  { %9396 = vlog2.f32 %v7122_v35 }
0x307c   :  { %v9391_v34 = vpop.eup %9390 }
0x307d   :  { %v7124_v40 = vmul.f32 0.6931472, %v9391_v34 }
0x307f   :  { %v7131_v24 = vsub.f32 %v7103_v32, %v7124_v40 }
0x3080   :  { %v9393_v43 = vpop.eup %9392 }
0x3081   :  { %v9395_v36 = vpop.eup %9394  ;;  %7135 = vst [vmem:[#allocation13] sm:$0xff] %v7131_v24  ;;  %v7126_v0 = vmul.f32 0.6931472, %v9393_v43 }
0x3082   :  { %v7128_v60 = vmul.f32 0.6931472, %v9395_v36 }
0x3083   :  { %v7132_v30 = vsub.f32 %v7104_v3, %v7126_v0 }
0x3084   :  { %v9397_v19 = vpop.eup %9396  ;;  %v7133_v8 = vsub.f32 %v7105_v18, %v7128_v60 }
0x3085   :  { %7136 = vst [vmem:[#allocation13 + $0x8] sm:$0xff] %v7132_v30  ;;  %v7130_v61 = vmul.f32 0.6931472, %v9397_v19 }
0x3086   :  { %7137 = vst [vmem:[#allocation13 + $0x10] sm:$0xff] %v7133_v8 }
0x3087   :  { %v7134_v52 = vsub.f32 %v7106_v62, %v7130_v61 }
0x3089   :  { %7138 = vst [vmem:[#allocation13 + $0x18] sm:$0xff] %v7134_v52 }
0x308a   :  { %9601 = shalt.err (!%p9598_p6)
}
0x308b   :  { %7150 = dma.vmem_to_hbm [thread:$0]  %s7145_s11, 512, %s10721_s10, [#allocation4], %s9625_s27, %s9625_s27, %s9626_s28  }
0x308c   :  { %9618 = dma.done.wait [#allocation4], 512  }
0x308d   :  { %9619 = vsyncadd [#allocation4], 4294966784 }
0x308e   :  { %7154 = vsyncpa [#allocation3], 1 }
0x308f   :  { %7155 = vsyncpa [#allocation6], 1 }
0x3090   :  { %7156 = vsyncpa [#allocation9], 1 }
0x3091   :  { %7157 = vsyncpa [#allocation12], 1 }
0x3092   :  { %7158 = vsyncpa [#allocation4], 1 }

</bundles_post_ra>
